<compile_context>
chip_gen: v7x
topology: tpu7x:2x2x1
jax: 0.10.0
libtpu: 0.0.40
codegen_flags: <defaults>
</compile_context>

<pallas_src>
import functools
import math

import jax
import jax.numpy as jnp
from jax.experimental import pallas as pl
from jax.experimental.pallas import tpu as pltpu

NEG_SLOPE = 0.01  # torch.nn.LeakyReLU default negative_slope


def _leaky_relu(x):
    # maximum(x, a*x) == LeakyReLU(x) for 0 < a < 1; 2 VALU ops vs 3 for where().
    return jnp.maximum(x, NEG_SLOPE * x)


def _use_bf16_activations():
    """bf16 VALU exists on v6e/v7x; keep f32 activations on v5x and older."""
    try:
        kind = jax.devices()[0].device_kind.lower()
    except Exception:
        return True
    return not any(tag in kind for tag in ("v2", "v3", "v4", "v5"))


def mlp_kernel(x_ref,
               w1_ref, b1_ref,
               w2_ref, b2_ref,
               w3_ref, b3_ref,
               w4_ref, b4_ref,
               o_ref, *, bf16_act):
    # x tile: [tile_b, 37] f32. Big weights are bf16; dots accumulate in f32.
    x = x_ref[...].astype(jnp.bfloat16)

    if bf16_act:
        # Packed-bf16 activation chain (halves VALU vreg count on v6e/v7x).
        def act(h):
            return _leaky_relu(h.astype(jnp.bfloat16))
    else:
        # f32 activation, single cast for the next MXU operand (v5e path).
        def act(h):
            return _leaky_relu(h).astype(jnp.bfloat16)

    h = act(jnp.dot(x, w1_ref[...], preferred_element_type=jnp.float32)
            + b1_ref[...])
    h = act(jnp.dot(h, w2_ref[...], preferred_element_type=jnp.float32)
            + b2_ref[...])
    h = _leaky_relu(jnp.dot(h, w3_ref[...], preferred_element_type=jnp.float32)
                    + b3_ref[...])                      # f32, [tile_b, 200]

    # fc4: N=1 output -> VPU multiply + lane reduction (MXU would waste the
    # whole 128/256-wide result path on a single output column).
    z = jnp.sum(h * w4_ref[...], axis=-1, keepdims=True) + b4_ref[...]

    # Sigmoid: exp and reciprocal both go to the otherwise-idle EUP slot.
    o_ref[...] = pl.reciprocal(1.0 + jnp.exp(-z), approx=True)


def _pick_batch_tile(batch, max_tile):
    """Adaptive tile: smallest multiple-of-8 tile that covers B in
    ceil(B / max_tile) tiles (minimizes padded garbage rows)."""
    max_tile = max(8, (max_tile // 8) * 8)
    num_tiles = pl.cdiv(batch, max_tile)
    tile = ((pl.cdiv(batch, num_tiles) + 7) // 8) * 8
    return min(tile, max_tile)


def _resident_spec(arr, single_buffer):
    # Full-extent block whose index never changes -> weights DMA'd to VMEM once
    # and kept resident across all batch tiles. All weights/biases are 2-D.
    if single_buffer:
        return pl.BlockSpec(arr.shape, lambda i: (0, 0),
                            pipeline_mode=pl.Buffered(1))
    return pl.BlockSpec(arr.shape, lambda i: (0, 0))


def net_forward(x, params, *, max_batch_tile=512):
    """Fused MLP forward. x: [B, 37] f32 -> [B, 1] f32 in (0, 1)."""
    batch, k_in = x.shape
    bf16_act = _use_bf16_activations()

    tile_b = _pick_batch_tile(batch, max_batch_tile)
    padded_b = pl.cdiv(batch, tile_b) * tile_b
    if padded_b != batch:
        x = jnp.pad(x, ((0, padded_b - batch), (0, 0)))
    grid = (padded_b // tile_b,)

    kernel = functools.partial(mlp_kernel, bf16_act=bf16_act)
    out = None
    last_err = None
    # Try single-buffered resident weights first (saves ~2.5 MB VMEM); fall
    # back to default buffering if this jax/Mosaic build rejects Buffered(1).
    for single_buffer in (True, False):
        in_specs = [pl.BlockSpec((tile_b, k_in), lambda i: (i, 0))]  # streamed x
        in_specs += [_resident_spec(p, single_buffer) for p in params]
        try:
            out = pl.pallas_call(
                kernel,
                out_shape=jax.ShapeDtypeStruct((padded_b, 1), jnp.float32),
                grid=grid,
                in_specs=in_specs,
                out_specs=pl.BlockSpec((tile_b, 1), lambda i: (i, 0)),
                compiler_params=pltpu.CompilerParams(
                    # Batch tiles are independent -> shard over v7x's 2 TCs
                    # whenever grid >= 2 (no-op otherwise).
                    dimension_semantics=("parallel",),
                    # Explicit headroom: above v5e's 16 MiB / v6e's 32 MiB
                    # scoped defaults, below v7x's 64 MiB physical VMEM.
                    vmem_limit_bytes=48 * 1024 * 1024),
            )(x, *params)
            break
        except Exception as e:  # pragma: no cover - Buffered(1) unsupported
            last_err = e
            out = None
    if out is None:
        raise last_err

    return out[:batch]


def init_params(key):
    """Deterministic init mimicking PyTorch Linear default
    (uniform +/- 1/sqrt(fan_in)).

    Returns (kernel_params, f32_params):
      kernel_params: w1/w2/w3 pre-transposed to [in, out] bf16, w4 as a
                     lane-dense [1, 200] f32 row, biases [1, out] f32.
      f32_params:    same layout but every weight kept in f32 (accuracy ref)."""
    dims = [(37, 1000), (1000, 1000), (1000, 200), (200, 1)]
    kparams, fparams = [], []
    for li, (fan_in, fan_out) in enumerate(dims):
        key, kw, kb = jax.random.split(key, 3)
        bound = 1.0 / math.sqrt(fan_in)
        w = jax.random.uniform(kw, (fan_in, fan_out), jnp.float32, -bound, bound)
        b = jax.random.uniform(kb, (1, fan_out), jnp.float32, -bound, bound)
        if li == 3:
            w = w.reshape(1, fan_in)            # fc4 weight as a [1, 200] row
            wk = w
        else:
            wk = w.astype(jnp.bfloat16)         # bf16 weights -> half the HBM DMA
        kparams.extend([wk, b])
        fparams.extend([w, b])
    return tuple(kparams), tuple(fparams)


def reference_forward(x, params, *, bf16_act):
    """Pure-JAX reference with the same bf16 compute contract as the kernel."""
    (w1, b1, w2, b2, w3, b3, w4, b4) = params
    if bf16_act:
        act = lambda h: _leaky_relu(h.astype(jnp.bfloat16))
    else:
        act = lambda h: _leaky_relu(h).astype(jnp.bfloat16)
    h = act(jnp.dot(x.astype(jnp.bfloat16), w1,
                    preferred_element_type=jnp.float32) + b1)
    h = act(jnp.dot(h, w2, preferred_element_type=jnp.float32) + b2)
    h = _leaky_relu(jnp.dot(h, w3, preferred_element_type=jnp.float32) + b3)
    z = jnp.sum(h * w4, axis=-1, keepdims=True) + b4
    return 1.0 / (1.0 + jnp.exp(-z))


def reference_forward_f32(x, params_f32):
    """Full-precision reference matching the original PyTorch Net exactly."""
    (w1, b1, w2, b2, w3, b3, w4, b4) = params_f32
    h = _leaky_relu(x @ w1 + b1)
    h = _leaky_relu(h @ w2 + b2)
    h = _leaky_relu(h @ w3 + b3)
    z = jnp.sum(h * w4, axis=-1, keepdims=True) + b4
    return jax.nn.sigmoid(z)


if __name__ == "__main__":
    key = jax.random.PRNGKey(0)
    key, kx1, kx2 = jax.random.split(key, 3)
    params, params_f32 = init_params(key)
    bf16_act = _use_bf16_activations()

    # Small-batch case (matches the module's typical per-sample use).
    batch = 8
    x = jax.random.normal(kx1, (batch, 37), dtype=jnp.float32)
    out = jax.block_until_ready(net_forward(x, params))
    assert out.shape == (batch, 1), out.shape
    ref = reference_forward(x, params, bf16_act=bf16_act)
    assert jnp.allclose(out, ref, atol=2e-3, rtol=2e-2), "mismatch vs bf16 reference"
    # Also check against the true f32 Net (bf16 quantization accuracy guard).
    ref32 = reference_forward_f32(x, params_f32)
    assert jnp.allclose(out, ref32, atol=5e-2), "drifted from f32 reference"

    # Multi-tile case: exercises padding, the adaptive tile and grid >= 2.
    batch2 = 600
    x2 = jax.random.normal(kx2, (batch2, 37), dtype=jnp.float32)
    out2 = jax.block_until_ready(net_forward(x2, params))
    assert out2.shape == (batch2, 1), out2.shape
    ref2 = reference_forward(x2, params, bf16_act=bf16_act)
    assert jnp.allclose(out2, ref2, atol=2e-3, rtol=2e-2), "mismatch (multi-tile)"

    print("KERNEL_OK")
</pallas_src>

<mosaic_0001>
module attributes {stable_mosaic.version = 11 : i64} {
  func.func @mlp_kernel(%arg0: i32, %arg1: memref<8x37xf32, #tpu.memory_space<vmem>>, %arg2: memref<37x1000xbf16, #tpu.memory_space<vmem>>, %arg3: memref<1x1000xf32, #tpu.memory_space<vmem>>, %arg4: memref<1000x1000xbf16, #tpu.memory_space<vmem>>, %arg5: memref<1x1000xf32, #tpu.memory_space<vmem>>, %arg6: memref<1000x200xbf16, #tpu.memory_space<vmem>>, %arg7: memref<1x200xf32, #tpu.memory_space<vmem>>, %arg8: memref<1x200xf32, #tpu.memory_space<vmem>>, %arg9: memref<1x1xf32, #tpu.memory_space<vmem>>, %arg10: memref<8x1xf32, #tpu.memory_space<vmem>>) attributes {dimension_semantics = [#tpu.dimension_semantics<parallel>], iteration_bounds = array<i64: 1>, scalar_prefetch = 0 : i64, scratch_operands = 0 : i64, tpu.core_type = #tpu.core_type<tc>, window_params = [{transform_indices = @transform_0, window_bounds = array<i64: 8, 37>}, {pipeline_mode = #tpu.pipeline_mode<synchronous>, transform_indices = @transform_1, window_bounds = array<i64: 37, 1000>}, {pipeline_mode = #tpu.pipeline_mode<synchronous>, transform_indices = @transform_2, window_bounds = array<i64: 1, 1000>}, {pipeline_mode = #tpu.pipeline_mode<synchronous>, transform_indices = @transform_3, window_bounds = array<i64: 1000, 1000>}, {pipeline_mode = #tpu.pipeline_mode<synchronous>, transform_indices = @transform_4, window_bounds = array<i64: 1, 1000>}, {pipeline_mode = #tpu.pipeline_mode<synchronous>, transform_indices = @transform_5, window_bounds = array<i64: 1000, 200>}, {pipeline_mode = #tpu.pipeline_mode<synchronous>, transform_indices = @transform_6, window_bounds = array<i64: 1, 200>}, {pipeline_mode = #tpu.pipeline_mode<synchronous>, transform_indices = @transform_7, window_bounds = array<i64: 1, 200>}, {pipeline_mode = #tpu.pipeline_mode<synchronous>, transform_indices = @transform_8, window_bounds = array<i64: 1, 1>}, {transform_indices = @transform_9, window_bounds = array<i64: 8, 1>}]} {
    %c0 = arith.constant 0 : index
    %c0_0 = arith.constant 0 : index
    %0 = vector.load %arg1[%c0, %c0_0] : memref<8x37xf32, #tpu.memory_space<vmem>>, vector<8x37xf32>
    %1 = arith.truncf %0 : vector<8x37xf32> to vector<8x37xbf16>
    %c0_1 = arith.constant 0 : index
    %c0_2 = arith.constant 0 : index
    %2 = vector.load %arg2[%c0_1, %c0_2] : memref<37x1000xbf16, #tpu.memory_space<vmem>>, vector<37x1000xbf16>
    %cst = arith.constant dense<0.000000e+00> : vector<8x1000xf32>
    %3 = tpu.matmul %1, %2, %cst {dimension_numbers = #tpu.dot_dimension_numbers<[1], [0], [0], [1], [0, 0, 1, 1], [], []>} : vector<8x37xbf16>, vector<37x1000xbf16>, vector<8x1000xf32> -> vector<8x1000xf32>
    %c0_3 = arith.constant 0 : index
    %c0_4 = arith.constant 0 : index
    %4 = vector.load %arg3[%c0_3, %c0_4] : memref<1x1000xf32, #tpu.memory_space<vmem>>, vector<1x1000xf32>
    %5 = vector.broadcast %4 : vector<1x1000xf32> to vector<8x1000xf32>
    %6 = arith.addf %3, %5 : vector<8x1000xf32>
    %7 = arith.truncf %6 : vector<8x1000xf32> to vector<8x1000xbf16>
    %cst_5 = arith.constant 1.000980e-02 : bf16
    %8 = vector.broadcast %cst_5 : bf16 to vector<8x1000xbf16>
    %9 = arith.mulf %8, %7 : vector<8x1000xbf16>
    %10 = arith.maximumf %7, %9 : vector<8x1000xbf16>
    %c0_6 = arith.constant 0 : index
    %c0_7 = arith.constant 0 : index
    %11 = vector.load %arg4[%c0_6, %c0_7] : memref<1000x1000xbf16, #tpu.memory_space<vmem>>, vector<1000x1000xbf16>
    %cst_8 = arith.constant dense<0.000000e+00> : vector<8x1000xf32>
    %12 = tpu.matmul %10, %11, %cst_8 {dimension_numbers = #tpu.dot_dimension_numbers<[1], [0], [0], [1], [0, 0, 1, 1], [], []>} : vector<8x1000xbf16>, vector<1000x1000xbf16>, vector<8x1000xf32> -> vector<8x1000xf32>
    %c0_9 = arith.constant 0 : index
    %c0_10 = arith.constant 0 : index
    %13 = vector.load %arg5[%c0_9, %c0_10] : memref<1x1000xf32, #tpu.memory_space<vmem>>, vector<1x1000xf32>
    %14 = vector.broadcast %13 : vector<1x1000xf32> to vector<8x1000xf32>
    %15 = arith.addf %12, %14 : vector<8x1000xf32>
    %16 = arith.truncf %15 : vector<8x1000xf32> to vector<8x1000xbf16>
    %cst_11 = arith.constant 1.000980e-02 : bf16
    %17 = vector.broadcast %cst_11 : bf16 to vector<8x1000xbf16>
    %18 = arith.mulf %17, %16 : vector<8x1000xbf16>
    %19 = arith.maximumf %16, %18 : vector<8x1000xbf16>
    %c0_12 = arith.constant 0 : index
    %c0_13 = arith.constant 0 : index
    %20 = vector.load %arg6[%c0_12, %c0_13] : memref<1000x200xbf16, #tpu.memory_space<vmem>>, vector<1000x200xbf16>
    %cst_14 = arith.constant dense<0.000000e+00> : vector<8x200xf32>
    %21 = tpu.matmul %19, %20, %cst_14 {dimension_numbers = #tpu.dot_dimension_numbers<[1], [0], [0], [1], [0, 0, 1, 1], [], []>} : vector<8x1000xbf16>, vector<1000x200xbf16>, vector<8x200xf32> -> vector<8x200xf32>
    %c0_15 = arith.constant 0 : index
    %c0_16 = arith.constant 0 : index
    %22 = vector.load %arg7[%c0_15, %c0_16] : memref<1x200xf32, #tpu.memory_space<vmem>>, vector<1x200xf32>
    %23 = vector.broadcast %22 : vector<1x200xf32> to vector<8x200xf32>
    %24 = arith.addf %21, %23 : vector<8x200xf32>
    %cst_17 = arith.constant 0.00999999977 : f32
    %25 = vector.broadcast %cst_17 : f32 to vector<8x200xf32>
    %26 = arith.mulf %25, %24 : vector<8x200xf32>
    %27 = arith.maximumf %24, %26 : vector<8x200xf32>
    %c0_18 = arith.constant 0 : index
    %c0_19 = arith.constant 0 : index
    %28 = vector.load %arg8[%c0_18, %c0_19] : memref<1x200xf32, #tpu.memory_space<vmem>>, vector<1x200xf32>
    %29 = vector.broadcast %28 : vector<1x200xf32> to vector<8x200xf32>
    %30 = arith.mulf %27, %29 : vector<8x200xf32>
    %cst_20 = arith.constant dense<0.000000e+00> : vector<8xf32>
    %31 = vector.multi_reduction <add>, %30, %cst_20 [1] : vector<8x200xf32> to vector<8xf32>
    %32 = vector.shape_cast %31 : vector<8xf32> to vector<8x1xf32>
    %c0_21 = arith.constant 0 : index
    %c0_22 = arith.constant 0 : index
    %33 = vector.load %arg9[%c0_21, %c0_22] : memref<1x1xf32, #tpu.memory_space<vmem>>, vector<1x1xf32>
    %34 = vector.broadcast %33 : vector<1x1xf32> to vector<8x1xf32>
    %35 = arith.addf %32, %34 : vector<8x1xf32>
    %cst_23 = arith.constant 0.000000e+00 : f32
    %36 = vector.broadcast %cst_23 : f32 to vector<8x1xf32>
    %37 = arith.subf %36, %35 : vector<8x1xf32>
    %38 = math.exp %37 : vector<8x1xf32>
    %cst_24 = arith.constant 1.000000e+00 : f32
    %39 = vector.broadcast %cst_24 : f32 to vector<8x1xf32>
    %40 = arith.addf %39, %38 : vector<8x1xf32>
    %41 = tpu.reciprocal %40 {approx = true} : vector<8x1xf32> -> vector<8x1xf32>
    %c0_25 = arith.constant 0 : index
    %c0_26 = arith.constant 0 : index
    %42 = vector.load %arg10[%c0_25, %c0_26] : memref<8x1xf32, #tpu.memory_space<vmem>>, vector<8x1xf32>
    tpu.vector_store %arg10[%c0_25, %c0_26], %41 {strides = array<i32>} : memref<8x1xf32, #tpu.memory_space<vmem>>, vector<8x1xf32>,
    return
  }
  func.func @transform_0(%arg0: i32) -> (i32, i32) {
    %c0_i32 = arith.constant 0 : i32
    %c0_i32_0 = arith.constant 0 : i32
    return %arg0, %c0_i32 : i32, i32
  }
  func.func @transform_1(%arg0: i32) -> (i32, i32) {
    %c0_i32 = arith.constant 0 : i32
    %c0_i32_0 = arith.constant 0 : i32
    %c0_i32_1 = arith.constant 0 : i32
    return %c0_i32, %c0_i32_0 : i32, i32
  }
  func.func @transform_2(%arg0: i32) -> (i32, i32) {
    %c0_i32 = arith.constant 0 : i32
    %c0_i32_0 = arith.constant 0 : i32
    %c0_i32_1 = arith.constant 0 : i32
    return %c0_i32, %c0_i32_0 : i32, i32
  }
  func.func @transform_3(%arg0: i32) -> (i32, i32) {
    %c0_i32 = arith.constant 0 : i32
    %c0_i32_0 = arith.constant 0 : i32
    %c0_i32_1 = arith.constant 0 : i32
    return %c0_i32, %c0_i32_0 : i32, i32
  }
  func.func @transform_4(%arg0: i32) -> (i32, i32) {
    %c0_i32 = arith.constant 0 : i32
    %c0_i32_0 = arith.constant 0 : i32
    %c0_i32_1 = arith.constant 0 : i32
    return %c0_i32, %c0_i32_0 : i32, i32
  }
  func.func @transform_5(%arg0: i32) -> (i32, i32) {
    %c0_i32 = arith.constant 0 : i32
    %c0_i32_0 = arith.constant 0 : i32
    %c0_i32_1 = arith.constant 0 : i32
    return %c0_i32, %c0_i32_0 : i32, i32
  }
  func.func @transform_6(%arg0: i32) -> (i32, i32) {
    %c0_i32 = arith.constant 0 : i32
    %c0_i32_0 = arith.constant 0 : i32
    %c0_i32_1 = arith.constant 0 : i32
    return %c0_i32, %c0_i32_0 : i32, i32
  }
  func.func @transform_7(%arg0: i32) -> (i32, i32) {
    %c0_i32 = arith.constant 0 : i32
    %c0_i32_0 = arith.constant 0 : i32
    %c0_i32_1 = arith.constant 0 : i32
    return %c0_i32, %c0_i32_0 : i32, i32
  }
  func.func @transform_8(%arg0: i32) -> (i32, i32) {
    %c0_i32 = arith.constant 0 : i32
    %c0_i32_0 = arith.constant 0 : i32
    %c0_i32_1 = arith.constant 0 : i32
    return %c0_i32, %c0_i32_0 : i32, i32
  }
  func.func @transform_9(%arg0: i32) -> (i32, i32) {
    %c0_i32 = arith.constant 0 : i32
    %c0_i32_0 = arith.constant 0 : i32
    return %arg0, %c0_i32 : i32, i32
  }
}

module attributes {stable_mosaic.version = 11 : i64} {
  func.func @mlp_kernel(%arg0: i32, %arg1: memref<8x37xf32, #tpu.memory_space<vmem>>, %arg2: memref<37x1000xbf16, #tpu.memory_space<vmem>>, %arg3: memref<1x1000xf32, #tpu.memory_space<vmem>>, %arg4: memref<1000x1000xbf16, #tpu.memory_space<vmem>>, %arg5: memref<1x1000xf32, #tpu.memory_space<vmem>>, %arg6: memref<1000x200xbf16, #tpu.memory_space<vmem>>, %arg7: memref<1x200xf32, #tpu.memory_space<vmem>>, %arg8: memref<1x200xf32, #tpu.memory_space<vmem>>, %arg9: memref<1x1xf32, #tpu.memory_space<vmem>>, %arg10: memref<8x1xf32, #tpu.memory_space<vmem>>) attributes {dimension_semantics = [#tpu.dimension_semantics<parallel>], iteration_bounds = array<i64: 1>, scalar_prefetch = 0 : i64, scratch_operands = 0 : i64, tpu.core_type = #tpu.core_type<tc>, window_params = [{transform_indices = @transform_0, window_bounds = array<i64: 8, 37>}, {pipeline_mode = #tpu.pipeline_mode<synchronous>, transform_indices = @transform_1, window_bounds = array<i64: 37, 1000>}, {pipeline_mode = #tpu.pipeline_mode<synchronous>, transform_indices = @transform_2, window_bounds = array<i64: 1, 1000>}, {pipeline_mode = #tpu.pipeline_mode<synchronous>, transform_indices = @transform_3, window_bounds = array<i64: 1000, 1000>}, {pipeline_mode = #tpu.pipeline_mode<synchronous>, transform_indices = @transform_4, window_bounds = array<i64: 1, 1000>}, {pipeline_mode = #tpu.pipeline_mode<synchronous>, transform_indices = @transform_5, window_bounds = array<i64: 1000, 200>}, {pipeline_mode = #tpu.pipeline_mode<synchronous>, transform_indices = @transform_6, window_bounds = array<i64: 1, 200>}, {pipeline_mode = #tpu.pipeline_mode<synchronous>, transform_indices = @transform_7, window_bounds = array<i64: 1, 200>}, {pipeline_mode = #tpu.pipeline_mode<synchronous>, transform_indices = @transform_8, window_bounds = array<i64: 1, 1>}, {transform_indices = @transform_9, window_bounds = array<i64: 8, 1>}]} {
    %c0 = arith.constant 0 : index
    %c0_0 = arith.constant 0 : index
    %0 = vector.load %arg1[%c0, %c0_0] : memref<8x37xf32, #tpu.memory_space<vmem>>, vector<8x37xf32>
    %1 = arith.truncf %0 : vector<8x37xf32> to vector<8x37xbf16>
    %c0_1 = arith.constant 0 : index
    %c0_2 = arith.constant 0 : index
    %2 = vector.load %arg2[%c0_1, %c0_2] : memref<37x1000xbf16, #tpu.memory_space<vmem>>, vector<37x1000xbf16>
    %cst = arith.constant dense<0.000000e+00> : vector<8x1000xf32>
    %3 = tpu.matmul %1, %2, %cst {dimension_numbers = #tpu.dot_dimension_numbers<[1], [0], [0], [1], [0, 0, 1, 1], [], []>} : vector<8x37xbf16>, vector<37x1000xbf16>, vector<8x1000xf32> -> vector<8x1000xf32>
    %c0_3 = arith.constant 0 : index
    %c0_4 = arith.constant 0 : index
    %4 = vector.load %arg3[%c0_3, %c0_4] : memref<1x1000xf32, #tpu.memory_space<vmem>>, vector<1x1000xf32>
    %5 = vector.broadcast %4 : vector<1x1000xf32> to vector<8x1000xf32>
    %6 = arith.addf %3, %5 : vector<8x1000xf32>
    %7 = arith.truncf %6 : vector<8x1000xf32> to vector<8x1000xbf16>
    %cst_5 = arith.constant 1.000980e-02 : bf16
    %8 = vector.broadcast %cst_5 : bf16 to vector<8x1000xbf16>
    %9 = arith.mulf %8, %7 : vector<8x1000xbf16>
    %10 = arith.maximumf %7, %9 : vector<8x1000xbf16>
    %c0_6 = arith.constant 0 : index
    %c0_7 = arith.constant 0 : index
    %11 = vector.load %arg4[%c0_6, %c0_7] : memref<1000x1000xbf16, #tpu.memory_space<vmem>>, vector<1000x1000xbf16>
    %cst_8 = arith.constant dense<0.000000e+00> : vector<8x1000xf32>
    %12 = tpu.matmul %10, %11, %cst_8 {dimension_numbers = #tpu.dot_dimension_numbers<[1], [0], [0], [1], [0, 0, 1, 1], [], []>} : vector<8x1000xbf16>, vector<1000x1000xbf16>, vector<8x1000xf32> -> vector<8x1000xf32>
    %c0_9 = arith.constant 0 : index
    %c0_10 = arith.constant 0 : index
    %13 = vector.load %arg5[%c0_9, %c0_10] : memref<1x1000xf32, #tpu.memory_space<vmem>>, vector<1x1000xf32>
    %14 = vector.broadcast %13 : vector<1x1000xf32> to vector<8x1000xf32>
    %15 = arith.addf %12, %14 : vector<8x1000xf32>
    %16 = arith.truncf %15 : vector<8x1000xf32> to vector<8x1000xbf16>
    %cst_11 = arith.constant 1.000980e-02 : bf16
    %17 = vector.broadcast %cst_11 : bf16 to vector<8x1000xbf16>
    %18 = arith.mulf %17, %16 : vector<8x1000xbf16>
    %19 = arith.maximumf %16, %18 : vector<8x1000xbf16>
    %c0_12 = arith.constant 0 : index
    %c0_13 = arith.constant 0 : index
    %20 = vector.load %arg6[%c0_12, %c0_13] : memref<1000x200xbf16, #tpu.memory_space<vmem>>, vector<1000x200xbf16>
    %cst_14 = arith.constant dense<0.000000e+00> : vector<8x200xf32>
    %21 = tpu.matmul %19, %20, %cst_14 {dimension_numbers = #tpu.dot_dimension_numbers<[1], [0], [0], [1], [0, 0, 1, 1], [], []>} : vector<8x1000xbf16>, vector<1000x200xbf16>, vector<8x200xf32> -> vector<8x200xf32>
    %c0_15 = arith.constant 0 : index
    %c0_16 = arith.constant 0 : index
    %22 = vector.load %arg7[%c0_15, %c0_16] : memref<1x200xf32, #tpu.memory_space<vmem>>, vector<1x200xf32>
    %23 = vector.broadcast %22 : vector<1x200xf32> to vector<8x200xf32>
    %24 = arith.addf %21, %23 : vector<8x200xf32>
    %cst_17 = arith.constant 0.00999999977 : f32
    %25 = vector.broadcast %cst_17 : f32 to vector<8x200xf32>
    %26 = arith.mulf %25, %24 : vector<8x200xf32>
    %27 = arith.maximumf %24, %26 : vector<8x200xf32>
    %c0_18 = arith.constant 0 : index
    %c0_19 = arith.constant 0 : index
    %28 = vector.load %arg8[%c0_18, %c0_19] : memref<1x200xf32, #tpu.memory_space<vmem>>, vector<1x200xf32>
    %29 = vector.broadcast %28 : vector<1x200xf32> to vector<8x200xf32>
    %30 = arith.mulf %27, %29 : vector<8x200xf32>
    %cst_20 = arith.constant dense<0.000000e+00> : vector<8xf32>
    %31 = vector.multi_reduction <add>, %30, %cst_20 [1] : vector<8x200xf32> to vector<8xf32>
    %32 = vector.shape_cast %31 : vector<8xf32> to vector<8x1xf32>
    %c0_21 = arith.constant 0 : index
    %c0_22 = arith.constant 0 : index
    %33 = vector.load %arg9[%c0_21, %c0_22] : memref<1x1xf32, #tpu.memory_space<vmem>>, vector<1x1xf32>
    %34 = vector.broadcast %33 : vector<1x1xf32> to vector<8x1xf32>
    %35 = arith.addf %32, %34 : vector<8x1xf32>
    %cst_23 = arith.constant 0.000000e+00 : f32
    %36 = vector.broadcast %cst_23 : f32 to vector<8x1xf32>
    %37 = arith.subf %36, %35 : vector<8x1xf32>
    %38 = math.exp %37 : vector<8x1xf32>
    %cst_24 = arith.constant 1.000000e+00 : f32
    %39 = vector.broadcast %cst_24 : f32 to vector<8x1xf32>
    %40 = arith.addf %39, %38 : vector<8x1xf32>
    %41 = tpu.reciprocal %40 {approx = true} : vector<8x1xf32> -> vector<8x1xf32>
    %c0_25 = arith.constant 0 : index
    %c0_26 = arith.constant 0 : index
    %42 = vector.load %arg10[%c0_25, %c0_26] : memref<8x1xf32, #tpu.memory_space<vmem>>, vector<8x1xf32>
    tpu.vector_store %arg10[%c0_25, %c0_26], %41 {strides = array<i32>} : memref<8x1xf32, #tpu.memory_space<vmem>>, vector<8x1xf32>,
    return
  }
  func.func @transform_0(%arg0: i32) -> (i32, i32) {
    %c0_i32 = arith.constant 0 : i32
    %c0_i32_0 = arith.constant 0 : i32
    return %arg0, %c0_i32 : i32, i32
  }
  func.func @transform_1(%arg0: i32) -> (i32, i32) {
    %c0_i32 = arith.constant 0 : i32
    %c0_i32_0 = arith.constant 0 : i32
    %c0_i32_1 = arith.constant 0 : i32
    return %c0_i32, %c0_i32_0 : i32, i32
  }
  func.func @transform_2(%arg0: i32) -> (i32, i32) {
    %c0_i32 = arith.constant 0 : i32
    %c0_i32_0 = arith.constant 0 : i32
    %c0_i32_1 = arith.constant 0 : i32
    return %c0_i32, %c0_i32_0 : i32, i32
  }
  func.func @transform_3(%arg0: i32) -> (i32, i32) {
    %c0_i32 = arith.constant 0 : i32
    %c0_i32_0 = arith.constant 0 : i32
    %c0_i32_1 = arith.constant 0 : i32
    return %c0_i32, %c0_i32_0 : i32, i32
  }
  func.func @transform_4(%arg0: i32) -> (i32, i32) {
    %c0_i32 = arith.constant 0 : i32
    %c0_i32_0 = arith.constant 0 : i32
    %c0_i32_1 = arith.constant 0 : i32
    return %c0_i32, %c0_i32_0 : i32, i32
  }
  func.func @transform_5(%arg0: i32) -> (i32, i32) {
    %c0_i32 = arith.constant 0 : i32
    %c0_i32_0 = arith.constant 0 : i32
    %c0_i32_1 = arith.constant 0 : i32
    return %c0_i32, %c0_i32_0 : i32, i32
  }
  func.func @transform_6(%arg0: i32) -> (i32, i32) {
    %c0_i32 = arith.constant 0 : i32
    %c0_i32_0 = arith.constant 0 : i32
    %c0_i32_1 = arith.constant 0 : i32
    return %c0_i32, %c0_i32_0 : i32, i32
  }
  func.func @transform_7(%arg0: i32) -> (i32, i32) {
    %c0_i32 = arith.constant 0 : i32
    %c0_i32_0 = arith.constant 0 : i32
    %c0_i32_1 = arith.constant 0 : i32
    return %c0_i32, %c0_i32_0 : i32, i32
  }
  func.func @transform_8(%arg0: i32) -> (i32, i32) {
    %c0_i32 = arith.constant 0 : i32
    %c0_i32_0 = arith.constant 0 : i32
    %c0_i32_1 = arith.constant 0 : i32
    return %c0_i32, %c0_i32_0 : i32, i32
  }
  func.func @transform_9(%arg0: i32) -> (i32, i32) {
    %c0_i32 = arith.constant 0 : i32
    %c0_i32_0 = arith.constant 0 : i32
    return %arg0, %c0_i32 : i32, i32
  }
}

</mosaic_0001>

<bundles_post_ra>
// kernel: tpu_custom_call.1
= control target key start
LH: loop header
LB: loop body
LE: loop exit
PB: predicated region body
PF: predicated region fallthrough
CT: control target
= control target key end

     0   :  { %s7069_s0 = inlined_call_operand.hbm [shape: f32[8,37], index: 0, kind: input, shape index: {}]   ;;  %s7070_s1 = inlined_call_operand.hbm [shape: bf16[37,1000], index: 1, kind: input, shape index: {}]   ;;  %s7071_s2 = inlined_call_operand.hbm [shape: f32[1,1000], index: 2, kind: input, shape index: {}]   ;;  %s7072_s3 = inlined_call_operand.hbm [shape: bf16[1000,1000], index: 3, kind: input, shape index: {}]   ;;  %s7073_s4 = inlined_call_operand.hbm [shape: f32[1,1000], index: 4, kind: input, shape index: {}]   ;;  %s7074_s5 = inlined_call_operand.vmem [shape: bf16[1000,200], index: 5, kind: input, shape index: {}]   ;;  %s7075_s6 = inlined_call_operand.hbm [shape: f32[1,200], index: 6, kind: input, shape index: {}]   ;;  %s7076_s7 = inlined_call_operand.hbm [shape: f32[1,200], index: 7, kind: input, shape index: {}]   ;;  %s7077_s8 = inlined_call_operand.<no memory space> [shape: f32[1,1], index: 8, kind: input, shape index: {}]   ;;  %s7078_s9 = inlined_call_operand.vmem [shape: f32[8,1], index: 9, kind: output, shape index: {}]  }
   0x1   :  { %v14_v0 = vstv %s7077_s8 }
   0x2   :  { %15 = vst [vmem:[#allocation2] sm:$0x1] %v14_v0 }
   0x3   :  { %16 = vsyncpa [#allocation4], 0 }
   0x4   :  { %17 = vsyncpa [#allocation6], 0 }
   0x5   :  { %18 = vsyncpa [#allocation9], 0 }
   0x6   :  { %19 = vsyncpa [#allocation12], 0  ;;  %s6356_s11 = smov [#allocation5]   ;;  %s6194_s15 = scalar_lea.hbm %s7070_s1, 2560 }
   0x7   :  { %s35_s12 = sshll.u32 %s6356_s11, 4  ;;  %p6195_p0 = scmp.ne.s32.totalorder %s7070_s1, %s6194_s15  ;;  %s36_s12 = int_to_ptr.vmem [resolvable:$true] %s35_s12 }
   0x8   :  { %p6198_p1 = scmp.lt.u32.totalorder %s6194_s15, %s7070_s1 }
   0xa   :  { %p6200_p2 = pnand %p6198_p1, %p6195_p0 }
   0xc   :  { %6203 = shalt.err (!%p6200_p2)
}
   0xd   :  { %s6204_s8 = scalar_lea.vmem %s36_s12, 2560  ;;  %p6209_p4 = scmp.lt.s32.totalorder %s36_s12, %s36_s12 }
   0xe   :  { %p6205_p3 = scmp.ne.s32.totalorder %s36_s12, %s6204_s8  ;;  %p6210_p5 = scmp.lt.s32.totalorder %s6204_s8, %s6204_s8 }
  0x10   :  { %p6211_p6 = por %p6210_p5, %p6209_p4 }
  0x12   :  { %p6212_p7 = pnand %p6211_p6, %p6205_p3 }
  0x14   :  { %6215 = shalt.err (!%p6212_p7)
}
  0x15   :  { %s6357_s20 = smov 512   ;;  %s6358_s21 = smov 32  }
  0x16   :  { %41 = dma.hbm_to_vmem [thread:$0]  %s7070_s1, 2560, %s36_s12, [#allocation6], %s6357_s20, %s6357_s20, %s6358_s21  }
  0x17   :  { %s6359_s24 = smov [#allocation8]   ;;  %s6360_s26 = smov [#allocation11]  }
  0x18   :  { %s57_s25 = sshll.u32 %s6359_s24, 4  ;;  %s82_s27 = sshll.u32 %s6360_s26, 4  ;;  %s58_s25 = int_to_ptr.vmem [resolvable:$true] %s57_s25  ;;  %s83_s27 = int_to_ptr.vmem [resolvable:$true] %s82_s27 }
  0x19   :  { %s6216_s30 = scalar_lea.hbm %s7072_s3, 64000 }
  0x1a   :  { %p6217_p8 = scmp.ne.s32.totalorder %s7072_s3, %s6216_s30  ;;  %p6220_p9 = scmp.lt.u32.totalorder %s6216_s30, %s7072_s3 }
  0x1c   :  { %p6222_p10 = pnand %p6220_p9, %p6217_p8 }
  0x1e   :  { %6225 = shalt.err (!%p6222_p10)
}
  0x1f   :  { %s6226_s1 = scalar_lea.vmem %s58_s25, 64000  ;;  %p6231_p12 = scmp.lt.s32.totalorder %s58_s25, %s58_s25 }
  0x20   :  { %p6227_p11 = scmp.ne.s32.totalorder %s58_s25, %s6226_s1  ;;  %p6232_p13 = scmp.lt.s32.totalorder %s6226_s1, %s6226_s1 }
  0x22   :  { %p6233_p0 = por %p6232_p13, %p6231_p12 }
  0x24   :  { %p6234_p1 = pnand %p6233_p0, %p6227_p11 }
  0x26   :  { %6237 = shalt.err (!%p6234_p1)
}
  0x27   :  { %63 = dma.hbm_to_vmem [thread:$0]  %s7072_s3, 64000, %s58_s25, [#allocation9], %s6357_s20, %s6357_s20, %s6358_s21  }
  0x28   :  { %s6238_s18 = scalar_lea.hbm %s7075_s6, 32 }
  0x29   :  { %p6239_p2 = scmp.ne.s32.totalorder %s7075_s6, %s6238_s18  ;;  %p6242_p3 = scmp.lt.u32.totalorder %s6238_s18, %s7075_s6 }
  0x2b   :  { %p6244_p4 = pnand %p6242_p3, %p6239_p2 }
  0x2d   :  { %6247 = shalt.err (!%p6244_p4)
}
  0x2e   :  { %s6248_s24 = scalar_lea.vmem %s83_s27, 32  ;;  %p6253_p6 = scmp.lt.s32.totalorder %s83_s27, %s83_s27 }
  0x2f   :  { %p6249_p5 = scmp.ne.s32.totalorder %s83_s27, %s6248_s24  ;;  %p6254_p7 = scmp.lt.s32.totalorder %s6248_s24, %s6248_s24 }
  0x31   :  { %p6255_p8 = por %p6254_p7, %p6253_p6 }
  0x33   :  { %p6256_p9 = pnand %p6255_p8, %p6249_p5 }
  0x35   :  { %6259 = shalt.err (!%p6256_p9)
}
  0x36   :  { %85 = dma.hbm_to_vmem [thread:$0]  %s7075_s6, 32, %s83_s27, [#allocation12]  }
  0x37   :  { %s6361_s21 = smov [#allocation3]   ;;  %s6362_s26 = smov [#allocation7]  }
  0x38   :  { %s26_s25 = sshll.u32 %s6361_s21, 4  ;;  %s48_s28 = sshll.u32 %s6362_s26, 4  ;;  %s27_s25 = int_to_ptr.vmem [resolvable:$true] %s26_s25  ;;  %s49_s28 = int_to_ptr.vmem [resolvable:$true] %s48_s28 }
  0x39   :  { %s6260_s10 = scalar_lea.hbm %s7069_s0, 128 }
  0x3a   :  { %p6261_p10 = scmp.ne.s32.totalorder %s7069_s0, %s6260_s10  ;;  %p6264_p11 = scmp.lt.u32.totalorder %s6260_s10, %s7069_s0 }
  0x3c   :  { %p6266_p12 = pnand %p6264_p11, %p6261_p10 }
  0x3e   :  { %6269 = shalt.err (!%p6266_p12)
}
  0x3f   :  { %s6270_s6 = scalar_lea.vmem %s27_s25, 128  ;;  %p6275_p0 = scmp.lt.s32.totalorder %s27_s25, %s27_s25 }
  0x40   :  { %p6271_p13 = scmp.ne.s32.totalorder %s27_s25, %s6270_s6  ;;  %p6276_p1 = scmp.lt.s32.totalorder %s6270_s6, %s6270_s6 }
  0x42   :  { %p6277_p2 = por %p6276_p1, %p6275_p0 }
  0x44   :  { %p6278_p3 = pnand %p6277_p2, %p6271_p13 }
  0x46   :  { %6281 = shalt.err (!%p6278_p3)
}
  0x47   :  { %29 = dma.hbm_to_vmem [thread:$0]  %s7069_s0, 128, %s27_s25, [#allocation4]  }
  0x48   :  { %s6282_s17 = scalar_lea.hbm %s7071_s2, 128 }
  0x49   :  { %p6283_p4 = scmp.ne.s32.totalorder %s7071_s2, %s6282_s17  ;;  %p6286_p5 = scmp.lt.u32.totalorder %s6282_s17, %s7071_s2 }
  0x4b   :  { %p6288_p6 = pnand %p6286_p5, %p6283_p4 }
  0x4d   :  { %6291 = shalt.err (!%p6288_p6)
}
  0x4e   :  { %s6292_s23 = scalar_lea.vmem %s49_s28, 128  ;;  %p6297_p8 = scmp.lt.s32.totalorder %s49_s28, %s49_s28 }
  0x4f   :  { %p6293_p7 = scmp.ne.s32.totalorder %s49_s28, %s6292_s23  ;;  %p6298_p9 = scmp.lt.s32.totalorder %s6292_s23, %s6292_s23 }
  0x51   :  { %p6299_p10 = por %p6298_p9, %p6297_p8 }
  0x53   :  { %p6300_p11 = pnand %p6299_p10, %p6293_p7 }
  0x55   :  { %6303 = shalt.err (!%p6300_p11)
}
  0x56   :  { %51 = dma.hbm_to_vmem [thread:$0]  %s7071_s2, 128, %s49_s28, [#allocation6]  }
  0x57   :  { %s6363_s3 = smov [#allocation10]   ;;  %s6364_s21 = smov [#allocation13]  }
  0x58   :  { %s70_s20 = sshll.u32 %s6363_s3, 4  ;;  %s92_s25 = sshll.u32 %s6364_s21, 4  ;;  %s71_s20 = int_to_ptr.vmem [resolvable:$true] %s70_s20  ;;  %s93_s25 = int_to_ptr.vmem [resolvable:$true] %s92_s25 }
  0x59   :  { %s6304_s30 = scalar_lea.hbm %s7073_s4, 128 }
  0x5a   :  { %p6305_p12 = scmp.ne.s32.totalorder %s7073_s4, %s6304_s30  ;;  %p6308_p13 = scmp.lt.u32.totalorder %s6304_s30, %s7073_s4 }
  0x5c   :  { %p6310_p0 = pnand %p6308_p13, %p6305_p12 }
  0x5e   :  { %6313 = shalt.err (!%p6310_p0)
}
  0x5f   :  { %s6314_s2 = scalar_lea.vmem %s71_s20, 128  ;;  %p6319_p2 = scmp.lt.s32.totalorder %s71_s20, %s71_s20 }
  0x60   :  { %p6315_p1 = scmp.ne.s32.totalorder %s71_s20, %s6314_s2  ;;  %p6320_p3 = scmp.lt.s32.totalorder %s6314_s2, %s6314_s2 }
  0x62   :  { %p6321_p4 = por %p6320_p3, %p6319_p2 }
  0x64   :  { %p6322_p5 = pnand %p6321_p4, %p6315_p1 }
  0x66   :  { %6325 = shalt.err (!%p6322_p5)
}
  0x67   :  { %73 = dma.hbm_to_vmem [thread:$0]  %s7073_s4, 128, %s71_s20, [#allocation9]  }
  0x68   :  { %s6326_s12 = scalar_lea.hbm %s7076_s7, 32 }
  0x69   :  { %p6327_p6 = scmp.ne.s32.totalorder %s7076_s7, %s6326_s12  ;;  %p6330_p7 = scmp.lt.u32.totalorder %s6326_s12, %s7076_s7 }
  0x6b   :  { %p6332_p8 = pnand %p6330_p7, %p6327_p6 }
  0x6d   :  { %6335 = shalt.err (!%p6332_p8)
}
  0x6e   :  { %s6336_s19 = scalar_lea.vmem %s93_s25, 32  ;;  %p6341_p10 = scmp.lt.s32.totalorder %s93_s25, %s93_s25 }
  0x6f   :  { %p6337_p9 = scmp.ne.s32.totalorder %s93_s25, %s6336_s19  ;;  %p6342_p11 = scmp.lt.s32.totalorder %s6336_s19, %s6336_s19 }
  0x71   :  { %p6343_p12 = por %p6342_p11, %p6341_p10 }
  0x73   :  { %p6344_p13 = pnand %p6343_p12, %p6337_p9 }
  0x75   :  { %6347 = shalt.err (!%p6344_p13)
}
  0x76   :  { %95 = dma.hbm_to_vmem [thread:$0]  %s7076_s7, 32, %s93_s25, [#allocation12]  }
  0x77   :  { %6348 = dma.done.wait [#allocation4], 128  }
  0x78   :  { %6349 = vsyncadd [#allocation4], 4294967168 }
  0x79   :  { %6350 = dma.done.wait [#allocation6], 2688  }
  0x7a   :  { %6351 = vsyncadd [#allocation6], 4294964608 }
  0x7b   :  { %6352 = dma.done.wait [#allocation9], 64128  }
  0x7c   :  { %6353 = vsyncadd [#allocation9], 4294903168 }
  0x7d   :  { %6354 = dma.done.wait [#allocation12], 64  }
  0x7e   :  { %6355 = vsyncadd [#allocation12], 4294967232  ;;  %v6365_v1 = vmov 0   ;;  %vm289_vm0 = vcmask 1041408   ;;  %vm290_vm1 = vcmask 1042432   ;;  %v6366_v2 = vmov 65535  }
  0x7f   :  { %349 = vmatprep.mubr.bf16.mxu0 %v6365_v1  ;;  %390 = vmatprep.mubr.bf16.mxu1 %v6365_v1  ;;  %v291_v3 = vsel %vm289_vm0, 4294967295, %v6366_v2  ;;  %v123_v4 = vld [vmem:[#allocation5] sm:$0xff]  ;;  %v124_v14 = vld [vmem:[#allocation5 + $0x8] sm:$0xff]  ;;  %v125_v24 = vld [vmem:[#allocation5 + $0x10] sm:$0xff]  ;;  %vm285_vm2 = vcmask 302080   ;;  %vm3547_vm3 = vcmask 850944  }
  0x80   :  { %v127_v5 = vld [vmem:[#allocation5 + $0x20] sm:$0xff]  ;;  %v6506_v13 = vsel %vm290_vm1, %v291_v3, 0  ;;  %v128_v17 = vld [vmem:[#allocation5 + $0x28] sm:$0xff]  ;;  %v129_v25 = vld [vmem:[#allocation5 + $0x30] sm:$0xff]  ;;  %vm3551_vm4 = vcmask 1043456   ;;  %vm5209_vm5 = vcmask 588800  }
  0x81   :  { %v131_v6 = vld [vmem:[#allocation5 + $0x40] sm:$0xff]  ;;  %v5238_v7 = vcombine.high %v123_v4, %v127_v5  ;;  %v5237_v8 = vcombine.low %v123_v4, %v127_v5  ;;  %v132_v18 = vld [vmem:[#allocation5 + $0x48] sm:$0xff]  ;;  %v5240_v21 = vcombine.high %v124_v14, %v128_v17  ;;  %v5239_v22 = vcombine.low %v124_v14, %v128_v17  ;;  %v121_v29 = vld [vmem:[#allocation3] sm:$0xff] }
  0x82   :  { %v135_v9 = vld [vmem:[#allocation5 + $0x60] sm:$0xff]  ;;  %v136_v19 = vld [vmem:[#allocation5 + $0x68] sm:$0xff]  ;;  %v5242_v31 = vcombine.high %v125_v24, %v129_v25  ;;  %v133_v34 = vld [vmem:[#allocation5 + $0x50] sm:$0xff]  ;;  %v6511_v37 = vpack.c.bf16 %v121_v29, %v121_v29  ;;  %v5241_v40 = vcombine.low %v125_v24, %v129_v25  ;;  %vm5227_vm6 = vcmask 7168  }
  0x83   :  { %v139_v10 = vld [vmem:[#allocation5 + $0x80] sm:$0x77]  ;;  %v5246_v11 = vcombine.high %v131_v6, %v135_v9  ;;  %317 = vmatprep.subr.bf16.mxu0 %v5238_v7  ;;  %v5245_v15 = vcombine.low %v131_v6, %v135_v9  ;;  %v140_v23 = vld [vmem:[#allocation5 + $0x88] sm:$0x77]  ;;  %v5248_v26 = vcombine.high %v132_v18, %v136_v19  ;;  %358 = vmatprep.subr.bf16.mxu1 %v5240_v21  ;;  %v137_v35 = vld [vmem:[#allocation5 + $0x70] sm:$0xff] }
  0x84   :  { %v5254_v12 = vcombine.high %v139_v10, %v139_v10  ;;  %318 = vmatpush1.bf16.msra.mxu0 %v5237_v8  ;;  %v5253_v16 = vcombine.low %v139_v10, %v139_v10  ;;  %v5256_v27 = vcombine.high %v140_v23, %v140_v23  ;;  %359 = vmatpush1.bf16.msra.mxu1 %v5239_v22  ;;  %v141_v36 = vld [vmem:[#allocation5 + $0x90] sm:$0x77]  ;;  %v126_v38 = vld [vmem:[#allocation5 + $0x18] sm:$0xff]  ;;  %v761_v54 = vld [vmem:[#allocation8 + $0x800] sm:$0xff] }
  0x85   :  { %319 = vmatprep.subr.bf16.mxu0 %v5246_v11  ;;  %v5247_v30 = vcombine.low %v132_v18, %v136_v19  ;;  %360 = vmatprep.subr.bf16.mxu1 %v5248_v26  ;;  %v5255_v33 = vcombine.low %v140_v23, %v140_v23  ;;  %v130_v39 = vld [vmem:[#allocation5 + $0x38] sm:$0xff]  ;;  %v5250_v41 = vcombine.high %v133_v34, %v137_v35  ;;  %v765_v55 = vld [vmem:[#allocation8 + $0x820] sm:$0xff] }
  0x86   :  { %v297_v20 = vand.u32 %v5254_v12, %v6506_v13  ;;  %v294_v28 = vand.u32 %v5253_v16, %v6506_v13  ;;  %v303_v32 = vand.u32 %v5256_v27, %v6506_v13  ;;  %v5258_v42 = vcombine.high %v141_v36, %v141_v36  ;;  %v134_v45 = vld [vmem:[#allocation5 + $0x58] sm:$0xff]  ;;  %v769_v61 = vld [vmem:[#allocation8 + $0x840] sm:$0xff] }
  0x87   :  { %v300_v43 = vand.u32 %v5255_v33, %v6506_v13  ;;  %v5244_v44 = vcombine.high %v126_v38, %v130_v39  ;;  %v138_v46 = vld [vmem:[#allocation5 + $0x78] sm:$0xff]  ;;  %v5249_v48 = vcombine.low %v133_v34, %v137_v35  ;;  %v5257_v49 = vcombine.low %v141_v36, %v141_v36  ;;  %v773_v62 = vld [vmem:[#allocation8 + $0x860] sm:$0xff] }
  0x88   :  { %320 = vmatpush1.bf16.msra.mxu0 %v5245_v15  ;;  %361 = vmatpush1.bf16.msra.mxu1 %v5247_v30  ;;  %v142_v47 = vld [vmem:[#allocation5 + $0x98] sm:$0x77]  ;;  %v309_v50 = vand.u32 %v5258_v42, %v6506_v13  ;;  %v5243_v51 = vcombine.low %v126_v38, %v130_v39  ;;  %v5252_v52 = vcombine.high %v134_v45, %v138_v46  ;;  %v505_v63 = vld [vmem:[#allocation8] sm:$0xff] }
  0x89   :  { %321 = vmatprep.subr.bf16.mxu0 %v297_v20  ;;  %362 = vmatprep.subr.bf16.mxu1 %v303_v32  ;;  %v5260_v53 = vcombine.high %v142_v47, %v142_v47  ;;  %v306_v56 = vand.u32 %v5257_v49, %v6506_v13  ;;  %v5251_v57 = vcombine.low %v134_v45, %v138_v46  ;;  %v509_v0 = vld [vmem:[#allocation8 + $0x20] sm:$0xff] }
  0x8a   :  { %v5259_v58 = vcombine.low %v142_v47, %v142_v47  ;;  %v5522_v59 = vcombine.high %v761_v54, %v765_v55  ;;  %v5521_v2 = vcombine.low %v761_v54, %v765_v55  ;;  %v777_v3 = vld [vmem:[#allocation8 + $0x880] sm:$0xff]  ;;  %v5530_v8 = vcombine.high %v769_v61, %v773_v62 }
  0x8b   :  { %v315_v60 = vand.u32 %v5260_v53, %v6506_v13  ;;  %v781_v4 = vld [vmem:[#allocation8 + $0x8a0] sm:$0xff]  ;;  %v5266_v9 = vcombine.high %v505_v63, %v509_v0  ;;  %v5265_v12 = vcombine.low %v505_v63, %v509_v0 }
  0x8c   :  { %322 = vmatpush1.bf16.msra.mxu0 %v294_v28  ;;  %363 = vmatpush1.bf16.msra.mxu1 %v300_v43  ;;  %v312_v5 = vand.u32 %v5259_v58, %v6506_v13  ;;  %v513_v6 = vld [vmem:[#allocation8 + $0x40] sm:$0xff]  ;;  %v5538_v16 = vcombine.high %v777_v3, %v781_v4  ;;  %v5537_v17 = vcombine.low %v777_v3, %v781_v4 }
  0x8d   :  { %399 = vmatprep.subr.bf16.mxu0 %v5242_v31  ;;  %440 = vmatprep.subr.bf16.mxu1 %v5244_v44  ;;  %v517_v7 = vld [vmem:[#allocation8 + $0x60] sm:$0xff] }
  0x8e   :  { %v785_v10 = vld [vmem:[#allocation8 + $0x8c0] sm:$0xff]  ;;  %v5274_v13 = vcombine.high %v513_v6, %v517_v7  ;;  %v5273_v20 = vcombine.low %v513_v6, %v517_v7 }
  0x8f   :  { %5261 = vmatmul.mubr.msk.bf16.vlgmr.msra.gmra.mrb[0].mxu0 %vm285_vm2, %v6511_v37  ;;  %5262 = vmatmul.mubr.msk.bf16.vlgmr.msra.gmra.mrb[0].mxu1 %vm285_vm2, %v6511_v37  ;;  %v789_v11 = vld [vmem:[#allocation8 + $0x8e0] sm:$0xff] }
  0x90   :  { %400 = vmatpush1.bf16.msra.mxu0 %v5241_v40  ;;  %431 = vmatprep.mubr.bf16.mxu0 %v6365_v1  ;;  %v521_v14 = vld [vmem:[#allocation8 + $0x80] sm:$0xff]  ;;  %v5546_v23 = vcombine.high %v785_v10, %v789_v11  ;;  %v5545_v25 = vcombine.low %v785_v10, %v789_v11 }
  0x91   :  { %401 = vmatprep.subr.bf16.mxu0 %v5250_v41  ;;  %441 = vmatpush1.bf16.msra.mxu1 %v5243_v51  ;;  %v525_v15 = vld [vmem:[#allocation8 + $0xa0] sm:$0xff] }
  0x92   :  { %442 = vmatprep.subr.bf16.mxu1 %v5252_v52  ;;  %472 = vmatprep.mubr.bf16.mxu1 %v6365_v1  ;;  %v5529_v1 = vcombine.low %v769_v61, %v773_v62  ;;  %v793_v18 = vld [vmem:[#allocation8 + $0x900] sm:$0xff]  ;;  %v5282_v24 = vcombine.high %v521_v14, %v525_v15  ;;  %v5281_v28 = vcombine.low %v521_v14, %v525_v15 }
  0x93   :  { %v797_v19 = vld [vmem:[#allocation8 + $0x920] sm:$0xff] }
  0x94   :  { %402 = vmatpush1.bf16.msra.mxu0 %v5249_v48  ;;  %v529_v21 = vld [vmem:[#allocation8 + $0xc0] sm:$0xff]  ;;  %v5554_v31 = vcombine.high %v793_v18, %v797_v19  ;;  %v5553_v33 = vcombine.low %v793_v18, %v797_v19 }
  0x95   :  { %403 = vmatprep.subr.bf16.mxu0 %v309_v50  ;;  %443 = vmatpush1.bf16.msra.mxu1 %v5251_v57  ;;  %v533_v22 = vld [vmem:[#allocation8 + $0xe0] sm:$0xff] }
  0x96   :  { %444 = vmatprep.subr.bf16.mxu1 %v315_v60  ;;  %v801_v26 = vld [vmem:[#allocation8 + $0x940] sm:$0xff]  ;;  %v5290_v32 = vcombine.high %v529_v21, %v533_v22  ;;  %v5289_v36 = vcombine.low %v529_v21, %v533_v22 }
  0x97   :  { %v805_v27 = vld [vmem:[#allocation8 + $0x960] sm:$0xff] }
  0x98   :  { %404 = vmatpush1.bf16.msra.mxu0 %v306_v56  ;;  %v537_v29 = vld [vmem:[#allocation8 + $0x100] sm:$0xff]  ;;  %v5562_v39 = vcombine.high %v801_v26, %v805_v27  ;;  %v5561_v41 = vcombine.low %v801_v26, %v805_v27 }
  0x99   :  { %3658 = vmatprep.subr.bf16.mxu0 %v5522_v59  ;;  %445 = vmatpush1.bf16.msra.mxu1 %v312_v5  ;;  %v541_v30 = vld [vmem:[#allocation8 + $0x120] sm:$0xff] }
  0x9a   :  { %3576 = vmatprep.subr.bf16.mxu1 %v5266_v9  ;;  %v809_v34 = vld [vmem:[#allocation8 + $0x980] sm:$0xff]  ;;  %v5298_v40 = vcombine.high %v537_v29, %v541_v30  ;;  %v5297_v44 = vcombine.low %v537_v29, %v541_v30 }
  0x9b   :  { %5263 = vmatmul.mubr.msk.bf16.vlgmr.msra.gmra.mrb[4].mxu0 %vm285_vm2, %v6511_v37  ;;  %v813_v35 = vld [vmem:[#allocation8 + $0x9a0] sm:$0xff] }
  0x9c   :  { %3659 = vmatpush1.bf16.msra.mxu0 %v5521_v2  ;;  %5264 = vmatmul.mubr.msk.bf16.vlgmr.msra.gmra.mrb[4].mxu1 %vm285_vm2, %v6511_v37  ;;  %v545_v37 = vld [vmem:[#allocation8 + $0x140] sm:$0xff]  ;;  %v5570_v47 = vcombine.high %v809_v34, %v813_v35  ;;  %v5569_v49 = vcombine.low %v809_v34, %v813_v35 }
  0x9d   :  { %3660 = vmatprep.subr.bf16.mxu0 %v5530_v8  ;;  %3577 = vmatpush1.bf16.msra.mxu1 %v5265_v12  ;;  %v549_v38 = vld [vmem:[#allocation8 + $0x160] sm:$0xff] }
  0x9e   :  { %3578 = vmatprep.subr.bf16.mxu1 %v5274_v13  ;;  %v817_v42 = vld [vmem:[#allocation8 + $0x9c0] sm:$0xff]  ;;  %v5306_v48 = vcombine.high %v545_v37, %v549_v38  ;;  %v5305_v52 = vcombine.low %v545_v37, %v549_v38 }
  0x9f   :  { %v821_v43 = vld [vmem:[#allocation8 + $0x9e0] sm:$0xff] }
  0xa0   :  { %3661 = vmatpush1.bf16.msra.mxu0 %v5529_v1  ;;  %v553_v45 = vld [vmem:[#allocation8 + $0x180] sm:$0xff]  ;;  %v5578_v55 = vcombine.high %v817_v42, %v821_v43  ;;  %v5577_v57 = vcombine.low %v817_v42, %v821_v43 }
  0xa1   :  { %3662 = vmatprep.subr.bf16.mxu0 %v5538_v16  ;;  %3579 = vmatpush1.bf16.msra.mxu1 %v5273_v20  ;;  %v557_v46 = vld [vmem:[#allocation8 + $0x1a0] sm:$0xff] }
  0xa2   :  { %3580 = vmatprep.subr.bf16.mxu1 %v5282_v24  ;;  %v825_v50 = vld [vmem:[#allocation8 + $0xa00] sm:$0xff]  ;;  %v5314_v56 = vcombine.high %v553_v45, %v557_v46  ;;  %v5313_v60 = vcombine.low %v553_v45, %v557_v46 }
  0xa3   :  { %v829_v51 = vld [vmem:[#allocation8 + $0xa20] sm:$0xff] }
  0xa4   :  { %3663 = vmatpush1.bf16.msra.mxu0 %v5537_v17  ;;  %v561_v53 = vld [vmem:[#allocation8 + $0x1c0] sm:$0xff]  ;;  %v5586_v63 = vcombine.high %v825_v50, %v829_v51  ;;  %v5585_v2 = vcombine.low %v825_v50, %v829_v51 }
  0xa5   :  { %3664 = vmatprep.subr.bf16.mxu0 %v5546_v23  ;;  %3581 = vmatpush1.bf16.msra.mxu1 %v5281_v28  ;;  %v565_v54 = vld [vmem:[#allocation8 + $0x1e0] sm:$0xff] }
  0xa6   :  { %3582 = vmatprep.subr.bf16.mxu1 %v5290_v32  ;;  %v833_v58 = vld [vmem:[#allocation8 + $0xa40] sm:$0xff]  ;;  %v5322_v0 = vcombine.high %v561_v53, %v565_v54  ;;  %v5321_v5 = vcombine.low %v561_v53, %v565_v54 }
  0xa7   :  { %v837_v59 = vld [vmem:[#allocation8 + $0xa60] sm:$0xff] }
  0xa8   :  { %3665 = vmatpush1.bf16.msra.mxu0 %v5545_v25  ;;  %v569_v61 = vld [vmem:[#allocation8 + $0x200] sm:$0xff]  ;;  %v5594_v8 = vcombine.high %v833_v58, %v837_v59  ;;  %v5593_v1 = vcombine.low %v833_v58, %v837_v59 }
  0xa9   :  { %3666 = vmatprep.subr.bf16.mxu0 %v5554_v31  ;;  %3583 = vmatpush1.bf16.msra.mxu1 %v5289_v36  ;;  %v573_v62 = vld [vmem:[#allocation8 + $0x220] sm:$0xff] }
  0xaa   :  { %3584 = vmatprep.subr.bf16.mxu1 %v5298_v40  ;;  %v841_v3 = vld [vmem:[#allocation8 + $0xa80] sm:$0xff]  ;;  %v5330_v9 = vcombine.high %v569_v61, %v573_v62  ;;  %v5329_v10 = vcombine.low %v569_v61, %v573_v62 }
  0xab   :  { %v845_v4 = vld [vmem:[#allocation8 + $0xaa0] sm:$0xff] }
  0xac   :  { %3667 = vmatpush1.bf16.msra.mxu0 %v5553_v33  ;;  %v577_v6 = vld [vmem:[#allocation8 + $0x240] sm:$0xff]  ;;  %v5602_v14 = vcombine.high %v841_v3, %v845_v4  ;;  %v5601_v16 = vcombine.low %v841_v3, %v845_v4  ;;  %v145_v4 = vlaneseq }
  0xad   :  { %3668 = vmatprep.subr.bf16.mxu0 %v5562_v39  ;;  %3585 = vmatpush1.bf16.msra.mxu1 %v5297_v44  ;;  %v581_v7 = vld [vmem:[#allocation8 + $0x260] sm:$0xff] }
  0xae   :  { %3586 = vmatprep.subr.bf16.mxu1 %v5306_v48  ;;  %v585_v11 = vld [vmem:[#allocation8 + $0x280] sm:$0xff]  ;;  %v5338_v15 = vcombine.high %v577_v6, %v581_v7  ;;  %v5337_v13 = vcombine.low %v577_v6, %v581_v7  ;;  %v6549_v7 = vld [vmem:[#allocation7] sm:$0xff] }
  0xaf   :  { %v589_v12 = vld [vmem:[#allocation8 + $0x2a0] sm:$0xff] }
  0xb0   :  { %3669 = vmatpush1.bf16.msra.mxu0 %v5561_v41  ;;  %v5346_v17 = vcombine.high %v585_v11, %v589_v12  ;;  %v593_v18 = vld [vmem:[#allocation8 + $0x2c0] sm:$0xff]  ;;  %v5345_v20 = vcombine.low %v585_v11, %v589_v12 }
  0xb1   :  { %3670 = vmatprep.subr.bf16.mxu0 %v5570_v47  ;;  %3587 = vmatpush1.bf16.msra.mxu1 %v5305_v52  ;;  %v597_v19 = vld [vmem:[#allocation8 + $0x2e0] sm:$0xff] }
  0xb2   :  { %3588 = vmatprep.subr.bf16.mxu1 %v5314_v56  ;;  %v5354_v21 = vcombine.high %v593_v18, %v597_v19  ;;  %v601_v22 = vld [vmem:[#allocation8 + $0x300] sm:$0xff]  ;;  %v5353_v24 = vcombine.low %v593_v18, %v597_v19 }
  0xb3   :  { %v605_v23 = vld [vmem:[#allocation8 + $0x320] sm:$0xff] }
  0xb4   :  { %3671 = vmatpush1.bf16.msra.mxu0 %v5569_v49  ;;  %v5362_v25 = vcombine.high %v601_v22, %v605_v23  ;;  %v609_v26 = vld [vmem:[#allocation8 + $0x340] sm:$0xff]  ;;  %v5361_v28 = vcombine.low %v601_v22, %v605_v23 }
  0xb5   :  { %3672 = vmatprep.subr.bf16.mxu0 %v5578_v55  ;;  %3589 = vmatpush1.bf16.msra.mxu1 %v5313_v60  ;;  %v613_v27 = vld [vmem:[#allocation8 + $0x360] sm:$0xff] }
  0xb6   :  { %3590 = vmatprep.subr.bf16.mxu1 %v5322_v0  ;;  %v5370_v29 = vcombine.high %v609_v26, %v613_v27  ;;  %v5369_v30 = vcombine.low %v609_v26, %v613_v27  ;;  %v617_v31 = vld [vmem:[#allocation8 + $0x380] sm:$0xff] }
  0xb7   :  { %v621_v32 = vld [vmem:[#allocation8 + $0x3a0] sm:$0xff] }
  0xb8   :  { %3673 = vmatpush1.bf16.msra.mxu0 %v5577_v57  ;;  %v849_v33 = vld [vmem:[#allocation8 + $0xac0] sm:$0xff]  ;;  %v5378_v34 = vcombine.high %v617_v31, %v621_v32  ;;  %v5377_v36 = vcombine.low %v617_v31, %v621_v32 }
  0xb9   :  { %3674 = vmatprep.subr.bf16.mxu0 %v5586_v63  ;;  %3591 = vmatpush1.bf16.msra.mxu1 %v5321_v5  ;;  %v853_v35 = vld [vmem:[#allocation8 + $0xae0] sm:$0xff]  ;;  %v6544_v5 = vshrl.u32 %v145_v4, 7 }
  0xba   :  { %3592 = vmatprep.subr.bf16.mxu1 %v5330_v9  ;;  %v5609_v37 = vcombine.low %v849_v33, %v853_v35  ;;  %v5610_v38 = vcombine.high %v849_v33, %v853_v35  ;;  %v625_v39 = vld [vmem:[#allocation8 + $0x3c0] sm:$0xff] }
  0xbb   :  { %v629_v40 = vld [vmem:[#allocation8 + $0x3e0] sm:$0xff]  ;;  %v6547_v6 = vsub.s32 0, %v6544_v5 }
  0xbc   :  { %3675 = vmatpush1.bf16.msra.mxu0 %v5585_v2  ;;  %v857_v41 = vld [vmem:[#allocation8 + $0xb00] sm:$0xff]  ;;  %v5386_v42 = vcombine.high %v625_v39, %v629_v40  ;;  %v5385_v44 = vcombine.low %v625_v39, %v629_v40  ;;  %v175_v40 = vsub.s32 7, %v6544_v5 }
  0xbd   :  { %3676 = vmatprep.subr.bf16.mxu0 %v5594_v8  ;;  %3593 = vmatpush1.bf16.msra.mxu1 %v5329_v10  ;;  %v861_v43 = vld [vmem:[#allocation8 + $0xb20] sm:$0xff]  ;;  %v6552_v8 = vsub.s32 1, %v6544_v5  ;;  %v148_v9 = vrot.slane %v6549_v7, %v6547_v6  ;;  %v159_v10 = vsub.s32 3, %v6544_v5 }
  0xbe   :  { %3594 = vmatprep.subr.bf16.mxu1 %v5338_v15  ;;  %v5617_v45 = vcombine.low %v857_v41, %v861_v43  ;;  %v5618_v46 = vcombine.high %v857_v41, %v861_v43  ;;  %v6528_v47 = vld [vmem:[#allocation8 + $0x400] sm:$0xff] }
  0xbf   :  { %v6530_v48 = vld [vmem:[#allocation8 + $0x420] sm:$0xff]  ;;  %v160_v18 = vrot.slane %v6549_v7, %v159_v10 }
  0xc0   :  { %3677 = vmatpush1.bf16.msra.mxu0 %v5593_v1  ;;  %v865_v49 = vld [vmem:[#allocation8 + $0xb40] sm:$0xff]  ;;  %v5394_v50 = vcombine.high %v6528_v47, %v6530_v48  ;;  %v5393_v52 = vcombine.low %v6528_v47, %v6530_v48  ;;  %v152_v1 = vrot.slane %v6549_v7, %v6552_v8 }
  0xc1   :  { %3678 = vmatprep.subr.bf16.mxu0 %v5602_v14  ;;  %3595 = vmatpush1.bf16.msra.mxu1 %v5337_v13  ;;  %v869_v51 = vld [vmem:[#allocation8 + $0xb60] sm:$0xff] }
  0xc2   :  { %3596 = vmatprep.subr.bf16.mxu1 %v5346_v17  ;;  %v5625_v53 = vcombine.low %v865_v49, %v869_v51  ;;  %v5626_v54 = vcombine.high %v865_v49, %v869_v51  ;;  %v873_v55 = vld [vmem:[#allocation8 + $0xb80] sm:$0xff] }
  0xc3   :  { %v877_v56 = vld [vmem:[#allocation8 + $0xba0] sm:$0xff] }
  0xc4   :  { %3679 = vmatpush1.bf16.msra.mxu0 %v5601_v16  ;;  %v5633_v57 = vcombine.low %v873_v55, %v877_v56  ;;  %v5634_v58 = vcombine.high %v873_v55, %v877_v56  ;;  %v881_v59 = vld [vmem:[#allocation8 + $0xbc0] sm:$0xff] }
  0xc5   :  { %3597 = vmatpush1.bf16.msra.mxu1 %v5345_v20  ;;  %3680 = vmatprep.subr.bf16.mxu0 %v5610_v38  ;;  %v885_v60 = vld [vmem:[#allocation8 + $0xbe0] sm:$0xff] }
  0xc6   :  { %3598 = vmatprep.subr.bf16.mxu1 %v5354_v21  ;;  %v5641_v61 = vcombine.low %v881_v59, %v885_v60  ;;  %v5642_v62 = vcombine.high %v881_v59, %v885_v60  ;;  %v6536_v63 = vld [vmem:[#allocation8 + $0xc00] sm:$0xff]  ;;  %v163_v21 = vsub.s32 4, %v6544_v5 }
  0xc7   :  { %v6538_v0 = vld [vmem:[#allocation8 + $0xc20] sm:$0xff] }
  0xc8   :  { %3681 = vmatpush1.bf16.msra.mxu0 %v5609_v37  ;;  %v5649_v2 = vcombine.low %v6536_v63, %v6538_v0  ;;  %v5650_v3 = vcombine.high %v6536_v63, %v6538_v0  ;;  %v645_v26 = vld [vmem:[#allocation8 + $0x460] sm:$0xff]  ;;  %v164_v33 = vrot.slane %v6549_v7, %v163_v21 }
  0xc9   :  { %3599 = vmatpush1.bf16.msra.mxu1 %v5353_v24  ;;  %3682 = vmatprep.subr.bf16.mxu0 %v5618_v46  ;;  %v167_v24 = vsub.s32 5, %v6544_v5  ;;  %v649_v37 = vld [vmem:[#allocation8 + $0x480] sm:$0xff] }
  0xca   :  { %3600 = vmatprep.subr.bf16.mxu1 %v5362_v25  ;;  %v641_v25 = vld [vmem:[#allocation8 + $0x440] sm:$0xff] }
  0xcb   :  { %v653_v38 = vld [vmem:[#allocation8 + $0x4a0] sm:$0xff] }
  0xcc   :  { %3683 = vmatpush1.bf16.msra.mxu0 %v5617_v45  ;;  %v5410_v45 = vcombine.high %v649_v37, %v653_v38  ;;  %v657_v48 = vld [vmem:[#allocation8 + $0x4c0] sm:$0xff]  ;;  %v5409_v55 = vcombine.low %v649_v37, %v653_v38 }
  0xcd   :  { %3601 = vmatpush1.bf16.msra.mxu1 %v5361_v28  ;;  %3684 = vmatprep.subr.bf16.mxu0 %v5626_v54  ;;  %v661_v49 = vld [vmem:[#allocation8 + $0x4e0] sm:$0xff] }
  0xce   :  { %3602 = vmatprep.subr.bf16.mxu1 %v5370_v29  ;;  %v689_v38 = vld [vmem:[#allocation8 + $0x5c0] sm:$0xff] }
  0xd0   :  { %3685 = vmatpush1.bf16.msra.mxu0 %v5625_v53  ;;  %v176_v53 = vrot.slane %v6549_v7, %v175_v40 }
  0xd1   :  { %3603 = vmatpush1.bf16.msra.mxu1 %v5369_v30  ;;  %3686 = vmatprep.subr.bf16.mxu0 %v5634_v58  ;;  %v665_v58 = vld [vmem:[#allocation8 + $0x500] sm:$0xff] }
  0xd2   :  { %3604 = vmatprep.subr.bf16.mxu1 %v5378_v34  ;;  %v5402_v34 = vcombine.high %v641_v25, %v645_v26 }
  0xd4   :  { %3687 = vmatpush1.bf16.msra.mxu0 %v5633_v57  ;;  %v5418_v57 = vcombine.high %v657_v48, %v661_v49 }
  0xd5   :  { %3605 = vmatpush1.bf16.msra.mxu1 %v5377_v36  ;;  %3688 = vmatprep.subr.bf16.mxu0 %v5642_v62  ;;  %v168_v36 = vrot.slane %v6549_v7, %v167_v24  ;;  %v897_v62 = vld [vmem:[#allocation8 + $0xc40] sm:$0xff] }
  0xd6   :  { %3606 = vmatprep.subr.bf16.mxu1 %v5386_v42  ;;  %v5401_v42 = vcombine.low %v641_v25, %v645_v26 }
  0xd8   :  { %3689 = vmatpush1.bf16.msra.mxu0 %v5641_v61  ;;  %v669_v61 = vld [vmem:[#allocation8 + $0x520] sm:$0xff] }
  0xd9   :  { %3607 = vmatpush1.bf16.msra.mxu1 %v5385_v44  ;;  %3699 = vmatprep.subr.bf16.mxu0 %v5650_v3  ;;  %v901_v3 = vld [vmem:[#allocation8 + $0xc60] sm:$0xff]  ;;  %v5425_v26 = vcombine.low %v665_v58, %v669_v61 }
  0xda   :  { %3617 = vmatprep.subr.bf16.mxu1 %v5394_v50 }
 0x162   :  { %v351_v11 = vpop.f32.mrb[0].mxu0  ;;  %v6563_v22 = vpop.f32.mrb[0].mxu1 }
 0x163   :  { %v352_v12 = vadd.f32 %v351_v11, %v148_v9  ;;  %v353_v14 = vpop.f32.mrb[1].mxu0  ;;  %v394_v27 = vpop.f32.mrb[1].mxu1 }
 0x164   :  { %v354_v15 = vadd.f32 %v353_v14, %v152_v1  ;;  %v355_v16 = vpop.f32.mrb[2].mxu0  ;;  %v395_v28 = vadd.f32 %v394_v27, %v160_v18  ;;  %v396_v29 = vpop.f32.mrb[2].mxu1  ;;  %v5417_v14 = vcombine.low %v657_v48, %v661_v49  ;;  %v5657_v27 = vcombine.low %v897_v62, %v901_v3  ;;  %v697_v48 = vld [vmem:[#allocation8 + $0x600] sm:$0xff] }
 0x165   :  { %v481_v13 = vpack.c.bf16 %v352_v12, %v352_v12  ;;  %v356_v17 = vpop.f32.mrb[3].mxu0  ;;  %v397_v31 = vpop.f32.mrb[3].mxu1  ;;  %v5426_v16 = vcombine.high %v665_v58, %v669_v61  ;;  %v701_v49 = vld [vmem:[#allocation8 + $0x620] sm:$0xff] }
 0x166   :  { %v482_v19 = vpack.c.bf16 %v354_v15, %v354_v15  ;;  %v484_v35 = vpack.c.bf16 %v395_v28, %v395_v28  ;;  %v673_v17 = vld [vmem:[#allocation8 + $0x540] sm:$0xff]  ;;  %v5457_v61 = vcombine.low %v697_v48, %v701_v49 }
 0x167   :  { %v489_v20 = vmul.bf16 1009007652, %v481_v13  ;;  %v681_v31 = vld [vmem:[#allocation8 + $0x580] sm:$0xff] }
 0x168   :  { %v490_v23 = vmul.bf16 1009007652, %v482_v19  ;;  %v492_v39 = vmul.bf16 1009007652, %v484_v35  ;;  %v937_v58 = vld [vmem:[#allocation8 + $0xd80] sm:$0xff] }
 0x169   :  { %v6568_v32 = vmax.bf16 %v489_v20, %v481_v13  ;;  %v5658_v13 = vcombine.high %v897_v62, %v901_v3  ;;  %v905_v20 = vld [vmem:[#allocation8 + $0xc80] sm:$0xff] }
 0x16a   :  { %v6566_v30 = vmax.bf16 %v490_v23, %v482_v19  ;;  %v6579_v46 = vmax.bf16 %v492_v39, %v484_v35  ;;  %v677_v19 = vld [vmem:[#allocation8 + $0x560] sm:$0xff] }
 0x16b   :  { %v909_v23 = vld [vmem:[#allocation8 + $0xca0] sm:$0xff]  ;;  %v5434_v28 = vcombine.high %v673_v17, %v677_v19  ;;  %v5433_v63 = vcombine.low %v673_v17, %v677_v19 }
 0x16c   :  { %3608 = vmatprep.mubr.bf16.mxu1 %v6566_v30  ;;  %v5666_v29 = vcombine.high %v905_v20, %v909_v23  ;;  %v913_v35 = vld [vmem:[#allocation8 + $0xcc0] sm:$0xff]  ;;  %v5665_v0 = vcombine.low %v905_v20, %v909_v23 }
 0x16d   :  { %3609 = vmatmul.mubr.bf16.vlgmr.msra.gmra.mrb[8].mxu1 %v6568_v32  ;;  %v693_v39 = vld [vmem:[#allocation8 + $0x5e0] sm:$0xff] }
 0x16e   :  { %3618 = vmatpush1.bf16.msra.mxu1 %v5393_v52  ;;  %v433_v41 = vpop.f32.mrb[4].mxu0  ;;  %3649 = vmatprep.mubr.bf16.mxu1 %v6579_v46  ;;  %v721_v19 = vld [vmem:[#allocation8 + $0x6c0] sm:$0xff] }
 0x16f   :  { %v434_v43 = vadd.f32 %v433_v41, %v164_v33  ;;  %v435_v44 = vpop.f32.mrb[5].mxu0  ;;  %3619 = vmatprep.subr.bf16.mxu1 %v5402_v34  ;;  %v6585_v59 = vpop.f32.mrb[4].mxu1  ;;  %v685_v34 = vld [vmem:[#allocation8 + $0x5a0] sm:$0xff] }
 0x170   :  { %v436_v47 = vadd.f32 %v435_v44, %v168_v36  ;;  %v437_v50 = vpop.f32.mrb[6].mxu0  ;;  %v476_v4 = vpop.f32.mrb[5].mxu1  ;;  %v917_v36 = vld [vmem:[#allocation8 + $0xce0] sm:$0xff] }
 0x171   :  { %v485_v51 = vpack.c.bf16 %v434_v43, %v434_v43  ;;  %v438_v52 = vpop.f32.mrb[7].mxu0  ;;  %v477_v1 = vadd.f32 %v476_v4, %v176_v53  ;;  %v478_v11 = vpop.f32.mrb[6].mxu1  ;;  %v5674_v37 = vcombine.high %v913_v35, %v917_v36  ;;  %v921_v41 = vld [vmem:[#allocation8 + $0xd00] sm:$0xff]  ;;  %v5441_v43 = vcombine.low %v681_v31, %v685_v34 }
 0x172   :  { %v486_v54 = vpack.c.bf16 %v436_v47, %v436_v47  ;;  %3620 = vmatpush1.bf16.msra.mxu1 %v5401_v42  ;;  %v479_v15 = vpop.f32.mrb[7].mxu1  ;;  %v925_v42 = vld [vmem:[#allocation8 + $0xd20] sm:$0xff]  ;;  %v5673_v44 = vcombine.low %v913_v35, %v917_v36  ;;  %v5449_v53 = vcombine.low %v689_v38, %v693_v39 }
 0x173   :  { %v493_v56 = vmul.bf16 1009007652, %v485_v51  ;;  %3621 = vmatprep.subr.bf16.mxu1 %v5410_v45  ;;  %v488_v18 = vpack.c.bf16 %v477_v1, %v477_v1  ;;  %v5450_v45 = vcombine.high %v689_v38, %v693_v39  ;;  %v5682_v47 = vcombine.high %v921_v41, %v925_v42  ;;  %v929_v50 = vld [vmem:[#allocation8 + $0xd40] sm:$0xff] }
 0x174   :  { %v494_v60 = vmul.bf16 1009007652, %v486_v54  ;;  %v5681_v52 = vcombine.low %v921_v41, %v925_v42  ;;  %v713_v1 = vld [vmem:[#allocation8 + $0x680] sm:$0xff]  ;;  %v155_v38 = vsub.s32 2, %v6544_v5 }
 0x175   :  { %v6587_v9 = vmax.bf16 %v493_v56, %v485_v51  ;;  %v496_v25 = vmul.bf16 1009007652, %v488_v18  ;;  %v933_v51 = vld [vmem:[#allocation8 + $0xd60] sm:$0xff] }
 0x176   :  { %v6589_v12 = vmax.bf16 %v494_v60, %v486_v54  ;;  %3622 = vmatpush1.bf16.msra.mxu1 %v5409_v55  ;;  %v5458_v54 = vcombine.high %v697_v48, %v701_v49  ;;  %v5690_v55 = vcombine.high %v929_v50, %v933_v51  ;;  %v705_v56 = vld [vmem:[#allocation8 + $0x640] sm:$0xff]  ;;  %v5689_v62 = vcombine.low %v929_v50, %v933_v51 }
 0x177   :  { %3623 = vmatprep.subr.bf16.mxu1 %v5418_v57  ;;  %v6596_v33 = vmax.bf16 %v496_v25, %v488_v18  ;;  %v709_v57 = vld [vmem:[#allocation8 + $0x660] sm:$0xff] }
 0x178   :  { %3690 = vmatprep.mubr.bf16.mxu0 %v6589_v12  ;;  %v941_v60 = vld [vmem:[#allocation8 + $0xda0] sm:$0xff]  ;;  %v5466_v3 = vcombine.high %v705_v56, %v709_v57 }
 0x179   :  { %3691 = vmatmul.mubr.bf16.vlgmr.msra.gmra.mrb[8].mxu0 %v6587_v9  ;;  %v5698_v4 = vcombine.high %v937_v58, %v941_v60  ;;  %v717_v11 = vld [vmem:[#allocation8 + $0x6a0] sm:$0xff] }
 0x17a   :  { %3624 = vmatpush1.bf16.msra.mxu1 %v5417_v14  ;;  %3700 = vmatpush1.bf16.msra.mxu0 %v5649_v2  ;;  %v5442_v2 = vcombine.high %v681_v31, %v685_v34  ;;  %v945_v14 = vld [vmem:[#allocation8 + $0xdc0] sm:$0xff]  ;;  %v5474_v17 = vcombine.high %v713_v1, %v717_v11 }
 0x17b   :  { %3625 = vmatprep.subr.bf16.mxu1 %v5426_v16  ;;  %3701 = vmatprep.subr.bf16.mxu0 %v5658_v13  ;;  %v949_v15 = vld [vmem:[#allocation8 + $0xde0] sm:$0xff]  ;;  %v5465_v16 = vcombine.low %v705_v56, %v709_v57  ;;  %v5697_v13 = vcombine.low %v937_v58, %v941_v60 }
 0x17c   :  { %5770 = vmatprep.mubr.msk.bf16.mxu0 %vm3547_vm3, %v6596_v33  ;;  %v5706_v18 = vcombine.high %v945_v14, %v949_v15  ;;  %v725_v20 = vld [vmem:[#allocation8 + $0x6e0] sm:$0xff] }
 0x17d   :  { %v953_v23 = vld [vmem:[#allocation8 + $0xe00] sm:$0xff] }
 0x17e   :  { %3626 = vmatpush1.bf16.msra.mxu1 %v5425_v26  ;;  %3702 = vmatpush1.bf16.msra.mxu0 %v5657_v27  ;;  %v957_v25 = vld [vmem:[#allocation8 + $0xe20] sm:$0xff]  ;;  %v5473_v26 = vcombine.low %v713_v1, %v717_v11  ;;  %v5705_v27 = vcombine.low %v945_v14, %v949_v15 }
 0x17f   :  { %3627 = vmatprep.subr.bf16.mxu1 %v5434_v28  ;;  %3703 = vmatprep.subr.bf16.mxu0 %v5666_v29  ;;  %v5482_v28 = vcombine.high %v721_v19, %v725_v20  ;;  %v5714_v29 = vcombine.high %v953_v23, %v957_v25  ;;  %v729_v31 = vld [vmem:[#allocation8 + $0x700] sm:$0xff] }
 0x180   :  { %v733_v34 = vld [vmem:[#allocation8 + $0x720] sm:$0xff] }
 0x181   :  { %v961_v35 = vld [vmem:[#allocation8 + $0xe40] sm:$0xff] }
 0x182   :  { %3628 = vmatpush1.bf16.msra.mxu1 %v5433_v63  ;;  %3704 = vmatpush1.bf16.msra.mxu0 %v5665_v0  ;;  %v965_v36 = vld [vmem:[#allocation8 + $0xe60] sm:$0xff]  ;;  %v5481_v63 = vcombine.low %v721_v19, %v725_v20  ;;  %v5713_v0 = vcombine.low %v953_v23, %v957_v25  ;;  %v510_v19 = vld [vmem:[#allocation8 + $0x28] sm:$0xff] }
 0x183   :  { %3629 = vmatprep.subr.bf16.mxu1 %v5442_v2  ;;  %3705 = vmatprep.subr.bf16.mxu0 %v5674_v37  ;;  %v5490_v2 = vcombine.high %v729_v31, %v733_v34  ;;  %v5722_v37 = vcombine.high %v961_v35, %v965_v36  ;;  %v737_v39 = vld [vmem:[#allocation8 + $0x740] sm:$0xff] }
 0x184   :  { %v741_v41 = vld [vmem:[#allocation8 + $0x760] sm:$0xff] }
 0x185   :  { %v969_v42 = vld [vmem:[#allocation8 + $0xe80] sm:$0xff]  ;;  %v5498_v48 = vcombine.high %v737_v39, %v741_v41 }
 0x186   :  { %3630 = vmatpush1.bf16.msra.mxu1 %v5441_v43  ;;  %3706 = vmatpush1.bf16.msra.mxu0 %v5673_v44  ;;  %v973_v43 = vld [vmem:[#allocation8 + $0xea0] sm:$0xff]  ;;  %v5489_v44 = vcombine.low %v729_v31, %v733_v34  ;;  %v514_v31 = vld [vmem:[#allocation8 + $0x48] sm:$0xff] }
 0x187   :  { %3631 = vmatprep.subr.bf16.mxu1 %v5450_v45  ;;  %3707 = vmatprep.subr.bf16.mxu0 %v5682_v47  ;;  %v5721_v45 = vcombine.low %v961_v35, %v965_v36  ;;  %v156_v47 = vrot.slane %v6549_v7, %v155_v38  ;;  %v5730_v49 = vcombine.high %v969_v42, %v973_v43  ;;  %v745_v50 = vld [vmem:[#allocation8 + $0x780] sm:$0xff]  ;;  %v518_v34 = vld [vmem:[#allocation8 + $0x68] sm:$0xff] }
 0x188   :  { %v749_v51 = vld [vmem:[#allocation8 + $0x7a0] sm:$0xff]  ;;  %v5729_v56 = vcombine.low %v969_v42, %v973_v43  ;;  %v511_v42 = vld [vmem:[#allocation8 + $0x30] sm:$0xff] }
 0x189   :  { %v393_v57 = vadd.f32 %v6563_v22, %v156_v47  ;;  %v5506_v58 = vcombine.high %v745_v50, %v749_v51  ;;  %v5505_v11 = vcombine.low %v745_v50, %v749_v51  ;;  %v534_v50 = vld [vmem:[#allocation8 + $0xe8] sm:$0xff] }
 0x18a   :  { %3632 = vmatpush1.bf16.msra.mxu1 %v5449_v53  ;;  %3708 = vmatpush1.bf16.msra.mxu0 %v5681_v52  ;;  %v977_v53 = vld [vmem:[#allocation8 + $0xec0] sm:$0xff] }
 0x18b   :  { %3633 = vmatprep.subr.bf16.mxu1 %v5458_v54  ;;  %3709 = vmatprep.subr.bf16.mxu0 %v5690_v55  ;;  %v981_v52 = vld [vmem:[#allocation8 + $0xee0] sm:$0xff]  ;;  %v171_v54 = vsub.s32 6, %v6544_v5  ;;  %v5497_v55 = vcombine.low %v737_v39, %v741_v41  ;;  %v483_v15 = vpack.c.bf16 %v393_v57, %v393_v57  ;;  %v526_v39 = vld [vmem:[#allocation8 + $0xa8] sm:$0xff]  ;;  %v507_v41 = vld [vmem:[#allocation8 + $0x10] sm:$0xff] }
 0x18c   :  { %v5738_v60 = vcombine.high %v977_v53, %v981_v52  ;;  %v5737_v14 = vcombine.low %v977_v53, %v981_v52  ;;  %v515_v53 = vld [vmem:[#allocation8 + $0x50] sm:$0xff] }
 0x18d   :  { %v172_v1 = vrot.slane %v6549_v7, %v171_v54  ;;  %v491_v7 = vmul.bf16 1009007652, %v483_v15  ;;  %v519_v52 = vld [vmem:[#allocation8 + $0x70] sm:$0xff] }
 0x18e   :  { %3634 = vmatpush1.bf16.msra.mxu1 %v5457_v61  ;;  %3710 = vmatpush1.bf16.msra.mxu0 %v5689_v62  ;;  %v753_v61 = vld [vmem:[#allocation8 + $0x7c0] sm:$0xff] }
 0x18f   :  { %3635 = vmatprep.subr.bf16.mxu1 %v5466_v3  ;;  %3711 = vmatprep.subr.bf16.mxu0 %v5698_v4  ;;  %v757_v62 = vld [vmem:[#allocation8 + $0x7e0] sm:$0xff]  ;;  %v475_v20 = vadd.f32 %v6585_v59, %v172_v1  ;;  %v5277_v1 = vcombine.low %v515_v53, %v519_v52 }
 0x190   :  { %v985_v3 = vld [vmem:[#allocation8 + $0xf00] sm:$0xff]  ;;  %v5514_v22 = vcombine.high %v753_v61, %v757_v62  ;;  %v5513_v23 = vcombine.low %v753_v61, %v757_v62  ;;  %v542_v61 = vld [vmem:[#allocation8 + $0x128] sm:$0xff]  ;;  %v523_v62 = vld [vmem:[#allocation8 + $0x90] sm:$0xff] }
 0x191   :  { %v989_v4 = vld [vmem:[#allocation8 + $0xf20] sm:$0xff] }
 0x192   :  { %3636 = vmatpush1.bf16.msra.mxu1 %v5465_v16  ;;  %3712 = vmatpush1.bf16.msra.mxu0 %v5697_v13  ;;  %v5746_v16 = vcombine.high %v985_v3, %v989_v4  ;;  %v993_v13 = vld [vmem:[#allocation8 + $0xf40] sm:$0xff]  ;;  %v5745_v25 = vcombine.low %v985_v3, %v989_v4  ;;  %v527_v3 = vld [vmem:[#allocation8 + $0xb0] sm:$0xff] }
 0x193   :  { %3637 = vmatprep.subr.bf16.mxu1 %v5474_v17  ;;  %3713 = vmatprep.subr.bf16.mxu0 %v5706_v18  ;;  %v997_v17 = vld [vmem:[#allocation8 + $0xf60] sm:$0xff]  ;;  %v506_v18 = vld [vmem:[#allocation8 + $0x8] sm:$0xff] }
 0x194   :  { %v5753_v35 = vcombine.low %v993_v13, %v997_v17  ;;  %v5267_v36 = vcombine.low %v506_v18, %v510_v19 }
 0x196   :  { %3638 = vmatpush1.bf16.msra.mxu1 %v5473_v26  ;;  %3714 = vmatpush1.bf16.msra.mxu0 %v5705_v27  ;;  %v5754_v26 = vcombine.high %v993_v13, %v997_v17  ;;  %v5268_v27 = vcombine.high %v506_v18, %v510_v19  ;;  %v535_v13 = vld [vmem:[#allocation8 + $0xf0] sm:$0xff]  ;;  %v5285_v18 = vcombine.low %v523_v62, %v527_v3 }
 0x197   :  { %3639 = vmatprep.subr.bf16.mxu1 %v5482_v28  ;;  %3715 = vmatprep.subr.bf16.mxu0 %v5714_v29  ;;  %v1001_v28 = vld [vmem:[#allocation8 + $0xf80] sm:$0xff]  ;;  %v487_v29 = vpack.c.bf16 %v475_v20, %v475_v20 }
 0x198   :  { %v5762_v59 = vcombine.high %v1001_v28, %v1001_v28 }
 0x199   :  { %v495_v43 = vmul.bf16 1009007652, %v487_v29 }
 0x19a   :  { %3640 = vmatpush1.bf16.msra.mxu1 %v5481_v63  ;;  %3716 = vmatpush1.bf16.msra.mxu0 %v5713_v0  ;;  %v6610_v63 = vmax.bf16 %v491_v7, %v483_v15  ;;  %v5761_v0 = vcombine.low %v1001_v28, %v1001_v28  ;;  %v546_v15 = vld [vmem:[#allocation8 + $0x148] sm:$0xff]  ;;  %v539_v7 = vld [vmem:[#allocation8 + $0x110] sm:$0xff] }
 0x19b   :  { %3641 = vmatprep.subr.bf16.mxu1 %v5490_v2  ;;  %3717 = vmatprep.subr.bf16.mxu0 %v5722_v37  ;;  %v522_v2 = vld [vmem:[#allocation8 + $0x88] sm:$0xff]  ;;  %v5276_v37 = vcombine.high %v514_v31, %v518_v34  ;;  %v6616_v51 = vmax.bf16 %v495_v43, %v487_v29  ;;  %v555_v43 = vld [vmem:[#allocation8 + $0x190] sm:$0xff] }
 0x19c   :  { %v5284_v47 = vcombine.high %v522_v2, %v526_v39 }
 0x19e   :  { %3642 = vmatpush1.bf16.msra.mxu1 %v5489_v44  ;;  %3718 = vmatpush1.bf16.msra.mxu0 %v5721_v45  ;;  %v5275_v44 = vcombine.low %v514_v31, %v518_v34  ;;  %v3553_v45 = vsel %vm3551_vm4, %v5761_v0, 0  ;;  %v562_v34 = vld [vmem:[#allocation8 + $0x1c8] sm:$0xff] }
 0x19f   :  { %3643 = vmatprep.subr.bf16.mxu1 %v5498_v48  ;;  %3719 = vmatprep.subr.bf16.mxu0 %v5730_v49  ;;  %v5270_v48 = vcombine.high %v507_v41, %v511_v42  ;;  %v530_v49 = vld [vmem:[#allocation8 + $0xc8] sm:$0xff] }
 0x1a0   :  { %v5292_v57 = vcombine.high %v530_v49, %v534_v50  ;;  %v5291_v4 = vcombine.low %v530_v49, %v534_v50  ;;  %v578_v50 = vld [vmem:[#allocation8 + $0x248] sm:$0xff] }
 0x1a2   :  { %3644 = vmatpush1.bf16.msra.mxu1 %v5497_v55  ;;  %3720 = vmatpush1.bf16.msra.mxu0 %v5729_v56  ;;  %v5283_v55 = vcombine.low %v522_v2, %v526_v39  ;;  %v5269_v56 = vcombine.low %v507_v41, %v511_v42  ;;  %v570_v41 = vld [vmem:[#allocation8 + $0x208] sm:$0xff] }
 0x1a3   :  { %3645 = vmatprep.subr.bf16.mxu1 %v5506_v58  ;;  %3721 = vmatprep.subr.bf16.mxu0 %v5738_v60  ;;  %v538_v58 = vld [vmem:[#allocation8 + $0x108] sm:$0xff]  ;;  %v5278_v60 = vcombine.high %v515_v53, %v519_v52  ;;  %v563_v52 = vld [vmem:[#allocation8 + $0x1d0] sm:$0xff] }
 0x1a4   :  { %v5299_v17 = vcombine.low %v538_v58, %v542_v61  ;;  %v574_v42 = vld [vmem:[#allocation8 + $0x228] sm:$0xff] }
 0x1a5   :  { %v582_v53 = vld [vmem:[#allocation8 + $0x268] sm:$0xff] }
 0x1a6   :  { %3646 = vmatpush1.bf16.msra.mxu1 %v5505_v11  ;;  %3722 = vmatpush1.bf16.msra.mxu0 %v5737_v14  ;;  %v5300_v11 = vcombine.high %v538_v58, %v542_v61  ;;  %v5286_v14 = vcombine.high %v523_v62, %v527_v3  ;;  %v5340_v58 = vcombine.high %v578_v50, %v582_v53  ;;  %v586_v61 = vld [vmem:[#allocation8 + $0x288] sm:$0xff]  ;;  %v571_v3 = vld [vmem:[#allocation8 + $0x210] sm:$0xff] }
 0x1a7   :  { %3647 = vmatprep.subr.bf16.mxu1 %v5514_v22  ;;  %3723 = vmatprep.subr.bf16.mxu0 %v5746_v16  ;;  %v550_v22 = vld [vmem:[#allocation8 + $0x168] sm:$0xff]  ;;  %v531_v16 = vld [vmem:[#allocation8 + $0xd0] sm:$0xff] }
 0x1a8   :  { %v5308_v19 = vcombine.high %v546_v15, %v550_v22  ;;  %v5294_v20 = vcombine.high %v531_v16, %v535_v13  ;;  %v5293_v28 = vcombine.low %v531_v16, %v535_v13  ;;  %v590_v62 = vld [vmem:[#allocation8 + $0x2a8] sm:$0xff]  ;;  %v579_v13 = vld [vmem:[#allocation8 + $0x250] sm:$0xff] }
 0x1a9   :  { %v598_v16 = vld [vmem:[#allocation8 + $0x2e8] sm:$0xff] }
 0x1aa   :  { %3648 = vmatpush1.bf16.msra.mxu1 %v5513_v23  ;;  %3724 = vmatpush1.bf16.msra.mxu0 %v5745_v25  ;;  %v554_v23 = vld [vmem:[#allocation8 + $0x188] sm:$0xff] }
 0x1ab   :  { %3725 = vmatprep.subr.bf16.mxu0 %v5754_v26  ;;  %3740 = vmatprep.subr.bf16.mxu1 %v5268_v27  ;;  %v558_v25 = vld [vmem:[#allocation8 + $0x1a8] sm:$0xff]  ;;  %v543_v26 = vld [vmem:[#allocation8 + $0x130] sm:$0xff]  ;;  %v5307_v27 = vcombine.low %v546_v15, %v550_v22 }
 0x1ac   :  { %v5316_v29 = vcombine.high %v554_v23, %v558_v25  ;;  %v5302_v31 = vcombine.high %v539_v7, %v543_v26  ;;  %v5315_v0 = vcombine.low %v554_v23, %v558_v25  ;;  %v5301_v2 = vcombine.low %v539_v7, %v543_v26  ;;  %v594_v22 = vld [vmem:[#allocation8 + $0x2c8] sm:$0xff]  ;;  %v587_v26 = vld [vmem:[#allocation8 + $0x290] sm:$0xff] }
 0x1ad   :  { %3650 = vmatmul.mubr.bf16.vlgmr.msra.gmra.mrb[8].mxu1 %v6610_v63  ;;  %v602_v25 = vld [vmem:[#allocation8 + $0x308] sm:$0xff] }
 0x1ae   :  { %3726 = vmatpush1.bf16.msra.mxu0 %v5753_v35  ;;  %3741 = vmatpush1.bf16.msra.mxu1 %v5267_v36  ;;  %v566_v35 = vld [vmem:[#allocation8 + $0x1e8] sm:$0xff]  ;;  %v547_v36 = vld [vmem:[#allocation8 + $0x150] sm:$0xff] }
 0x1af   :  { %3772 = vmatprep.mubr.bf16.mxu1 %v6566_v30  ;;  %5769 = vmatprep.subr.msk.bf16.mxu0 %vm3551_vm4, %v5762_v59  ;;  %v551_v59 = vld [vmem:[#allocation8 + $0x170] sm:$0xff]  ;;  %v606_v7 = vld [vmem:[#allocation8 + $0x328] sm:$0xff] }
 0x1b0   :  { %3742 = vmatprep.subr.bf16.mxu1 %v5276_v37  ;;  %v5324_v37 = vcombine.high %v562_v34, %v566_v35  ;;  %v5310_v39 = vcombine.high %v547_v36, %v551_v59 }
 0x1b2   :  { %3728 = vmatpush1.bf16.msra.mxu0 %v3553_v45  ;;  %3743 = vmatpush1.bf16.msra.mxu1 %v5275_v44  ;;  %v559_v44 = vld [vmem:[#allocation8 + $0x1b0] sm:$0xff]  ;;  %v5323_v45 = vcombine.low %v562_v34, %v566_v35  ;;  %v610_v35 = vld [vmem:[#allocation8 + $0x348] sm:$0xff] }
 0x1b3   :  { %3744 = vmatprep.subr.bf16.mxu1 %v5284_v47  ;;  %3904 = vmatprep.subr.bf16.mxu0 %v5270_v48  ;;  %v5309_v47 = vcombine.low %v547_v36, %v551_v59  ;;  %v5332_v48 = vcombine.high %v570_v41, %v574_v42  ;;  %v5318_v49 = vcombine.high %v555_v43, %v559_v44  ;;  %v614_v36 = vld [vmem:[#allocation8 + $0x368] sm:$0xff]  ;;  %v595_v59 = vld [vmem:[#allocation8 + $0x2d0] sm:$0xff] }
 0x1b5   :  { %3732 = vmatmul.mubr.bf16.vlgmr.msra.gmra.mrb[8].mxu0 %v6616_v51 }
 0x1b6   :  { %3745 = vmatpush1.bf16.msra.mxu1 %v5283_v55  ;;  %3905 = vmatpush1.bf16.msra.mxu0 %v5269_v56  ;;  %v567_v55 = vld [vmem:[#allocation8 + $0x1f0] sm:$0xff]  ;;  %v5331_v56 = vcombine.low %v570_v41, %v574_v42  ;;  %v618_v42 = vld [vmem:[#allocation8 + $0x388] sm:$0xff] }
 0x1b7   :  { %3936 = vmatprep.mubr.bf16.mxu0 %v6566_v30  ;;  %3746 = vmatprep.subr.bf16.mxu1 %v5292_v57  ;;  %v5317_v57 = vcombine.low %v555_v43, %v559_v44  ;;  %v622_v43 = vld [vmem:[#allocation8 + $0x3a8] sm:$0xff]  ;;  %v603_v44 = vld [vmem:[#allocation8 + $0x310] sm:$0xff] }
 0x1b8   :  { %3906 = vmatprep.subr.bf16.mxu0 %v5278_v60  ;;  %v5326_v60 = vcombine.high %v563_v52, %v567_v55 }
 0x1ba   :  { %3747 = vmatpush1.bf16.msra.mxu1 %v5291_v4  ;;  %3907 = vmatpush1.bf16.msra.mxu0 %v5277_v1  ;;  %v575_v4 = vld [vmem:[#allocation8 + $0x230] sm:$0xff]  ;;  %v5339_v1 = vcombine.low %v578_v50, %v582_v53  ;;  %v626_v53 = vld [vmem:[#allocation8 + $0x3c8] sm:$0xff] }
 0x1bb   :  { %3748 = vmatprep.subr.bf16.mxu1 %v5300_v11  ;;  %3908 = vmatprep.subr.bf16.mxu0 %v5286_v14  ;;  %v5325_v11 = vcombine.low %v563_v52, %v567_v55  ;;  %v5348_v14 = vcombine.high %v586_v61, %v590_v62  ;;  %v5334_v15 = vcombine.high %v571_v3, %v575_v4  ;;  %v630_v52 = vld [vmem:[#allocation8 + $0x3e8] sm:$0xff]  ;;  %v611_v55 = vld [vmem:[#allocation8 + $0x350] sm:$0xff] }
 0x1be   :  { %3749 = vmatpush1.bf16.msra.mxu1 %v5299_v17  ;;  %3909 = vmatpush1.bf16.msra.mxu0 %v5285_v18  ;;  %v583_v17 = vld [vmem:[#allocation8 + $0x270] sm:$0xff]  ;;  %v5347_v18 = vcombine.low %v586_v61, %v590_v62  ;;  %v634_v62 = vld [vmem:[#allocation8 + $0x408] sm:$0xff] }
 0x1bf   :  { %3750 = vmatprep.subr.bf16.mxu1 %v5308_v19  ;;  %3910 = vmatprep.subr.bf16.mxu0 %v5294_v20  ;;  %v5333_v19 = vcombine.low %v571_v3, %v575_v4  ;;  %v5356_v20 = vcombine.high %v594_v22, %v598_v16  ;;  %v5342_v23 = vcombine.high %v579_v13, %v583_v17  ;;  %v638_v3 = vld [vmem:[#allocation8 + $0x428] sm:$0xff]  ;;  %v619_v4 = vld [vmem:[#allocation8 + $0x390] sm:$0xff] }
 0x1c2   :  { %3751 = vmatpush1.bf16.msra.mxu1 %v5307_v27  ;;  %3911 = vmatpush1.bf16.msra.mxu0 %v5293_v28  ;;  %v591_v27 = vld [vmem:[#allocation8 + $0x2b0] sm:$0xff]  ;;  %v5355_v28 = vcombine.low %v594_v22, %v598_v16  ;;  %v642_v16 = vld [vmem:[#allocation8 + $0x448] sm:$0xff] }
 0x1c3   :  { %3752 = vmatprep.subr.bf16.mxu1 %v5316_v29  ;;  %3912 = vmatprep.subr.bf16.mxu0 %v5302_v31  ;;  %v5341_v29 = vcombine.low %v579_v13, %v583_v17  ;;  %v5364_v31 = vcombine.high %v602_v25, %v606_v7  ;;  %v5350_v34 = vcombine.high %v587_v26, %v591_v27  ;;  %v646_v13 = vld [vmem:[#allocation8 + $0x468] sm:$0xff]  ;;  %v627_v17 = vld [vmem:[#allocation8 + $0x3d0] sm:$0xff] }
 0x1c6   :  { %3753 = vmatpush1.bf16.msra.mxu1 %v5315_v0  ;;  %3913 = vmatpush1.bf16.msra.mxu0 %v5301_v2  ;;  %v599_v0 = vld [vmem:[#allocation8 + $0x2f0] sm:$0xff]  ;;  %v5363_v2 = vcombine.low %v602_v25, %v606_v7  ;;  %v650_v7 = vld [vmem:[#allocation8 + $0x488] sm:$0xff] }
 0x1c7   :  { %3754 = vmatprep.subr.bf16.mxu1 %v5324_v37  ;;  %3914 = vmatprep.subr.bf16.mxu0 %v5310_v39  ;;  %v5349_v37 = vcombine.low %v587_v26, %v591_v27  ;;  %v5372_v39 = vcombine.high %v610_v35, %v614_v36  ;;  %v5358_v41 = vcombine.high %v595_v59, %v599_v0  ;;  %v654_v26 = vld [vmem:[#allocation8 + $0x4a8] sm:$0xff]  ;;  %v635_v27 = vld [vmem:[#allocation8 + $0x410] sm:$0xff] }
 0x1ca   :  { %3755 = vmatpush1.bf16.msra.mxu1 %v5323_v45  ;;  %3915 = vmatpush1.bf16.msra.mxu0 %v5309_v47  ;;  %v607_v45 = vld [vmem:[#allocation8 + $0x330] sm:$0xff]  ;;  %v5371_v47 = vcombine.low %v610_v35, %v614_v36  ;;  %v658_v36 = vld [vmem:[#allocation8 + $0x4c8] sm:$0xff] }
 0x1cb   :  { %3756 = vmatprep.subr.bf16.mxu1 %v5332_v48  ;;  %3916 = vmatprep.subr.bf16.mxu0 %v5318_v49  ;;  %v5357_v48 = vcombine.low %v595_v59, %v599_v0  ;;  %v5380_v49 = vcombine.high %v618_v42, %v622_v43  ;;  %v5366_v50 = vcombine.high %v603_v44, %v607_v45  ;;  %v662_v59 = vld [vmem:[#allocation8 + $0x4e8] sm:$0xff]  ;;  %v643_v0 = vld [vmem:[#allocation8 + $0x450] sm:$0xff] }
 0x1ce   :  { %3757 = vmatpush1.bf16.msra.mxu1 %v5331_v56  ;;  %3917 = vmatpush1.bf16.msra.mxu0 %v5317_v57  ;;  %v615_v56 = vld [vmem:[#allocation8 + $0x370] sm:$0xff]  ;;  %v5379_v57 = vcombine.low %v618_v42, %v622_v43  ;;  %v666_v43 = vld [vmem:[#allocation8 + $0x508] sm:$0xff] }
 0x1cf   :  { %3758 = vmatprep.subr.bf16.mxu1 %v5340_v58  ;;  %3918 = vmatprep.subr.bf16.mxu0 %v5326_v60  ;;  %v5365_v58 = vcombine.low %v603_v44, %v607_v45  ;;  %v5388_v60 = vcombine.high %v626_v53, %v630_v52  ;;  %v5374_v61 = vcombine.high %v611_v55, %v615_v56  ;;  %v670_v44 = vld [vmem:[#allocation8 + $0x528] sm:$0xff]  ;;  %v651_v45 = vld [vmem:[#allocation8 + $0x490] sm:$0xff] }
 0x1d2   :  { %3759 = vmatpush1.bf16.msra.mxu1 %v5339_v1  ;;  %3919 = vmatpush1.bf16.msra.mxu0 %v5325_v11  ;;  %v623_v1 = vld [vmem:[#allocation8 + $0x3b0] sm:$0xff]  ;;  %v5387_v11 = vcombine.low %v626_v53, %v630_v52  ;;  %v674_v52 = vld [vmem:[#allocation8 + $0x548] sm:$0xff] }
 0x1d3   :  { %3760 = vmatprep.subr.bf16.mxu1 %v5348_v14  ;;  %3920 = vmatprep.subr.bf16.mxu0 %v5334_v15  ;;  %v5373_v14 = vcombine.low %v611_v55, %v615_v56  ;;  %v5396_v15 = vcombine.high %v634_v62, %v638_v3  ;;  %v5382_v22 = vcombine.high %v619_v4, %v623_v1  ;;  %v678_v55 = vld [vmem:[#allocation8 + $0x568] sm:$0xff]  ;;  %v659_v56 = vld [vmem:[#allocation8 + $0x4d0] sm:$0xff] }
 0x1d6   :  { %3761 = vmatpush1.bf16.msra.mxu1 %v5347_v18  ;;  %3921 = vmatpush1.bf16.msra.mxu0 %v5333_v19  ;;  %v631_v18 = vld [vmem:[#allocation8 + $0x3f0] sm:$0xff]  ;;  %v5395_v19 = vcombine.low %v634_v62, %v638_v3  ;;  %v682_v3 = vld [vmem:[#allocation8 + $0x588] sm:$0xff] }
 0x1d7   :  { %3762 = vmatprep.subr.bf16.mxu1 %v5356_v20  ;;  %3922 = vmatprep.subr.bf16.mxu0 %v5342_v23  ;;  %v5381_v20 = vcombine.low %v619_v4, %v623_v1  ;;  %v5404_v23 = vcombine.high %v642_v16, %v646_v13  ;;  %v5390_v25 = vcombine.high %v627_v17, %v631_v18  ;;  %v686_v4 = vld [vmem:[#allocation8 + $0x5a8] sm:$0xff]  ;;  %v667_v1 = vld [vmem:[#allocation8 + $0x510] sm:$0xff] }
 0x1da   :  { %3763 = vmatpush1.bf16.msra.mxu1 %v5355_v28  ;;  %3923 = vmatpush1.bf16.msra.mxu0 %v5341_v29  ;;  %v639_v28 = vld [vmem:[#allocation8 + $0x430] sm:$0xff]  ;;  %v5403_v29 = vcombine.low %v642_v16, %v646_v13  ;;  %v690_v13 = vld [vmem:[#allocation8 + $0x5c8] sm:$0xff] }
 0x1db   :  { %3764 = vmatprep.subr.bf16.mxu1 %v5364_v31  ;;  %3924 = vmatprep.subr.bf16.mxu0 %v5350_v34  ;;  %v5389_v31 = vcombine.low %v627_v17, %v631_v18  ;;  %v5412_v34 = vcombine.high %v650_v7, %v654_v26  ;;  %v5398_v35 = vcombine.high %v635_v27, %v639_v28  ;;  %v694_v17 = vld [vmem:[#allocation8 + $0x5e8] sm:$0xff]  ;;  %v675_v18 = vld [vmem:[#allocation8 + $0x550] sm:$0xff] }
 0x1de   :  { %3765 = vmatpush1.bf16.msra.mxu1 %v5363_v2  ;;  %3925 = vmatpush1.bf16.msra.mxu0 %v5349_v37  ;;  %v647_v2 = vld [vmem:[#allocation8 + $0x470] sm:$0xff]  ;;  %v5411_v37 = vcombine.low %v650_v7, %v654_v26  ;;  %v698_v26 = vld [vmem:[#allocation8 + $0x608] sm:$0xff] }
 0x1df   :  { %3766 = vmatprep.subr.bf16.mxu1 %v5372_v39  ;;  %3926 = vmatprep.subr.bf16.mxu0 %v5358_v41  ;;  %v5397_v39 = vcombine.low %v635_v27, %v639_v28  ;;  %v5420_v41 = vcombine.high %v658_v36, %v662_v59  ;;  %v5406_v42 = vcombine.high %v643_v0, %v647_v2  ;;  %v702_v27 = vld [vmem:[#allocation8 + $0x628] sm:$0xff]  ;;  %v683_v28 = vld [vmem:[#allocation8 + $0x590] sm:$0xff] }
 0x1e2   :  { %3767 = vmatpush1.bf16.msra.mxu1 %v5371_v47  ;;  %3927 = vmatpush1.bf16.msra.mxu0 %v5357_v48  ;;  %v655_v47 = vld [vmem:[#allocation8 + $0x4b0] sm:$0xff]  ;;  %v5419_v48 = vcombine.low %v658_v36, %v662_v59  ;;  %v706_v59 = vld [vmem:[#allocation8 + $0x648] sm:$0xff] }
 0x1e3   :  { %3768 = vmatprep.subr.bf16.mxu1 %v5380_v49  ;;  %3928 = vmatprep.subr.bf16.mxu0 %v5366_v50  ;;  %v5405_v49 = vcombine.low %v643_v0, %v647_v2  ;;  %v5428_v50 = vcombine.high %v666_v43, %v670_v44  ;;  %v5414_v53 = vcombine.high %v651_v45, %v655_v47  ;;  %v710_v0 = vld [vmem:[#allocation8 + $0x668] sm:$0xff]  ;;  %v691_v2 = vld [vmem:[#allocation8 + $0x5d0] sm:$0xff] }
 0x1e6   :  { %3769 = vmatpush1.bf16.msra.mxu1 %v5379_v57  ;;  %3929 = vmatpush1.bf16.msra.mxu0 %v5365_v58  ;;  %v663_v57 = vld [vmem:[#allocation8 + $0x4f0] sm:$0xff]  ;;  %v5427_v58 = vcombine.low %v666_v43, %v670_v44  ;;  %v714_v44 = vld [vmem:[#allocation8 + $0x688] sm:$0xff] }
 0x1e7   :  { %3770 = vmatprep.subr.bf16.mxu1 %v5388_v60  ;;  %3930 = vmatprep.subr.bf16.mxu0 %v5374_v61  ;;  %v5413_v60 = vcombine.low %v651_v45, %v655_v47  ;;  %v5436_v61 = vcombine.high %v674_v52, %v678_v55  ;;  %v5422_v62 = vcombine.high %v659_v56, %v663_v57  ;;  %v718_v45 = vld [vmem:[#allocation8 + $0x6a8] sm:$0xff]  ;;  %v699_v47 = vld [vmem:[#allocation8 + $0x610] sm:$0xff] }
 0x1ea   :  { %3771 = vmatpush1.bf16.msra.mxu1 %v5387_v11  ;;  %3931 = vmatpush1.bf16.msra.mxu0 %v5373_v14  ;;  %v671_v11 = vld [vmem:[#allocation8 + $0x530] sm:$0xff]  ;;  %v5435_v14 = vcombine.low %v674_v52, %v678_v55  ;;  %v722_v55 = vld [vmem:[#allocation8 + $0x6c8] sm:$0xff] }
 0x1eb   :  { %3781 = vmatprep.subr.bf16.mxu1 %v5396_v15  ;;  %3932 = vmatprep.subr.bf16.mxu0 %v5382_v22  ;;  %v5421_v15 = vcombine.low %v659_v56, %v663_v57  ;;  %v5444_v22 = vcombine.high %v682_v3, %v686_v4  ;;  %v5430_v16 = vcombine.high %v667_v1, %v671_v11  ;;  %v726_v56 = vld [vmem:[#allocation8 + $0x6e8] sm:$0xff]  ;;  %v707_v57 = vld [vmem:[#allocation8 + $0x650] sm:$0xff] }
 0x1ed   :  { %3773 = vmatmul.mubr.bf16.vlgmr.msra.gmra.mrb[12].mxu1 %v6568_v32 }
 0x1ee   :  { %3782 = vmatpush1.bf16.msra.mxu1 %v5395_v19  ;;  %3813 = vmatprep.mubr.bf16.mxu1 %v6579_v46  ;;  %v679_v19 = vld [vmem:[#allocation8 + $0x570] sm:$0xff] }
 0x1ef   :  { %3933 = vmatpush1.bf16.msra.mxu0 %v5381_v20  ;;  %3783 = vmatprep.subr.bf16.mxu1 %v5404_v23  ;;  %v5443_v20 = vcombine.low %v682_v3, %v686_v4  ;;  %v5429_v23 = vcombine.low %v667_v1, %v671_v11  ;;  %v5438_v7 = vcombine.high %v675_v18, %v679_v19  ;;  %v730_v4 = vld [vmem:[#allocation8 + $0x708] sm:$0xff]  ;;  %v715_v11 = vld [vmem:[#allocation8 + $0x690] sm:$0xff] }
 0x1f0   :  { %3934 = vmatprep.subr.bf16.mxu0 %v5390_v25  ;;  %v5452_v25 = vcombine.high %v690_v13, %v694_v17  ;;  %v734_v1 = vld [vmem:[#allocation8 + $0x728] sm:$0xff] }
 0x1f2   :  { %3784 = vmatpush1.bf16.msra.mxu1 %v5403_v29  ;;  %v687_v29 = vld [vmem:[#allocation8 + $0x5b0] sm:$0xff] }
 0x1f3   :  { %3935 = vmatpush1.bf16.msra.mxu0 %v5389_v31  ;;  %3785 = vmatprep.subr.bf16.mxu1 %v5412_v34  ;;  %v5451_v31 = vcombine.low %v690_v13, %v694_v17  ;;  %v5437_v34 = vcombine.low %v675_v18, %v679_v19  ;;  %v5446_v36 = vcombine.high %v683_v28, %v687_v29  ;;  %v738_v17 = vld [vmem:[#allocation8 + $0x748] sm:$0xff]  ;;  %v723_v19 = vld [vmem:[#allocation8 + $0x6d0] sm:$0xff] }
 0x1f4   :  { %3945 = vmatprep.subr.bf16.mxu0 %v5398_v35  ;;  %v5460_v35 = vcombine.high %v698_v26, %v702_v27  ;;  %v742_v18 = vld [vmem:[#allocation8 + $0x768] sm:$0xff] }
 0x1f6   :  { %3937 = vmatmul.mubr.bf16.vlgmr.msra.gmra.mrb[12].mxu0 %v6568_v32  ;;  %3786 = vmatpush1.bf16.msra.mxu1 %v5411_v37  ;;  %v695_v37 = vld [vmem:[#allocation8 + $0x5f0] sm:$0xff] }
 0x1f7   :  { %3946 = vmatpush1.bf16.msra.mxu0 %v5397_v39  ;;  %3977 = vmatprep.mubr.bf16.mxu0 %v6579_v46  ;;  %v5459_v39 = vcombine.low %v698_v26, %v702_v27  ;;  %v5454_v43 = vcombine.high %v691_v2, %v695_v37  ;;  %v746_v27 = vld [vmem:[#allocation8 + $0x788] sm:$0xff] }
 0x1f8   :  { %3787 = vmatprep.subr.bf16.mxu1 %v5420_v41  ;;  %3947 = vmatprep.subr.bf16.mxu0 %v5406_v42  ;;  %v5445_v41 = vcombine.low %v683_v28, %v687_v29  ;;  %v5468_v42 = vcombine.high %v706_v59, %v710_v0  ;;  %v750_v28 = vld [vmem:[#allocation8 + $0x7a8] sm:$0xff]  ;;  %v731_v29 = vld [vmem:[#allocation8 + $0x710] sm:$0xff] }
 0x1fa   :  { %3788 = vmatpush1.bf16.msra.mxu1 %v5419_v48  ;;  %v703_v48 = vld [vmem:[#allocation8 + $0x630] sm:$0xff] }
 0x1fb   :  { %3948 = vmatpush1.bf16.msra.mxu0 %v5405_v49  ;;  %3789 = vmatprep.subr.bf16.mxu1 %v5428_v50  ;;  %v5467_v49 = vcombine.low %v706_v59, %v710_v0  ;;  %v5453_v50 = vcombine.low %v691_v2, %v695_v37  ;;  %v5462_v52 = vcombine.high %v699_v47, %v703_v48  ;;  %v754_v0 = vld [vmem:[#allocation8 + $0x7c8] sm:$0xff]  ;;  %v739_v37 = vld [vmem:[#allocation8 + $0x750] sm:$0xff] }
 0x1fc   :  { %3949 = vmatprep.subr.bf16.mxu0 %v5414_v53  ;;  %v5476_v53 = vcombine.high %v714_v44, %v718_v45  ;;  %v758_v2 = vld [vmem:[#allocation8 + $0x7e8] sm:$0xff] }
 0x1fe   :  { %3790 = vmatpush1.bf16.msra.mxu1 %v5427_v58  ;;  %v711_v58 = vld [vmem:[#allocation8 + $0x670] sm:$0xff] }
 0x1ff   :  { %3950 = vmatpush1.bf16.msra.mxu0 %v5413_v60  ;;  %3791 = vmatprep.subr.bf16.mxu1 %v5436_v61  ;;  %v5475_v60 = vcombine.low %v714_v44, %v718_v45  ;;  %v5461_v61 = vcombine.low %v699_v47, %v703_v48  ;;  %v5470_v3 = vcombine.high %v707_v57, %v711_v58  ;;  %v762_v45 = vld [vmem:[#allocation8 + $0x808] sm:$0xff]  ;;  %v747_v48 = vld [vmem:[#allocation8 + $0x790] sm:$0xff] }
 0x200   :  { %3951 = vmatprep.subr.bf16.mxu0 %v5422_v62  ;;  %v5484_v62 = vcombine.high %v722_v55, %v726_v56  ;;  %v766_v47 = vld [vmem:[#allocation8 + $0x828] sm:$0xff] }
 0x202   :  { %3792 = vmatpush1.bf16.msra.mxu1 %v5435_v14  ;;  %v719_v14 = vld [vmem:[#allocation8 + $0x6b0] sm:$0xff] }
 0x203   :  { %3952 = vmatpush1.bf16.msra.mxu0 %v5421_v15  ;;  %3793 = vmatprep.subr.bf16.mxu1 %v5444_v22  ;;  %v5483_v15 = vcombine.low %v722_v55, %v726_v56  ;;  %v5469_v22 = vcombine.low %v707_v57, %v711_v58  ;;  %v5478_v13 = vcombine.high %v715_v11, %v719_v14  ;;  %v770_v56 = vld [vmem:[#allocation8 + $0x848] sm:$0xff]  ;;  %v755_v58 = vld [vmem:[#allocation8 + $0x7d0] sm:$0xff] }
 0x204   :  { %3953 = vmatprep.subr.bf16.mxu0 %v5430_v16  ;;  %v5492_v16 = vcombine.high %v730_v4, %v734_v1  ;;  %v774_v57 = vld [vmem:[#allocation8 + $0x868] sm:$0xff] }
 0x206   :  { %3794 = vmatpush1.bf16.msra.mxu1 %v5443_v20  ;;  %v727_v20 = vld [vmem:[#allocation8 + $0x6f0] sm:$0xff] }
 0x207   :  { %3954 = vmatpush1.bf16.msra.mxu0 %v5429_v23  ;;  %3795 = vmatprep.subr.bf16.mxu1 %v5452_v25  ;;  %v5491_v23 = vcombine.low %v730_v4, %v734_v1  ;;  %v5477_v25 = vcombine.low %v715_v11, %v719_v14  ;;  %v5486_v26 = vcombine.high %v723_v19, %v727_v20  ;;  %v778_v1 = vld [vmem:[#allocation8 + $0x888] sm:$0xff]  ;;  %v763_v14 = vld [vmem:[#allocation8 + $0x810] sm:$0xff] }
 0x208   :  { %3955 = vmatprep.subr.bf16.mxu0 %v5438_v7  ;;  %v5500_v7 = vcombine.high %v738_v17, %v742_v18  ;;  %v782_v11 = vld [vmem:[#allocation8 + $0x8a8] sm:$0xff] }
 0x20a   :  { %3796 = vmatpush1.bf16.msra.mxu1 %v5451_v31  ;;  %v735_v31 = vld [vmem:[#allocation8 + $0x730] sm:$0xff] }
 0x20b   :  { %3956 = vmatpush1.bf16.msra.mxu0 %v5437_v34  ;;  %3797 = vmatprep.subr.bf16.mxu1 %v5460_v35  ;;  %v5499_v34 = vcombine.low %v738_v17, %v742_v18  ;;  %v5485_v35 = vcombine.low %v723_v19, %v727_v20  ;;  %v5494_v59 = vcombine.high %v731_v29, %v735_v31  ;;  %v786_v18 = vld [vmem:[#allocation8 + $0x8c8] sm:$0xff]  ;;  %v771_v20 = vld [vmem:[#allocation8 + $0x850] sm:$0xff] }
 0x20c   :  { %3957 = vmatprep.subr.bf16.mxu0 %v5446_v36  ;;  %v5508_v36 = vcombine.high %v746_v27, %v750_v28  ;;  %v790_v19 = vld [vmem:[#allocation8 + $0x8e8] sm:$0xff] }
 0x20e   :  { %3798 = vmatpush1.bf16.msra.mxu1 %v5459_v39  ;;  %v743_v39 = vld [vmem:[#allocation8 + $0x770] sm:$0xff] }
 0x20f   :  { %3958 = vmatpush1.bf16.msra.mxu0 %v5445_v41  ;;  %3799 = vmatprep.subr.bf16.mxu1 %v5468_v42  ;;  %v5507_v41 = vcombine.low %v746_v27, %v750_v28  ;;  %v5493_v42 = vcombine.low %v731_v29, %v735_v31  ;;  %v5502_v44 = vcombine.high %v739_v37, %v743_v39  ;;  %v794_v28 = vld [vmem:[#allocation8 + $0x908] sm:$0xff]  ;;  %v779_v31 = vld [vmem:[#allocation8 + $0x890] sm:$0xff] }
 0x210   :  { %3959 = vmatprep.subr.bf16.mxu0 %v5454_v43  ;;  %v5516_v43 = vcombine.high %v754_v0, %v758_v2  ;;  %v798_v29 = vld [vmem:[#allocation8 + $0x928] sm:$0xff] }
 0x212   :  { %3800 = vmatpush1.bf16.msra.mxu1 %v5467_v49  ;;  %v751_v49 = vld [vmem:[#allocation8 + $0x7b0] sm:$0xff] }
 0x213   :  { %3960 = vmatpush1.bf16.msra.mxu0 %v5453_v50  ;;  %3801 = vmatprep.subr.bf16.mxu1 %v5476_v53  ;;  %v5515_v50 = vcombine.low %v754_v0, %v758_v2  ;;  %v5501_v53 = vcombine.low %v739_v37, %v743_v39  ;;  %v5510_v55 = vcombine.high %v747_v48, %v751_v49  ;;  %v802_v2 = vld [vmem:[#allocation8 + $0x948] sm:$0xff]  ;;  %v787_v39 = vld [vmem:[#allocation8 + $0x8d0] sm:$0xff] }
 0x214   :  { %3961 = vmatprep.subr.bf16.mxu0 %v5462_v52  ;;  %v5524_v52 = vcombine.high %v762_v45, %v766_v47  ;;  %v806_v37 = vld [vmem:[#allocation8 + $0x968] sm:$0xff] }
 0x216   :  { %3802 = vmatpush1.bf16.msra.mxu1 %v5475_v60  ;;  %v759_v60 = vld [vmem:[#allocation8 + $0x7f0] sm:$0xff] }
 0x217   :  { %3962 = vmatpush1.bf16.msra.mxu0 %v5461_v61  ;;  %3803 = vmatprep.subr.bf16.mxu1 %v5484_v62  ;;  %v5523_v61 = vcombine.low %v762_v45, %v766_v47  ;;  %v5509_v62 = vcombine.low %v747_v48, %v751_v49  ;;  %v5518_v4 = vcombine.high %v755_v58, %v759_v60  ;;  %v810_v47 = vld [vmem:[#allocation8 + $0x988] sm:$0xff]  ;;  %v795_v49 = vld [vmem:[#allocation8 + $0x910] sm:$0xff] }
 0x218   :  { %3963 = vmatprep.subr.bf16.mxu0 %v5470_v3  ;;  %v5532_v3 = vcombine.high %v770_v56, %v774_v57  ;;  %v814_v48 = vld [vmem:[#allocation8 + $0x9a8] sm:$0xff] }
 0x21a   :  { %3804 = vmatpush1.bf16.msra.mxu1 %v5483_v15  ;;  %v767_v15 = vld [vmem:[#allocation8 + $0x830] sm:$0xff] }
 0x21b   :  { %3964 = vmatpush1.bf16.msra.mxu0 %v5469_v22  ;;  %3805 = vmatprep.subr.bf16.mxu1 %v5492_v16  ;;  %v5531_v22 = vcombine.low %v770_v56, %v774_v57  ;;  %v5517_v16 = vcombine.low %v755_v58, %v759_v60  ;;  %v5526_v17 = vcombine.high %v763_v14, %v767_v15  ;;  %v818_v57 = vld [vmem:[#allocation8 + $0x9c8] sm:$0xff]  ;;  %v803_v60 = vld [vmem:[#allocation8 + $0x950] sm:$0xff] }
 0x21c   :  { %3965 = vmatprep.subr.bf16.mxu0 %v5478_v13  ;;  %v5540_v13 = vcombine.high %v778_v1, %v782_v11  ;;  %v822_v58 = vld [vmem:[#allocation8 + $0x9e8] sm:$0xff] }
 0x21e   :  { %3806 = vmatpush1.bf16.msra.mxu1 %v5491_v23  ;;  %v775_v23 = vld [vmem:[#allocation8 + $0x870] sm:$0xff] }
 0x21f   :  { %3966 = vmatpush1.bf16.msra.mxu0 %v5477_v25  ;;  %3807 = vmatprep.subr.bf16.mxu1 %v5500_v7  ;;  %v5539_v25 = vcombine.low %v778_v1, %v782_v11  ;;  %v5525_v7 = vcombine.low %v763_v14, %v767_v15  ;;  %v5534_v27 = vcombine.high %v771_v20, %v775_v23  ;;  %v826_v11 = vld [vmem:[#allocation8 + $0xa08] sm:$0xff]  ;;  %v811_v15 = vld [vmem:[#allocation8 + $0x990] sm:$0xff] }
 0x220   :  { %3967 = vmatprep.subr.bf16.mxu0 %v5486_v26  ;;  %v5548_v26 = vcombine.high %v786_v18, %v790_v19  ;;  %v830_v14 = vld [vmem:[#allocation8 + $0xa28] sm:$0xff] }
 0x222   :  { %3808 = vmatpush1.bf16.msra.mxu1 %v5499_v34  ;;  %v783_v34 = vld [vmem:[#allocation8 + $0x8b0] sm:$0xff] }
 0x223   :  { %3968 = vmatpush1.bf16.msra.mxu0 %v5485_v35  ;;  %3809 = vmatprep.subr.bf16.mxu1 %v5508_v36  ;;  %v5547_v35 = vcombine.low %v786_v18, %v790_v19  ;;  %v5533_v36 = vcombine.low %v771_v20, %v775_v23  ;;  %v5542_v0 = vcombine.high %v779_v31, %v783_v34  ;;  %v834_v19 = vld [vmem:[#allocation8 + $0xa48] sm:$0xff]  ;;  %v819_v23 = vld [vmem:[#allocation8 + $0x9d0] sm:$0xff] }
 0x224   :  { %3969 = vmatprep.subr.bf16.mxu0 %v5494_v59  ;;  %v5556_v59 = vcombine.high %v794_v28, %v798_v29  ;;  %v838_v20 = vld [vmem:[#allocation8 + $0xa68] sm:$0xff] }
 0x226   :  { %3810 = vmatpush1.bf16.msra.mxu1 %v5507_v41  ;;  %v791_v41 = vld [vmem:[#allocation8 + $0x8f0] sm:$0xff] }
 0x227   :  { %3970 = vmatpush1.bf16.msra.mxu0 %v5493_v42  ;;  %3811 = vmatprep.subr.bf16.mxu1 %v5516_v43  ;;  %v5555_v42 = vcombine.low %v794_v28, %v798_v29  ;;  %v5541_v43 = vcombine.low %v779_v31, %v783_v34  ;;  %v5550_v45 = vcombine.high %v787_v39, %v791_v41  ;;  %v842_v29 = vld [vmem:[#allocation8 + $0xa88] sm:$0xff]  ;;  %v827_v34 = vld [vmem:[#allocation8 + $0xa10] sm:$0xff] }
 0x228   :  { %3971 = vmatprep.subr.bf16.mxu0 %v5502_v44  ;;  %v5564_v44 = vcombine.high %v802_v2, %v806_v37  ;;  %v846_v31 = vld [vmem:[#allocation8 + $0xaa8] sm:$0xff] }
 0x22a   :  { %3812 = vmatpush1.bf16.msra.mxu1 %v5515_v50  ;;  %v799_v50 = vld [vmem:[#allocation8 + $0x930] sm:$0xff] }
 0x22b   :  { %3972 = vmatpush1.bf16.msra.mxu0 %v5501_v53  ;;  %3822 = vmatprep.subr.bf16.mxu1 %v5524_v52  ;;  %v5563_v53 = vcombine.low %v802_v2, %v806_v37  ;;  %v5549_v52 = vcombine.low %v787_v39, %v791_v41  ;;  %v5558_v56 = vcombine.high %v795_v49, %v799_v50  ;;  %v850_v37 = vld [vmem:[#allocation8 + $0xac8] sm:$0xff]  ;;  %v835_v41 = vld [vmem:[#allocation8 + $0xa50] sm:$0xff] }
 0x22c   :  { %3973 = vmatprep.subr.bf16.mxu0 %v5510_v55  ;;  %v5572_v55 = vcombine.high %v810_v47, %v814_v48  ;;  %v854_v39 = vld [vmem:[#allocation8 + $0xae8] sm:$0xff] }
 0x22d   :  { %3814 = vmatmul.mubr.bf16.vlgmr.msra.gmra.mrb[12].mxu1 %v6610_v63 }
 0x22e   :  { %3823 = vmatpush1.bf16.msra.mxu1 %v5523_v61  ;;  %3854 = vmatprep.mubr.bf16.mxu1 %v6589_v12  ;;  %v807_v61 = vld [vmem:[#allocation8 + $0x970] sm:$0xff] }
 0x22f   :  { %3974 = vmatpush1.bf16.msra.mxu0 %v5509_v62  ;;  %3824 = vmatprep.subr.bf16.mxu1 %v5532_v3  ;;  %v5571_v62 = vcombine.low %v810_v47, %v814_v48  ;;  %v5557_v3 = vcombine.low %v795_v49, %v799_v50  ;;  %v5566_v1 = vcombine.high %v803_v60, %v807_v61  ;;  %v858_v48 = vld [vmem:[#allocation8 + $0xb08] sm:$0xff]  ;;  %v843_v50 = vld [vmem:[#allocation8 + $0xa90] sm:$0xff] }
 0x230   :  { %3975 = vmatprep.subr.bf16.mxu0 %v5518_v4  ;;  %v5580_v4 = vcombine.high %v818_v57, %v822_v58  ;;  %v862_v49 = vld [vmem:[#allocation8 + $0xb28] sm:$0xff] }
 0x232   :  { %3825 = vmatpush1.bf16.msra.mxu1 %v5531_v22  ;;  %v815_v22 = vld [vmem:[#allocation8 + $0x9b0] sm:$0xff] }
 0x233   :  { %3976 = vmatpush1.bf16.msra.mxu0 %v5517_v16  ;;  %3826 = vmatprep.subr.bf16.mxu1 %v5540_v13  ;;  %v5579_v16 = vcombine.low %v818_v57, %v822_v58  ;;  %v5565_v13 = vcombine.low %v803_v60, %v807_v61  ;;  %v5574_v18 = vcombine.high %v811_v15, %v815_v22  ;;  %v866_v58 = vld [vmem:[#allocation8 + $0xb48] sm:$0xff]  ;;  %v851_v61 = vld [vmem:[#allocation8 + $0xad0] sm:$0xff] }
 0x234   :  { %3986 = vmatprep.subr.bf16.mxu0 %v5526_v17  ;;  %v5588_v17 = vcombine.high %v826_v11, %v830_v14  ;;  %v870_v60 = vld [vmem:[#allocation8 + $0xb68] sm:$0xff] }
 0x236   :  { %3978 = vmatmul.mubr.bf16.vlgmr.msra.gmra.mrb[12].mxu0 %v6610_v63  ;;  %3827 = vmatpush1.bf16.msra.mxu1 %v5539_v25  ;;  %v823_v25 = vld [vmem:[#allocation8 + $0x9f0] sm:$0xff] }
 0x237   :  { %3987 = vmatpush1.bf16.msra.mxu0 %v5525_v7  ;;  %4018 = vmatprep.mubr.bf16.mxu0 %v6589_v12  ;;  %v5587_v7 = vcombine.low %v826_v11, %v830_v14  ;;  %v5582_v28 = vcombine.high %v819_v23, %v823_v25  ;;  %v874_v14 = vld [vmem:[#allocation8 + $0xb88] sm:$0xff] }
 0x238   :  { %3828 = vmatprep.subr.bf16.mxu1 %v5548_v26  ;;  %3988 = vmatprep.subr.bf16.mxu0 %v5534_v27  ;;  %v5573_v26 = vcombine.low %v811_v15, %v815_v22  ;;  %v5596_v27 = vcombine.high %v834_v19, %v838_v20  ;;  %v878_v15 = vld [vmem:[#allocation8 + $0xba8] sm:$0xff]  ;;  %v859_v22 = vld [vmem:[#allocation8 + $0xb10] sm:$0xff] }
 0x23a   :  { %3829 = vmatpush1.bf16.msra.mxu1 %v5547_v35  ;;  %v831_v35 = vld [vmem:[#allocation8 + $0xa30] sm:$0xff] }
 0x23b   :  { %3989 = vmatpush1.bf16.msra.mxu0 %v5533_v36  ;;  %3830 = vmatprep.subr.bf16.mxu1 %v5556_v59  ;;  %v5595_v36 = vcombine.low %v834_v19, %v838_v20  ;;  %v5581_v59 = vcombine.low %v819_v23, %v823_v25  ;;  %v5590_v2 = vcombine.high %v827_v34, %v831_v35  ;;  %v882_v20 = vld [vmem:[#allocation8 + $0xbc8] sm:$0xff]  ;;  %v867_v25 = vld [vmem:[#allocation8 + $0xb50] sm:$0xff] }
 0x23c   :  { %3990 = vmatprep.subr.bf16.mxu0 %v5542_v0  ;;  %v5604_v0 = vcombine.high %v842_v29, %v846_v31  ;;  %v886_v23 = vld [vmem:[#allocation8 + $0xbe8] sm:$0xff] }
 0x23e   :  { %3831 = vmatpush1.bf16.msra.mxu1 %v5555_v42  ;;  %v839_v42 = vld [vmem:[#allocation8 + $0xa70] sm:$0xff] }
 0x23f   :  { %3991 = vmatpush1.bf16.msra.mxu0 %v5541_v43  ;;  %3832 = vmatprep.subr.bf16.mxu1 %v5564_v44  ;;  %v5603_v43 = vcombine.low %v842_v29, %v846_v31  ;;  %v5589_v44 = vcombine.low %v827_v34, %v831_v35  ;;  %v5598_v47 = vcombine.high %v835_v41, %v839_v42  ;;  %v890_v31 = vld [vmem:[#allocation8 + $0xc08] sm:$0xff]  ;;  %v875_v35 = vld [vmem:[#allocation8 + $0xb90] sm:$0xff] }
 0x240   :  { %3992 = vmatprep.subr.bf16.mxu0 %v5550_v45  ;;  %v5612_v45 = vcombine.high %v850_v37, %v854_v39  ;;  %v894_v34 = vld [vmem:[#allocation8 + $0xc28] sm:$0xff] }
 0x242   :  { %3833 = vmatpush1.bf16.msra.mxu1 %v5563_v53  ;;  %v847_v53 = vld [vmem:[#allocation8 + $0xab0] sm:$0xff] }
 0x243   :  { %3993 = vmatpush1.bf16.msra.mxu0 %v5549_v52  ;;  %3834 = vmatprep.subr.bf16.mxu1 %v5572_v55  ;;  %v5611_v52 = vcombine.low %v850_v37, %v854_v39  ;;  %v5597_v55 = vcombine.low %v835_v41, %v839_v42  ;;  %v5606_v57 = vcombine.high %v843_v50, %v847_v53  ;;  %v898_v39 = vld [vmem:[#allocation8 + $0xc48] sm:$0xff]  ;;  %v883_v42 = vld [vmem:[#allocation8 + $0xbd0] sm:$0xff] }
 0x244   :  { %3994 = vmatprep.subr.bf16.mxu0 %v5558_v56  ;;  %v5620_v56 = vcombine.high %v858_v48, %v862_v49  ;;  %v902_v41 = vld [vmem:[#allocation8 + $0xc68] sm:$0xff] }
 0x246   :  { %3835 = vmatpush1.bf16.msra.mxu1 %v5571_v62  ;;  %v855_v62 = vld [vmem:[#allocation8 + $0xaf0] sm:$0xff] }
 0x247   :  { %3995 = vmatpush1.bf16.msra.mxu0 %v5557_v3  ;;  %3836 = vmatprep.subr.bf16.mxu1 %v5580_v4  ;;  %v5619_v3 = vcombine.low %v858_v48, %v862_v49  ;;  %v5605_v4 = vcombine.low %v843_v50, %v847_v53  ;;  %v5614_v11 = vcombine.high %v851_v61, %v855_v62  ;;  %v906_v49 = vld [vmem:[#allocation8 + $0xc88] sm:$0xff]  ;;  %v891_v53 = vld [vmem:[#allocation8 + $0xc10] sm:$0xff] }
 0x248   :  { %3996 = vmatprep.subr.bf16.mxu0 %v5566_v1  ;;  %v5628_v1 = vcombine.high %v866_v58, %v870_v60  ;;  %v910_v50 = vld [vmem:[#allocation8 + $0xca8] sm:$0xff] }
 0x24a   :  { %3837 = vmatpush1.bf16.msra.mxu1 %v5579_v16  ;;  %v863_v16 = vld [vmem:[#allocation8 + $0xb30] sm:$0xff] }
 0x24b   :  { %3997 = vmatpush1.bf16.msra.mxu0 %v5565_v13  ;;  %3838 = vmatprep.subr.bf16.mxu1 %v5588_v17  ;;  %v5627_v13 = vcombine.low %v866_v58, %v870_v60  ;;  %v5613_v17 = vcombine.low %v851_v61, %v855_v62  ;;  %v5622_v19 = vcombine.high %v859_v22, %v863_v16  ;;  %v914_v60 = vld [vmem:[#allocation8 + $0xcc8] sm:$0xff]  ;;  %v899_v62 = vld [vmem:[#allocation8 + $0xc50] sm:$0xff] }
 0x24c   :  { %3998 = vmatprep.subr.bf16.mxu0 %v5574_v18  ;;  %v5636_v18 = vcombine.high %v874_v14, %v878_v15  ;;  %v918_v61 = vld [vmem:[#allocation8 + $0xce8] sm:$0xff] }
 0x24e   :  { %3839 = vmatpush1.bf16.msra.mxu1 %v5587_v7  ;;  %v871_v7 = vld [vmem:[#allocation8 + $0xb70] sm:$0xff] }
 0x24f   :  { %3999 = vmatpush1.bf16.msra.mxu0 %v5573_v26  ;;  %3840 = vmatprep.subr.bf16.mxu1 %v5596_v27  ;;  %v5635_v26 = vcombine.low %v874_v14, %v878_v15  ;;  %v5621_v27 = vcombine.low %v859_v22, %v863_v16  ;;  %v5630_v29 = vcombine.high %v867_v25, %v871_v7  ;;  %v922_v15 = vld [vmem:[#allocation8 + $0xd08] sm:$0xff]  ;;  %v907_v16 = vld [vmem:[#allocation8 + $0xc90] sm:$0xff] }
 0x250   :  { %4000 = vmatprep.subr.bf16.mxu0 %v5582_v28  ;;  %v5644_v28 = vcombine.high %v882_v20, %v886_v23  ;;  %v926_v22 = vld [vmem:[#allocation8 + $0xd28] sm:$0xff] }
 0x252   :  { %3841 = vmatpush1.bf16.msra.mxu1 %v5595_v36  ;;  %v879_v36 = vld [vmem:[#allocation8 + $0xbb0] sm:$0xff] }
 0x253   :  { %4001 = vmatpush1.bf16.msra.mxu0 %v5581_v59  ;;  %3842 = vmatprep.subr.bf16.mxu1 %v5604_v0  ;;  %v5643_v59 = vcombine.low %v882_v20, %v886_v23  ;;  %v5629_v0 = vcombine.low %v867_v25, %v871_v7  ;;  %v5638_v37 = vcombine.high %v875_v35, %v879_v36  ;;  %v930_v23 = vld [vmem:[#allocation8 + $0xd48] sm:$0xff]  ;;  %v915_v7 = vld [vmem:[#allocation8 + $0xcd0] sm:$0xff] }
 0x254   :  { %4002 = vmatprep.subr.bf16.mxu0 %v5590_v2  ;;  %v5652_v2 = vcombine.high %v890_v31, %v894_v34  ;;  %v934_v25 = vld [vmem:[#allocation8 + $0xd68] sm:$0xff] }
 0x256   :  { %3843 = vmatpush1.bf16.msra.mxu1 %v5603_v43  ;;  %v887_v43 = vld [vmem:[#allocation8 + $0xbf0] sm:$0xff] }
 0x257   :  { %4003 = vmatpush1.bf16.msra.mxu0 %v5589_v44  ;;  %3844 = vmatprep.subr.bf16.mxu1 %v5612_v45  ;;  %v5651_v44 = vcombine.low %v890_v31, %v894_v34  ;;  %v5637_v45 = vcombine.low %v875_v35, %v879_v36  ;;  %v5646_v48 = vcombine.high %v883_v42, %v887_v43  ;;  %v938_v34 = vld [vmem:[#allocation8 + $0xd88] sm:$0xff]  ;;  %v923_v36 = vld [vmem:[#allocation8 + $0xd10] sm:$0xff] }
 0x258   :  { %4004 = vmatprep.subr.bf16.mxu0 %v5598_v47  ;;  %v5660_v47 = vcombine.high %v898_v39, %v902_v41  ;;  %v942_v35 = vld [vmem:[#allocation8 + $0xda8] sm:$0xff] }
 0x25a   :  { %3845 = vmatpush1.bf16.msra.mxu1 %v5611_v52  ;;  %v895_v52 = vld [vmem:[#allocation8 + $0xc30] sm:$0xff] }
 0x25b   :  { %4005 = vmatpush1.bf16.msra.mxu0 %v5597_v55  ;;  %3846 = vmatprep.subr.bf16.mxu1 %v5620_v56  ;;  %v5659_v55 = vcombine.low %v898_v39, %v902_v41  ;;  %v5645_v56 = vcombine.low %v883_v42, %v887_v43  ;;  %v5654_v58 = vcombine.high %v891_v53, %v895_v52  ;;  %v1005_v39 = vld [vmem:[#allocation10] sm:$0xff]  ;;  %v946_v43 = vld [vmem:[#allocation8 + $0xdc8] sm:$0xff] }
 0x25c   :  { %4006 = vmatprep.subr.bf16.mxu0 %v5606_v57  ;;  %v5668_v57 = vcombine.high %v906_v49, %v910_v50 }
 0x25e   :  { %3847 = vmatpush1.bf16.msra.mxu1 %v5619_v3  ;;  %v903_v3 = vld [vmem:[#allocation8 + $0xc70] sm:$0xff] }
 0x25f   :  { %4007 = vmatpush1.bf16.msra.mxu0 %v5605_v4  ;;  %3848 = vmatprep.subr.bf16.mxu1 %v5628_v1  ;;  %v5667_v4 = vcombine.low %v906_v49, %v910_v50  ;;  %v5653_v1 = vcombine.low %v891_v53, %v895_v52  ;;  %v5662_v14 = vcombine.high %v899_v62, %v903_v3 }
 0x260   :  { %4008 = vmatprep.subr.bf16.mxu0 %v5614_v11  ;;  %v5676_v11 = vcombine.high %v914_v60, %v918_v61  ;;  %v5699_v50 = vcombine.low %v938_v34, %v942_v35  ;;  %v1010_v53 = vrot.slane %v1005_v39, %v6547_v6 }
 0x262   :  { %3849 = vmatpush1.bf16.msra.mxu1 %v5627_v13  ;;  %v911_v13 = vld [vmem:[#allocation8 + $0xcb0] sm:$0xff] }
 0x263   :  { %4009 = vmatpush1.bf16.msra.mxu0 %v5613_v17  ;;  %3850 = vmatprep.subr.bf16.mxu1 %v5636_v18  ;;  %v5675_v17 = vcombine.low %v914_v60, %v918_v61  ;;  %v5661_v18 = vcombine.low %v899_v62, %v903_v3  ;;  %v5670_v20 = vcombine.high %v907_v16, %v911_v13  ;;  %v954_v60 = vld [vmem:[#allocation8 + $0xe08] sm:$0xff]  ;;  %v939_v62 = vld [vmem:[#allocation8 + $0xd90] sm:$0xff] }
 0x264   :  { %4010 = vmatprep.subr.bf16.mxu0 %v5622_v19  ;;  %v5684_v19 = vcombine.high %v922_v15, %v926_v22  ;;  %v958_v61 = vld [vmem:[#allocation8 + $0xe28] sm:$0xff]  ;;  %v943_v3 = vld [vmem:[#allocation8 + $0xdb0] sm:$0xff] }
 0x266   :  { %3851 = vmatpush1.bf16.msra.mxu1 %v5635_v26  ;;  %v919_v26 = vld [vmem:[#allocation8 + $0xcf0] sm:$0xff] }
 0x267   :  { %4011 = vmatpush1.bf16.msra.mxu0 %v5621_v27  ;;  %3852 = vmatprep.subr.bf16.mxu1 %v5644_v28  ;;  %v5683_v27 = vcombine.low %v922_v15, %v926_v22  ;;  %v5669_v28 = vcombine.low %v907_v16, %v911_v13  ;;  %v5678_v31 = vcombine.high %v915_v7, %v919_v26  ;;  %v962_v13 = vld [vmem:[#allocation8 + $0xe48] sm:$0xff] }
 0x268   :  { %4012 = vmatprep.subr.bf16.mxu0 %v5630_v29  ;;  %v5692_v29 = vcombine.high %v930_v23, %v934_v25  ;;  %v5702_v16 = vcombine.high %v939_v62, %v943_v3 }
 0x26a   :  { %3853 = vmatpush1.bf16.msra.mxu1 %v5643_v59  ;;  %v927_v59 = vld [vmem:[#allocation8 + $0xd30] sm:$0xff] }
 0x26b   :  { %4013 = vmatpush1.bf16.msra.mxu0 %v5629_v0  ;;  %3863 = vmatprep.subr.bf16.mxu1 %v5652_v2  ;;  %v5691_v0 = vcombine.low %v930_v23, %v934_v25  ;;  %v5677_v2 = vcombine.low %v915_v7, %v919_v26  ;;  %v5686_v42 = vcombine.high %v923_v36, %v927_v59  ;;  %v951_v23 = vld [vmem:[#allocation8 + $0xdf0] sm:$0xff] }
 0x26c   :  { %4014 = vmatprep.subr.bf16.mxu0 %v5638_v37  ;;  %v5700_v37 = vcombine.high %v938_v34, %v942_v35  ;;  %v5715_v7 = vcombine.low %v954_v60, %v958_v61  ;;  %v970_v34 = vld [vmem:[#allocation8 + $0xe88] sm:$0xff] }
 0x26d   :  { %3855 = vmatmul.mubr.bf16.vlgmr.msra.gmra.mrb[12].mxu1 %v6587_v9  ;;  %v974_v35 = vld [vmem:[#allocation8 + $0xea8] sm:$0xff] }
 0x26e   :  { %3864 = vmatpush1.bf16.msra.mxu1 %v5651_v44  ;;  %5772 = vmatprep.mubr.msk.bf16.mxu1 %vm3547_vm3, %v6596_v33  ;;  %v950_v44 = vld [vmem:[#allocation8 + $0xde8] sm:$0xff] }
 0x26f   :  { %4015 = vmatpush1.bf16.msra.mxu0 %v5637_v45  ;;  %3865 = vmatprep.subr.bf16.mxu1 %v5660_v47  ;;  %v931_v47 = vld [vmem:[#allocation8 + $0xd50] sm:$0xff] }
 0x270   :  { %4016 = vmatprep.subr.bf16.mxu0 %v5646_v48  ;;  %v935_v48 = vld [vmem:[#allocation8 + $0xd70] sm:$0xff] }
 0x272   :  { %3866 = vmatpush1.bf16.msra.mxu1 %v5659_v55  ;;  %v5685_v55 = vcombine.low %v923_v36, %v927_v59  ;;  %v955_v36 = vld [vmem:[#allocation8 + $0xe10] sm:$0xff] }
 0x273   :  { %4017 = vmatpush1.bf16.msra.mxu0 %v5645_v56  ;;  %3867 = vmatprep.subr.bf16.mxu1 %v5668_v57  ;;  %v5708_v56 = vcombine.high %v946_v43, %v950_v44  ;;  %v1014_v57 = vrot.slane %v1005_v39, %v6552_v8  ;;  %v959_v59 = vld [vmem:[#allocation8 + $0xe30] sm:$0xff] }
 0x274   :  { %4027 = vmatprep.subr.bf16.mxu0 %v5654_v58  ;;  %v5694_v58 = vcombine.high %v931_v47, %v935_v48  ;;  %v5718_v39 = vcombine.high %v955_v36, %v959_v59 }
 0x276   :  { %4019 = vmatmul.mubr.bf16.vlgmr.msra.gmra.mrb[12].mxu0 %v6587_v9  ;;  %3868 = vmatpush1.bf16.msra.mxu1 %v5667_v4  ;;  %v5707_v4 = vcombine.low %v946_v43, %v950_v44  ;;  %v963_v43 = vld [vmem:[#allocation8 + $0xe50] sm:$0xff] }
 0x277   :  { %4028 = vmatpush1.bf16.msra.mxu0 %v5653_v1  ;;  %5774 = vmatprep.mubr.msk.bf16.mxu0 %vm3547_vm3, %v6596_v33  ;;  %v967_v44 = vld [vmem:[#allocation8 + $0xe70] sm:$0xff] }
 0x278   :  { %3869 = vmatprep.subr.bf16.mxu1 %v5676_v11  ;;  %4029 = vmatprep.subr.bf16.mxu0 %v5662_v14  ;;  %v5693_v11 = vcombine.low %v931_v47, %v935_v48  ;;  %v5716_v14 = vcombine.high %v954_v60, %v958_v61  ;;  %v5717_v47 = vcombine.low %v955_v36, %v959_v59  ;;  %v994_v61 = vld [vmem:[#allocation8 + $0xf48] sm:$0xff]  ;;  %v516_v59 = vld [vmem:[#allocation8 + $0x58] sm:$0xff] }
 0x27a   :  { %3870 = vmatpush1.bf16.msra.mxu1 %v5675_v17  ;;  %v966_v17 = vld [vmem:[#allocation8 + $0xe68] sm:$0xff] }
 0x27b   :  { %4030 = vmatpush1.bf16.msra.mxu0 %v5661_v18  ;;  %3871 = vmatprep.subr.bf16.mxu1 %v5684_v19 }
 0x27c   :  { %4031 = vmatprep.subr.bf16.mxu0 %v5670_v20  ;;  %v947_v20 = vld [vmem:[#allocation8 + $0xdd0] sm:$0xff] }
 0x27e   :  { %3872 = vmatpush1.bf16.msra.mxu1 %v5683_v27  ;;  %v5701_v27 = vcombine.low %v939_v62, %v943_v3  ;;  %v998_v62 = vld [vmem:[#allocation8 + $0xf68] sm:$0xff]  ;;  %v979_v3 = vld [vmem:[#allocation8 + $0xed0] sm:$0xff] }
 0x27f   :  { %4032 = vmatpush1.bf16.msra.mxu0 %v5669_v28  ;;  %3873 = vmatprep.subr.bf16.mxu1 %v5692_v29  ;;  %v5724_v28 = vcombine.high %v962_v13, %v966_v17 }
 0x280   :  { %v3651_v41 = vpop.f32.mrb[8].mxu1  ;;  %4033 = vmatprep.subr.bf16.mxu0 %v5678_v31  ;;  %v5710_v31 = vcombine.high %v947_v20, %v951_v23 }
 0x281   :  { %v3653_v45 = vpop.f32.mrb[9].mxu1  ;;  %v5906_v1 = vadd.f32 %v3651_v41, %v1010_v53  ;;  %v978_v41 = vld [vmem:[#allocation8 + $0xec8] sm:$0xff] }
 0x282   :  { %v3655_v49 = vpop.f32.mrb[10].mxu1  ;;  %3874 = vmatpush1.bf16.msra.mxu1 %v5691_v0  ;;  %v5908_v15 = vadd.f32 %v3653_v45, %v1014_v57  ;;  %v5723_v0 = vcombine.low %v962_v13, %v966_v17  ;;  %v5731_v45 = vcombine.low %v970_v34, %v974_v35  ;;  %v990_v53 = vld [vmem:[#allocation8 + $0xf28] sm:$0xff]  ;;  %v5725_v57 = vcombine.low %v963_v43, %v967_v44  ;;  %v991_v13 = vld [vmem:[#allocation8 + $0xf30] sm:$0xff] }
 0x283   :  { %4034 = vmatpush1.bf16.msra.mxu0 %v5677_v2  ;;  %v3656_v52 = vpop.f32.mrb[11].mxu1  ;;  %3875 = vmatprep.subr.bf16.mxu1 %v5700_v37  ;;  %v5709_v2 = vcombine.low %v947_v20, %v951_v23  ;;  %v5732_v37 = vcombine.high %v970_v34, %v974_v35  ;;  %v5726_v49 = vcombine.high %v963_v43, %v967_v44  ;;  %v524_v44 = vld [vmem:[#allocation8 + $0x98] sm:$0xff] }
 0x284   :  { %4035 = vmatprep.subr.bf16.mxu0 %v5686_v42  ;;  %v982_v42 = vld [vmem:[#allocation8 + $0xee8] sm:$0xff]  ;;  %v971_v52 = vld [vmem:[#allocation8 + $0xe90] sm:$0xff]  ;;  %v5755_v17 = vcombine.low %v994_v61, %v998_v62 }
 0x285   :  { %v5740_v48 = vcombine.high %v978_v41, %v982_v42 }
 0x286   :  { %3876 = vmatpush1.bf16.msra.mxu1 %v5699_v50  ;;  %v986_v50 = vld [vmem:[#allocation8 + $0xf08] sm:$0xff] }
 0x287   :  { %4036 = vmatpush1.bf16.msra.mxu0 %v5685_v55  ;;  %3877 = vmatprep.subr.bf16.mxu1 %v5708_v56  ;;  %v975_v55 = vld [vmem:[#allocation8 + $0xeb0] sm:$0xff]  ;;  %v5739_v56 = vcombine.low %v978_v41, %v982_v42 }
 0x288   :  { %v3733_v22 = vpop.f32.mrb[8].mxu0  ;;  %4037 = vmatprep.subr.bf16.mxu0 %v5694_v58  ;;  %v5748_v58 = vcombine.high %v986_v50, %v990_v53  ;;  %v5734_v60 = vcombine.high %v971_v52, %v975_v55 }
 0x289   :  { %v6636_v18 = vadd.f32 %v5906_v1, %v3733_v22  ;;  %v3735_v19 = vpop.f32.mrb[9].mxu0  ;;  %v5747_v1 = vcombine.low %v986_v50, %v990_v53  ;;  %v1002_v22 = vld [vmem:[#allocation8 + $0xf88] sm:$0xff]  ;;  %v6001_v53 = vld [vmem:[%s7074_s5 + $0x4] ss:$8 sps:$4 sm:$0xff]  }
 0x28a   :  { %v6638_v25 = vadd.f32 %v5908_v15, %v3735_v19  ;;  %3878 = vmatpush1.bf16.msra.mxu1 %v5707_v4  ;;  %v3737_v26 = vpop.f32.mrb[10].mxu0  ;;  %v983_v4 = vld [vmem:[#allocation8 + $0xef0] sm:$0xff]  ;;  %v5764_v20 = vcombine.high %v1002_v22, %v1002_v22  ;;  %v5763_v23 = vcombine.low %v1002_v22, %v1002_v22 }
 0x28b   :  { %4038 = vmatpush1.bf16.msra.mxu0 %v5693_v11  ;;  %3879 = vmatprep.subr.bf16.mxu1 %v5716_v14  ;;  %v3738_v29 = vpop.f32.mrb[11].mxu0  ;;  %v5733_v11 = vcombine.low %v971_v52, %v975_v55  ;;  %v5756_v14 = vcombine.high %v994_v61, %v998_v62  ;;  %v5742_v15 = vcombine.high %v979_v3, %v983_v4  ;;  %v508_v26 = vld [vmem:[#allocation8 + $0x18] sm:$0xff] }
 0x28c   :  { %4039 = vmatprep.subr.bf16.mxu0 %v5702_v16  ;;  %v987_v16 = vld [vmem:[#allocation8 + $0xf10] sm:$0xff]  ;;  %v5741_v19 = vcombine.low %v979_v3, %v983_v4  ;;  %v3559_v34 = vsel %vm3551_vm4, %v5763_v23, 0  ;;  %v532_v55 = vld [vmem:[#allocation8 + $0xd8] sm:$0xff] }
 0x28d   :  { %v999_v29 = vld [vmem:[#allocation8 + $0xf70] sm:$0xff]  ;;  %v544_v61 = vld [vmem:[#allocation8 + $0x138] sm:$0xff] }
 0x28e   :  { %3880 = vmatpush1.bf16.msra.mxu1 %v5715_v7  ;;  %v5750_v7 = vcombine.high %v987_v16, %v991_v13  ;;  %v6002_v4 = vld [vmem:[%s7074_s5 + $0x10] ss:$8 sps:$4 sm:$0xff]  }
 0x28f   :  { %4040 = vmatpush1.bf16.msra.mxu0 %v5701_v27  ;;  %3881 = vmatprep.subr.bf16.mxu1 %v5724_v28  ;;  %v512_v27 = vld [vmem:[#allocation8 + $0x38] sm:$0xff]  ;;  %v995_v28 = vld [vmem:[#allocation8 + $0xf50] sm:$0xff] }
 0x290   :  { %4041 = vmatprep.subr.bf16.mxu0 %v5710_v31  ;;  %v5749_v31 = vcombine.low %v987_v16, %v991_v13  ;;  %v5272_v35 = vcombine.high %v508_v26, %v512_v27  ;;  %v5758_v36 = vcombine.high %v995_v28, %v999_v29  ;;  %v6005_v16 = vld [vmem:[%s7074_s5 + $0x20] ss:$8 sps:$4 sm:$0xff]  }
 0x292   :  { %3882 = vmatpush1.bf16.msra.mxu1 %v5723_v0  ;;  %v520_v0 = vld [vmem:[#allocation8 + $0x78] sm:$0xff] }
 0x293   :  { %4042 = vmatpush1.bf16.msra.mxu0 %v5709_v2  ;;  %3883 = vmatprep.subr.bf16.mxu1 %v5732_v37  ;;  %v1003_v2 = vld [vmem:[#allocation8 + $0xf90] sm:$0xff]  ;;  %v5271_v37 = vcombine.low %v508_v26, %v512_v27  ;;  %v5280_v41 = vcombine.high %v516_v59, %v520_v0 }
 0x294   :  { %4043 = vmatprep.subr.bf16.mxu0 %v5718_v39  ;;  %v5757_v39 = vcombine.low %v995_v28, %v999_v29  ;;  %v5766_v42 = vcombine.high %v1003_v2, %v1003_v2  ;;  %v5765_v43 = vcombine.low %v1003_v2, %v1003_v2  ;;  %v6013_v27 = vld [vmem:[%s7074_s5 + $0x44] ss:$8 sps:$4 sm:$0xff]  }
 0x295   :  { %v564_v28 = vld [vmem:[#allocation8 + $0x1d8] sm:$0xff] }
 0x296   :  { %3884 = vmatpush1.bf16.msra.mxu1 %v5731_v45  ;;  %v528_v45 = vld [vmem:[#allocation8 + $0xb8] sm:$0xff]  ;;  %v3565_v50 = vsel %vm3551_vm4, %v5765_v43, 0 }
 0x297   :  { %4044 = vmatpush1.bf16.msra.mxu0 %v5717_v47  ;;  %3885 = vmatprep.subr.bf16.mxu1 %v5740_v48  ;;  %v4233_v47 = vpack.c.bf16 %v6638_v25, %v6638_v25  ;;  %v5279_v48 = vcombine.low %v516_v59, %v520_v0  ;;  %v536_v25 = vld [vmem:[#allocation8 + $0xf8] sm:$0xff] }
 0x298   :  { %4045 = vmatprep.subr.bf16.mxu0 %v5726_v49  ;;  %v5288_v49 = vcombine.high %v524_v44, %v528_v45  ;;  %v5295_v3 = vcombine.low %v532_v55, %v536_v25  ;;  %v568_v29 = vld [vmem:[#allocation8 + $0x1f8] sm:$0xff] }
 0x299   :  { %v4241_v52 = vmul.bf16 1009007652, %v4233_v47  ;;  %v572_v59 = vld [vmem:[#allocation8 + $0x218] sm:$0xff]  ;;  %v5327_v2 = vcombine.low %v564_v28, %v568_v29 }
 0x29a   :  { %3886 = vmatpush1.bf16.msra.mxu1 %v5739_v56  ;;  %v5287_v56 = vcombine.low %v524_v44, %v528_v45  ;;  %v576_v0 = vld [vmem:[#allocation8 + $0x238] sm:$0xff] }
 0x29b   :  { %4046 = vmatpush1.bf16.msra.mxu0 %v5725_v57  ;;  %3887 = vmatprep.subr.bf16.mxu1 %v5748_v58  ;;  %v5296_v57 = vcombine.high %v532_v55, %v536_v25  ;;  %v6004_v58 = vld [vmem:[%s7074_s5 + $0x14] ss:$8 sps:$4 sm:$0xff]   ;;  %v4249_v62 = vmax.bf16 %v4241_v52, %v4233_v47  ;;  %v584_v43 = vld [vmem:[#allocation8 + $0x278] sm:$0xff]  ;;  %v5335_v44 = vcombine.low %v572_v59, %v576_v0 }
 0x29c   :  { %4047 = vmatprep.subr.bf16.mxu0 %v5734_v60  ;;  %v540_v60 = vld [vmem:[#allocation8 + $0x118] sm:$0xff] }
 0x29d   :  { %v5303_v22 = vcombine.low %v540_v60, %v544_v61  ;;  %v6017_v45 = vld [vmem:[%s7074_s5 + $0x60] ss:$8 sps:$4 sm:$0xff]   ;;  %v6020_v52 = vld [vmem:[%s7074_s5 + $0x70] ss:$8 sps:$4 sm:$0xff]   ;;  %v6025_v25 = vld [vmem:[%s7074_s5 + $0x84] ss:$8 sps:$4 sm:$0xff]  }
 0x29e   :  { %3888 = vmatpush1.bf16.msra.mxu1 %v5747_v1  ;;  %v5304_v1 = vcombine.high %v540_v60, %v544_v61  ;;  %v6028_v61 = vld [vmem:[%s7074_s5 + $0x94] ss:$8 sps:$4 sm:$0xff]  }
 0x29f   :  { %4048 = vmatpush1.bf16.msra.mxu0 %v5733_v11  ;;  %3889 = vmatprep.subr.bf16.mxu1 %v5756_v14  ;;  %v6007_v11 = vld [vmem:[%s7074_s5 + $0x24] ss:$8 sps:$4 sm:$0xff]  }
 0x2a0   :  { %4049 = vmatprep.subr.bf16.mxu0 %v5742_v15  ;;  %v548_v14 = vld [vmem:[#allocation8 + $0x158] sm:$0xff] }
 0x2a1   :  { %v552_v15 = vld [vmem:[#allocation8 + $0x178] sm:$0xff] }
 0x2a2   :  { %3890 = vmatpush1.bf16.msra.mxu1 %v5755_v17  ;;  %v5312_v13 = vcombine.high %v548_v14, %v552_v15  ;;  %v6010_v17 = vld [vmem:[%s7074_s5 + $0x34] ss:$8 sps:$4 sm:$0xff]   ;;  %v5311_v23 = vcombine.low %v548_v14, %v552_v15  ;;  %v6031_v14 = vld [vmem:[%s7074_s5 + $0xa4] ss:$8 sps:$4 sm:$0xff]  }
 0x2a3   :  { %4050 = vmatpush1.bf16.msra.mxu0 %v5741_v19  ;;  %5771 = vmatprep.subr.msk.bf16.mxu1 %vm3551_vm4, %v5764_v20  ;;  %v556_v19 = vld [vmem:[#allocation8 + $0x198] sm:$0xff] }
 0x2a4   :  { %4051 = vmatprep.subr.bf16.mxu0 %v5750_v7  ;;  %v560_v20 = vld [vmem:[#allocation8 + $0x1b8] sm:$0xff] }
 0x2a5   :  { %v6008_v7 = vld [vmem:[%s7074_s5 + $0x30] ss:$8 sps:$4 sm:$0xff]   ;;  %v5320_v26 = vcombine.high %v556_v19, %v560_v20 }
 0x2a6   :  { %3892 = vmatpush1.bf16.msra.mxu1 %v3559_v34  ;;  %v6011_v34 = vld [vmem:[%s7074_s5 + $0x40] ss:$8 sps:$4 sm:$0xff]  }
 0x2a7   :  { %4052 = vmatpush1.bf16.msra.mxu0 %v5749_v31  ;;  %4068 = vmatprep.subr.bf16.mxu1 %v5272_v35  ;;  %v5319_v31 = vcombine.low %v556_v19, %v560_v20  ;;  %v5328_v35 = vcombine.high %v564_v28, %v568_v29  ;;  %v612_v15 = vld [vmem:[#allocation8 + $0x358] sm:$0xff]  ;;  %v6034_v19 = vld [vmem:[%s7074_s5 + $0xb4] ss:$8 sps:$4 sm:$0xff]  }
 0x2a8   :  { %4053 = vmatprep.subr.bf16.mxu0 %v5758_v36  ;;  %v6016_v36 = vld [vmem:[%s7074_s5 + $0x54] ss:$8 sps:$4 sm:$0xff]   ;;  %v620_v20 = vld [vmem:[#allocation8 + $0x398] sm:$0xff] }
 0x2a9   :  { %3896 = vmatmul.mubr.bf16.vlgmr.msra.gmra.mrb[12].mxu1 %v6616_v51  ;;  %v6037_v28 = vld [vmem:[%s7074_s5 + $0xc4] ss:$8 sps:$4 sm:$0xff]  }
 0x2aa   :  { %4069 = vmatpush1.bf16.msra.mxu1 %v5271_v37  ;;  %4100 = vmatprep.mubr.bf16.mxu1 %v6566_v30  ;;  %v5999_v30 = vld [vmem:[%s7074_s5] ss:$8 sps:$4 sm:$0xff]   ;;  %v6014_v37 = vld [vmem:[%s7074_s5 + $0x50] ss:$8 sps:$4 sm:$0xff]  }
 0x2ab   :  { %4054 = vmatpush1.bf16.msra.mxu0 %v5757_v39  ;;  %4070 = vmatprep.subr.bf16.mxu1 %v5280_v41  ;;  %v5336_v39 = vcombine.high %v572_v59, %v576_v0  ;;  %v6019_v41 = vld [vmem:[%s7074_s5 + $0x64] ss:$8 sps:$4 sm:$0xff]   ;;  %v6040_v59 = vld [vmem:[%s7074_s5 + $0xd4] ss:$8 sps:$4 sm:$0xff]  }
 0x2ac   :  { %5773 = vmatprep.subr.msk.bf16.mxu0 %vm3551_vm4, %v5766_v42  ;;  %v580_v42 = vld [vmem:[#allocation8 + $0x258] sm:$0xff] }
 0x2ad   :  { %v5344_v47 = vcombine.high %v580_v42, %v584_v43  ;;  %v628_v29 = vld [vmem:[#allocation8 + $0x3d8] sm:$0xff] }
 0x2ae   :  { %4071 = vmatpush1.bf16.msra.mxu1 %v5279_v48  ;;  %v6022_v48 = vld [vmem:[%s7074_s5 + $0x74] ss:$8 sps:$4 sm:$0xff]   ;;  %v636_v0 = vld [vmem:[#allocation8 + $0x418] sm:$0xff] }
 0x2af   :  { %4056 = vmatpush1.bf16.msra.mxu0 %v3565_v50  ;;  %4072 = vmatprep.subr.bf16.mxu1 %v5288_v49  ;;  %v588_v49 = vld [vmem:[#allocation8 + $0x298] sm:$0xff] }
 0x2b0   :  { %5027 = vmatprep.subr.bf16.mxu0 %v6001_v53  ;;  %v592_v50 = vld [vmem:[#allocation8 + $0x2b8] sm:$0xff]  ;;  %v5343_v53 = vcombine.low %v580_v42, %v584_v43 }
 0x2b1   :  { %v5352_v55 = vcombine.high %v588_v49, %v592_v50  ;;  %v6043_v42 = vld [vmem:[%s7074_s5 + $0xe4] ss:$8 sps:$4 sm:$0xff]  }
 0x2b2   :  { %4060 = vmatmul.mubr.bf16.vlgmr.msra.gmra.mrb[12].mxu0 %v6616_v51  ;;  %4073 = vmatpush1.bf16.msra.mxu1 %v5287_v56  ;;  %v596_v56 = vld [vmem:[#allocation8 + $0x2d8] sm:$0xff] }
 0x2b3   :  { %5028 = vmatpush1.bf16.msra.mxu0 %v5999_v30  ;;  %5059 = vmatprep.mubr.bf16.mxu0 %v4249_v62  ;;  %v600_v30 = vld [vmem:[#allocation8 + $0x2f8] sm:$0xff] }
 0x2b4   :  { %4074 = vmatprep.subr.bf16.mxu1 %v5296_v57  ;;  %5029 = vmatprep.subr.bf16.mxu0 %v6004_v58  ;;  %v5351_v57 = vcombine.low %v588_v49, %v592_v50  ;;  %v6023_v58 = vld [vmem:[%s7074_s5 + $0x80] ss:$8 sps:$4 sm:$0xff]   ;;  %v5360_v60 = vcombine.high %v596_v56, %v600_v30  ;;  %v4232_v49 = vpack.c.bf16 %v6636_v18, %v6636_v18  ;;  %v6046_v50 = vld [vmem:[%s7074_s5 + $0xf4] ss:$8 sps:$4 sm:$0xff]  }
 0x2b5   :  { %v604_v62 = vld [vmem:[#allocation8 + $0x318] sm:$0xff] }
 0x2b6   :  { %4075 = vmatpush1.bf16.msra.mxu1 %v5295_v3  ;;  %v608_v3 = vld [vmem:[#allocation8 + $0x338] sm:$0xff] }
 0x2b7   :  { %5030 = vmatpush1.bf16.msra.mxu0 %v6002_v4  ;;  %4076 = vmatprep.subr.bf16.mxu1 %v5304_v1  ;;  %v5359_v4 = vcombine.low %v596_v56, %v600_v30  ;;  %v6026_v1 = vld [vmem:[%s7074_s5 + $0x90] ss:$8 sps:$4 sm:$0xff]   ;;  %v4240_v56 = vmul.bf16 1009007652, %v4232_v49 }
 0x2b8   :  { %5031 = vmatprep.subr.bf16.mxu0 %v6007_v11  ;;  %v5368_v11 = vcombine.high %v604_v62, %v608_v3  ;;  %v644_v43 = vld [vmem:[#allocation8 + $0x458] sm:$0xff] }
 0x2b9   :  { %v660_v30 = vld [vmem:[#allocation8 + $0x4d8] sm:$0xff] }
 0x2ba   :  { %4077 = vmatpush1.bf16.msra.mxu1 %v5303_v22  ;;  %v616_v22 = vld [vmem:[#allocation8 + $0x378] sm:$0xff] }
 0x2bb   :  { %5032 = vmatpush1.bf16.msra.mxu0 %v6005_v16  ;;  %4078 = vmatprep.subr.bf16.mxu1 %v5312_v13  ;;  %v5367_v16 = vcombine.low %v604_v62, %v608_v3  ;;  %v6029_v13 = vld [vmem:[%s7074_s5 + $0xa0] ss:$8 sps:$4 sm:$0xff]  }
 0x2bc   :  { %5033 = vmatprep.subr.bf16.mxu0 %v6010_v17  ;;  %v5376_v17 = vcombine.high %v612_v15, %v616_v22  ;;  %v668_v62 = vld [vmem:[#allocation8 + $0x518] sm:$0xff] }
 0x2bd   :  { %v672_v3 = vld [vmem:[#allocation8 + $0x538] sm:$0xff] }
 0x2be   :  { %4079 = vmatpush1.bf16.msra.mxu1 %v5311_v23  ;;  %v624_v23 = vld [vmem:[#allocation8 + $0x3b8] sm:$0xff] }
 0x2bf   :  { %5034 = vmatpush1.bf16.msra.mxu0 %v6008_v7  ;;  %4080 = vmatprep.subr.bf16.mxu1 %v5320_v26  ;;  %v5375_v7 = vcombine.low %v612_v15, %v616_v22  ;;  %v6032_v26 = vld [vmem:[%s7074_s5 + $0xb0] ss:$8 sps:$4 sm:$0xff]  }
 0x2c0   :  { %5035 = vmatprep.subr.bf16.mxu0 %v6013_v27  ;;  %v5384_v27 = vcombine.high %v620_v20, %v624_v23  ;;  %v676_v15 = vld [vmem:[#allocation8 + $0x558] sm:$0xff] }
 0x2c1   :  { %v680_v22 = vld [vmem:[#allocation8 + $0x578] sm:$0xff] }
 0x2c2   :  { %4081 = vmatpush1.bf16.msra.mxu1 %v5319_v31  ;;  %v632_v31 = vld [vmem:[#allocation8 + $0x3f8] sm:$0xff] }
 0x2c3   :  { %5036 = vmatpush1.bf16.msra.mxu0 %v6011_v34  ;;  %4082 = vmatprep.subr.bf16.mxu1 %v5328_v35  ;;  %v5383_v34 = vcombine.low %v620_v20, %v624_v23  ;;  %v6035_v35 = vld [vmem:[%s7074_s5 + $0xc0] ss:$8 sps:$4 sm:$0xff]  }
 0x2c4   :  { %5037 = vmatprep.subr.bf16.mxu0 %v6016_v36  ;;  %v5392_v36 = vcombine.high %v628_v29, %v632_v31  ;;  %v684_v20 = vld [vmem:[#allocation8 + $0x598] sm:$0xff] }
 0x2c5   :  { %v688_v23 = vld [vmem:[#allocation8 + $0x5b8] sm:$0xff] }
 0x2c6   :  { %4083 = vmatpush1.bf16.msra.mxu1 %v5327_v2  ;;  %v640_v2 = vld [vmem:[#allocation8 + $0x438] sm:$0xff] }
 0x2c7   :  { %5038 = vmatpush1.bf16.msra.mxu0 %v6014_v37  ;;  %4084 = vmatprep.subr.bf16.mxu1 %v5336_v39  ;;  %v5391_v37 = vcombine.low %v628_v29, %v632_v31  ;;  %v6038_v39 = vld [vmem:[%s7074_s5 + $0xd0] ss:$8 sps:$4 sm:$0xff]  }
 0x2c8   :  { %5039 = vmatprep.subr.bf16.mxu0 %v6019_v41  ;;  %v5400_v41 = vcombine.high %v636_v0, %v640_v2  ;;  %v692_v29 = vld [vmem:[#allocation8 + $0x5d8] sm:$0xff] }
 0x2c9   :  { %v696_v31 = vld [vmem:[#allocation8 + $0x5f8] sm:$0xff] }
 0x2ca   :  { %4085 = vmatpush1.bf16.msra.mxu1 %v5335_v44  ;;  %v648_v44 = vld [vmem:[#allocation8 + $0x478] sm:$0xff] }
 0x2cb   :  { %5040 = vmatpush1.bf16.msra.mxu0 %v6017_v45  ;;  %4086 = vmatprep.subr.bf16.mxu1 %v5344_v47  ;;  %v5399_v45 = vcombine.low %v636_v0, %v640_v2  ;;  %v6041_v47 = vld [vmem:[%s7074_s5 + $0xe0] ss:$8 sps:$4 sm:$0xff]  }
 0x2cc   :  { %5041 = vmatprep.subr.bf16.mxu0 %v6022_v48  ;;  %v5408_v48 = vcombine.high %v644_v43, %v648_v44  ;;  %v700_v0 = vld [vmem:[#allocation8 + $0x618] sm:$0xff] }
 0x2cd   :  { %v704_v2 = vld [vmem:[#allocation8 + $0x638] sm:$0xff] }
 0x2ce   :  { %4087 = vmatpush1.bf16.msra.mxu1 %v5343_v53  ;;  %v652_v53 = vld [vmem:[#allocation8 + $0x498] sm:$0xff] }
 0x2cf   :  { %5042 = vmatpush1.bf16.msra.mxu0 %v6020_v52  ;;  %4088 = vmatprep.subr.bf16.mxu1 %v5352_v55  ;;  %v656_v52 = vld [vmem:[#allocation8 + $0x4b8] sm:$0xff]  ;;  %v5407_v55 = vcombine.low %v644_v43, %v648_v44 }
 0x2d0   :  { %5043 = vmatprep.subr.bf16.mxu0 %v6025_v25  ;;  %v6044_v25 = vld [vmem:[%s7074_s5 + $0xf0] ss:$8 sps:$4 sm:$0xff]   ;;  %v5416_v18 = vcombine.high %v652_v53, %v656_v52 }
 0x2d1   :  { %v708_v43 = vld [vmem:[#allocation8 + $0x658] sm:$0xff] }
 0x2d2   :  { %4089 = vmatpush1.bf16.msra.mxu1 %v5351_v57  ;;  %v664_v57 = vld [vmem:[#allocation8 + $0x4f8] sm:$0xff] }
 0x2d3   :  { %5044 = vmatpush1.bf16.msra.mxu0 %v6023_v58  ;;  %4090 = vmatprep.subr.bf16.mxu1 %v5360_v60  ;;  %v6049_v58 = vld [vmem:[%s7074_s5 + $0x104] ss:$8 sps:$4 sm:$0xff]   ;;  %v6047_v60 = vld [vmem:[%s7074_s5 + $0x100] ss:$8 sps:$4 sm:$0xff]  }
 0x2d4   :  { %5045 = vmatprep.subr.bf16.mxu0 %v6028_v61  ;;  %v4248_v61 = vmax.bf16 %v4240_v56, %v4232_v49  ;;  %v712_v44 = vld [vmem:[#allocation8 + $0x678] sm:$0xff] }
 0x2d5   :  { %v6065_v49 = vld [vmem:[%s7074_s5 + $0x160] ss:$8 sps:$4 sm:$0xff]  }
 0x2d6   :  { %4091 = vmatpush1.bf16.msra.mxu1 %v5359_v4  ;;  %v6052_v4 = vld [vmem:[%s7074_s5 + $0x114] ss:$8 sps:$4 sm:$0xff]   ;;  %v724_v56 = vld [vmem:[#allocation8 + $0x6d8] sm:$0xff] }
 0x2d7   :  { %5046 = vmatpush1.bf16.msra.mxu0 %v6026_v1  ;;  %4092 = vmatprep.subr.bf16.mxu1 %v5368_v11  ;;  %v5423_v1 = vcombine.low %v660_v30, %v664_v57  ;;  %v5432_v11 = vcombine.high %v668_v62, %v672_v3 }
 0x2d8   :  { %5047 = vmatprep.subr.bf16.mxu0 %v6031_v14  ;;  %v6050_v14 = vld [vmem:[%s7074_s5 + $0x110] ss:$8 sps:$4 sm:$0xff]  }
 0x2da   :  { %4093 = vmatpush1.bf16.msra.mxu1 %v5367_v16  ;;  %v6055_v16 = vld [vmem:[%s7074_s5 + $0x124] ss:$8 sps:$4 sm:$0xff]  }
 0x2db   :  { %5048 = vmatpush1.bf16.msra.mxu0 %v6029_v13  ;;  %4094 = vmatprep.subr.bf16.mxu1 %v5376_v17  ;;  %v5431_v13 = vcombine.low %v668_v62, %v672_v3  ;;  %v5440_v17 = vcombine.high %v676_v15, %v680_v22  ;;  %v6076_v62 = vld [vmem:[%s7074_s5 + $0x194] ss:$8 sps:$4 sm:$0xff]  }
 0x2dc   :  { %5049 = vmatprep.subr.bf16.mxu0 %v6034_v19  ;;  %v6053_v19 = vld [vmem:[%s7074_s5 + $0x120] ss:$8 sps:$4 sm:$0xff]  }
 0x2de   :  { %4095 = vmatpush1.bf16.msra.mxu1 %v5375_v7  ;;  %v6058_v7 = vld [vmem:[%s7074_s5 + $0x134] ss:$8 sps:$4 sm:$0xff]  }
 0x2df   :  { %5050 = vmatpush1.bf16.msra.mxu0 %v6032_v26  ;;  %4096 = vmatprep.subr.bf16.mxu1 %v5384_v27  ;;  %v5439_v26 = vcombine.low %v676_v15, %v680_v22  ;;  %v5448_v27 = vcombine.high %v684_v20, %v688_v23  ;;  %v6079_v15 = vld [vmem:[%s7074_s5 + $0x1a4] ss:$8 sps:$4 sm:$0xff]  }
 0x2e0   :  { %5051 = vmatprep.subr.bf16.mxu0 %v6037_v28  ;;  %v6056_v28 = vld [vmem:[%s7074_s5 + $0x130] ss:$8 sps:$4 sm:$0xff]  }
 0x2e2   :  { %4097 = vmatpush1.bf16.msra.mxu1 %v5383_v34  ;;  %v6061_v34 = vld [vmem:[%s7074_s5 + $0x144] ss:$8 sps:$4 sm:$0xff]  }
 0x2e3   :  { %5052 = vmatpush1.bf16.msra.mxu0 %v6035_v35  ;;  %4098 = vmatprep.subr.bf16.mxu1 %v5392_v36  ;;  %v5447_v35 = vcombine.low %v684_v20, %v688_v23  ;;  %v5456_v36 = vcombine.high %v692_v29, %v696_v31  ;;  %v6082_v20 = vld [vmem:[%s7074_s5 + $0x1b4] ss:$8 sps:$4 sm:$0xff]  }
 0x2e4   :  { %5053 = vmatprep.subr.bf16.mxu0 %v6040_v59  ;;  %v6059_v59 = vld [vmem:[%s7074_s5 + $0x140] ss:$8 sps:$4 sm:$0xff]  }
 0x2e6   :  { %4099 = vmatpush1.bf16.msra.mxu1 %v5391_v37  ;;  %v6064_v37 = vld [vmem:[%s7074_s5 + $0x154] ss:$8 sps:$4 sm:$0xff]  }
 0x2e7   :  { %5054 = vmatpush1.bf16.msra.mxu0 %v6038_v39  ;;  %4109 = vmatprep.subr.bf16.mxu1 %v5400_v41  ;;  %v5455_v39 = vcombine.low %v692_v29, %v696_v31  ;;  %v5464_v41 = vcombine.high %v700_v0, %v704_v2  ;;  %v6085_v29 = vld [vmem:[%s7074_s5 + $0x1c4] ss:$8 sps:$4 sm:$0xff]  }
 0x2e8   :  { %5055 = vmatprep.subr.bf16.mxu0 %v6043_v42  ;;  %v6062_v42 = vld [vmem:[%s7074_s5 + $0x150] ss:$8 sps:$4 sm:$0xff]  }
 0x2e9   :  { %4101 = vmatmul.mubr.bf16.vlgmr.msra.gmra.mrb[16].mxu1 %v6568_v32  ;;  %v5415_v32 = vcombine.low %v652_v53, %v656_v52  ;;  %v720_v53 = vld [vmem:[#allocation8 + $0x6b8] sm:$0xff]  ;;  %v6070_v52 = vld [vmem:[%s7074_s5 + $0x174] ss:$8 sps:$4 sm:$0xff]  }
 0x2ea   :  { %4110 = vmatpush1.bf16.msra.mxu1 %v5399_v45  ;;  %4141 = vmatprep.mubr.bf16.mxu1 %v6579_v46  ;;  %v5424_v46 = vcombine.high %v660_v30, %v664_v57  ;;  %v6067_v45 = vld [vmem:[%s7074_s5 + $0x164] ss:$8 sps:$4 sm:$0xff]  }
 0x2eb   :  { %5056 = vmatpush1.bf16.msra.mxu0 %v6041_v47  ;;  %4111 = vmatprep.subr.bf16.mxu1 %v5408_v48  ;;  %v5463_v47 = vcombine.low %v700_v0, %v704_v2  ;;  %v5472_v48 = vcombine.high %v708_v43, %v712_v44  ;;  %v728_v30 = vld [vmem:[#allocation8 + $0x6f8] sm:$0xff]  ;;  %v6088_v0 = vld [vmem:[%s7074_s5 + $0x1d4] ss:$8 sps:$4 sm:$0xff]  }
 0x2ec   :  { %5057 = vmatprep.subr.bf16.mxu0 %v6046_v50  ;;  %v716_v50 = vld [vmem:[#allocation8 + $0x698] sm:$0xff]  ;;  %v5487_v3 = vcombine.low %v724_v56, %v728_v30 }
 0x2ed   :  { %v6073_v57 = vld [vmem:[%s7074_s5 + $0x184] ss:$8 sps:$4 sm:$0xff]  }
 0x2ee   :  { %4112 = vmatpush1.bf16.msra.mxu1 %v5407_v55  ;;  %v5471_v55 = vcombine.low %v708_v43, %v712_v44  ;;  %v6091_v43 = vld [vmem:[%s7074_s5 + $0x1e4] ss:$8 sps:$4 sm:$0xff]  }
 0x2ef   :  { %5058 = vmatpush1.bf16.msra.mxu0 %v6044_v25  ;;  %4113 = vmatprep.subr.bf16.mxu1 %v5416_v18  ;;  %v5480_v25 = vcombine.high %v716_v50, %v720_v53  ;;  %v6068_v18 = vld [vmem:[%s7074_s5 + $0x170] ss:$8 sps:$4 sm:$0xff]  }
 0x2f0   :  { %5068 = vmatprep.subr.bf16.mxu0 %v6049_v58  ;;  %v5479_v58 = vcombine.low %v716_v50, %v720_v53  ;;  %v6094_v50 = vld [vmem:[%s7074_s5 + $0x1f4] ss:$8 sps:$4 sm:$0xff]  }
 0x2f2   :  { %5060 = vmatmul.mubr.bf16.vlgmr.msra.gmra.mrb[16].mxu0 %v4248_v61  ;;  %4114 = vmatpush1.bf16.msra.mxu1 %v5415_v32  ;;  %v5488_v32 = vcombine.high %v724_v56, %v728_v30  ;;  %v736_v61 = vld [vmem:[#allocation8 + $0x738] sm:$0xff] }
 0x2f3   :  { %4115 = vmatprep.subr.bf16.mxu1 %v5424_v46  ;;  %5069 = vmatpush1.bf16.msra.mxu0 %v6047_v60  ;;  %v6071_v46 = vld [vmem:[%s7074_s5 + $0x180] ss:$8 sps:$4 sm:$0xff]   ;;  %v6097_v56 = vld [vmem:[%s7074_s5 + $0x204] ss:$8 sps:$4 sm:$0xff]  }
 0x2f4   :  { %5070 = vmatprep.subr.bf16.mxu0 %v6052_v4  ;;  %v732_v60 = vld [vmem:[#allocation8 + $0x718] sm:$0xff] }
 0x2f5   :  { %v5496_v4 = vcombine.high %v732_v60, %v736_v61  ;;  %v5495_v22 = vcombine.low %v732_v60, %v736_v61  ;;  %v808_v60 = vld [vmem:[#allocation8 + $0x978] sm:$0xff] }
 0x2f6   :  { %4116 = vmatpush1.bf16.msra.mxu1 %v5423_v1  ;;  %v6074_v1 = vld [vmem:[%s7074_s5 + $0x190] ss:$8 sps:$4 sm:$0xff]  }
 0x2f7   :  { %4117 = vmatprep.subr.bf16.mxu1 %v5432_v11  ;;  %5071 = vmatpush1.bf16.msra.mxu0 %v6050_v14  ;;  %v740_v11 = vld [vmem:[#allocation8 + $0x758] sm:$0xff] }
 0x2f8   :  { %5072 = vmatprep.subr.bf16.mxu0 %v6055_v16  ;;  %v744_v14 = vld [vmem:[#allocation8 + $0x778] sm:$0xff] }
 0x2f9   :  { %v5504_v16 = vcombine.high %v740_v11, %v744_v14  ;;  %v5503_v23 = vcombine.low %v740_v11, %v744_v14  ;;  %v820_v14 = vld [vmem:[#allocation8 + $0x9d8] sm:$0xff] }
 0x2fa   :  { %4118 = vmatpush1.bf16.msra.mxu1 %v5431_v13  ;;  %v6077_v13 = vld [vmem:[%s7074_s5 + $0x1a0] ss:$8 sps:$4 sm:$0xff]  }
 0x2fb   :  { %4119 = vmatprep.subr.bf16.mxu1 %v5440_v17  ;;  %5073 = vmatpush1.bf16.msra.mxu0 %v6053_v19  ;;  %v748_v17 = vld [vmem:[#allocation8 + $0x798] sm:$0xff] }
 0x2fc   :  { %5074 = vmatprep.subr.bf16.mxu0 %v6058_v7  ;;  %v752_v19 = vld [vmem:[#allocation8 + $0x7b8] sm:$0xff] }
 0x2fd   :  { %v5512_v7 = vcombine.high %v748_v17, %v752_v19  ;;  %v5511_v31 = vcombine.low %v748_v17, %v752_v19  ;;  %v832_v17 = vld [vmem:[#allocation8 + $0xa38] sm:$0xff] }
 0x2fe   :  { %4120 = vmatpush1.bf16.msra.mxu1 %v5439_v26  ;;  %v6080_v26 = vld [vmem:[%s7074_s5 + $0x1b0] ss:$8 sps:$4 sm:$0xff]  }
 0x2ff   :  { %4121 = vmatprep.subr.bf16.mxu1 %v5448_v27  ;;  %5075 = vmatpush1.bf16.msra.mxu0 %v6056_v28  ;;  %v756_v27 = vld [vmem:[#allocation8 + $0x7d8] sm:$0xff] }
 0x300   :  { %5076 = vmatprep.subr.bf16.mxu0 %v6061_v34  ;;  %v760_v28 = vld [vmem:[#allocation8 + $0x7f8] sm:$0xff] }
 0x301   :  { %v5520_v34 = vcombine.high %v756_v27, %v760_v28  ;;  %v5519_v2 = vcombine.low %v756_v27, %v760_v28  ;;  %v844_v28 = vld [vmem:[#allocation8 + $0xa98] sm:$0xff] }
 0x302   :  { %4122 = vmatpush1.bf16.msra.mxu1 %v5447_v35  ;;  %v6083_v35 = vld [vmem:[%s7074_s5 + $0x1c0] ss:$8 sps:$4 sm:$0xff]  }
 0x303   :  { %4123 = vmatprep.subr.bf16.mxu1 %v5456_v36  ;;  %5077 = vmatpush1.bf16.msra.mxu0 %v6059_v59  ;;  %v764_v36 = vld [vmem:[#allocation8 + $0x818] sm:$0xff] }
 0x304   :  { %5078 = vmatprep.subr.bf16.mxu0 %v6064_v37  ;;  %v768_v59 = vld [vmem:[#allocation8 + $0x838] sm:$0xff] }
 0x305   :  { %v5528_v37 = vcombine.high %v764_v36, %v768_v59  ;;  %v5527_v44 = vcombine.low %v764_v36, %v768_v59  ;;  %v856_v36 = vld [vmem:[#allocation8 + $0xaf8] sm:$0xff] }
 0x306   :  { %4124 = vmatpush1.bf16.msra.mxu1 %v5455_v39  ;;  %v6086_v39 = vld [vmem:[%s7074_s5 + $0x1d0] ss:$8 sps:$4 sm:$0xff]  }
 0x307   :  { %4125 = vmatprep.subr.bf16.mxu1 %v5464_v41  ;;  %5079 = vmatpush1.bf16.msra.mxu0 %v6062_v42  ;;  %v772_v41 = vld [vmem:[#allocation8 + $0x858] sm:$0xff] }
 0x308   :  { %5080 = vmatprep.subr.bf16.mxu0 %v6067_v45  ;;  %v776_v42 = vld [vmem:[#allocation8 + $0x878] sm:$0xff] }
 0x309   :  { %v5536_v45 = vcombine.high %v772_v41, %v776_v42  ;;  %v5535_v53 = vcombine.low %v772_v41, %v776_v42  ;;  %v868_v42 = vld [vmem:[#allocation8 + $0xb58] sm:$0xff] }
 0x30a   :  { %4126 = vmatpush1.bf16.msra.mxu1 %v5463_v47  ;;  %v6089_v47 = vld [vmem:[%s7074_s5 + $0x1e0] ss:$8 sps:$4 sm:$0xff]  }
 0x30b   :  { %4127 = vmatprep.subr.bf16.mxu1 %v5472_v48  ;;  %5081 = vmatpush1.bf16.msra.mxu0 %v6065_v49  ;;  %v780_v48 = vld [vmem:[#allocation8 + $0x898] sm:$0xff] }
 0x30c   :  { %5082 = vmatprep.subr.bf16.mxu0 %v6070_v52  ;;  %v784_v49 = vld [vmem:[#allocation8 + $0x8b8] sm:$0xff] }
 0x30d   :  { %v5544_v52 = vcombine.high %v780_v48, %v784_v49 }
 0x30e   :  { %4128 = vmatpush1.bf16.msra.mxu1 %v5471_v55  ;;  %v6092_v55 = vld [vmem:[%s7074_s5 + $0x1f0] ss:$8 sps:$4 sm:$0xff]  }
 0x30f   :  { %4129 = vmatprep.subr.bf16.mxu1 %v5480_v25  ;;  %5083 = vmatpush1.bf16.msra.mxu0 %v6068_v18  ;;  %v788_v25 = vld [vmem:[#allocation8 + $0x8d8] sm:$0xff] }
 0x310   :  { %5084 = vmatprep.subr.bf16.mxu0 %v6073_v57  ;;  %v792_v18 = vld [vmem:[#allocation8 + $0x8f8] sm:$0xff] }
 0x311   :  { %v5552_v30 = vcombine.high %v788_v25, %v792_v18  ;;  %v800_v57 = vld [vmem:[#allocation8 + $0x938] sm:$0xff] }
 0x312   :  { %4130 = vmatpush1.bf16.msra.mxu1 %v5479_v58  ;;  %v5551_v58 = vcombine.low %v788_v25, %v792_v18  ;;  %v892_v18 = vld [vmem:[#allocation8 + $0xc18] sm:$0xff] }
 0x313   :  { %4131 = vmatprep.subr.bf16.mxu1 %v5488_v32  ;;  %5085 = vmatpush1.bf16.msra.mxu0 %v6071_v46  ;;  %v804_v46 = vld [vmem:[#allocation8 + $0x958] sm:$0xff] }
 0x314   :  { %5086 = vmatprep.subr.bf16.mxu0 %v6076_v62  ;;  %v5568_v62 = vcombine.high %v804_v46, %v808_v60 }
 0x316   :  { %4132 = vmatpush1.bf16.msra.mxu1 %v5487_v3  ;;  %v812_v3 = vld [vmem:[#allocation8 + $0x998] sm:$0xff] }
 0x317   :  { %4133 = vmatprep.subr.bf16.mxu1 %v5496_v4  ;;  %5087 = vmatpush1.bf16.msra.mxu0 %v6074_v1  ;;  %v816_v4 = vld [vmem:[#allocation8 + $0x9b8] sm:$0xff]  ;;  %v5567_v1 = vcombine.low %v804_v46, %v808_v60 }
 0x318   :  { %5088 = vmatprep.subr.bf16.mxu0 %v6079_v15  ;;  %v5576_v11 = vcombine.high %v812_v3, %v816_v4  ;;  %v824_v15 = vld [vmem:[#allocation8 + $0x9f8] sm:$0xff] }
 0x319   :  { %v5583_v19 = vcombine.low %v820_v14, %v824_v15  ;;  %v908_v46 = vld [vmem:[#allocation8 + $0xc98] sm:$0xff] }
 0x31a   :  { %4134 = vmatpush1.bf16.msra.mxu1 %v5495_v22  ;;  %v5575_v22 = vcombine.low %v812_v3, %v816_v4  ;;  %v912_v60 = vld [vmem:[#allocation8 + $0xcb8] sm:$0xff] }
 0x31b   :  { %4135 = vmatprep.subr.bf16.mxu1 %v5504_v16  ;;  %5089 = vmatpush1.bf16.msra.mxu0 %v6077_v13  ;;  %v5584_v16 = vcombine.high %v820_v14, %v824_v15  ;;  %v828_v13 = vld [vmem:[#allocation8 + $0xa18] sm:$0xff] }
 0x31c   :  { %5090 = vmatprep.subr.bf16.mxu0 %v6082_v20  ;;  %v5592_v20 = vcombine.high %v828_v13, %v832_v17  ;;  %v916_v3 = vld [vmem:[#allocation8 + $0xcd8] sm:$0xff] }
 0x31d   :  { %v920_v4 = vld [vmem:[#allocation8 + $0xcf8] sm:$0xff] }
 0x31e   :  { %4136 = vmatpush1.bf16.msra.mxu1 %v5503_v23  ;;  %v836_v23 = vld [vmem:[#allocation8 + $0xa58] sm:$0xff] }
 0x31f   :  { %4137 = vmatprep.subr.bf16.mxu1 %v5512_v7  ;;  %5091 = vmatpush1.bf16.msra.mxu0 %v6080_v26  ;;  %v840_v7 = vld [vmem:[#allocation8 + $0xa78] sm:$0xff]  ;;  %v5591_v26 = vcombine.low %v828_v13, %v832_v17 }
 0x320   :  { %5092 = vmatprep.subr.bf16.mxu0 %v6085_v29  ;;  %v5600_v27 = vcombine.high %v836_v23, %v840_v7  ;;  %v848_v29 = vld [vmem:[#allocation8 + $0xab8] sm:$0xff] }
 0x321   :  { %v5607_v59 = vcombine.low %v844_v28, %v848_v29  ;;  %v924_v14 = vld [vmem:[#allocation8 + $0xd18] sm:$0xff] }
 0x322   :  { %4138 = vmatpush1.bf16.msra.mxu1 %v5511_v31  ;;  %v5599_v31 = vcombine.low %v836_v23, %v840_v7  ;;  %v928_v15 = vld [vmem:[#allocation8 + $0xd38] sm:$0xff]  ;;  %v6853_v23 = vld [vmem:[#allocation10] sm:$0xff] }
 0x323   :  { %4139 = vmatprep.subr.bf16.mxu1 %v5520_v34  ;;  %5093 = vmatpush1.bf16.msra.mxu0 %v6083_v35  ;;  %v5608_v34 = vcombine.high %v844_v28, %v848_v29  ;;  %v852_v35 = vld [vmem:[#allocation8 + $0xad8] sm:$0xff]  ;;  %v5687_v17 = vcombine.low %v924_v14, %v928_v15  ;;  %v1018_v7 = vrot.slane %v6853_v23, %v155_v38 }
 0x324   :  { %5094 = vmatprep.subr.bf16.mxu0 %v6088_v0  ;;  %v5616_v0 = vcombine.high %v852_v35, %v856_v36  ;;  %v936_v13 = vld [vmem:[#allocation8 + $0xd78] sm:$0xff] }
 0x326   :  { %4140 = vmatpush1.bf16.msra.mxu1 %v5519_v2  ;;  %v860_v2 = vld [vmem:[#allocation8 + $0xb18] sm:$0xff] }
 0x327   :  { %4150 = vmatprep.subr.bf16.mxu1 %v5528_v37  ;;  %5095 = vmatpush1.bf16.msra.mxu0 %v6086_v39  ;;  %v864_v37 = vld [vmem:[#allocation8 + $0xb38] sm:$0xff]  ;;  %v5615_v39 = vcombine.low %v852_v35, %v856_v36 }
 0x328   :  { %5096 = vmatprep.subr.bf16.mxu0 %v6091_v43  ;;  %v5624_v41 = vcombine.high %v860_v2, %v864_v37  ;;  %v872_v43 = vld [vmem:[#allocation8 + $0xb78] sm:$0xff] }
 0x329   :  { %4142 = vmatmul.mubr.bf16.vlgmr.msra.gmra.mrb[16].mxu1 %v6610_v63  ;;  %v5543_v63 = vcombine.low %v780_v48, %v784_v49  ;;  %v880_v48 = vld [vmem:[#allocation8 + $0xbb8] sm:$0xff]  ;;  %v5631_v49 = vcombine.low %v868_v42, %v872_v43 }
 0x32a   :  { %4151 = vmatpush1.bf16.msra.mxu1 %v5527_v44  ;;  %4182 = vmatprep.mubr.bf16.mxu1 %v6589_v12  ;;  %v796_v12 = vld [vmem:[#allocation8 + $0x918] sm:$0xff]  ;;  %v5623_v44 = vcombine.low %v860_v2, %v864_v37 }
 0x32b   :  { %4152 = vmatprep.subr.bf16.mxu1 %v5536_v45  ;;  %5097 = vmatpush1.bf16.msra.mxu0 %v6089_v47  ;;  %v5560_v32 = vcombine.high %v796_v12, %v800_v57  ;;  %v5559_v61 = vcombine.low %v796_v12, %v800_v57  ;;  %v5632_v45 = vcombine.high %v868_v42, %v872_v43  ;;  %v876_v47 = vld [vmem:[#allocation8 + $0xb98] sm:$0xff] }
 0x32c   :  { %5098 = vmatprep.subr.bf16.mxu0 %v6094_v50  ;;  %v5640_v50 = vcombine.high %v876_v47, %v880_v48  ;;  %v900_v12 = vld [vmem:[#allocation8 + $0xc58] sm:$0xff] }
 0x32d   :  { %v904_v57 = vld [vmem:[#allocation8 + $0xc78] sm:$0xff] }
 0x32e   :  { %4153 = vmatpush1.bf16.msra.mxu1 %v5535_v53  ;;  %v884_v53 = vld [vmem:[#allocation8 + $0xbd8] sm:$0xff] }
 0x32f   :  { %4154 = vmatprep.subr.bf16.mxu1 %v5544_v52  ;;  %5099 = vmatpush1.bf16.msra.mxu0 %v6092_v55  ;;  %v888_v52 = vld [vmem:[#allocation8 + $0xbf8] sm:$0xff]  ;;  %v5639_v55 = vcombine.low %v876_v47, %v880_v48  ;;  %v1030_v47 = vrot.slane %v6853_v23, %v167_v24 }
 0x330   :  { %5109 = vmatprep.subr.bf16.mxu0 %v6097_v56  ;;  %v5648_v25 = vcombine.high %v884_v53, %v888_v52  ;;  %v896_v56 = vld [vmem:[#allocation8 + $0xc38] sm:$0xff] }
 0x331   :  { %v956_v42 = vld [vmem:[#allocation8 + $0xe18] sm:$0xff] }
 0x332   :  { %4155 = vmatpush1.bf16.msra.mxu1 %v5543_v63  ;;  %v5647_v63 = vcombine.low %v884_v53, %v888_v52  ;;  %v960_v43 = vld [vmem:[#allocation8 + $0xe38] sm:$0xff] }
 0x333   :  { %4156 = vmatprep.subr.bf16.mxu1 %v5552_v30  ;;  %v5656_v30 = vcombine.high %v892_v18, %v896_v56  ;;  %v5720_v48 = vcombine.high %v956_v42, %v960_v43  ;;  %v964_v53 = vld [vmem:[#allocation8 + $0xe58] sm:$0xff]  ;;  %v5719_v24 = vcombine.low %v956_v42, %v960_v43 }
 0x334   :  { %v968_v52 = vld [vmem:[#allocation8 + $0xe78] sm:$0xff] }
 0x335   :  { %v6118_v42 = vld [vmem:[%s7074_s5 + $0x270] ss:$8 sps:$4 sm:$0xff]   ;;  %v6123_v43 = vld [vmem:[%s7074_s5 + $0x284] ss:$8 sps:$4 sm:$0xff]  }
 0x336   :  { %4157 = vmatpush1.bf16.msra.mxu1 %v5551_v58  ;;  %v5655_v58 = vcombine.low %v892_v18, %v896_v56  ;;  %v6100_v18 = vld [vmem:[%s7074_s5 + $0x214] ss:$8 sps:$4 sm:$0xff]  }
 0x337   :  { %4158 = vmatprep.subr.bf16.mxu1 %v5560_v32  ;;  %v5664_v32 = vcombine.high %v900_v12, %v904_v57 }
 0x33a   :  { %4159 = vmatpush1.bf16.msra.mxu1 %v5559_v61  ;;  %v5663_v61 = vcombine.low %v900_v12, %v904_v57  ;;  %v5728_v12 = vcombine.high %v964_v53, %v968_v52 }
 0x33b   :  { %4160 = vmatprep.subr.bf16.mxu1 %v5568_v62  ;;  %v5672_v62 = vcombine.high %v908_v46, %v912_v60 }
 0x33e   :  { %4161 = vmatpush1.bf16.msra.mxu1 %v5567_v1  ;;  %v5671_v1 = vcombine.low %v908_v46, %v912_v60  ;;  %v976_v46 = vld [vmem:[#allocation8 + $0xeb8] sm:$0xff] }
 0x33f   :  { %4162 = vmatprep.subr.bf16.mxu1 %v5576_v11  ;;  %v5680_v11 = vcombine.high %v916_v3, %v920_v4 }
 0x342   :  { %4163 = vmatpush1.bf16.msra.mxu1 %v5575_v22  ;;  %v5679_v22 = vcombine.low %v916_v3, %v920_v4 }
 0x343   :  { %4164 = vmatprep.subr.bf16.mxu1 %v5584_v16  ;;  %v5688_v16 = vcombine.high %v924_v14, %v928_v15  ;;  %v984_v14 = vld [vmem:[#allocation8 + $0xef8] sm:$0xff] }
 0x346   :  { %4165 = vmatpush1.bf16.msra.mxu1 %v5583_v19  ;;  %v940_v19 = vld [vmem:[#allocation8 + $0xd98] sm:$0xff] }
 0x347   :  { %4166 = vmatprep.subr.bf16.mxu1 %v5592_v20  ;;  %v944_v20 = vld [vmem:[#allocation8 + $0xdb8] sm:$0xff] }
 0x348   :  { %v5704_v28 = vcombine.high %v940_v19, %v944_v20  ;;  %v5703_v2 = vcombine.low %v940_v19, %v944_v20  ;;  %v6109_v19 = vld [vmem:[%s7074_s5 + $0x244] ss:$8 sps:$4 sm:$0xff]  }
 0x34a   :  { %4167 = vmatpush1.bf16.msra.mxu1 %v5591_v26  ;;  %v1022_v26 = vrot.slane %v6853_v23, %v159_v10 }
 0x34b   :  { %4168 = vmatprep.subr.bf16.mxu1 %v5600_v27 }
 0x34e   :  { %4169 = vmatpush1.bf16.msra.mxu1 %v5599_v31  ;;  %v948_v31 = vld [vmem:[#allocation8 + $0xdd8] sm:$0xff] }
 0x34f   :  { %4170 = vmatprep.subr.bf16.mxu1 %v5608_v34  ;;  %v952_v34 = vld [vmem:[#allocation8 + $0xdf8] sm:$0xff] }
 0x350   :  { %v5712_v38 = vcombine.high %v948_v31, %v952_v34 }
 0x352   :  { %4171 = vmatpush1.bf16.msra.mxu1 %v5607_v59 }
 0x353   :  { %4172 = vmatprep.subr.bf16.mxu1 %v5616_v0 }
 0x356   :  { %4173 = vmatpush1.bf16.msra.mxu1 %v5615_v39 }
 0x357   :  { %4174 = vmatprep.subr.bf16.mxu1 %v5624_v41 }
 0x35a   :  { %4175 = vmatpush1.bf16.msra.mxu1 %v5623_v44 }
 0x35b   :  { %4176 = vmatprep.subr.bf16.mxu1 %v5632_v45  ;;  %v5711_v45 = vcombine.low %v948_v31, %v952_v34 }
 0x35e   :  { %4177 = vmatpush1.bf16.msra.mxu1 %v5631_v49 }
 0x35f   :  { %4178 = vmatprep.subr.bf16.mxu1 %v5640_v50  ;;  %v6095_v50 = vld [vmem:[%s7074_s5 + $0x200] ss:$8 sps:$4 sm:$0xff]  }
 0x362   :  { %4179 = vmatpush1.bf16.msra.mxu1 %v5639_v55 }
 0x363   :  { %4180 = vmatprep.subr.bf16.mxu1 %v5648_v25 }
 0x366   :  { %4181 = vmatpush1.bf16.msra.mxu1 %v5647_v63 }
 0x367   :  { %4191 = vmatprep.subr.bf16.mxu1 %v5656_v30 }
 0x369   :  { %4183 = vmatmul.mubr.bf16.vlgmr.msra.gmra.mrb[16].mxu1 %v6587_v9  ;;  %v932_v9 = vld [vmem:[#allocation8 + $0xd58] sm:$0xff] }
 0x36a   :  { %4192 = vmatpush1.bf16.msra.mxu1 %v5655_v58  ;;  %5776 = vmatprep.mubr.msk.bf16.mxu1 %vm3547_vm3, %v6596_v33  ;;  %v5696_v33 = vcombine.high %v932_v9, %v936_v13  ;;  %v5695_v27 = vcombine.low %v932_v9, %v936_v13  ;;  %v6098_v58 = vld [vmem:[%s7074_s5 + $0x210] ss:$8 sps:$4 sm:$0xff]  }
 0x36b   :  { %4193 = vmatprep.subr.bf16.mxu1 %v5664_v32  ;;  %v972_v32 = vld [vmem:[#allocation8 + $0xe98] sm:$0xff] }
 0x36c   :  { %v5736_v4 = vcombine.high %v972_v32, %v976_v46  ;;  %v6104_v13 = vld [vmem:[%s7074_s5 + $0x230] ss:$8 sps:$4 sm:$0xff]  }
 0x36e   :  { %4194 = vmatpush1.bf16.msra.mxu1 %v5663_v61  ;;  %v6103_v61 = vld [vmem:[%s7074_s5 + $0x224] ss:$8 sps:$4 sm:$0xff]  }
 0x36f   :  { %4195 = vmatprep.subr.bf16.mxu1 %v5672_v62  ;;  %v5727_v62 = vcombine.low %v964_v53, %v968_v52  ;;  %v6133_v53 = vld [vmem:[%s7074_s5 + $0x2c0] ss:$8 sps:$4 sm:$0xff]   ;;  %v1026_v52 = vrot.slane %v6853_v23, %v163_v21 }
 0x370   :  { %v6139_v21 = vld [vmem:[%s7074_s5 + $0x2e0] ss:$8 sps:$4 sm:$0xff]  }
 0x372   :  { %4196 = vmatpush1.bf16.msra.mxu1 %v5671_v1  ;;  %v6101_v1 = vld [vmem:[%s7074_s5 + $0x220] ss:$8 sps:$4 sm:$0xff]  }
 0x373   :  { %4197 = vmatprep.subr.bf16.mxu1 %v5680_v11  ;;  %v980_v11 = vld [vmem:[#allocation8 + $0xed8] sm:$0xff] }
 0x374   :  { %v5744_v9 = vcombine.high %v980_v11, %v984_v14  ;;  %v5743_v20 = vcombine.low %v980_v11, %v984_v14  ;;  %v6157_v11 = vld [vmem:[%s7074_s5 + $0x340] ss:$8 sps:$4 sm:$0xff]   ;;  %v6162_v14 = vld [vmem:[%s7074_s5 + $0x354] ss:$8 sps:$4 sm:$0xff]  }
 0x376   :  { %4198 = vmatpush1.bf16.msra.mxu1 %v5679_v22  ;;  %v6106_v22 = vld [vmem:[%s7074_s5 + $0x234] ss:$8 sps:$4 sm:$0xff]  }
 0x377   :  { %4199 = vmatprep.subr.bf16.mxu1 %v5688_v16  ;;  %v5735_v16 = vcombine.low %v972_v32, %v976_v46  ;;  %v6150_v46 = vld [vmem:[%s7074_s5 + $0x314] ss:$8 sps:$4 sm:$0xff]  }
 0x37a   :  { %4200 = vmatpush1.bf16.msra.mxu1 %v5687_v17  ;;  %v988_v17 = vld [vmem:[#allocation8 + $0xf18] sm:$0xff] }
 0x37b   :  { %4201 = vmatprep.subr.bf16.mxu1 %v5696_v33  ;;  %v992_v33 = vld [vmem:[#allocation8 + $0xf38] sm:$0xff] }
 0x37c   :  { %v3897_v29 = vpop.f32.mrb[12].mxu1  ;;  %v5751_v31 = vcombine.low %v988_v17, %v992_v33 }
 0x37d   :  { %v5910_v35 = vadd.f32 %v3897_v29, %v1018_v7  ;;  %v3899_v36 = vpop.f32.mrb[13].mxu1  ;;  %v5752_v7 = vcombine.high %v988_v17, %v992_v33  ;;  %v6112_v29 = vld [vmem:[%s7074_s5 + $0x254] ss:$8 sps:$4 sm:$0xff]   ;;  %v6171_v17 = vld [vmem:[%s7074_s5 + $0x384] ss:$8 sps:$4 sm:$0xff]  }
 0x37e   :  { %v5911_v59 = vadd.f32 %v3899_v36, %v1022_v26  ;;  %v3901_v0 = vpop.f32.mrb[14].mxu1  ;;  %4202 = vmatpush1.bf16.msra.mxu1 %v5695_v27  ;;  %v6107_v26 = vld [vmem:[%s7074_s5 + $0x240] ss:$8 sps:$4 sm:$0xff]  }
 0x37f   :  { %v4234_v37 = vpack.c.bf16 %v5910_v35, %v5910_v35  ;;  %v3902_v39 = vpop.f32.mrb[15].mxu1  ;;  %4203 = vmatprep.subr.bf16.mxu1 %v5704_v28  ;;  %v996_v27 = vld [vmem:[#allocation8 + $0xf58] sm:$0xff] }
 0x380   :  { %v4235_v41 = vpack.c.bf16 %v5911_v59, %v5911_v59  ;;  %v1000_v28 = vld [vmem:[#allocation8 + $0xf78] sm:$0xff] }
 0x381   :  { %v4242_v10 = vmul.bf16 1009007652, %v4234_v37  ;;  %v5760_v34 = vcombine.high %v996_v27, %v1000_v28  ;;  %v6110_v35 = vld [vmem:[%s7074_s5 + $0x250] ss:$8 sps:$4 sm:$0xff]   ;;  %v6115_v59 = vld [vmem:[%s7074_s5 + $0x264] ss:$8 sps:$4 sm:$0xff]   ;;  %v5759_v0 = vcombine.low %v996_v27, %v1000_v28 }
 0x382   :  { %v4243_v44 = vmul.bf16 1009007652, %v4235_v41  ;;  %4204 = vmatpush1.bf16.msra.mxu1 %v5703_v2  ;;  %v1004_v36 = vld [vmem:[#allocation8 + $0xf98] sm:$0xff]  ;;  %v6180_v27 = vld [vmem:[%s7074_s5 + $0x3b4] ss:$8 sps:$4 sm:$0xff]  }
 0x383   :  { %4205 = vmatprep.subr.bf16.mxu1 %v5712_v38  ;;  %v4250_v55 = vmax.bf16 %v4242_v10, %v4234_v37  ;;  %v5768_v2 = vcombine.high %v1004_v36, %v1004_v36  ;;  %v5767_v37 = vcombine.low %v1004_v36, %v1004_v36  ;;  %v6113_v39 = vld [vmem:[%s7074_s5 + $0x260] ss:$8 sps:$4 sm:$0xff]   ;;  %v6120_v38 = vld [vmem:[%s7074_s5 + $0x274] ss:$8 sps:$4 sm:$0xff]   ;;  %v6178_v28 = vld [vmem:[%s7074_s5 + $0x3b0] ss:$8 sps:$4 sm:$0xff]  }
 0x384   :  { %v4251_v49 = vmax.bf16 %v4243_v44, %v4235_v41  ;;  %v6121_v10 = vld [vmem:[%s7074_s5 + $0x280] ss:$8 sps:$4 sm:$0xff]   ;;  %v6126_v44 = vld [vmem:[%s7074_s5 + $0x294] ss:$8 sps:$4 sm:$0xff]  }
 0x385   :  { %v6867_v25 = vpop.f32.mrb[12].mxu0  ;;  %v3571_v41 = vsel %vm3551_vm4, %v5767_v37, 0  ;;  %v6169_v33 = vld [vmem:[%s7074_s5 + $0x380] ss:$8 sps:$4 sm:$0xff]   ;;  %v1034_v37 = vrot.slane %v6853_v23, %v171_v54  ;;  %v4381_v54 = vld [vmem:[#allocation11] sm:$0x3] }
 0x386   :  { %v4063_v56 = vpop.f32.mrb[13].mxu0  ;;  %4206 = vmatpush1.bf16.msra.mxu1 %v5711_v45  ;;  %5100 = vmatprep.mubr.bf16.mxu0 %v4251_v49  ;;  %v6124_v45 = vld [vmem:[%s7074_s5 + $0x290] ss:$8 sps:$4 sm:$0xff]   ;;  %v4380_v36 = vld [vmem:[%s7074_s5 + $0x3e0] sm:$0xff]  ;;  %v4386_v5 = vrot.slane %v4381_v54, %v6547_v6 }
 0x387   :  { %v5913_v63 = vadd.f32 %v4063_v56, %v1030_v47  ;;  %v4065_v30 = vpop.f32.mrb[14].mxu0  ;;  %5101 = vmatmul.mubr.bf16.vlgmr.msra.gmra.mrb[16].mxu0 %v4250_v55  ;;  %4207 = vmatprep.subr.bf16.mxu1 %v5720_v48  ;;  %v6129_v47 = vld [vmem:[%s7074_s5 + $0x2a4] ss:$8 sps:$4 sm:$0xff]   ;;  %v6132_v48 = vld [vmem:[%s7074_s5 + $0x2b4] ss:$8 sps:$4 sm:$0xff]   ;;  %v5912_v56 = vadd.f32 %v6867_v25, %v1026_v52 }
 0x388   :  { %v4066_v57 = vpop.f32.mrb[15].mxu0  ;;  %5110 = vmatpush1.bf16.msra.mxu0 %v6095_v50  ;;  %v6130_v49 = vld [vmem:[%s7074_s5 + $0x2b0] ss:$8 sps:$4 sm:$0xff]   ;;  %v6135_v50 = vld [vmem:[%s7074_s5 + $0x2c4] ss:$8 sps:$4 sm:$0xff]  }
 0x389   :  { %v4237_v60 = vpack.c.bf16 %v5913_v63, %v5913_v63  ;;  %5111 = vmatprep.subr.bf16.mxu0 %v6100_v18  ;;  %v6138_v55 = vld [vmem:[%s7074_s5 + $0x2d4] ss:$8 sps:$4 sm:$0xff]   ;;  %v6136_v18 = vld [vmem:[%s7074_s5 + $0x2d0] ss:$8 sps:$4 sm:$0xff]   ;;  %v4236_v63 = vpack.c.bf16 %v5912_v56, %v5912_v56  ;;  %v6147_v57 = vld [vmem:[%s7074_s5 + $0x304] ss:$8 sps:$4 sm:$0xff]  }
 0x38a   :  { %4208 = vmatpush1.bf16.msra.mxu1 %v5719_v24  ;;  %v6141_v24 = vld [vmem:[%s7074_s5 + $0x2e4] ss:$8 sps:$4 sm:$0xff]   ;;  %v6144_v30 = vld [vmem:[%s7074_s5 + $0x2f4] ss:$8 sps:$4 sm:$0xff]   ;;  %v6142_v25 = vld [vmem:[%s7074_s5 + $0x2f0] ss:$8 sps:$4 sm:$0xff]  }
 0x38b   :  { %v4245_v3 = vmul.bf16 1009007652, %v4237_v60  ;;  %4209 = vmatprep.subr.bf16.mxu1 %v5728_v12  ;;  %v4244_v12 = vmul.bf16 1009007652, %v4236_v63 }
 0x38c   :  { %5112 = vmatpush1.bf16.msra.mxu0 %v6098_v58  ;;  %v6145_v58 = vld [vmem:[%s7074_s5 + $0x300] ss:$8 sps:$4 sm:$0xff]  }
 0x38d   :  { %v4253_v15 = vmax.bf16 %v4245_v3, %v4237_v60  ;;  %5113 = vmatprep.subr.bf16.mxu0 %v6103_v61  ;;  %v4252_v32 = vmax.bf16 %v4244_v12, %v4236_v63  ;;  %v6148_v60 = vld [vmem:[%s7074_s5 + $0x310] ss:$8 sps:$4 sm:$0xff]   ;;  %v6153_v61 = vld [vmem:[%s7074_s5 + $0x324] ss:$8 sps:$4 sm:$0xff]   ;;  %v6156_v3 = vld [vmem:[%s7074_s5 + $0x334] ss:$8 sps:$4 sm:$0xff]  }
 0x38e   :  { %4210 = vmatpush1.bf16.msra.mxu1 %v5727_v62  ;;  %v6151_v62 = vld [vmem:[%s7074_s5 + $0x320] ss:$8 sps:$4 sm:$0xff]  }
 0x38f   :  { %5141 = vmatprep.mubr.bf16.mxu0 %v4253_v15  ;;  %4211 = vmatprep.subr.bf16.mxu1 %v5736_v4  ;;  %v6154_v4 = vld [vmem:[%s7074_s5 + $0x330] ss:$8 sps:$4 sm:$0xff]  }
 0x390   :  { %5114 = vmatpush1.bf16.msra.mxu0 %v6101_v1  ;;  %v6159_v1 = vld [vmem:[%s7074_s5 + $0x344] ss:$8 sps:$4 sm:$0xff]   ;;  %v6160_v15 = vld [vmem:[%s7074_s5 + $0x350] ss:$8 sps:$4 sm:$0xff]  }
 0x391   :  { %5115 = vmatprep.subr.bf16.mxu0 %v6106_v22  ;;  %v6165_v22 = vld [vmem:[%s7074_s5 + $0x364] ss:$8 sps:$4 sm:$0xff]  }
 0x392   :  { %4212 = vmatpush1.bf16.msra.mxu1 %v5735_v16  ;;  %v6163_v16 = vld [vmem:[%s7074_s5 + $0x360] ss:$8 sps:$4 sm:$0xff]  }
 0x393   :  { %4213 = vmatprep.subr.bf16.mxu1 %v5744_v9  ;;  %v6168_v9 = vld [vmem:[%s7074_s5 + $0x374] ss:$8 sps:$4 sm:$0xff]  }
 0x394   :  { %5116 = vmatpush1.bf16.msra.mxu0 %v6104_v13  ;;  %v6166_v13 = vld [vmem:[%s7074_s5 + $0x370] ss:$8 sps:$4 sm:$0xff]  }
 0x395   :  { %5117 = vmatprep.subr.bf16.mxu0 %v6109_v19  ;;  %v6174_v19 = vld [vmem:[%s7074_s5 + $0x394] ss:$8 sps:$4 sm:$0xff]  }
 0x396   :  { %4214 = vmatpush1.bf16.msra.mxu1 %v5743_v20  ;;  %v6172_v20 = vld [vmem:[%s7074_s5 + $0x390] ss:$8 sps:$4 sm:$0xff]  }
 0x397   :  { %4215 = vmatprep.subr.bf16.mxu1 %v5752_v7  ;;  %v6177_v7 = vld [vmem:[%s7074_s5 + $0x3a4] ss:$8 sps:$4 sm:$0xff]  }
 0x398   :  { %5118 = vmatpush1.bf16.msra.mxu0 %v6107_v26  ;;  %v6175_v26 = vld [vmem:[%s7074_s5 + $0x3a0] ss:$8 sps:$4 sm:$0xff]  }
 0x399   :  { %5119 = vmatprep.subr.bf16.mxu0 %v6112_v29  ;;  %v6183_v29 = vld [vmem:[%s7074_s5 + $0x3c4] ss:$8 sps:$4 sm:$0xff]  }
 0x39a   :  { %4216 = vmatpush1.bf16.msra.mxu1 %v5751_v31  ;;  %v6181_v31 = vld [vmem:[%s7074_s5 + $0x3c0] ss:$8 sps:$4 sm:$0xff]  }
 0x39b   :  { %4217 = vmatprep.subr.bf16.mxu1 %v5760_v34  ;;  %v6186_v34 = vld [vmem:[%s7074_s5 + $0x3d4] ss:$8 sps:$4 sm:$0xff]  }
 0x39c   :  { %5120 = vmatpush1.bf16.msra.mxu0 %v6110_v35  ;;  %v6184_v35 = vld [vmem:[%s7074_s5 + $0x3d0] ss:$8 sps:$4 sm:$0xff]  }
 0x39d   :  { %5121 = vmatprep.subr.bf16.mxu0 %v6115_v59  ;;  %v5902_v59 = vcombine.high %v4380_v36, %v4380_v36 }
 0x39e   :  { %4218 = vmatpush1.bf16.msra.mxu1 %v5759_v0  ;;  %v5901_v0 = vcombine.low %v4380_v36, %v4380_v36 }
 0x39f   :  { %5775 = vmatprep.subr.msk.bf16.mxu1 %vm3551_vm4, %v5768_v2 }
 0x3a0   :  { %5122 = vmatpush1.bf16.msra.mxu0 %v6113_v39  ;;  %v5022_v2 = vsel %vm3551_vm4, %v5901_v0, 0  ;;  %v1038_v39 = vrot.slane %v6853_v23, %v175_v40  ;;  %v4390_v40 = vrot.slane %v4381_v54, %v6552_v8 }
 0x3a1   :  { %5123 = vmatprep.subr.bf16.mxu0 %v6120_v38 }
 0x3a2   :  { %4220 = vmatpush1.bf16.msra.mxu1 %v3571_v41 }
 0x3a4   :  { %5124 = vmatpush1.bf16.msra.mxu0 %v6118_v42 }
 0x3a5   :  { %4224 = vmatmul.mubr.bf16.vlgmr.msra.gmra.mrb[16].mxu1 %v6616_v51  ;;  %5125 = vmatprep.subr.bf16.mxu0 %v6123_v43  ;;  %v6127_v51 = vld [vmem:[%s7074_s5 + $0x2a0] ss:$8 sps:$4 sm:$0xff]  }
 0x3a8   :  { %5126 = vmatpush1.bf16.msra.mxu0 %v6121_v10 }
 0x3a9   :  { %5127 = vmatprep.subr.bf16.mxu0 %v6126_v44 }
 0x3ac   :  { %5128 = vmatpush1.bf16.msra.mxu0 %v6124_v45 }
 0x3ad   :  { %5129 = vmatprep.subr.bf16.mxu0 %v6129_v47 }
 0x3b0   :  { %5130 = vmatpush1.bf16.msra.mxu0 %v6127_v51 }
 0x3b1   :  { %5131 = vmatprep.subr.bf16.mxu0 %v6132_v48 }
 0x3b4   :  { %5132 = vmatpush1.bf16.msra.mxu0 %v6130_v49 }
 0x3b5   :  { %5133 = vmatprep.subr.bf16.mxu0 %v6135_v50 }
 0x3b8   :  { %5134 = vmatpush1.bf16.msra.mxu0 %v6133_v53 }
 0x3b9   :  { %5135 = vmatprep.subr.bf16.mxu0 %v6138_v55  ;;  %v5195_v55 = vld [vmem:[#allocation13] sm:$0x3] }
 0x3ba   :  { %v5200_v12 = vrot.slane %v5195_v55, %v6547_v6 }
 0x3bc   :  { %5136 = vmatpush1.bf16.msra.mxu0 %v6136_v18 }
 0x3bd   :  { %5137 = vmatprep.subr.bf16.mxu0 %v6141_v24 }
 0x3c0   :  { %5138 = vmatpush1.bf16.msra.mxu0 %v6139_v21 }
 0x3c1   :  { %5139 = vmatprep.subr.bf16.mxu0 %v6144_v30  ;;  %v5204_v30 = vrot.slane %v5195_v55, %v6552_v8 }
 0x3c4   :  { %5140 = vmatpush1.bf16.msra.mxu0 %v6142_v25 }
 0x3c5   :  { %5150 = vmatprep.subr.bf16.mxu0 %v6147_v57 }
 0x3c7   :  { %5142 = vmatmul.mubr.bf16.vlgmr.msra.gmra.mrb[16].mxu0 %v4252_v32 }
 0x3c8   :  { %5151 = vmatpush1.bf16.msra.mxu0 %v6145_v58 }
 0x3c9   :  { %5152 = vmatprep.subr.bf16.mxu0 %v6150_v46 }
 0x3cc   :  { %5153 = vmatpush1.bf16.msra.mxu0 %v6148_v60 }
 0x3cd   :  { %5154 = vmatprep.subr.bf16.mxu0 %v6153_v61  ;;  %v5905_v61 = vld [vmem:[#allocation2] ss:$0 sm:$0xff] }
 0x3d0   :  { %5155 = vmatpush1.bf16.msra.mxu0 %v6151_v62 }
 0x3d1   :  { %5156 = vmatprep.subr.bf16.mxu0 %v6156_v3 }
 0x3d4   :  { %5157 = vmatpush1.bf16.msra.mxu0 %v6154_v4 }
 0x3d5   :  { %5158 = vmatprep.subr.bf16.mxu0 %v6159_v1 }
 0x3d8   :  { %5159 = vmatpush1.bf16.msra.mxu0 %v6157_v11 }
 0x3d9   :  { %5160 = vmatprep.subr.bf16.mxu0 %v6162_v14 }
 0x3dc   :  { %5161 = vmatpush1.bf16.msra.mxu0 %v6160_v15 }
 0x3dd   :  { %5162 = vmatprep.subr.bf16.mxu0 %v6165_v22 }
 0x3e0   :  { %5163 = vmatpush1.bf16.msra.mxu0 %v6163_v16 }
 0x3e1   :  { %5164 = vmatprep.subr.bf16.mxu0 %v6168_v9 }
 0x3e4   :  { %5165 = vmatpush1.bf16.msra.mxu0 %v6166_v13 }
 0x3e5   :  { %5166 = vmatprep.subr.bf16.mxu0 %v6171_v17 }
 0x3e8   :  { %5167 = vmatpush1.bf16.msra.mxu0 %v6169_v33 }
 0x3e9   :  { %5168 = vmatprep.subr.bf16.mxu0 %v6174_v19 }
 0x3ec   :  { %5169 = vmatpush1.bf16.msra.mxu0 %v6172_v20 }
 0x3ed   :  { %5170 = vmatprep.subr.bf16.mxu0 %v6177_v7 }
 0x3f0   :  { %5171 = vmatpush1.bf16.msra.mxu0 %v6175_v26 }
 0x3f1   :  { %5172 = vmatprep.subr.bf16.mxu0 %v6180_v27 }
 0x3f4   :  { %5173 = vmatpush1.bf16.msra.mxu0 %v6178_v28 }
 0x3f5   :  { %5174 = vmatprep.subr.bf16.mxu0 %v6183_v29 }
 0x3f8   :  { %5175 = vmatpush1.bf16.msra.mxu0 %v6181_v31 }
 0x3f9   :  { %5176 = vmatprep.subr.bf16.mxu0 %v6186_v34 }
 0x3fc   :  { %5177 = vmatpush1.bf16.msra.mxu0 %v6184_v35 }
 0x3fd   :  { %5903 = vmatprep.subr.msk.bf16.mxu0 %vm3551_vm4, %v5902_v59 }
 0x400   :  { %5179 = vmatpush1.bf16.msra.mxu0 %v5022_v2 }
 0x478   :  { %v4225_v38 = vpop.f32.mrb[16].mxu1 }
 0x479   :  { %v5914_v41 = vadd.f32 %v4225_v38, %v1034_v37  ;;  %v4227_v42 = vpop.f32.mrb[17].mxu1 }
 0x47a   :  { %v5915_v43 = vadd.f32 %v4227_v42, %v1038_v39  ;;  %v4229_v10 = vpop.f32.mrb[18].mxu1 }
 0x47b   :  { %v4238_v44 = vpack.c.bf16 %v5914_v41, %v5914_v41  ;;  %v4230_v45 = vpop.f32.mrb[19].mxu1 }
 0x47c   :  { %v4239_v47 = vpack.c.bf16 %v5915_v43, %v5915_v43 }
 0x47d   :  { %v4246_v51 = vmul.bf16 1009007652, %v4238_v44 }
 0x47e   :  { %v4247_v48 = vmul.bf16 1009007652, %v4239_v47 }
 0x47f   :  { %v4254_v50 = vmax.bf16 %v4246_v51, %v4238_v44 }
 0x480   :  { %v4255_v49 = vmax.bf16 %v4247_v48, %v4239_v47 }
 0x482   :  { %5904 = vmatprep.mubr.msk.bf16.mxu0 %vm3547_vm3, %v4255_v49 }
 0x483   :  { %5183 = vmatmul.mubr.bf16.vlgmr.msra.gmra.mrb[16].mxu0 %v4254_v50 }
 0x556   :  { %v5184_v23 = vpop.f32.mrb[16].mxu0 }
 0x557   :  { %v5916_v53 = vadd.f32 %v5184_v23, %v4386_v5  ;;  %v5186_v52 = vpop.f32.mrb[17].mxu0 }
 0x558   :  { %v5917_v18 = vadd.f32 %v5186_v52, %v4390_v40  ;;  %v5188_v56 = vpop.f32.mrb[18].mxu0 }
 0x559   :  { %v5191_v24 = vmul.f32 0.01, %v5916_v53  ;;  %v5189_v21 = vpop.f32.mrb[19].mxu0 }
 0x55a   :  { %v5192_v63 = vmul.f32 0.01, %v5917_v18 }
 0x55b   :  { %v5193_v25 = vmax.f32 %v5916_v53, %v5191_v24 }
 0x55c   :  { %v5194_v57 = vmax.f32 %v5917_v18, %v5192_v63 }
 0x55d   :  { %v5207_v32 = vmul.f32 %v5200_v12, %v5193_v25 }
 0x55e   :  { %v5208_v58 = vmul.f32 %v5204_v30, %v5194_v57 }
 0x560   :  { %v5210_v46 = vsel %vm5209_vm5, %v5208_v58, 0.0 }
 0x561   :  { %v5211_v60 = vadd.f32 %v5210_v46, %v5207_v32 }
 0x563   :  { %5212 = vadd.xlane.f32.xlu0 %v5211_v60 }
 0x5f0   :  { %v5213_v62 = vpop.xlane.xlu0 %5212 }
 0x5f1   :  { %v5221_v3 = vadd.f32 %v5905_v61, %v5213_v62 }
 0x5f3   :  { %v5222_v4 = vsub.f32 0.0, %v5221_v3 }
 0x5f5   :  { %v5223_v1 = vmul.f32 1.442695, %v5222_v4 }
 0x5f7   :  { %6189 = vpow2.f32 %v5223_v1 }
 0x601   :  { %v6190_v11 = vpop.eup %6189 }
 0x602   :  { %v5225_v14 = vadd.f32 1.0, %v6190_v11 }
 0x604   :  { %6191 = vrcp.f32 %v5225_v14 }
 0x60e   :  { %v6192_v8 = vpop.eup %6191 }
 0x60f   :  { %5228 = vst.msk [vmem:[%s7078_s9] sm:$0xff] %vm5227_vm6, %v6192_v8 }
 0x610   :  { %5233 = vsyncpa [#allocation4], 1 }
 0x611   :  { %5234 = vsyncpa [#allocation6], 1 }
 0x612   :  { %5235 = vsyncpa [#allocation9], 1 }
 0x613   :  { %5236 = vsyncpa [#allocation12], 1 }

// kernel: tpu_custom_call.1
= control target key start
LH: loop header
LB: loop body
LE: loop exit
PB: predicated region body
PF: predicated region fallthrough
CT: control target
= control target key end

     0   :  { %s7069_s0 = inlined_call_operand.hbm [shape: f32[8,37], index: 0, kind: input, shape index: {}]   ;;  %s7070_s1 = inlined_call_operand.hbm [shape: bf16[37,1000], index: 1, kind: input, shape index: {}]   ;;  %s7071_s2 = inlined_call_operand.hbm [shape: f32[1,1000], index: 2, kind: input, shape index: {}]   ;;  %s7072_s3 = inlined_call_operand.hbm [shape: bf16[1000,1000], index: 3, kind: input, shape index: {}]   ;;  %s7073_s4 = inlined_call_operand.hbm [shape: f32[1,1000], index: 4, kind: input, shape index: {}]   ;;  %s7074_s5 = inlined_call_operand.vmem [shape: bf16[1000,200], index: 5, kind: input, shape index: {}]   ;;  %s7075_s6 = inlined_call_operand.hbm [shape: f32[1,200], index: 6, kind: input, shape index: {}]   ;;  %s7076_s7 = inlined_call_operand.hbm [shape: f32[1,200], index: 7, kind: input, shape index: {}]   ;;  %s7077_s8 = inlined_call_operand.<no memory space> [shape: f32[1,1], index: 8, kind: input, shape index: {}]   ;;  %s7078_s9 = inlined_call_operand.vmem [shape: f32[8,1], index: 9, kind: output, shape index: {}]  }
   0x1   :  { %v14_v0 = vstv %s7077_s8 }
   0x2   :  { %15 = vst [vmem:[#allocation2] sm:$0x1] %v14_v0 }
   0x3   :  { %16 = vsyncpa [#allocation4], 0 }
   0x4   :  { %17 = vsyncpa [#allocation6], 0 }
   0x5   :  { %18 = vsyncpa [#allocation9], 0 }
   0x6   :  { %19 = vsyncpa [#allocation12], 0  ;;  %s6356_s11 = smov [#allocation5]   ;;  %s6194_s15 = scalar_lea.hbm %s7070_s1, 2560 }
   0x7   :  { %s35_s12 = sshll.u32 %s6356_s11, 4  ;;  %p6195_p0 = scmp.ne.s32.totalorder %s7070_s1, %s6194_s15  ;;  %s36_s12 = int_to_ptr.vmem [resolvable:$true] %s35_s12 }
   0x8   :  { %p6198_p1 = scmp.lt.u32.totalorder %s6194_s15, %s7070_s1 }
   0xa   :  { %p6200_p2 = pnand %p6198_p1, %p6195_p0 }
   0xc   :  { %6203 = shalt.err (!%p6200_p2)
}
   0xd   :  { %s6204_s8 = scalar_lea.vmem %s36_s12, 2560  ;;  %p6209_p4 = scmp.lt.s32.totalorder %s36_s12, %s36_s12 }
   0xe   :  { %p6205_p3 = scmp.ne.s32.totalorder %s36_s12, %s6204_s8  ;;  %p6210_p5 = scmp.lt.s32.totalorder %s6204_s8, %s6204_s8 }
  0x10   :  { %p6211_p6 = por %p6210_p5, %p6209_p4 }
  0x12   :  { %p6212_p7 = pnand %p6211_p6, %p6205_p3 }
  0x14   :  { %6215 = shalt.err (!%p6212_p7)
}
  0x15   :  { %s6357_s20 = smov 512   ;;  %s6358_s21 = smov 32  }
  0x16   :  { %41 = dma.hbm_to_vmem [thread:$0]  %s7070_s1, 2560, %s36_s12, [#allocation6], %s6357_s20, %s6357_s20, %s6358_s21  }
  0x17   :  { %s6359_s24 = smov [#allocation8]   ;;  %s6360_s26 = smov [#allocation11]  }
  0x18   :  { %s57_s25 = sshll.u32 %s6359_s24, 4  ;;  %s82_s27 = sshll.u32 %s6360_s26, 4  ;;  %s58_s25 = int_to_ptr.vmem [resolvable:$true] %s57_s25  ;;  %s83_s27 = int_to_ptr.vmem [resolvable:$true] %s82_s27 }
  0x19   :  { %s6216_s30 = scalar_lea.hbm %s7072_s3, 64000 }
  0x1a   :  { %p6217_p8 = scmp.ne.s32.totalorder %s7072_s3, %s6216_s30  ;;  %p6220_p9 = scmp.lt.u32.totalorder %s6216_s30, %s7072_s3 }
  0x1c   :  { %p6222_p10 = pnand %p6220_p9, %p6217_p8 }
  0x1e   :  { %6225 = shalt.err (!%p6222_p10)
}
  0x1f   :  { %s6226_s1 = scalar_lea.vmem %s58_s25, 64000  ;;  %p6231_p12 = scmp.lt.s32.totalorder %s58_s25, %s58_s25 }
  0x20   :  { %p6227_p11 = scmp.ne.s32.totalorder %s58_s25, %s6226_s1  ;;  %p6232_p13 = scmp.lt.s32.totalorder %s6226_s1, %s6226_s1 }
  0x22   :  { %p6233_p0 = por %p6232_p13, %p6231_p12 }
  0x24   :  { %p6234_p1 = pnand %p6233_p0, %p6227_p11 }
  0x26   :  { %6237 = shalt.err (!%p6234_p1)
}
  0x27   :  { %63 = dma.hbm_to_vmem [thread:$0]  %s7072_s3, 64000, %s58_s25, [#allocation9], %s6357_s20, %s6357_s20, %s6358_s21  }
  0x28   :  { %s6238_s18 = scalar_lea.hbm %s7075_s6, 32 }
  0x29   :  { %p6239_p2 = scmp.ne.s32.totalorder %s7075_s6, %s6238_s18  ;;  %p6242_p3 = scmp.lt.u32.totalorder %s6238_s18, %s7075_s6 }
  0x2b   :  { %p6244_p4 = pnand %p6242_p3, %p6239_p2 }
  0x2d   :  { %6247 = shalt.err (!%p6244_p4)
}
  0x2e   :  { %s6248_s24 = scalar_lea.vmem %s83_s27, 32  ;;  %p6253_p6 = scmp.lt.s32.totalorder %s83_s27, %s83_s27 }
  0x2f   :  { %p6249_p5 = scmp.ne.s32.totalorder %s83_s27, %s6248_s24  ;;  %p6254_p7 = scmp.lt.s32.totalorder %s6248_s24, %s6248_s24 }
  0x31   :  { %p6255_p8 = por %p6254_p7, %p6253_p6 }
  0x33   :  { %p6256_p9 = pnand %p6255_p8, %p6249_p5 }
  0x35   :  { %6259 = shalt.err (!%p6256_p9)
}
  0x36   :  { %85 = dma.hbm_to_vmem [thread:$0]  %s7075_s6, 32, %s83_s27, [#allocation12]  }
  0x37   :  { %s6361_s21 = smov [#allocation3]   ;;  %s6362_s26 = smov [#allocation7]  }
  0x38   :  { %s26_s25 = sshll.u32 %s6361_s21, 4  ;;  %s48_s28 = sshll.u32 %s6362_s26, 4  ;;  %s27_s25 = int_to_ptr.vmem [resolvable:$true] %s26_s25  ;;  %s49_s28 = int_to_ptr.vmem [resolvable:$true] %s48_s28 }
  0x39   :  { %s6260_s10 = scalar_lea.hbm %s7069_s0, 128 }
  0x3a   :  { %p6261_p10 = scmp.ne.s32.totalorder %s7069_s0, %s6260_s10  ;;  %p6264_p11 = scmp.lt.u32.totalorder %s6260_s10, %s7069_s0 }
  0x3c   :  { %p6266_p12 = pnand %p6264_p11, %p6261_p10 }
  0x3e   :  { %6269 = shalt.err (!%p6266_p12)
}
  0x3f   :  { %s6270_s6 = scalar_lea.vmem %s27_s25, 128  ;;  %p6275_p0 = scmp.lt.s32.totalorder %s27_s25, %s27_s25 }
  0x40   :  { %p6271_p13 = scmp.ne.s32.totalorder %s27_s25, %s6270_s6  ;;  %p6276_p1 = scmp.lt.s32.totalorder %s6270_s6, %s6270_s6 }
  0x42   :  { %p6277_p2 = por %p6276_p1, %p6275_p0 }
  0x44   :  { %p6278_p3 = pnand %p6277_p2, %p6271_p13 }
  0x46   :  { %6281 = shalt.err (!%p6278_p3)
}
  0x47   :  { %29 = dma.hbm_to_vmem [thread:$0]  %s7069_s0, 128, %s27_s25, [#allocation4]  }
  0x48   :  { %s6282_s17 = scalar_lea.hbm %s7071_s2, 128 }
  0x49   :  { %p6283_p4 = scmp.ne.s32.totalorder %s7071_s2, %s6282_s17  ;;  %p6286_p5 = scmp.lt.u32.totalorder %s6282_s17, %s7071_s2 }
  0x4b   :  { %p6288_p6 = pnand %p6286_p5, %p6283_p4 }
  0x4d   :  { %6291 = shalt.err (!%p6288_p6)
}
  0x4e   :  { %s6292_s23 = scalar_lea.vmem %s49_s28, 128  ;;  %p6297_p8 = scmp.lt.s32.totalorder %s49_s28, %s49_s28 }
  0x4f   :  { %p6293_p7 = scmp.ne.s32.totalorder %s49_s28, %s6292_s23  ;;  %p6298_p9 = scmp.lt.s32.totalorder %s6292_s23, %s6292_s23 }
  0x51   :  { %p6299_p10 = por %p6298_p9, %p6297_p8 }
  0x53   :  { %p6300_p11 = pnand %p6299_p10, %p6293_p7 }
  0x55   :  { %6303 = shalt.err (!%p6300_p11)
}
  0x56   :  { %51 = dma.hbm_to_vmem [thread:$0]  %s7071_s2, 128, %s49_s28, [#allocation6]  }
  0x57   :  { %s6363_s3 = smov [#allocation10]   ;;  %s6364_s21 = smov [#allocation13]  }
  0x58   :  { %s70_s20 = sshll.u32 %s6363_s3, 4  ;;  %s92_s25 = sshll.u32 %s6364_s21, 4  ;;  %s71_s20 = int_to_ptr.vmem [resolvable:$true] %s70_s20  ;;  %s93_s25 = int_to_ptr.vmem [resolvable:$true] %s92_s25 }
  0x59   :  { %s6304_s30 = scalar_lea.hbm %s7073_s4, 128 }
  0x5a   :  { %p6305_p12 = scmp.ne.s32.totalorder %s7073_s4, %s6304_s30  ;;  %p6308_p13 = scmp.lt.u32.totalorder %s6304_s30, %s7073_s4 }
  0x5c   :  { %p6310_p0 = pnand %p6308_p13, %p6305_p12 }
  0x5e   :  { %6313 = shalt.err (!%p6310_p0)
}
  0x5f   :  { %s6314_s2 = scalar_lea.vmem %s71_s20, 128  ;;  %p6319_p2 = scmp.lt.s32.totalorder %s71_s20, %s71_s20 }
  0x60   :  { %p6315_p1 = scmp.ne.s32.totalorder %s71_s20, %s6314_s2  ;;  %p6320_p3 = scmp.lt.s32.totalorder %s6314_s2, %s6314_s2 }
  0x62   :  { %p6321_p4 = por %p6320_p3, %p6319_p2 }
  0x64   :  { %p6322_p5 = pnand %p6321_p4, %p6315_p1 }
  0x66   :  { %6325 = shalt.err (!%p6322_p5)
}
  0x67   :  { %73 = dma.hbm_to_vmem [thread:$0]  %s7073_s4, 128, %s71_s20, [#allocation9]  }
  0x68   :  { %s6326_s12 = scalar_lea.hbm %s7076_s7, 32 }
  0x69   :  { %p6327_p6 = scmp.ne.s32.totalorder %s7076_s7, %s6326_s12  ;;  %p6330_p7 = scmp.lt.u32.totalorder %s6326_s12, %s7076_s7 }
  0x6b   :  { %p6332_p8 = pnand %p6330_p7, %p6327_p6 }
  0x6d   :  { %6335 = shalt.err (!%p6332_p8)
}
  0x6e   :  { %s6336_s19 = scalar_lea.vmem %s93_s25, 32  ;;  %p6341_p10 = scmp.lt.s32.totalorder %s93_s25, %s93_s25 }
  0x6f   :  { %p6337_p9 = scmp.ne.s32.totalorder %s93_s25, %s6336_s19  ;;  %p6342_p11 = scmp.lt.s32.totalorder %s6336_s19, %s6336_s19 }
  0x71   :  { %p6343_p12 = por %p6342_p11, %p6341_p10 }
  0x73   :  { %p6344_p13 = pnand %p6343_p12, %p6337_p9 }
  0x75   :  { %6347 = shalt.err (!%p6344_p13)
}
  0x76   :  { %95 = dma.hbm_to_vmem [thread:$0]  %s7076_s7, 32, %s93_s25, [#allocation12]  }
  0x77   :  { %6348 = dma.done.wait [#allocation4], 128  }
  0x78   :  { %6349 = vsyncadd [#allocation4], 4294967168 }
  0x79   :  { %6350 = dma.done.wait [#allocation6], 2688  }
  0x7a   :  { %6351 = vsyncadd [#allocation6], 4294964608 }
  0x7b   :  { %6352 = dma.done.wait [#allocation9], 64128  }
  0x7c   :  { %6353 = vsyncadd [#allocation9], 4294903168 }
  0x7d   :  { %6354 = dma.done.wait [#allocation12], 64  }
  0x7e   :  { %6355 = vsyncadd [#allocation12], 4294967232  ;;  %v6365_v1 = vmov 0   ;;  %vm289_vm0 = vcmask 1041408   ;;  %vm290_vm1 = vcmask 1042432   ;;  %v6366_v2 = vmov 65535  }
  0x7f   :  { %349 = vmatprep.mubr.bf16.mxu0 %v6365_v1  ;;  %390 = vmatprep.mubr.bf16.mxu1 %v6365_v1  ;;  %v291_v3 = vsel %vm289_vm0, 4294967295, %v6366_v2  ;;  %v123_v4 = vld [vmem:[#allocation5] sm:$0xff]  ;;  %v124_v14 = vld [vmem:[#allocation5 + $0x8] sm:$0xff]  ;;  %v125_v24 = vld [vmem:[#allocation5 + $0x10] sm:$0xff]  ;;  %vm285_vm2 = vcmask 302080   ;;  %vm3547_vm3 = vcmask 850944  }
  0x80   :  { %v127_v5 = vld [vmem:[#allocation5 + $0x20] sm:$0xff]  ;;  %v6506_v13 = vsel %vm290_vm1, %v291_v3, 0  ;;  %v128_v17 = vld [vmem:[#allocation5 + $0x28] sm:$0xff]  ;;  %v129_v25 = vld [vmem:[#allocation5 + $0x30] sm:$0xff]  ;;  %vm3551_vm4 = vcmask 1043456   ;;  %vm5209_vm5 = vcmask 588800  }
  0x81   :  { %v131_v6 = vld [vmem:[#allocation5 + $0x40] sm:$0xff]  ;;  %v5238_v7 = vcombine.high %v123_v4, %v127_v5  ;;  %v5237_v8 = vcombine.low %v123_v4, %v127_v5  ;;  %v132_v18 = vld [vmem:[#allocation5 + $0x48] sm:$0xff]  ;;  %v5240_v21 = vcombine.high %v124_v14, %v128_v17  ;;  %v5239_v22 = vcombine.low %v124_v14, %v128_v17  ;;  %v121_v29 = vld [vmem:[#allocation3] sm:$0xff] }
  0x82   :  { %v135_v9 = vld [vmem:[#allocation5 + $0x60] sm:$0xff]  ;;  %v136_v19 = vld [vmem:[#allocation5 + $0x68] sm:$0xff]  ;;  %v5242_v31 = vcombine.high %v125_v24, %v129_v25  ;;  %v133_v34 = vld [vmem:[#allocation5 + $0x50] sm:$0xff]  ;;  %v6511_v37 = vpack.c.bf16 %v121_v29, %v121_v29  ;;  %v5241_v40 = vcombine.low %v125_v24, %v129_v25  ;;  %vm5227_vm6 = vcmask 7168  }
  0x83   :  { %v139_v10 = vld [vmem:[#allocation5 + $0x80] sm:$0x77]  ;;  %v5246_v11 = vcombine.high %v131_v6, %v135_v9  ;;  %317 = vmatprep.subr.bf16.mxu0 %v5238_v7  ;;  %v5245_v15 = vcombine.low %v131_v6, %v135_v9  ;;  %v140_v23 = vld [vmem:[#allocation5 + $0x88] sm:$0x77]  ;;  %v5248_v26 = vcombine.high %v132_v18, %v136_v19  ;;  %358 = vmatprep.subr.bf16.mxu1 %v5240_v21  ;;  %v137_v35 = vld [vmem:[#allocation5 + $0x70] sm:$0xff] }
  0x84   :  { %v5254_v12 = vcombine.high %v139_v10, %v139_v10  ;;  %318 = vmatpush1.bf16.msra.mxu0 %v5237_v8  ;;  %v5253_v16 = vcombine.low %v139_v10, %v139_v10  ;;  %v5256_v27 = vcombine.high %v140_v23, %v140_v23  ;;  %359 = vmatpush1.bf16.msra.mxu1 %v5239_v22  ;;  %v141_v36 = vld [vmem:[#allocation5 + $0x90] sm:$0x77]  ;;  %v126_v38 = vld [vmem:[#allocation5 + $0x18] sm:$0xff]  ;;  %v761_v54 = vld [vmem:[#allocation8 + $0x800] sm:$0xff] }
  0x85   :  { %319 = vmatprep.subr.bf16.mxu0 %v5246_v11  ;;  %v5247_v30 = vcombine.low %v132_v18, %v136_v19  ;;  %360 = vmatprep.subr.bf16.mxu1 %v5248_v26  ;;  %v5255_v33 = vcombine.low %v140_v23, %v140_v23  ;;  %v130_v39 = vld [vmem:[#allocation5 + $0x38] sm:$0xff]  ;;  %v5250_v41 = vcombine.high %v133_v34, %v137_v35  ;;  %v765_v55 = vld [vmem:[#allocation8 + $0x820] sm:$0xff] }
  0x86   :  { %v297_v20 = vand.u32 %v5254_v12, %v6506_v13  ;;  %v294_v28 = vand.u32 %v5253_v16, %v6506_v13  ;;  %v303_v32 = vand.u32 %v5256_v27, %v6506_v13  ;;  %v5258_v42 = vcombine.high %v141_v36, %v141_v36  ;;  %v134_v45 = vld [vmem:[#allocation5 + $0x58] sm:$0xff]  ;;  %v769_v61 = vld [vmem:[#allocation8 + $0x840] sm:$0xff] }
  0x87   :  { %v300_v43 = vand.u32 %v5255_v33, %v6506_v13  ;;  %v5244_v44 = vcombine.high %v126_v38, %v130_v39  ;;  %v138_v46 = vld [vmem:[#allocation5 + $0x78] sm:$0xff]  ;;  %v5249_v48 = vcombine.low %v133_v34, %v137_v35  ;;  %v5257_v49 = vcombine.low %v141_v36, %v141_v36  ;;  %v773_v62 = vld [vmem:[#allocation8 + $0x860] sm:$0xff] }
  0x88   :  { %320 = vmatpush1.bf16.msra.mxu0 %v5245_v15  ;;  %361 = vmatpush1.bf16.msra.mxu1 %v5247_v30  ;;  %v142_v47 = vld [vmem:[#allocation5 + $0x98] sm:$0x77]  ;;  %v309_v50 = vand.u32 %v5258_v42, %v6506_v13  ;;  %v5243_v51 = vcombine.low %v126_v38, %v130_v39  ;;  %v5252_v52 = vcombine.high %v134_v45, %v138_v46  ;;  %v505_v63 = vld [vmem:[#allocation8] sm:$0xff] }
  0x89   :  { %321 = vmatprep.subr.bf16.mxu0 %v297_v20  ;;  %362 = vmatprep.subr.bf16.mxu1 %v303_v32  ;;  %v5260_v53 = vcombine.high %v142_v47, %v142_v47  ;;  %v306_v56 = vand.u32 %v5257_v49, %v6506_v13  ;;  %v5251_v57 = vcombine.low %v134_v45, %v138_v46  ;;  %v509_v0 = vld [vmem:[#allocation8 + $0x20] sm:$0xff] }
  0x8a   :  { %v5259_v58 = vcombine.low %v142_v47, %v142_v47  ;;  %v5522_v59 = vcombine.high %v761_v54, %v765_v55  ;;  %v5521_v2 = vcombine.low %v761_v54, %v765_v55  ;;  %v777_v3 = vld [vmem:[#allocation8 + $0x880] sm:$0xff]  ;;  %v5530_v8 = vcombine.high %v769_v61, %v773_v62 }
  0x8b   :  { %v315_v60 = vand.u32 %v5260_v53, %v6506_v13  ;;  %v781_v4 = vld [vmem:[#allocation8 + $0x8a0] sm:$0xff]  ;;  %v5266_v9 = vcombine.high %v505_v63, %v509_v0  ;;  %v5265_v12 = vcombine.low %v505_v63, %v509_v0 }
  0x8c   :  { %322 = vmatpush1.bf16.msra.mxu0 %v294_v28  ;;  %363 = vmatpush1.bf16.msra.mxu1 %v300_v43  ;;  %v312_v5 = vand.u32 %v5259_v58, %v6506_v13  ;;  %v513_v6 = vld [vmem:[#allocation8 + $0x40] sm:$0xff]  ;;  %v5538_v16 = vcombine.high %v777_v3, %v781_v4  ;;  %v5537_v17 = vcombine.low %v777_v3, %v781_v4 }
  0x8d   :  { %399 = vmatprep.subr.bf16.mxu0 %v5242_v31  ;;  %440 = vmatprep.subr.bf16.mxu1 %v5244_v44  ;;  %v517_v7 = vld [vmem:[#allocation8 + $0x60] sm:$0xff] }
  0x8e   :  { %v785_v10 = vld [vmem:[#allocation8 + $0x8c0] sm:$0xff]  ;;  %v5274_v13 = vcombine.high %v513_v6, %v517_v7  ;;  %v5273_v20 = vcombine.low %v513_v6, %v517_v7 }
  0x8f   :  { %5261 = vmatmul.mubr.msk.bf16.vlgmr.msra.gmra.mrb[0].mxu0 %vm285_vm2, %v6511_v37  ;;  %5262 = vmatmul.mubr.msk.bf16.vlgmr.msra.gmra.mrb[0].mxu1 %vm285_vm2, %v6511_v37  ;;  %v789_v11 = vld [vmem:[#allocation8 + $0x8e0] sm:$0xff] }
  0x90   :  { %400 = vmatpush1.bf16.msra.mxu0 %v5241_v40  ;;  %431 = vmatprep.mubr.bf16.mxu0 %v6365_v1  ;;  %v521_v14 = vld [vmem:[#allocation8 + $0x80] sm:$0xff]  ;;  %v5546_v23 = vcombine.high %v785_v10, %v789_v11  ;;  %v5545_v25 = vcombine.low %v785_v10, %v789_v11 }
  0x91   :  { %401 = vmatprep.subr.bf16.mxu0 %v5250_v41  ;;  %441 = vmatpush1.bf16.msra.mxu1 %v5243_v51  ;;  %v525_v15 = vld [vmem:[#allocation8 + $0xa0] sm:$0xff] }
  0x92   :  { %442 = vmatprep.subr.bf16.mxu1 %v5252_v52  ;;  %472 = vmatprep.mubr.bf16.mxu1 %v6365_v1  ;;  %v5529_v1 = vcombine.low %v769_v61, %v773_v62  ;;  %v793_v18 = vld [vmem:[#allocation8 + $0x900] sm:$0xff]  ;;  %v5282_v24 = vcombine.high %v521_v14, %v525_v15  ;;  %v5281_v28 = vcombine.low %v521_v14, %v525_v15 }
  0x93   :  { %v797_v19 = vld [vmem:[#allocation8 + $0x920] sm:$0xff] }
  0x94   :  { %402 = vmatpush1.bf16.msra.mxu0 %v5249_v48  ;;  %v529_v21 = vld [vmem:[#allocation8 + $0xc0] sm:$0xff]  ;;  %v5554_v31 = vcombine.high %v793_v18, %v797_v19  ;;  %v5553_v33 = vcombine.low %v793_v18, %v797_v19 }
  0x95   :  { %403 = vmatprep.subr.bf16.mxu0 %v309_v50  ;;  %443 = vmatpush1.bf16.msra.mxu1 %v5251_v57  ;;  %v533_v22 = vld [vmem:[#allocation8 + $0xe0] sm:$0xff] }
  0x96   :  { %444 = vmatprep.subr.bf16.mxu1 %v315_v60  ;;  %v801_v26 = vld [vmem:[#allocation8 + $0x940] sm:$0xff]  ;;  %v5290_v32 = vcombine.high %v529_v21, %v533_v22  ;;  %v5289_v36 = vcombine.low %v529_v21, %v533_v22 }
  0x97   :  { %v805_v27 = vld [vmem:[#allocation8 + $0x960] sm:$0xff] }
  0x98   :  { %404 = vmatpush1.bf16.msra.mxu0 %v306_v56  ;;  %v537_v29 = vld [vmem:[#allocation8 + $0x100] sm:$0xff]  ;;  %v5562_v39 = vcombine.high %v801_v26, %v805_v27  ;;  %v5561_v41 = vcombine.low %v801_v26, %v805_v27 }
  0x99   :  { %3658 = vmatprep.subr.bf16.mxu0 %v5522_v59  ;;  %445 = vmatpush1.bf16.msra.mxu1 %v312_v5  ;;  %v541_v30 = vld [vmem:[#allocation8 + $0x120] sm:$0xff] }
  0x9a   :  { %3576 = vmatprep.subr.bf16.mxu1 %v5266_v9  ;;  %v809_v34 = vld [vmem:[#allocation8 + $0x980] sm:$0xff]  ;;  %v5298_v40 = vcombine.high %v537_v29, %v541_v30  ;;  %v5297_v44 = vcombine.low %v537_v29, %v541_v30 }
  0x9b   :  { %5263 = vmatmul.mubr.msk.bf16.vlgmr.msra.gmra.mrb[4].mxu0 %vm285_vm2, %v6511_v37  ;;  %v813_v35 = vld [vmem:[#allocation8 + $0x9a0] sm:$0xff] }
  0x9c   :  { %3659 = vmatpush1.bf16.msra.mxu0 %v5521_v2  ;;  %5264 = vmatmul.mubr.msk.bf16.vlgmr.msra.gmra.mrb[4].mxu1 %vm285_vm2, %v6511_v37  ;;  %v545_v37 = vld [vmem:[#allocation8 + $0x140] sm:$0xff]  ;;  %v5570_v47 = vcombine.high %v809_v34, %v813_v35  ;;  %v5569_v49 = vcombine.low %v809_v34, %v813_v35 }
  0x9d   :  { %3660 = vmatprep.subr.bf16.mxu0 %v5530_v8  ;;  %3577 = vmatpush1.bf16.msra.mxu1 %v5265_v12  ;;  %v549_v38 = vld [vmem:[#allocation8 + $0x160] sm:$0xff] }
  0x9e   :  { %3578 = vmatprep.subr.bf16.mxu1 %v5274_v13  ;;  %v817_v42 = vld [vmem:[#allocation8 + $0x9c0] sm:$0xff]  ;;  %v5306_v48 = vcombine.high %v545_v37, %v549_v38  ;;  %v5305_v52 = vcombine.low %v545_v37, %v549_v38 }
  0x9f   :  { %v821_v43 = vld [vmem:[#allocation8 + $0x9e0] sm:$0xff] }
  0xa0   :  { %3661 = vmatpush1.bf16.msra.mxu0 %v5529_v1  ;;  %v553_v45 = vld [vmem:[#allocation8 + $0x180] sm:$0xff]  ;;  %v5578_v55 = vcombine.high %v817_v42, %v821_v43  ;;  %v5577_v57 = vcombine.low %v817_v42, %v821_v43 }
  0xa1   :  { %3662 = vmatprep.subr.bf16.mxu0 %v5538_v16  ;;  %3579 = vmatpush1.bf16.msra.mxu1 %v5273_v20  ;;  %v557_v46 = vld [vmem:[#allocation8 + $0x1a0] sm:$0xff] }
  0xa2   :  { %3580 = vmatprep.subr.bf16.mxu1 %v5282_v24  ;;  %v825_v50 = vld [vmem:[#allocation8 + $0xa00] sm:$0xff]  ;;  %v5314_v56 = vcombine.high %v553_v45, %v557_v46  ;;  %v5313_v60 = vcombine.low %v553_v45, %v557_v46 }
  0xa3   :  { %v829_v51 = vld [vmem:[#allocation8 + $0xa20] sm:$0xff] }
  0xa4   :  { %3663 = vmatpush1.bf16.msra.mxu0 %v5537_v17  ;;  %v561_v53 = vld [vmem:[#allocation8 + $0x1c0] sm:$0xff]  ;;  %v5586_v63 = vcombine.high %v825_v50, %v829_v51  ;;  %v5585_v2 = vcombine.low %v825_v50, %v829_v51 }
  0xa5   :  { %3664 = vmatprep.subr.bf16.mxu0 %v5546_v23  ;;  %3581 = vmatpush1.bf16.msra.mxu1 %v5281_v28  ;;  %v565_v54 = vld [vmem:[#allocation8 + $0x1e0] sm:$0xff] }
  0xa6   :  { %3582 = vmatprep.subr.bf16.mxu1 %v5290_v32  ;;  %v833_v58 = vld [vmem:[#allocation8 + $0xa40] sm:$0xff]  ;;  %v5322_v0 = vcombine.high %v561_v53, %v565_v54  ;;  %v5321_v5 = vcombine.low %v561_v53, %v565_v54 }
  0xa7   :  { %v837_v59 = vld [vmem:[#allocation8 + $0xa60] sm:$0xff] }
  0xa8   :  { %3665 = vmatpush1.bf16.msra.mxu0 %v5545_v25  ;;  %v569_v61 = vld [vmem:[#allocation8 + $0x200] sm:$0xff]  ;;  %v5594_v8 = vcombine.high %v833_v58, %v837_v59  ;;  %v5593_v1 = vcombine.low %v833_v58, %v837_v59 }
  0xa9   :  { %3666 = vmatprep.subr.bf16.mxu0 %v5554_v31  ;;  %3583 = vmatpush1.bf16.msra.mxu1 %v5289_v36  ;;  %v573_v62 = vld [vmem:[#allocation8 + $0x220] sm:$0xff] }
  0xaa   :  { %3584 = vmatprep.subr.bf16.mxu1 %v5298_v40  ;;  %v841_v3 = vld [vmem:[#allocation8 + $0xa80] sm:$0xff]  ;;  %v5330_v9 = vcombine.high %v569_v61, %v573_v62  ;;  %v5329_v10 = vcombine.low %v569_v61, %v573_v62 }
  0xab   :  { %v845_v4 = vld [vmem:[#allocation8 + $0xaa0] sm:$0xff] }
  0xac   :  { %3667 = vmatpush1.bf16.msra.mxu0 %v5553_v33  ;;  %v577_v6 = vld [vmem:[#allocation8 + $0x240] sm:$0xff]  ;;  %v5602_v14 = vcombine.high %v841_v3, %v845_v4  ;;  %v5601_v16 = vcombine.low %v841_v3, %v845_v4  ;;  %v145_v4 = vlaneseq }
  0xad   :  { %3668 = vmatprep.subr.bf16.mxu0 %v5562_v39  ;;  %3585 = vmatpush1.bf16.msra.mxu1 %v5297_v44  ;;  %v581_v7 = vld [vmem:[#allocation8 + $0x260] sm:$0xff] }
  0xae   :  { %3586 = vmatprep.subr.bf16.mxu1 %v5306_v48  ;;  %v585_v11 = vld [vmem:[#allocation8 + $0x280] sm:$0xff]  ;;  %v5338_v15 = vcombine.high %v577_v6, %v581_v7  ;;  %v5337_v13 = vcombine.low %v577_v6, %v581_v7  ;;  %v6549_v7 = vld [vmem:[#allocation7] sm:$0xff] }
  0xaf   :  { %v589_v12 = vld [vmem:[#allocation8 + $0x2a0] sm:$0xff] }
  0xb0   :  { %3669 = vmatpush1.bf16.msra.mxu0 %v5561_v41  ;;  %v5346_v17 = vcombine.high %v585_v11, %v589_v12  ;;  %v593_v18 = vld [vmem:[#allocation8 + $0x2c0] sm:$0xff]  ;;  %v5345_v20 = vcombine.low %v585_v11, %v589_v12 }
  0xb1   :  { %3670 = vmatprep.subr.bf16.mxu0 %v5570_v47  ;;  %3587 = vmatpush1.bf16.msra.mxu1 %v5305_v52  ;;  %v597_v19 = vld [vmem:[#allocation8 + $0x2e0] sm:$0xff] }
  0xb2   :  { %3588 = vmatprep.subr.bf16.mxu1 %v5314_v56  ;;  %v5354_v21 = vcombine.high %v593_v18, %v597_v19  ;;  %v601_v22 = vld [vmem:[#allocation8 + $0x300] sm:$0xff]  ;;  %v5353_v24 = vcombine.low %v593_v18, %v597_v19 }
  0xb3   :  { %v605_v23 = vld [vmem:[#allocation8 + $0x320] sm:$0xff] }
  0xb4   :  { %3671 = vmatpush1.bf16.msra.mxu0 %v5569_v49  ;;  %v5362_v25 = vcombine.high %v601_v22, %v605_v23  ;;  %v609_v26 = vld [vmem:[#allocation8 + $0x340] sm:$0xff]  ;;  %v5361_v28 = vcombine.low %v601_v22, %v605_v23 }
  0xb5   :  { %3672 = vmatprep.subr.bf16.mxu0 %v5578_v55  ;;  %3589 = vmatpush1.bf16.msra.mxu1 %v5313_v60  ;;  %v613_v27 = vld [vmem:[#allocation8 + $0x360] sm:$0xff] }
  0xb6   :  { %3590 = vmatprep.subr.bf16.mxu1 %v5322_v0  ;;  %v5370_v29 = vcombine.high %v609_v26, %v613_v27  ;;  %v5369_v30 = vcombine.low %v609_v26, %v613_v27  ;;  %v617_v31 = vld [vmem:[#allocation8 + $0x380] sm:$0xff] }
  0xb7   :  { %v621_v32 = vld [vmem:[#allocation8 + $0x3a0] sm:$0xff] }
  0xb8   :  { %3673 = vmatpush1.bf16.msra.mxu0 %v5577_v57  ;;  %v849_v33 = vld [vmem:[#allocation8 + $0xac0] sm:$0xff]  ;;  %v5378_v34 = vcombine.high %v617_v31, %v621_v32  ;;  %v5377_v36 = vcombine.low %v617_v31, %v621_v32 }
  0xb9   :  { %3674 = vmatprep.subr.bf16.mxu0 %v5586_v63  ;;  %3591 = vmatpush1.bf16.msra.mxu1 %v5321_v5  ;;  %v853_v35 = vld [vmem:[#allocation8 + $0xae0] sm:$0xff]  ;;  %v6544_v5 = vshrl.u32 %v145_v4, 7 }
  0xba   :  { %3592 = vmatprep.subr.bf16.mxu1 %v5330_v9  ;;  %v5609_v37 = vcombine.low %v849_v33, %v853_v35  ;;  %v5610_v38 = vcombine.high %v849_v33, %v853_v35  ;;  %v625_v39 = vld [vmem:[#allocation8 + $0x3c0] sm:$0xff] }
  0xbb   :  { %v629_v40 = vld [vmem:[#allocation8 + $0x3e0] sm:$0xff]  ;;  %v6547_v6 = vsub.s32 0, %v6544_v5 }
  0xbc   :  { %3675 = vmatpush1.bf16.msra.mxu0 %v5585_v2  ;;  %v857_v41 = vld [vmem:[#allocation8 + $0xb00] sm:$0xff]  ;;  %v5386_v42 = vcombine.high %v625_v39, %v629_v40  ;;  %v5385_v44 = vcombine.low %v625_v39, %v629_v40  ;;  %v175_v40 = vsub.s32 7, %v6544_v5 }
  0xbd   :  { %3676 = vmatprep.subr.bf16.mxu0 %v5594_v8  ;;  %3593 = vmatpush1.bf16.msra.mxu1 %v5329_v10  ;;  %v861_v43 = vld [vmem:[#allocation8 + $0xb20] sm:$0xff]  ;;  %v6552_v8 = vsub.s32 1, %v6544_v5  ;;  %v148_v9 = vrot.slane %v6549_v7, %v6547_v6  ;;  %v159_v10 = vsub.s32 3, %v6544_v5 }
  0xbe   :  { %3594 = vmatprep.subr.bf16.mxu1 %v5338_v15  ;;  %v5617_v45 = vcombine.low %v857_v41, %v861_v43  ;;  %v5618_v46 = vcombine.high %v857_v41, %v861_v43  ;;  %v6528_v47 = vld [vmem:[#allocation8 + $0x400] sm:$0xff] }
  0xbf   :  { %v6530_v48 = vld [vmem:[#allocation8 + $0x420] sm:$0xff]  ;;  %v160_v18 = vrot.slane %v6549_v7, %v159_v10 }
  0xc0   :  { %3677 = vmatpush1.bf16.msra.mxu0 %v5593_v1  ;;  %v865_v49 = vld [vmem:[#allocation8 + $0xb40] sm:$0xff]  ;;  %v5394_v50 = vcombine.high %v6528_v47, %v6530_v48  ;;  %v5393_v52 = vcombine.low %v6528_v47, %v6530_v48  ;;  %v152_v1 = vrot.slane %v6549_v7, %v6552_v8 }
  0xc1   :  { %3678 = vmatprep.subr.bf16.mxu0 %v5602_v14  ;;  %3595 = vmatpush1.bf16.msra.mxu1 %v5337_v13  ;;  %v869_v51 = vld [vmem:[#allocation8 + $0xb60] sm:$0xff] }
  0xc2   :  { %3596 = vmatprep.subr.bf16.mxu1 %v5346_v17  ;;  %v5625_v53 = vcombine.low %v865_v49, %v869_v51  ;;  %v5626_v54 = vcombine.high %v865_v49, %v869_v51  ;;  %v873_v55 = vld [vmem:[#allocation8 + $0xb80] sm:$0xff] }
  0xc3   :  { %v877_v56 = vld [vmem:[#allocation8 + $0xba0] sm:$0xff] }
  0xc4   :  { %3679 = vmatpush1.bf16.msra.mxu0 %v5601_v16  ;;  %v5633_v57 = vcombine.low %v873_v55, %v877_v56  ;;  %v5634_v58 = vcombine.high %v873_v55, %v877_v56  ;;  %v881_v59 = vld [vmem:[#allocation8 + $0xbc0] sm:$0xff] }
  0xc5   :  { %3597 = vmatpush1.bf16.msra.mxu1 %v5345_v20  ;;  %3680 = vmatprep.subr.bf16.mxu0 %v5610_v38  ;;  %v885_v60 = vld [vmem:[#allocation8 + $0xbe0] sm:$0xff] }
  0xc6   :  { %3598 = vmatprep.subr.bf16.mxu1 %v5354_v21  ;;  %v5641_v61 = vcombine.low %v881_v59, %v885_v60  ;;  %v5642_v62 = vcombine.high %v881_v59, %v885_v60  ;;  %v6536_v63 = vld [vmem:[#allocation8 + $0xc00] sm:$0xff]  ;;  %v163_v21 = vsub.s32 4, %v6544_v5 }
  0xc7   :  { %v6538_v0 = vld [vmem:[#allocation8 + $0xc20] sm:$0xff] }
  0xc8   :  { %3681 = vmatpush1.bf16.msra.mxu0 %v5609_v37  ;;  %v5649_v2 = vcombine.low %v6536_v63, %v6538_v0  ;;  %v5650_v3 = vcombine.high %v6536_v63, %v6538_v0  ;;  %v645_v26 = vld [vmem:[#allocation8 + $0x460] sm:$0xff]  ;;  %v164_v33 = vrot.slane %v6549_v7, %v163_v21 }
  0xc9   :  { %3599 = vmatpush1.bf16.msra.mxu1 %v5353_v24  ;;  %3682 = vmatprep.subr.bf16.mxu0 %v5618_v46  ;;  %v167_v24 = vsub.s32 5, %v6544_v5  ;;  %v649_v37 = vld [vmem:[#allocation8 + $0x480] sm:$0xff] }
  0xca   :  { %3600 = vmatprep.subr.bf16.mxu1 %v5362_v25  ;;  %v641_v25 = vld [vmem:[#allocation8 + $0x440] sm:$0xff] }
  0xcb   :  { %v653_v38 = vld [vmem:[#allocation8 + $0x4a0] sm:$0xff] }
  0xcc   :  { %3683 = vmatpush1.bf16.msra.mxu0 %v5617_v45  ;;  %v5410_v45 = vcombine.high %v649_v37, %v653_v38  ;;  %v657_v48 = vld [vmem:[#allocation8 + $0x4c0] sm:$0xff]  ;;  %v5409_v55 = vcombine.low %v649_v37, %v653_v38 }
  0xcd   :  { %3601 = vmatpush1.bf16.msra.mxu1 %v5361_v28  ;;  %3684 = vmatprep.subr.bf16.mxu0 %v5626_v54  ;;  %v661_v49 = vld [vmem:[#allocation8 + $0x4e0] sm:$0xff] }
  0xce   :  { %3602 = vmatprep.subr.bf16.mxu1 %v5370_v29  ;;  %v689_v38 = vld [vmem:[#allocation8 + $0x5c0] sm:$0xff] }
  0xd0   :  { %3685 = vmatpush1.bf16.msra.mxu0 %v5625_v53  ;;  %v176_v53 = vrot.slane %v6549_v7, %v175_v40 }
  0xd1   :  { %3603 = vmatpush1.bf16.msra.mxu1 %v5369_v30  ;;  %3686 = vmatprep.subr.bf16.mxu0 %v5634_v58  ;;  %v665_v58 = vld [vmem:[#allocation8 + $0x500] sm:$0xff] }
  0xd2   :  { %3604 = vmatprep.subr.bf16.mxu1 %v5378_v34  ;;  %v5402_v34 = vcombine.high %v641_v25, %v645_v26 }
  0xd4   :  { %3687 = vmatpush1.bf16.msra.mxu0 %v5633_v57  ;;  %v5418_v57 = vcombine.high %v657_v48, %v661_v49 }
  0xd5   :  { %3605 = vmatpush1.bf16.msra.mxu1 %v5377_v36  ;;  %3688 = vmatprep.subr.bf16.mxu0 %v5642_v62  ;;  %v168_v36 = vrot.slane %v6549_v7, %v167_v24  ;;  %v897_v62 = vld [vmem:[#allocation8 + $0xc40] sm:$0xff] }
  0xd6   :  { %3606 = vmatprep.subr.bf16.mxu1 %v5386_v42  ;;  %v5401_v42 = vcombine.low %v641_v25, %v645_v26 }
  0xd8   :  { %3689 = vmatpush1.bf16.msra.mxu0 %v5641_v61  ;;  %v669_v61 = vld [vmem:[#allocation8 + $0x520] sm:$0xff] }
  0xd9   :  { %3607 = vmatpush1.bf16.msra.mxu1 %v5385_v44  ;;  %3699 = vmatprep.subr.bf16.mxu0 %v5650_v3  ;;  %v901_v3 = vld [vmem:[#allocation8 + $0xc60] sm:$0xff]  ;;  %v5425_v26 = vcombine.low %v665_v58, %v669_v61 }
  0xda   :  { %3617 = vmatprep.subr.bf16.mxu1 %v5394_v50 }
 0x162   :  { %v351_v11 = vpop.f32.mrb[0].mxu0  ;;  %v6563_v22 = vpop.f32.mrb[0].mxu1 }
 0x163   :  { %v352_v12 = vadd.f32 %v351_v11, %v148_v9  ;;  %v353_v14 = vpop.f32.mrb[1].mxu0  ;;  %v394_v27 = vpop.f32.mrb[1].mxu1 }
 0x164   :  { %v354_v15 = vadd.f32 %v353_v14, %v152_v1  ;;  %v355_v16 = vpop.f32.mrb[2].mxu0  ;;  %v395_v28 = vadd.f32 %v394_v27, %v160_v18  ;;  %v396_v29 = vpop.f32.mrb[2].mxu1  ;;  %v5417_v14 = vcombine.low %v657_v48, %v661_v49  ;;  %v5657_v27 = vcombine.low %v897_v62, %v901_v3  ;;  %v697_v48 = vld [vmem:[#allocation8 + $0x600] sm:$0xff] }
 0x165   :  { %v481_v13 = vpack.c.bf16 %v352_v12, %v352_v12  ;;  %v356_v17 = vpop.f32.mrb[3].mxu0  ;;  %v397_v31 = vpop.f32.mrb[3].mxu1  ;;  %v5426_v16 = vcombine.high %v665_v58, %v669_v61  ;;  %v701_v49 = vld [vmem:[#allocation8 + $0x620] sm:$0xff] }
 0x166   :  { %v482_v19 = vpack.c.bf16 %v354_v15, %v354_v15  ;;  %v484_v35 = vpack.c.bf16 %v395_v28, %v395_v28  ;;  %v673_v17 = vld [vmem:[#allocation8 + $0x540] sm:$0xff]  ;;  %v5457_v61 = vcombine.low %v697_v48, %v701_v49 }
 0x167   :  { %v489_v20 = vmul.bf16 1009007652, %v481_v13  ;;  %v681_v31 = vld [vmem:[#allocation8 + $0x580] sm:$0xff] }
 0x168   :  { %v490_v23 = vmul.bf16 1009007652, %v482_v19  ;;  %v492_v39 = vmul.bf16 1009007652, %v484_v35  ;;  %v937_v58 = vld [vmem:[#allocation8 + $0xd80] sm:$0xff] }
 0x169   :  { %v6568_v32 = vmax.bf16 %v489_v20, %v481_v13  ;;  %v5658_v13 = vcombine.high %v897_v62, %v901_v3  ;;  %v905_v20 = vld [vmem:[#allocation8 + $0xc80] sm:$0xff] }
 0x16a   :  { %v6566_v30 = vmax.bf16 %v490_v23, %v482_v19  ;;  %v6579_v46 = vmax.bf16 %v492_v39, %v484_v35  ;;  %v677_v19 = vld [vmem:[#allocation8 + $0x560] sm:$0xff] }
 0x16b   :  { %v909_v23 = vld [vmem:[#allocation8 + $0xca0] sm:$0xff]  ;;  %v5434_v28 = vcombine.high %v673_v17, %v677_v19  ;;  %v5433_v63 = vcombine.low %v673_v17, %v677_v19 }
 0x16c   :  { %3608 = vmatprep.mubr.bf16.mxu1 %v6566_v30  ;;  %v5666_v29 = vcombine.high %v905_v20, %v909_v23  ;;  %v913_v35 = vld [vmem:[#allocation8 + $0xcc0] sm:$0xff]  ;;  %v5665_v0 = vcombine.low %v905_v20, %v909_v23 }
 0x16d   :  { %3609 = vmatmul.mubr.bf16.vlgmr.msra.gmra.mrb[8].mxu1 %v6568_v32  ;;  %v693_v39 = vld [vmem:[#allocation8 + $0x5e0] sm:$0xff] }
 0x16e   :  { %3618 = vmatpush1.bf16.msra.mxu1 %v5393_v52  ;;  %v433_v41 = vpop.f32.mrb[4].mxu0  ;;  %3649 = vmatprep.mubr.bf16.mxu1 %v6579_v46  ;;  %v721_v19 = vld [vmem:[#allocation8 + $0x6c0] sm:$0xff] }
 0x16f   :  { %v434_v43 = vadd.f32 %v433_v41, %v164_v33  ;;  %v435_v44 = vpop.f32.mrb[5].mxu0  ;;  %3619 = vmatprep.subr.bf16.mxu1 %v5402_v34  ;;  %v6585_v59 = vpop.f32.mrb[4].mxu1  ;;  %v685_v34 = vld [vmem:[#allocation8 + $0x5a0] sm:$0xff] }
 0x170   :  { %v436_v47 = vadd.f32 %v435_v44, %v168_v36  ;;  %v437_v50 = vpop.f32.mrb[6].mxu0  ;;  %v476_v4 = vpop.f32.mrb[5].mxu1  ;;  %v917_v36 = vld [vmem:[#allocation8 + $0xce0] sm:$0xff] }
 0x171   :  { %v485_v51 = vpack.c.bf16 %v434_v43, %v434_v43  ;;  %v438_v52 = vpop.f32.mrb[7].mxu0  ;;  %v477_v1 = vadd.f32 %v476_v4, %v176_v53  ;;  %v478_v11 = vpop.f32.mrb[6].mxu1  ;;  %v5674_v37 = vcombine.high %v913_v35, %v917_v36  ;;  %v921_v41 = vld [vmem:[#allocation8 + $0xd00] sm:$0xff]  ;;  %v5441_v43 = vcombine.low %v681_v31, %v685_v34 }
 0x172   :  { %v486_v54 = vpack.c.bf16 %v436_v47, %v436_v47  ;;  %3620 = vmatpush1.bf16.msra.mxu1 %v5401_v42  ;;  %v479_v15 = vpop.f32.mrb[7].mxu1  ;;  %v925_v42 = vld [vmem:[#allocation8 + $0xd20] sm:$0xff]  ;;  %v5673_v44 = vcombine.low %v913_v35, %v917_v36  ;;  %v5449_v53 = vcombine.low %v689_v38, %v693_v39 }
 0x173   :  { %v493_v56 = vmul.bf16 1009007652, %v485_v51  ;;  %3621 = vmatprep.subr.bf16.mxu1 %v5410_v45  ;;  %v488_v18 = vpack.c.bf16 %v477_v1, %v477_v1  ;;  %v5450_v45 = vcombine.high %v689_v38, %v693_v39  ;;  %v5682_v47 = vcombine.high %v921_v41, %v925_v42  ;;  %v929_v50 = vld [vmem:[#allocation8 + $0xd40] sm:$0xff] }
 0x174   :  { %v494_v60 = vmul.bf16 1009007652, %v486_v54  ;;  %v5681_v52 = vcombine.low %v921_v41, %v925_v42  ;;  %v713_v1 = vld [vmem:[#allocation8 + $0x680] sm:$0xff]  ;;  %v155_v38 = vsub.s32 2, %v6544_v5 }
 0x175   :  { %v6587_v9 = vmax.bf16 %v493_v56, %v485_v51  ;;  %v496_v25 = vmul.bf16 1009007652, %v488_v18  ;;  %v933_v51 = vld [vmem:[#allocation8 + $0xd60] sm:$0xff] }
 0x176   :  { %v6589_v12 = vmax.bf16 %v494_v60, %v486_v54  ;;  %3622 = vmatpush1.bf16.msra.mxu1 %v5409_v55  ;;  %v5458_v54 = vcombine.high %v697_v48, %v701_v49  ;;  %v5690_v55 = vcombine.high %v929_v50, %v933_v51  ;;  %v705_v56 = vld [vmem:[#allocation8 + $0x640] sm:$0xff]  ;;  %v5689_v62 = vcombine.low %v929_v50, %v933_v51 }
 0x177   :  { %3623 = vmatprep.subr.bf16.mxu1 %v5418_v57  ;;  %v6596_v33 = vmax.bf16 %v496_v25, %v488_v18  ;;  %v709_v57 = vld [vmem:[#allocation8 + $0x660] sm:$0xff] }
 0x178   :  { %3690 = vmatprep.mubr.bf16.mxu0 %v6589_v12  ;;  %v941_v60 = vld [vmem:[#allocation8 + $0xda0] sm:$0xff]  ;;  %v5466_v3 = vcombine.high %v705_v56, %v709_v57 }
 0x179   :  { %3691 = vmatmul.mubr.bf16.vlgmr.msra.gmra.mrb[8].mxu0 %v6587_v9  ;;  %v5698_v4 = vcombine.high %v937_v58, %v941_v60  ;;  %v717_v11 = vld [vmem:[#allocation8 + $0x6a0] sm:$0xff] }
 0x17a   :  { %3624 = vmatpush1.bf16.msra.mxu1 %v5417_v14  ;;  %3700 = vmatpush1.bf16.msra.mxu0 %v5649_v2  ;;  %v5442_v2 = vcombine.high %v681_v31, %v685_v34  ;;  %v945_v14 = vld [vmem:[#allocation8 + $0xdc0] sm:$0xff]  ;;  %v5474_v17 = vcombine.high %v713_v1, %v717_v11 }
 0x17b   :  { %3625 = vmatprep.subr.bf16.mxu1 %v5426_v16  ;;  %3701 = vmatprep.subr.bf16.mxu0 %v5658_v13  ;;  %v949_v15 = vld [vmem:[#allocation8 + $0xde0] sm:$0xff]  ;;  %v5465_v16 = vcombine.low %v705_v56, %v709_v57  ;;  %v5697_v13 = vcombine.low %v937_v58, %v941_v60 }
 0x17c   :  { %5770 = vmatprep.mubr.msk.bf16.mxu0 %vm3547_vm3, %v6596_v33  ;;  %v5706_v18 = vcombine.high %v945_v14, %v949_v15  ;;  %v725_v20 = vld [vmem:[#allocation8 + $0x6e0] sm:$0xff] }
 0x17d   :  { %v953_v23 = vld [vmem:[#allocation8 + $0xe00] sm:$0xff] }
 0x17e   :  { %3626 = vmatpush1.bf16.msra.mxu1 %v5425_v26  ;;  %3702 = vmatpush1.bf16.msra.mxu0 %v5657_v27  ;;  %v957_v25 = vld [vmem:[#allocation8 + $0xe20] sm:$0xff]  ;;  %v5473_v26 = vcombine.low %v713_v1, %v717_v11  ;;  %v5705_v27 = vcombine.low %v945_v14, %v949_v15 }
 0x17f   :  { %3627 = vmatprep.subr.bf16.mxu1 %v5434_v28  ;;  %3703 = vmatprep.subr.bf16.mxu0 %v5666_v29  ;;  %v5482_v28 = vcombine.high %v721_v19, %v725_v20  ;;  %v5714_v29 = vcombine.high %v953_v23, %v957_v25  ;;  %v729_v31 = vld [vmem:[#allocation8 + $0x700] sm:$0xff] }
 0x180   :  { %v733_v34 = vld [vmem:[#allocation8 + $0x720] sm:$0xff] }
 0x181   :  { %v961_v35 = vld [vmem:[#allocation8 + $0xe40] sm:$0xff] }
 0x182   :  { %3628 = vmatpush1.bf16.msra.mxu1 %v5433_v63  ;;  %3704 = vmatpush1.bf16.msra.mxu0 %v5665_v0  ;;  %v965_v36 = vld [vmem:[#allocation8 + $0xe60] sm:$0xff]  ;;  %v5481_v63 = vcombine.low %v721_v19, %v725_v20  ;;  %v5713_v0 = vcombine.low %v953_v23, %v957_v25  ;;  %v510_v19 = vld [vmem:[#allocation8 + $0x28] sm:$0xff] }
 0x183   :  { %3629 = vmatprep.subr.bf16.mxu1 %v5442_v2  ;;  %3705 = vmatprep.subr.bf16.mxu0 %v5674_v37  ;;  %v5490_v2 = vcombine.high %v729_v31, %v733_v34  ;;  %v5722_v37 = vcombine.high %v961_v35, %v965_v36  ;;  %v737_v39 = vld [vmem:[#allocation8 + $0x740] sm:$0xff] }
 0x184   :  { %v741_v41 = vld [vmem:[#allocation8 + $0x760] sm:$0xff] }
 0x185   :  { %v969_v42 = vld [vmem:[#allocation8 + $0xe80] sm:$0xff]  ;;  %v5498_v48 = vcombine.high %v737_v39, %v741_v41 }
 0x186   :  { %3630 = vmatpush1.bf16.msra.mxu1 %v5441_v43  ;;  %3706 = vmatpush1.bf16.msra.mxu0 %v5673_v44  ;;  %v973_v43 = vld [vmem:[#allocation8 + $0xea0] sm:$0xff]  ;;  %v5489_v44 = vcombine.low %v729_v31, %v733_v34  ;;  %v514_v31 = vld [vmem:[#allocation8 + $0x48] sm:$0xff] }
 0x187   :  { %3631 = vmatprep.subr.bf16.mxu1 %v5450_v45  ;;  %3707 = vmatprep.subr.bf16.mxu0 %v5682_v47  ;;  %v5721_v45 = vcombine.low %v961_v35, %v965_v36  ;;  %v156_v47 = vrot.slane %v6549_v7, %v155_v38  ;;  %v5730_v49 = vcombine.high %v969_v42, %v973_v43  ;;  %v745_v50 = vld [vmem:[#allocation8 + $0x780] sm:$0xff]  ;;  %v518_v34 = vld [vmem:[#allocation8 + $0x68] sm:$0xff] }
 0x188   :  { %v749_v51 = vld [vmem:[#allocation8 + $0x7a0] sm:$0xff]  ;;  %v5729_v56 = vcombine.low %v969_v42, %v973_v43  ;;  %v511_v42 = vld [vmem:[#allocation8 + $0x30] sm:$0xff] }
 0x189   :  { %v393_v57 = vadd.f32 %v6563_v22, %v156_v47  ;;  %v5506_v58 = vcombine.high %v745_v50, %v749_v51  ;;  %v5505_v11 = vcombine.low %v745_v50, %v749_v51  ;;  %v534_v50 = vld [vmem:[#allocation8 + $0xe8] sm:$0xff] }
 0x18a   :  { %3632 = vmatpush1.bf16.msra.mxu1 %v5449_v53  ;;  %3708 = vmatpush1.bf16.msra.mxu0 %v5681_v52  ;;  %v977_v53 = vld [vmem:[#allocation8 + $0xec0] sm:$0xff] }
 0x18b   :  { %3633 = vmatprep.subr.bf16.mxu1 %v5458_v54  ;;  %3709 = vmatprep.subr.bf16.mxu0 %v5690_v55  ;;  %v981_v52 = vld [vmem:[#allocation8 + $0xee0] sm:$0xff]  ;;  %v171_v54 = vsub.s32 6, %v6544_v5  ;;  %v5497_v55 = vcombine.low %v737_v39, %v741_v41  ;;  %v483_v15 = vpack.c.bf16 %v393_v57, %v393_v57  ;;  %v526_v39 = vld [vmem:[#allocation8 + $0xa8] sm:$0xff]  ;;  %v507_v41 = vld [vmem:[#allocation8 + $0x10] sm:$0xff] }
 0x18c   :  { %v5738_v60 = vcombine.high %v977_v53, %v981_v52  ;;  %v5737_v14 = vcombine.low %v977_v53, %v981_v52  ;;  %v515_v53 = vld [vmem:[#allocation8 + $0x50] sm:$0xff] }
 0x18d   :  { %v172_v1 = vrot.slane %v6549_v7, %v171_v54  ;;  %v491_v7 = vmul.bf16 1009007652, %v483_v15  ;;  %v519_v52 = vld [vmem:[#allocation8 + $0x70] sm:$0xff] }
 0x18e   :  { %3634 = vmatpush1.bf16.msra.mxu1 %v5457_v61  ;;  %3710 = vmatpush1.bf16.msra.mxu0 %v5689_v62  ;;  %v753_v61 = vld [vmem:[#allocation8 + $0x7c0] sm:$0xff] }
 0x18f   :  { %3635 = vmatprep.subr.bf16.mxu1 %v5466_v3  ;;  %3711 = vmatprep.subr.bf16.mxu0 %v5698_v4  ;;  %v757_v62 = vld [vmem:[#allocation8 + $0x7e0] sm:$0xff]  ;;  %v475_v20 = vadd.f32 %v6585_v59, %v172_v1  ;;  %v5277_v1 = vcombine.low %v515_v53, %v519_v52 }
 0x190   :  { %v985_v3 = vld [vmem:[#allocation8 + $0xf00] sm:$0xff]  ;;  %v5514_v22 = vcombine.high %v753_v61, %v757_v62  ;;  %v5513_v23 = vcombine.low %v753_v61, %v757_v62  ;;  %v542_v61 = vld [vmem:[#allocation8 + $0x128] sm:$0xff]  ;;  %v523_v62 = vld [vmem:[#allocation8 + $0x90] sm:$0xff] }
 0x191   :  { %v989_v4 = vld [vmem:[#allocation8 + $0xf20] sm:$0xff] }
 0x192   :  { %3636 = vmatpush1.bf16.msra.mxu1 %v5465_v16  ;;  %3712 = vmatpush1.bf16.msra.mxu0 %v5697_v13  ;;  %v5746_v16 = vcombine.high %v985_v3, %v989_v4  ;;  %v993_v13 = vld [vmem:[#allocation8 + $0xf40] sm:$0xff]  ;;  %v5745_v25 = vcombine.low %v985_v3, %v989_v4  ;;  %v527_v3 = vld [vmem:[#allocation8 + $0xb0] sm:$0xff] }
 0x193   :  { %3637 = vmatprep.subr.bf16.mxu1 %v5474_v17  ;;  %3713 = vmatprep.subr.bf16.mxu0 %v5706_v18  ;;  %v997_v17 = vld [vmem:[#allocation8 + $0xf60] sm:$0xff]  ;;  %v506_v18 = vld [vmem:[#allocation8 + $0x8] sm:$0xff] }
 0x194   :  { %v5753_v35 = vcombine.low %v993_v13, %v997_v17  ;;  %v5267_v36 = vcombine.low %v506_v18, %v510_v19 }
 0x196   :  { %3638 = vmatpush1.bf16.msra.mxu1 %v5473_v26  ;;  %3714 = vmatpush1.bf16.msra.mxu0 %v5705_v27  ;;  %v5754_v26 = vcombine.high %v993_v13, %v997_v17  ;;  %v5268_v27 = vcombine.high %v506_v18, %v510_v19  ;;  %v535_v13 = vld [vmem:[#allocation8 + $0xf0] sm:$0xff]  ;;  %v5285_v18 = vcombine.low %v523_v62, %v527_v3 }
 0x197   :  { %3639 = vmatprep.subr.bf16.mxu1 %v5482_v28  ;;  %3715 = vmatprep.subr.bf16.mxu0 %v5714_v29  ;;  %v1001_v28 = vld [vmem:[#allocation8 + $0xf80] sm:$0xff]  ;;  %v487_v29 = vpack.c.bf16 %v475_v20, %v475_v20 }
 0x198   :  { %v5762_v59 = vcombine.high %v1001_v28, %v1001_v28 }
 0x199   :  { %v495_v43 = vmul.bf16 1009007652, %v487_v29 }
 0x19a   :  { %3640 = vmatpush1.bf16.msra.mxu1 %v5481_v63  ;;  %3716 = vmatpush1.bf16.msra.mxu0 %v5713_v0  ;;  %v6610_v63 = vmax.bf16 %v491_v7, %v483_v15  ;;  %v5761_v0 = vcombine.low %v1001_v28, %v1001_v28  ;;  %v546_v15 = vld [vmem:[#allocation8 + $0x148] sm:$0xff]  ;;  %v539_v7 = vld [vmem:[#allocation8 + $0x110] sm:$0xff] }
 0x19b   :  { %3641 = vmatprep.subr.bf16.mxu1 %v5490_v2  ;;  %3717 = vmatprep.subr.bf16.mxu0 %v5722_v37  ;;  %v522_v2 = vld [vmem:[#allocation8 + $0x88] sm:$0xff]  ;;  %v5276_v37 = vcombine.high %v514_v31, %v518_v34  ;;  %v6616_v51 = vmax.bf16 %v495_v43, %v487_v29  ;;  %v555_v43 = vld [vmem:[#allocation8 + $0x190] sm:$0xff] }
 0x19c   :  { %v5284_v47 = vcombine.high %v522_v2, %v526_v39 }
 0x19e   :  { %3642 = vmatpush1.bf16.msra.mxu1 %v5489_v44  ;;  %3718 = vmatpush1.bf16.msra.mxu0 %v5721_v45  ;;  %v5275_v44 = vcombine.low %v514_v31, %v518_v34  ;;  %v3553_v45 = vsel %vm3551_vm4, %v5761_v0, 0  ;;  %v562_v34 = vld [vmem:[#allocation8 + $0x1c8] sm:$0xff] }
 0x19f   :  { %3643 = vmatprep.subr.bf16.mxu1 %v5498_v48  ;;  %3719 = vmatprep.subr.bf16.mxu0 %v5730_v49  ;;  %v5270_v48 = vcombine.high %v507_v41, %v511_v42  ;;  %v530_v49 = vld [vmem:[#allocation8 + $0xc8] sm:$0xff] }
 0x1a0   :  { %v5292_v57 = vcombine.high %v530_v49, %v534_v50  ;;  %v5291_v4 = vcombine.low %v530_v49, %v534_v50  ;;  %v578_v50 = vld [vmem:[#allocation8 + $0x248] sm:$0xff] }
 0x1a2   :  { %3644 = vmatpush1.bf16.msra.mxu1 %v5497_v55  ;;  %3720 = vmatpush1.bf16.msra.mxu0 %v5729_v56  ;;  %v5283_v55 = vcombine.low %v522_v2, %v526_v39  ;;  %v5269_v56 = vcombine.low %v507_v41, %v511_v42  ;;  %v570_v41 = vld [vmem:[#allocation8 + $0x208] sm:$0xff] }
 0x1a3   :  { %3645 = vmatprep.subr.bf16.mxu1 %v5506_v58  ;;  %3721 = vmatprep.subr.bf16.mxu0 %v5738_v60  ;;  %v538_v58 = vld [vmem:[#allocation8 + $0x108] sm:$0xff]  ;;  %v5278_v60 = vcombine.high %v515_v53, %v519_v52  ;;  %v563_v52 = vld [vmem:[#allocation8 + $0x1d0] sm:$0xff] }
 0x1a4   :  { %v5299_v17 = vcombine.low %v538_v58, %v542_v61  ;;  %v574_v42 = vld [vmem:[#allocation8 + $0x228] sm:$0xff] }
 0x1a5   :  { %v582_v53 = vld [vmem:[#allocation8 + $0x268] sm:$0xff] }
 0x1a6   :  { %3646 = vmatpush1.bf16.msra.mxu1 %v5505_v11  ;;  %3722 = vmatpush1.bf16.msra.mxu0 %v5737_v14  ;;  %v5300_v11 = vcombine.high %v538_v58, %v542_v61  ;;  %v5286_v14 = vcombine.high %v523_v62, %v527_v3  ;;  %v5340_v58 = vcombine.high %v578_v50, %v582_v53  ;;  %v586_v61 = vld [vmem:[#allocation8 + $0x288] sm:$0xff]  ;;  %v571_v3 = vld [vmem:[#allocation8 + $0x210] sm:$0xff] }
 0x1a7   :  { %3647 = vmatprep.subr.bf16.mxu1 %v5514_v22  ;;  %3723 = vmatprep.subr.bf16.mxu0 %v5746_v16  ;;  %v550_v22 = vld [vmem:[#allocation8 + $0x168] sm:$0xff]  ;;  %v531_v16 = vld [vmem:[#allocation8 + $0xd0] sm:$0xff] }
 0x1a8   :  { %v5308_v19 = vcombine.high %v546_v15, %v550_v22  ;;  %v5294_v20 = vcombine.high %v531_v16, %v535_v13  ;;  %v5293_v28 = vcombine.low %v531_v16, %v535_v13  ;;  %v590_v62 = vld [vmem:[#allocation8 + $0x2a8] sm:$0xff]  ;;  %v579_v13 = vld [vmem:[#allocation8 + $0x250] sm:$0xff] }
 0x1a9   :  { %v598_v16 = vld [vmem:[#allocation8 + $0x2e8] sm:$0xff] }
 0x1aa   :  { %3648 = vmatpush1.bf16.msra.mxu1 %v5513_v23  ;;  %3724 = vmatpush1.bf16.msra.mxu0 %v5745_v25  ;;  %v554_v23 = vld [vmem:[#allocation8 + $0x188] sm:$0xff] }
 0x1ab   :  { %3725 = vmatprep.subr.bf16.mxu0 %v5754_v26  ;;  %3740 = vmatprep.subr.bf16.mxu1 %v5268_v27  ;;  %v558_v25 = vld [vmem:[#allocation8 + $0x1a8] sm:$0xff]  ;;  %v543_v26 = vld [vmem:[#allocation8 + $0x130] sm:$0xff]  ;;  %v5307_v27 = vcombine.low %v546_v15, %v550_v22 }
 0x1ac   :  { %v5316_v29 = vcombine.high %v554_v23, %v558_v25  ;;  %v5302_v31 = vcombine.high %v539_v7, %v543_v26  ;;  %v5315_v0 = vcombine.low %v554_v23, %v558_v25  ;;  %v5301_v2 = vcombine.low %v539_v7, %v543_v26  ;;  %v594_v22 = vld [vmem:[#allocation8 + $0x2c8] sm:$0xff]  ;;  %v587_v26 = vld [vmem:[#allocation8 + $0x290] sm:$0xff] }
 0x1ad   :  { %3650 = vmatmul.mubr.bf16.vlgmr.msra.gmra.mrb[8].mxu1 %v6610_v63  ;;  %v602_v25 = vld [vmem:[#allocation8 + $0x308] sm:$0xff] }
 0x1ae   :  { %3726 = vmatpush1.bf16.msra.mxu0 %v5753_v35  ;;  %3741 = vmatpush1.bf16.msra.mxu1 %v5267_v36  ;;  %v566_v35 = vld [vmem:[#allocation8 + $0x1e8] sm:$0xff]  ;;  %v547_v36 = vld [vmem:[#allocation8 + $0x150] sm:$0xff] }
 0x1af   :  { %3772 = vmatprep.mubr.bf16.mxu1 %v6566_v30  ;;  %5769 = vmatprep.subr.msk.bf16.mxu0 %vm3551_vm4, %v5762_v59  ;;  %v551_v59 = vld [vmem:[#allocation8 + $0x170] sm:$0xff]  ;;  %v606_v7 = vld [vmem:[#allocation8 + $0x328] sm:$0xff] }
 0x1b0   :  { %3742 = vmatprep.subr.bf16.mxu1 %v5276_v37  ;;  %v5324_v37 = vcombine.high %v562_v34, %v566_v35  ;;  %v5310_v39 = vcombine.high %v547_v36, %v551_v59 }
 0x1b2   :  { %3728 = vmatpush1.bf16.msra.mxu0 %v3553_v45  ;;  %3743 = vmatpush1.bf16.msra.mxu1 %v5275_v44  ;;  %v559_v44 = vld [vmem:[#allocation8 + $0x1b0] sm:$0xff]  ;;  %v5323_v45 = vcombine.low %v562_v34, %v566_v35  ;;  %v610_v35 = vld [vmem:[#allocation8 + $0x348] sm:$0xff] }
 0x1b3   :  { %3744 = vmatprep.subr.bf16.mxu1 %v5284_v47  ;;  %3904 = vmatprep.subr.bf16.mxu0 %v5270_v48  ;;  %v5309_v47 = vcombine.low %v547_v36, %v551_v59  ;;  %v5332_v48 = vcombine.high %v570_v41, %v574_v42  ;;  %v5318_v49 = vcombine.high %v555_v43, %v559_v44  ;;  %v614_v36 = vld [vmem:[#allocation8 + $0x368] sm:$0xff]  ;;  %v595_v59 = vld [vmem:[#allocation8 + $0x2d0] sm:$0xff] }
 0x1b5   :  { %3732 = vmatmul.mubr.bf16.vlgmr.msra.gmra.mrb[8].mxu0 %v6616_v51 }
 0x1b6   :  { %3745 = vmatpush1.bf16.msra.mxu1 %v5283_v55  ;;  %3905 = vmatpush1.bf16.msra.mxu0 %v5269_v56  ;;  %v567_v55 = vld [vmem:[#allocation8 + $0x1f0] sm:$0xff]  ;;  %v5331_v56 = vcombine.low %v570_v41, %v574_v42  ;;  %v618_v42 = vld [vmem:[#allocation8 + $0x388] sm:$0xff] }
 0x1b7   :  { %3936 = vmatprep.mubr.bf16.mxu0 %v6566_v30  ;;  %3746 = vmatprep.subr.bf16.mxu1 %v5292_v57  ;;  %v5317_v57 = vcombine.low %v555_v43, %v559_v44  ;;  %v622_v43 = vld [vmem:[#allocation8 + $0x3a8] sm:$0xff]  ;;  %v603_v44 = vld [vmem:[#allocation8 + $0x310] sm:$0xff] }
 0x1b8   :  { %3906 = vmatprep.subr.bf16.mxu0 %v5278_v60  ;;  %v5326_v60 = vcombine.high %v563_v52, %v567_v55 }
 0x1ba   :  { %3747 = vmatpush1.bf16.msra.mxu1 %v5291_v4  ;;  %3907 = vmatpush1.bf16.msra.mxu0 %v5277_v1  ;;  %v575_v4 = vld [vmem:[#allocation8 + $0x230] sm:$0xff]  ;;  %v5339_v1 = vcombine.low %v578_v50, %v582_v53  ;;  %v626_v53 = vld [vmem:[#allocation8 + $0x3c8] sm:$0xff] }
 0x1bb   :  { %3748 = vmatprep.subr.bf16.mxu1 %v5300_v11  ;;  %3908 = vmatprep.subr.bf16.mxu0 %v5286_v14  ;;  %v5325_v11 = vcombine.low %v563_v52, %v567_v55  ;;  %v5348_v14 = vcombine.high %v586_v61, %v590_v62  ;;  %v5334_v15 = vcombine.high %v571_v3, %v575_v4  ;;  %v630_v52 = vld [vmem:[#allocation8 + $0x3e8] sm:$0xff]  ;;  %v611_v55 = vld [vmem:[#allocation8 + $0x350] sm:$0xff] }
 0x1be   :  { %3749 = vmatpush1.bf16.msra.mxu1 %v5299_v17  ;;  %3909 = vmatpush1.bf16.msra.mxu0 %v5285_v18  ;;  %v583_v17 = vld [vmem:[#allocation8 + $0x270] sm:$0xff]  ;;  %v5347_v18 = vcombine.low %v586_v61, %v590_v62  ;;  %v634_v62 = vld [vmem:[#allocation8 + $0x408] sm:$0xff] }
 0x1bf   :  { %3750 = vmatprep.subr.bf16.mxu1 %v5308_v19  ;;  %3910 = vmatprep.subr.bf16.mxu0 %v5294_v20  ;;  %v5333_v19 = vcombine.low %v571_v3, %v575_v4  ;;  %v5356_v20 = vcombine.high %v594_v22, %v598_v16  ;;  %v5342_v23 = vcombine.high %v579_v13, %v583_v17  ;;  %v638_v3 = vld [vmem:[#allocation8 + $0x428] sm:$0xff]  ;;  %v619_v4 = vld [vmem:[#allocation8 + $0x390] sm:$0xff] }
 0x1c2   :  { %3751 = vmatpush1.bf16.msra.mxu1 %v5307_v27  ;;  %3911 = vmatpush1.bf16.msra.mxu0 %v5293_v28  ;;  %v591_v27 = vld [vmem:[#allocation8 + $0x2b0] sm:$0xff]  ;;  %v5355_v28 = vcombine.low %v594_v22, %v598_v16  ;;  %v642_v16 = vld [vmem:[#allocation8 + $0x448] sm:$0xff] }
 0x1c3   :  { %3752 = vmatprep.subr.bf16.mxu1 %v5316_v29  ;;  %3912 = vmatprep.subr.bf16.mxu0 %v5302_v31  ;;  %v5341_v29 = vcombine.low %v579_v13, %v583_v17  ;;  %v5364_v31 = vcombine.high %v602_v25, %v606_v7  ;;  %v5350_v34 = vcombine.high %v587_v26, %v591_v27  ;;  %v646_v13 = vld [vmem:[#allocation8 + $0x468] sm:$0xff]  ;;  %v627_v17 = vld [vmem:[#allocation8 + $0x3d0] sm:$0xff] }
 0x1c6   :  { %3753 = vmatpush1.bf16.msra.mxu1 %v5315_v0  ;;  %3913 = vmatpush1.bf16.msra.mxu0 %v5301_v2  ;;  %v599_v0 = vld [vmem:[#allocation8 + $0x2f0] sm:$0xff]  ;;  %v5363_v2 = vcombine.low %v602_v25, %v606_v7  ;;  %v650_v7 = vld [vmem:[#allocation8 + $0x488] sm:$0xff] }
 0x1c7   :  { %3754 = vmatprep.subr.bf16.mxu1 %v5324_v37  ;;  %3914 = vmatprep.subr.bf16.mxu0 %v5310_v39  ;;  %v5349_v37 = vcombine.low %v587_v26, %v591_v27  ;;  %v5372_v39 = vcombine.high %v610_v35, %v614_v36  ;;  %v5358_v41 = vcombine.high %v595_v59, %v599_v0  ;;  %v654_v26 = vld [vmem:[#allocation8 + $0x4a8] sm:$0xff]  ;;  %v635_v27 = vld [vmem:[#allocation8 + $0x410] sm:$0xff] }
 0x1ca   :  { %3755 = vmatpush1.bf16.msra.mxu1 %v5323_v45  ;;  %3915 = vmatpush1.bf16.msra.mxu0 %v5309_v47  ;;  %v607_v45 = vld [vmem:[#allocation8 + $0x330] sm:$0xff]  ;;  %v5371_v47 = vcombine.low %v610_v35, %v614_v36  ;;  %v658_v36 = vld [vmem:[#allocation8 + $0x4c8] sm:$0xff] }
 0x1cb   :  { %3756 = vmatprep.subr.bf16.mxu1 %v5332_v48  ;;  %3916 = vmatprep.subr.bf16.mxu0 %v5318_v49  ;;  %v5357_v48 = vcombine.low %v595_v59, %v599_v0  ;;  %v5380_v49 = vcombine.high %v618_v42, %v622_v43  ;;  %v5366_v50 = vcombine.high %v603_v44, %v607_v45  ;;  %v662_v59 = vld [vmem:[#allocation8 + $0x4e8] sm:$0xff]  ;;  %v643_v0 = vld [vmem:[#allocation8 + $0x450] sm:$0xff] }
 0x1ce   :  { %3757 = vmatpush1.bf16.msra.mxu1 %v5331_v56  ;;  %3917 = vmatpush1.bf16.msra.mxu0 %v5317_v57  ;;  %v615_v56 = vld [vmem:[#allocation8 + $0x370] sm:$0xff]  ;;  %v5379_v57 = vcombine.low %v618_v42, %v622_v43  ;;  %v666_v43 = vld [vmem:[#allocation8 + $0x508] sm:$0xff] }
 0x1cf   :  { %3758 = vmatprep.subr.bf16.mxu1 %v5340_v58  ;;  %3918 = vmatprep.subr.bf16.mxu0 %v5326_v60  ;;  %v5365_v58 = vcombine.low %v603_v44, %v607_v45  ;;  %v5388_v60 = vcombine.high %v626_v53, %v630_v52  ;;  %v5374_v61 = vcombine.high %v611_v55, %v615_v56  ;;  %v670_v44 = vld [vmem:[#allocation8 + $0x528] sm:$0xff]  ;;  %v651_v45 = vld [vmem:[#allocation8 + $0x490] sm:$0xff] }
 0x1d2   :  { %3759 = vmatpush1.bf16.msra.mxu1 %v5339_v1  ;;  %3919 = vmatpush1.bf16.msra.mxu0 %v5325_v11  ;;  %v623_v1 = vld [vmem:[#allocation8 + $0x3b0] sm:$0xff]  ;;  %v5387_v11 = vcombine.low %v626_v53, %v630_v52  ;;  %v674_v52 = vld [vmem:[#allocation8 + $0x548] sm:$0xff] }
 0x1d3   :  { %3760 = vmatprep.subr.bf16.mxu1 %v5348_v14  ;;  %3920 = vmatprep.subr.bf16.mxu0 %v5334_v15  ;;  %v5373_v14 = vcombine.low %v611_v55, %v615_v56  ;;  %v5396_v15 = vcombine.high %v634_v62, %v638_v3  ;;  %v5382_v22 = vcombine.high %v619_v4, %v623_v1  ;;  %v678_v55 = vld [vmem:[#allocation8 + $0x568] sm:$0xff]  ;;  %v659_v56 = vld [vmem:[#allocation8 + $0x4d0] sm:$0xff] }
 0x1d6   :  { %3761 = vmatpush1.bf16.msra.mxu1 %v5347_v18  ;;  %3921 = vmatpush1.bf16.msra.mxu0 %v5333_v19  ;;  %v631_v18 = vld [vmem:[#allocation8 + $0x3f0] sm:$0xff]  ;;  %v5395_v19 = vcombine.low %v634_v62, %v638_v3  ;;  %v682_v3 = vld [vmem:[#allocation8 + $0x588] sm:$0xff] }
 0x1d7   :  { %3762 = vmatprep.subr.bf16.mxu1 %v5356_v20  ;;  %3922 = vmatprep.subr.bf16.mxu0 %v5342_v23  ;;  %v5381_v20 = vcombine.low %v619_v4, %v623_v1  ;;  %v5404_v23 = vcombine.high %v642_v16, %v646_v13  ;;  %v5390_v25 = vcombine.high %v627_v17, %v631_v18  ;;  %v686_v4 = vld [vmem:[#allocation8 + $0x5a8] sm:$0xff]  ;;  %v667_v1 = vld [vmem:[#allocation8 + $0x510] sm:$0xff] }
 0x1da   :  { %3763 = vmatpush1.bf16.msra.mxu1 %v5355_v28  ;;  %3923 = vmatpush1.bf16.msra.mxu0 %v5341_v29  ;;  %v639_v28 = vld [vmem:[#allocation8 + $0x430] sm:$0xff]  ;;  %v5403_v29 = vcombine.low %v642_v16, %v646_v13  ;;  %v690_v13 = vld [vmem:[#allocation8 + $0x5c8] sm:$0xff] }
 0x1db   :  { %3764 = vmatprep.subr.bf16.mxu1 %v5364_v31  ;;  %3924 = vmatprep.subr.bf16.mxu0 %v5350_v34  ;;  %v5389_v31 = vcombine.low %v627_v17, %v631_v18  ;;  %v5412_v34 = vcombine.high %v650_v7, %v654_v26  ;;  %v5398_v35 = vcombine.high %v635_v27, %v639_v28  ;;  %v694_v17 = vld [vmem:[#allocation8 + $0x5e8] sm:$0xff]  ;;  %v675_v18 = vld [vmem:[#allocation8 + $0x550] sm:$0xff] }
 0x1de   :  { %3765 = vmatpush1.bf16.msra.mxu1 %v5363_v2  ;;  %3925 = vmatpush1.bf16.msra.mxu0 %v5349_v37  ;;  %v647_v2 = vld [vmem:[#allocation8 + $0x470] sm:$0xff]  ;;  %v5411_v37 = vcombine.low %v650_v7, %v654_v26  ;;  %v698_v26 = vld [vmem:[#allocation8 + $0x608] sm:$0xff] }
 0x1df   :  { %3766 = vmatprep.subr.bf16.mxu1 %v5372_v39  ;;  %3926 = vmatprep.subr.bf16.mxu0 %v5358_v41  ;;  %v5397_v39 = vcombine.low %v635_v27, %v639_v28  ;;  %v5420_v41 = vcombine.high %v658_v36, %v662_v59  ;;  %v5406_v42 = vcombine.high %v643_v0, %v647_v2  ;;  %v702_v27 = vld [vmem:[#allocation8 + $0x628] sm:$0xff]  ;;  %v683_v28 = vld [vmem:[#allocation8 + $0x590] sm:$0xff] }
 0x1e2   :  { %3767 = vmatpush1.bf16.msra.mxu1 %v5371_v47  ;;  %3927 = vmatpush1.bf16.msra.mxu0 %v5357_v48  ;;  %v655_v47 = vld [vmem:[#allocation8 + $0x4b0] sm:$0xff]  ;;  %v5419_v48 = vcombine.low %v658_v36, %v662_v59  ;;  %v706_v59 = vld [vmem:[#allocation8 + $0x648] sm:$0xff] }
 0x1e3   :  { %3768 = vmatprep.subr.bf16.mxu1 %v5380_v49  ;;  %3928 = vmatprep.subr.bf16.mxu0 %v5366_v50  ;;  %v5405_v49 = vcombine.low %v643_v0, %v647_v2  ;;  %v5428_v50 = vcombine.high %v666_v43, %v670_v44  ;;  %v5414_v53 = vcombine.high %v651_v45, %v655_v47  ;;  %v710_v0 = vld [vmem:[#allocation8 + $0x668] sm:$0xff]  ;;  %v691_v2 = vld [vmem:[#allocation8 + $0x5d0] sm:$0xff] }
 0x1e6   :  { %3769 = vmatpush1.bf16.msra.mxu1 %v5379_v57  ;;  %3929 = vmatpush1.bf16.msra.mxu0 %v5365_v58  ;;  %v663_v57 = vld [vmem:[#allocation8 + $0x4f0] sm:$0xff]  ;;  %v5427_v58 = vcombine.low %v666_v43, %v670_v44  ;;  %v714_v44 = vld [vmem:[#allocation8 + $0x688] sm:$0xff] }
 0x1e7   :  { %3770 = vmatprep.subr.bf16.mxu1 %v5388_v60  ;;  %3930 = vmatprep.subr.bf16.mxu0 %v5374_v61  ;;  %v5413_v60 = vcombine.low %v651_v45, %v655_v47  ;;  %v5436_v61 = vcombine.high %v674_v52, %v678_v55  ;;  %v5422_v62 = vcombine.high %v659_v56, %v663_v57  ;;  %v718_v45 = vld [vmem:[#allocation8 + $0x6a8] sm:$0xff]  ;;  %v699_v47 = vld [vmem:[#allocation8 + $0x610] sm:$0xff] }
 0x1ea   :  { %3771 = vmatpush1.bf16.msra.mxu1 %v5387_v11  ;;  %3931 = vmatpush1.bf16.msra.mxu0 %v5373_v14  ;;  %v671_v11 = vld [vmem:[#allocation8 + $0x530] sm:$0xff]  ;;  %v5435_v14 = vcombine.low %v674_v52, %v678_v55  ;;  %v722_v55 = vld [vmem:[#allocation8 + $0x6c8] sm:$0xff] }
 0x1eb   :  { %3781 = vmatprep.subr.bf16.mxu1 %v5396_v15  ;;  %3932 = vmatprep.subr.bf16.mxu0 %v5382_v22  ;;  %v5421_v15 = vcombine.low %v659_v56, %v663_v57  ;;  %v5444_v22 = vcombine.high %v682_v3, %v686_v4  ;;  %v5430_v16 = vcombine.high %v667_v1, %v671_v11  ;;  %v726_v56 = vld [vmem:[#allocation8 + $0x6e8] sm:$0xff]  ;;  %v707_v57 = vld [vmem:[#allocation8 + $0x650] sm:$0xff] }
 0x1ed   :  { %3773 = vmatmul.mubr.bf16.vlgmr.msra.gmra.mrb[12].mxu1 %v6568_v32 }
 0x1ee   :  { %3782 = vmatpush1.bf16.msra.mxu1 %v5395_v19  ;;  %3813 = vmatprep.mubr.bf16.mxu1 %v6579_v46  ;;  %v679_v19 = vld [vmem:[#allocation8 + $0x570] sm:$0xff] }
 0x1ef   :  { %3933 = vmatpush1.bf16.msra.mxu0 %v5381_v20  ;;  %3783 = vmatprep.subr.bf16.mxu1 %v5404_v23  ;;  %v5443_v20 = vcombine.low %v682_v3, %v686_v4  ;;  %v5429_v23 = vcombine.low %v667_v1, %v671_v11  ;;  %v5438_v7 = vcombine.high %v675_v18, %v679_v19  ;;  %v730_v4 = vld [vmem:[#allocation8 + $0x708] sm:$0xff]  ;;  %v715_v11 = vld [vmem:[#allocation8 + $0x690] sm:$0xff] }
 0x1f0   :  { %3934 = vmatprep.subr.bf16.mxu0 %v5390_v25  ;;  %v5452_v25 = vcombine.high %v690_v13, %v694_v17  ;;  %v734_v1 = vld [vmem:[#allocation8 + $0x728] sm:$0xff] }
 0x1f2   :  { %3784 = vmatpush1.bf16.msra.mxu1 %v5403_v29  ;;  %v687_v29 = vld [vmem:[#allocation8 + $0x5b0] sm:$0xff] }
 0x1f3   :  { %3935 = vmatpush1.bf16.msra.mxu0 %v5389_v31  ;;  %3785 = vmatprep.subr.bf16.mxu1 %v5412_v34  ;;  %v5451_v31 = vcombine.low %v690_v13, %v694_v17  ;;  %v5437_v34 = vcombine.low %v675_v18, %v679_v19  ;;  %v5446_v36 = vcombine.high %v683_v28, %v687_v29  ;;  %v738_v17 = vld [vmem:[#allocation8 + $0x748] sm:$0xff]  ;;  %v723_v19 = vld [vmem:[#allocation8 + $0x6d0] sm:$0xff] }
 0x1f4   :  { %3945 = vmatprep.subr.bf16.mxu0 %v5398_v35  ;;  %v5460_v35 = vcombine.high %v698_v26, %v702_v27  ;;  %v742_v18 = vld [vmem:[#allocation8 + $0x768] sm:$0xff] }
 0x1f6   :  { %3937 = vmatmul.mubr.bf16.vlgmr.msra.gmra.mrb[12].mxu0 %v6568_v32  ;;  %3786 = vmatpush1.bf16.msra.mxu1 %v5411_v37  ;;  %v695_v37 = vld [vmem:[#allocation8 + $0x5f0] sm:$0xff] }
 0x1f7   :  { %3946 = vmatpush1.bf16.msra.mxu0 %v5397_v39  ;;  %3977 = vmatprep.mubr.bf16.mxu0 %v6579_v46  ;;  %v5459_v39 = vcombine.low %v698_v26, %v702_v27  ;;  %v5454_v43 = vcombine.high %v691_v2, %v695_v37  ;;  %v746_v27 = vld [vmem:[#allocation8 + $0x788] sm:$0xff] }
 0x1f8   :  { %3787 = vmatprep.subr.bf16.mxu1 %v5420_v41  ;;  %3947 = vmatprep.subr.bf16.mxu0 %v5406_v42  ;;  %v5445_v41 = vcombine.low %v683_v28, %v687_v29  ;;  %v5468_v42 = vcombine.high %v706_v59, %v710_v0  ;;  %v750_v28 = vld [vmem:[#allocation8 + $0x7a8] sm:$0xff]  ;;  %v731_v29 = vld [vmem:[#allocation8 + $0x710] sm:$0xff] }
 0x1fa   :  { %3788 = vmatpush1.bf16.msra.mxu1 %v5419_v48  ;;  %v703_v48 = vld [vmem:[#allocation8 + $0x630] sm:$0xff] }
 0x1fb   :  { %3948 = vmatpush1.bf16.msra.mxu0 %v5405_v49  ;;  %3789 = vmatprep.subr.bf16.mxu1 %v5428_v50  ;;  %v5467_v49 = vcombine.low %v706_v59, %v710_v0  ;;  %v5453_v50 = vcombine.low %v691_v2, %v695_v37  ;;  %v5462_v52 = vcombine.high %v699_v47, %v703_v48  ;;  %v754_v0 = vld [vmem:[#allocation8 + $0x7c8] sm:$0xff]  ;;  %v739_v37 = vld [vmem:[#allocation8 + $0x750] sm:$0xff] }
 0x1fc   :  { %3949 = vmatprep.subr.bf16.mxu0 %v5414_v53  ;;  %v5476_v53 = vcombine.high %v714_v44, %v718_v45  ;;  %v758_v2 = vld [vmem:[#allocation8 + $0x7e8] sm:$0xff] }
 0x1fe   :  { %3790 = vmatpush1.bf16.msra.mxu1 %v5427_v58  ;;  %v711_v58 = vld [vmem:[#allocation8 + $0x670] sm:$0xff] }
 0x1ff   :  { %3950 = vmatpush1.bf16.msra.mxu0 %v5413_v60  ;;  %3791 = vmatprep.subr.bf16.mxu1 %v5436_v61  ;;  %v5475_v60 = vcombine.low %v714_v44, %v718_v45  ;;  %v5461_v61 = vcombine.low %v699_v47, %v703_v48  ;;  %v5470_v3 = vcombine.high %v707_v57, %v711_v58  ;;  %v762_v45 = vld [vmem:[#allocation8 + $0x808] sm:$0xff]  ;;  %v747_v48 = vld [vmem:[#allocation8 + $0x790] sm:$0xff] }
 0x200   :  { %3951 = vmatprep.subr.bf16.mxu0 %v5422_v62  ;;  %v5484_v62 = vcombine.high %v722_v55, %v726_v56  ;;  %v766_v47 = vld [vmem:[#allocation8 + $0x828] sm:$0xff] }
 0x202   :  { %3792 = vmatpush1.bf16.msra.mxu1 %v5435_v14  ;;  %v719_v14 = vld [vmem:[#allocation8 + $0x6b0] sm:$0xff] }
 0x203   :  { %3952 = vmatpush1.bf16.msra.mxu0 %v5421_v15  ;;  %3793 = vmatprep.subr.bf16.mxu1 %v5444_v22  ;;  %v5483_v15 = vcombine.low %v722_v55, %v726_v56  ;;  %v5469_v22 = vcombine.low %v707_v57, %v711_v58  ;;  %v5478_v13 = vcombine.high %v715_v11, %v719_v14  ;;  %v770_v56 = vld [vmem:[#allocation8 + $0x848] sm:$0xff]  ;;  %v755_v58 = vld [vmem:[#allocation8 + $0x7d0] sm:$0xff] }
 0x204   :  { %3953 = vmatprep.subr.bf16.mxu0 %v5430_v16  ;;  %v5492_v16 = vcombine.high %v730_v4, %v734_v1  ;;  %v774_v57 = vld [vmem:[#allocation8 + $0x868] sm:$0xff] }
 0x206   :  { %3794 = vmatpush1.bf16.msra.mxu1 %v5443_v20  ;;  %v727_v20 = vld [vmem:[#allocation8 + $0x6f0] sm:$0xff] }
 0x207   :  { %3954 = vmatpush1.bf16.msra.mxu0 %v5429_v23  ;;  %3795 = vmatprep.subr.bf16.mxu1 %v5452_v25  ;;  %v5491_v23 = vcombine.low %v730_v4, %v734_v1  ;;  %v5477_v25 = vcombine.low %v715_v11, %v719_v14  ;;  %v5486_v26 = vcombine.high %v723_v19, %v727_v20  ;;  %v778_v1 = vld [vmem:[#allocation8 + $0x888] sm:$0xff]  ;;  %v763_v14 = vld [vmem:[#allocation8 + $0x810] sm:$0xff] }
 0x208   :  { %3955 = vmatprep.subr.bf16.mxu0 %v5438_v7  ;;  %v5500_v7 = vcombine.high %v738_v17, %v742_v18  ;;  %v782_v11 = vld [vmem:[#allocation8 + $0x8a8] sm:$0xff] }
 0x20a   :  { %3796 = vmatpush1.bf16.msra.mxu1 %v5451_v31  ;;  %v735_v31 = vld [vmem:[#allocation8 + $0x730] sm:$0xff] }
 0x20b   :  { %3956 = vmatpush1.bf16.msra.mxu0 %v5437_v34  ;;  %3797 = vmatprep.subr.bf16.mxu1 %v5460_v35  ;;  %v5499_v34 = vcombine.low %v738_v17, %v742_v18  ;;  %v5485_v35 = vcombine.low %v723_v19, %v727_v20  ;;  %v5494_v59 = vcombine.high %v731_v29, %v735_v31  ;;  %v786_v18 = vld [vmem:[#allocation8 + $0x8c8] sm:$0xff]  ;;  %v771_v20 = vld [vmem:[#allocation8 + $0x850] sm:$0xff] }
 0x20c   :  { %3957 = vmatprep.subr.bf16.mxu0 %v5446_v36  ;;  %v5508_v36 = vcombine.high %v746_v27, %v750_v28  ;;  %v790_v19 = vld [vmem:[#allocation8 + $0x8e8] sm:$0xff] }
 0x20e   :  { %3798 = vmatpush1.bf16.msra.mxu1 %v5459_v39  ;;  %v743_v39 = vld [vmem:[#allocation8 + $0x770] sm:$0xff] }
 0x20f   :  { %3958 = vmatpush1.bf16.msra.mxu0 %v5445_v41  ;;  %3799 = vmatprep.subr.bf16.mxu1 %v5468_v42  ;;  %v5507_v41 = vcombine.low %v746_v27, %v750_v28  ;;  %v5493_v42 = vcombine.low %v731_v29, %v735_v31  ;;  %v5502_v44 = vcombine.high %v739_v37, %v743_v39  ;;  %v794_v28 = vld [vmem:[#allocation8 + $0x908] sm:$0xff]  ;;  %v779_v31 = vld [vmem:[#allocation8 + $0x890] sm:$0xff] }
 0x210   :  { %3959 = vmatprep.subr.bf16.mxu0 %v5454_v43  ;;  %v5516_v43 = vcombine.high %v754_v0, %v758_v2  ;;  %v798_v29 = vld [vmem:[#allocation8 + $0x928] sm:$0xff] }
 0x212   :  { %3800 = vmatpush1.bf16.msra.mxu1 %v5467_v49  ;;  %v751_v49 = vld [vmem:[#allocation8 + $0x7b0] sm:$0xff] }
 0x213   :  { %3960 = vmatpush1.bf16.msra.mxu0 %v5453_v50  ;;  %3801 = vmatprep.subr.bf16.mxu1 %v5476_v53  ;;  %v5515_v50 = vcombine.low %v754_v0, %v758_v2  ;;  %v5501_v53 = vcombine.low %v739_v37, %v743_v39  ;;  %v5510_v55 = vcombine.high %v747_v48, %v751_v49  ;;  %v802_v2 = vld [vmem:[#allocation8 + $0x948] sm:$0xff]  ;;  %v787_v39 = vld [vmem:[#allocation8 + $0x8d0] sm:$0xff] }
 0x214   :  { %3961 = vmatprep.subr.bf16.mxu0 %v5462_v52  ;;  %v5524_v52 = vcombine.high %v762_v45, %v766_v47  ;;  %v806_v37 = vld [vmem:[#allocation8 + $0x968] sm:$0xff] }
 0x216   :  { %3802 = vmatpush1.bf16.msra.mxu1 %v5475_v60  ;;  %v759_v60 = vld [vmem:[#allocation8 + $0x7f0] sm:$0xff] }
 0x217   :  { %3962 = vmatpush1.bf16.msra.mxu0 %v5461_v61  ;;  %3803 = vmatprep.subr.bf16.mxu1 %v5484_v62  ;;  %v5523_v61 = vcombine.low %v762_v45, %v766_v47  ;;  %v5509_v62 = vcombine.low %v747_v48, %v751_v49  ;;  %v5518_v4 = vcombine.high %v755_v58, %v759_v60  ;;  %v810_v47 = vld [vmem:[#allocation8 + $0x988] sm:$0xff]  ;;  %v795_v49 = vld [vmem:[#allocation8 + $0x910] sm:$0xff] }
 0x218   :  { %3963 = vmatprep.subr.bf16.mxu0 %v5470_v3  ;;  %v5532_v3 = vcombine.high %v770_v56, %v774_v57  ;;  %v814_v48 = vld [vmem:[#allocation8 + $0x9a8] sm:$0xff] }
 0x21a   :  { %3804 = vmatpush1.bf16.msra.mxu1 %v5483_v15  ;;  %v767_v15 = vld [vmem:[#allocation8 + $0x830] sm:$0xff] }
 0x21b   :  { %3964 = vmatpush1.bf16.msra.mxu0 %v5469_v22  ;;  %3805 = vmatprep.subr.bf16.mxu1 %v5492_v16  ;;  %v5531_v22 = vcombine.low %v770_v56, %v774_v57  ;;  %v5517_v16 = vcombine.low %v755_v58, %v759_v60  ;;  %v5526_v17 = vcombine.high %v763_v14, %v767_v15  ;;  %v818_v57 = vld [vmem:[#allocation8 + $0x9c8] sm:$0xff]  ;;  %v803_v60 = vld [vmem:[#allocation8 + $0x950] sm:$0xff] }
 0x21c   :  { %3965 = vmatprep.subr.bf16.mxu0 %v5478_v13  ;;  %v5540_v13 = vcombine.high %v778_v1, %v782_v11  ;;  %v822_v58 = vld [vmem:[#allocation8 + $0x9e8] sm:$0xff] }
 0x21e   :  { %3806 = vmatpush1.bf16.msra.mxu1 %v5491_v23  ;;  %v775_v23 = vld [vmem:[#allocation8 + $0x870] sm:$0xff] }
 0x21f   :  { %3966 = vmatpush1.bf16.msra.mxu0 %v5477_v25  ;;  %3807 = vmatprep.subr.bf16.mxu1 %v5500_v7  ;;  %v5539_v25 = vcombine.low %v778_v1, %v782_v11  ;;  %v5525_v7 = vcombine.low %v763_v14, %v767_v15  ;;  %v5534_v27 = vcombine.high %v771_v20, %v775_v23  ;;  %v826_v11 = vld [vmem:[#allocation8 + $0xa08] sm:$0xff]  ;;  %v811_v15 = vld [vmem:[#allocation8 + $0x990] sm:$0xff] }
 0x220   :  { %3967 = vmatprep.subr.bf16.mxu0 %v5486_v26  ;;  %v5548_v26 = vcombine.high %v786_v18, %v790_v19  ;;  %v830_v14 = vld [vmem:[#allocation8 + $0xa28] sm:$0xff] }
 0x222   :  { %3808 = vmatpush1.bf16.msra.mxu1 %v5499_v34  ;;  %v783_v34 = vld [vmem:[#allocation8 + $0x8b0] sm:$0xff] }
 0x223   :  { %3968 = vmatpush1.bf16.msra.mxu0 %v5485_v35  ;;  %3809 = vmatprep.subr.bf16.mxu1 %v5508_v36  ;;  %v5547_v35 = vcombine.low %v786_v18, %v790_v19  ;;  %v5533_v36 = vcombine.low %v771_v20, %v775_v23  ;;  %v5542_v0 = vcombine.high %v779_v31, %v783_v34  ;;  %v834_v19 = vld [vmem:[#allocation8 + $0xa48] sm:$0xff]  ;;  %v819_v23 = vld [vmem:[#allocation8 + $0x9d0] sm:$0xff] }
 0x224   :  { %3969 = vmatprep.subr.bf16.mxu0 %v5494_v59  ;;  %v5556_v59 = vcombine.high %v794_v28, %v798_v29  ;;  %v838_v20 = vld [vmem:[#allocation8 + $0xa68] sm:$0xff] }
 0x226   :  { %3810 = vmatpush1.bf16.msra.mxu1 %v5507_v41  ;;  %v791_v41 = vld [vmem:[#allocation8 + $0x8f0] sm:$0xff] }
 0x227   :  { %3970 = vmatpush1.bf16.msra.mxu0 %v5493_v42  ;;  %3811 = vmatprep.subr.bf16.mxu1 %v5516_v43  ;;  %v5555_v42 = vcombine.low %v794_v28, %v798_v29  ;;  %v5541_v43 = vcombine.low %v779_v31, %v783_v34  ;;  %v5550_v45 = vcombine.high %v787_v39, %v791_v41  ;;  %v842_v29 = vld [vmem:[#allocation8 + $0xa88] sm:$0xff]  ;;  %v827_v34 = vld [vmem:[#allocation8 + $0xa10] sm:$0xff] }
 0x228   :  { %3971 = vmatprep.subr.bf16.mxu0 %v5502_v44  ;;  %v5564_v44 = vcombine.high %v802_v2, %v806_v37  ;;  %v846_v31 = vld [vmem:[#allocation8 + $0xaa8] sm:$0xff] }
 0x22a   :  { %3812 = vmatpush1.bf16.msra.mxu1 %v5515_v50  ;;  %v799_v50 = vld [vmem:[#allocation8 + $0x930] sm:$0xff] }
 0x22b   :  { %3972 = vmatpush1.bf16.msra.mxu0 %v5501_v53  ;;  %3822 = vmatprep.subr.bf16.mxu1 %v5524_v52  ;;  %v5563_v53 = vcombine.low %v802_v2, %v806_v37  ;;  %v5549_v52 = vcombine.low %v787_v39, %v791_v41  ;;  %v5558_v56 = vcombine.high %v795_v49, %v799_v50  ;;  %v850_v37 = vld [vmem:[#allocation8 + $0xac8] sm:$0xff]  ;;  %v835_v41 = vld [vmem:[#allocation8 + $0xa50] sm:$0xff] }
 0x22c   :  { %3973 = vmatprep.subr.bf16.mxu0 %v5510_v55  ;;  %v5572_v55 = vcombine.high %v810_v47, %v814_v48  ;;  %v854_v39 = vld [vmem:[#allocation8 + $0xae8] sm:$0xff] }
 0x22d   :  { %3814 = vmatmul.mubr.bf16.vlgmr.msra.gmra.mrb[12].mxu1 %v6610_v63 }
 0x22e   :  { %3823 = vmatpush1.bf16.msra.mxu1 %v5523_v61  ;;  %3854 = vmatprep.mubr.bf16.mxu1 %v6589_v12  ;;  %v807_v61 = vld [vmem:[#allocation8 + $0x970] sm:$0xff] }
 0x22f   :  { %3974 = vmatpush1.bf16.msra.mxu0 %v5509_v62  ;;  %3824 = vmatprep.subr.bf16.mxu1 %v5532_v3  ;;  %v5571_v62 = vcombine.low %v810_v47, %v814_v48  ;;  %v5557_v3 = vcombine.low %v795_v49, %v799_v50  ;;  %v5566_v1 = vcombine.high %v803_v60, %v807_v61  ;;  %v858_v48 = vld [vmem:[#allocation8 + $0xb08] sm:$0xff]  ;;  %v843_v50 = vld [vmem:[#allocation8 + $0xa90] sm:$0xff] }
 0x230   :  { %3975 = vmatprep.subr.bf16.mxu0 %v5518_v4  ;;  %v5580_v4 = vcombine.high %v818_v57, %v822_v58  ;;  %v862_v49 = vld [vmem:[#allocation8 + $0xb28] sm:$0xff] }
 0x232   :  { %3825 = vmatpush1.bf16.msra.mxu1 %v5531_v22  ;;  %v815_v22 = vld [vmem:[#allocation8 + $0x9b0] sm:$0xff] }
 0x233   :  { %3976 = vmatpush1.bf16.msra.mxu0 %v5517_v16  ;;  %3826 = vmatprep.subr.bf16.mxu1 %v5540_v13  ;;  %v5579_v16 = vcombine.low %v818_v57, %v822_v58  ;;  %v5565_v13 = vcombine.low %v803_v60, %v807_v61  ;;  %v5574_v18 = vcombine.high %v811_v15, %v815_v22  ;;  %v866_v58 = vld [vmem:[#allocation8 + $0xb48] sm:$0xff]  ;;  %v851_v61 = vld [vmem:[#allocation8 + $0xad0] sm:$0xff] }
 0x234   :  { %3986 = vmatprep.subr.bf16.mxu0 %v5526_v17  ;;  %v5588_v17 = vcombine.high %v826_v11, %v830_v14  ;;  %v870_v60 = vld [vmem:[#allocation8 + $0xb68] sm:$0xff] }
 0x236   :  { %3978 = vmatmul.mubr.bf16.vlgmr.msra.gmra.mrb[12].mxu0 %v6610_v63  ;;  %3827 = vmatpush1.bf16.msra.mxu1 %v5539_v25  ;;  %v823_v25 = vld [vmem:[#allocation8 + $0x9f0] sm:$0xff] }
 0x237   :  { %3987 = vmatpush1.bf16.msra.mxu0 %v5525_v7  ;;  %4018 = vmatprep.mubr.bf16.mxu0 %v6589_v12  ;;  %v5587_v7 = vcombine.low %v826_v11, %v830_v14  ;;  %v5582_v28 = vcombine.high %v819_v23, %v823_v25  ;;  %v874_v14 = vld [vmem:[#allocation8 + $0xb88] sm:$0xff] }
 0x238   :  { %3828 = vmatprep.subr.bf16.mxu1 %v5548_v26  ;;  %3988 = vmatprep.subr.bf16.mxu0 %v5534_v27  ;;  %v5573_v26 = vcombine.low %v811_v15, %v815_v22  ;;  %v5596_v27 = vcombine.high %v834_v19, %v838_v20  ;;  %v878_v15 = vld [vmem:[#allocation8 + $0xba8] sm:$0xff]  ;;  %v859_v22 = vld [vmem:[#allocation8 + $0xb10] sm:$0xff] }
 0x23a   :  { %3829 = vmatpush1.bf16.msra.mxu1 %v5547_v35  ;;  %v831_v35 = vld [vmem:[#allocation8 + $0xa30] sm:$0xff] }
 0x23b   :  { %3989 = vmatpush1.bf16.msra.mxu0 %v5533_v36  ;;  %3830 = vmatprep.subr.bf16.mxu1 %v5556_v59  ;;  %v5595_v36 = vcombine.low %v834_v19, %v838_v20  ;;  %v5581_v59 = vcombine.low %v819_v23, %v823_v25  ;;  %v5590_v2 = vcombine.high %v827_v34, %v831_v35  ;;  %v882_v20 = vld [vmem:[#allocation8 + $0xbc8] sm:$0xff]  ;;  %v867_v25 = vld [vmem:[#allocation8 + $0xb50] sm:$0xff] }
 0x23c   :  { %3990 = vmatprep.subr.bf16.mxu0 %v5542_v0  ;;  %v5604_v0 = vcombine.high %v842_v29, %v846_v31  ;;  %v886_v23 = vld [vmem:[#allocation8 + $0xbe8] sm:$0xff] }
 0x23e   :  { %3831 = vmatpush1.bf16.msra.mxu1 %v5555_v42  ;;  %v839_v42 = vld [vmem:[#allocation8 + $0xa70] sm:$0xff] }
 0x23f   :  { %3991 = vmatpush1.bf16.msra.mxu0 %v5541_v43  ;;  %3832 = vmatprep.subr.bf16.mxu1 %v5564_v44  ;;  %v5603_v43 = vcombine.low %v842_v29, %v846_v31  ;;  %v5589_v44 = vcombine.low %v827_v34, %v831_v35  ;;  %v5598_v47 = vcombine.high %v835_v41, %v839_v42  ;;  %v890_v31 = vld [vmem:[#allocation8 + $0xc08] sm:$0xff]  ;;  %v875_v35 = vld [vmem:[#allocation8 + $0xb90] sm:$0xff] }
 0x240   :  { %3992 = vmatprep.subr.bf16.mxu0 %v5550_v45  ;;  %v5612_v45 = vcombine.high %v850_v37, %v854_v39  ;;  %v894_v34 = vld [vmem:[#allocation8 + $0xc28] sm:$0xff] }
 0x242   :  { %3833 = vmatpush1.bf16.msra.mxu1 %v5563_v53  ;;  %v847_v53 = vld [vmem:[#allocation8 + $0xab0] sm:$0xff] }
 0x243   :  { %3993 = vmatpush1.bf16.msra.mxu0 %v5549_v52  ;;  %3834 = vmatprep.subr.bf16.mxu1 %v5572_v55  ;;  %v5611_v52 = vcombine.low %v850_v37, %v854_v39  ;;  %v5597_v55 = vcombine.low %v835_v41, %v839_v42  ;;  %v5606_v57 = vcombine.high %v843_v50, %v847_v53  ;;  %v898_v39 = vld [vmem:[#allocation8 + $0xc48] sm:$0xff]  ;;  %v883_v42 = vld [vmem:[#allocation8 + $0xbd0] sm:$0xff] }
 0x244   :  { %3994 = vmatprep.subr.bf16.mxu0 %v5558_v56  ;;  %v5620_v56 = vcombine.high %v858_v48, %v862_v49  ;;  %v902_v41 = vld [vmem:[#allocation8 + $0xc68] sm:$0xff] }
 0x246   :  { %3835 = vmatpush1.bf16.msra.mxu1 %v5571_v62  ;;  %v855_v62 = vld [vmem:[#allocation8 + $0xaf0] sm:$0xff] }
 0x247   :  { %3995 = vmatpush1.bf16.msra.mxu0 %v5557_v3  ;;  %3836 = vmatprep.subr.bf16.mxu1 %v5580_v4  ;;  %v5619_v3 = vcombine.low %v858_v48, %v862_v49  ;;  %v5605_v4 = vcombine.low %v843_v50, %v847_v53  ;;  %v5614_v11 = vcombine.high %v851_v61, %v855_v62  ;;  %v906_v49 = vld [vmem:[#allocation8 + $0xc88] sm:$0xff]  ;;  %v891_v53 = vld [vmem:[#allocation8 + $0xc10] sm:$0xff] }
 0x248   :  { %3996 = vmatprep.subr.bf16.mxu0 %v5566_v1  ;;  %v5628_v1 = vcombine.high %v866_v58, %v870_v60  ;;  %v910_v50 = vld [vmem:[#allocation8 + $0xca8] sm:$0xff] }
 0x24a   :  { %3837 = vmatpush1.bf16.msra.mxu1 %v5579_v16  ;;  %v863_v16 = vld [vmem:[#allocation8 + $0xb30] sm:$0xff] }
 0x24b   :  { %3997 = vmatpush1.bf16.msra.mxu0 %v5565_v13  ;;  %3838 = vmatprep.subr.bf16.mxu1 %v5588_v17  ;;  %v5627_v13 = vcombine.low %v866_v58, %v870_v60  ;;  %v5613_v17 = vcombine.low %v851_v61, %v855_v62  ;;  %v5622_v19 = vcombine.high %v859_v22, %v863_v16  ;;  %v914_v60 = vld [vmem:[#allocation8 + $0xcc8] sm:$0xff]  ;;  %v899_v62 = vld [vmem:[#allocation8 + $0xc50] sm:$0xff] }
 0x24c   :  { %3998 = vmatprep.subr.bf16.mxu0 %v5574_v18  ;;  %v5636_v18 = vcombine.high %v874_v14, %v878_v15  ;;  %v918_v61 = vld [vmem:[#allocation8 + $0xce8] sm:$0xff] }
 0x24e   :  { %3839 = vmatpush1.bf16.msra.mxu1 %v5587_v7  ;;  %v871_v7 = vld [vmem:[#allocation8 + $0xb70] sm:$0xff] }
 0x24f   :  { %3999 = vmatpush1.bf16.msra.mxu0 %v5573_v26  ;;  %3840 = vmatprep.subr.bf16.mxu1 %v5596_v27  ;;  %v5635_v26 = vcombine.low %v874_v14, %v878_v15  ;;  %v5621_v27 = vcombine.low %v859_v22, %v863_v16  ;;  %v5630_v29 = vcombine.high %v867_v25, %v871_v7  ;;  %v922_v15 = vld [vmem:[#allocation8 + $0xd08] sm:$0xff]  ;;  %v907_v16 = vld [vmem:[#allocation8 + $0xc90] sm:$0xff] }
 0x250   :  { %4000 = vmatprep.subr.bf16.mxu0 %v5582_v28  ;;  %v5644_v28 = vcombine.high %v882_v20, %v886_v23  ;;  %v926_v22 = vld [vmem:[#allocation8 + $0xd28] sm:$0xff] }
 0x252   :  { %3841 = vmatpush1.bf16.msra.mxu1 %v5595_v36  ;;  %v879_v36 = vld [vmem:[#allocation8 + $0xbb0] sm:$0xff] }
 0x253   :  { %4001 = vmatpush1.bf16.msra.mxu0 %v5581_v59  ;;  %3842 = vmatprep.subr.bf16.mxu1 %v5604_v0  ;;  %v5643_v59 = vcombine.low %v882_v20, %v886_v23  ;;  %v5629_v0 = vcombine.low %v867_v25, %v871_v7  ;;  %v5638_v37 = vcombine.high %v875_v35, %v879_v36  ;;  %v930_v23 = vld [vmem:[#allocation8 + $0xd48] sm:$0xff]  ;;  %v915_v7 = vld [vmem:[#allocation8 + $0xcd0] sm:$0xff] }
 0x254   :  { %4002 = vmatprep.subr.bf16.mxu0 %v5590_v2  ;;  %v5652_v2 = vcombine.high %v890_v31, %v894_v34  ;;  %v934_v25 = vld [vmem:[#allocation8 + $0xd68] sm:$0xff] }
 0x256   :  { %3843 = vmatpush1.bf16.msra.mxu1 %v5603_v43  ;;  %v887_v43 = vld [vmem:[#allocation8 + $0xbf0] sm:$0xff] }
 0x257   :  { %4003 = vmatpush1.bf16.msra.mxu0 %v5589_v44  ;;  %3844 = vmatprep.subr.bf16.mxu1 %v5612_v45  ;;  %v5651_v44 = vcombine.low %v890_v31, %v894_v34  ;;  %v5637_v45 = vcombine.low %v875_v35, %v879_v36  ;;  %v5646_v48 = vcombine.high %v883_v42, %v887_v43  ;;  %v938_v34 = vld [vmem:[#allocation8 + $0xd88] sm:$0xff]  ;;  %v923_v36 = vld [vmem:[#allocation8 + $0xd10] sm:$0xff] }
 0x258   :  { %4004 = vmatprep.subr.bf16.mxu0 %v5598_v47  ;;  %v5660_v47 = vcombine.high %v898_v39, %v902_v41  ;;  %v942_v35 = vld [vmem:[#allocation8 + $0xda8] sm:$0xff] }
 0x25a   :  { %3845 = vmatpush1.bf16.msra.mxu1 %v5611_v52  ;;  %v895_v52 = vld [vmem:[#allocation8 + $0xc30] sm:$0xff] }
 0x25b   :  { %4005 = vmatpush1.bf16.msra.mxu0 %v5597_v55  ;;  %3846 = vmatprep.subr.bf16.mxu1 %v5620_v56  ;;  %v5659_v55 = vcombine.low %v898_v39, %v902_v41  ;;  %v5645_v56 = vcombine.low %v883_v42, %v887_v43  ;;  %v5654_v58 = vcombine.high %v891_v53, %v895_v52  ;;  %v1005_v39 = vld [vmem:[#allocation10] sm:$0xff]  ;;  %v946_v43 = vld [vmem:[#allocation8 + $0xdc8] sm:$0xff] }
 0x25c   :  { %4006 = vmatprep.subr.bf16.mxu0 %v5606_v57  ;;  %v5668_v57 = vcombine.high %v906_v49, %v910_v50 }
 0x25e   :  { %3847 = vmatpush1.bf16.msra.mxu1 %v5619_v3  ;;  %v903_v3 = vld [vmem:[#allocation8 + $0xc70] sm:$0xff] }
 0x25f   :  { %4007 = vmatpush1.bf16.msra.mxu0 %v5605_v4  ;;  %3848 = vmatprep.subr.bf16.mxu1 %v5628_v1  ;;  %v5667_v4 = vcombine.low %v906_v49, %v910_v50  ;;  %v5653_v1 = vcombine.low %v891_v53, %v895_v52  ;;  %v5662_v14 = vcombine.high %v899_v62, %v903_v3 }
 0x260   :  { %4008 = vmatprep.subr.bf16.mxu0 %v5614_v11  ;;  %v5676_v11 = vcombine.high %v914_v60, %v918_v61  ;;  %v5699_v50 = vcombine.low %v938_v34, %v942_v35  ;;  %v1010_v53 = vrot.slane %v1005_v39, %v6547_v6 }
 0x262   :  { %3849 = vmatpush1.bf16.msra.mxu1 %v5627_v13  ;;  %v911_v13 = vld [vmem:[#allocation8 + $0xcb0] sm:$0xff] }
 0x263   :  { %4009 = vmatpush1.bf16.msra.mxu0 %v5613_v17  ;;  %3850 = vmatprep.subr.bf16.mxu1 %v5636_v18  ;;  %v5675_v17 = vcombine.low %v914_v60, %v918_v61  ;;  %v5661_v18 = vcombine.low %v899_v62, %v903_v3  ;;  %v5670_v20 = vcombine.high %v907_v16, %v911_v13  ;;  %v954_v60 = vld [vmem:[#allocation8 + $0xe08] sm:$0xff]  ;;  %v939_v62 = vld [vmem:[#allocation8 + $0xd90] sm:$0xff] }
 0x264   :  { %4010 = vmatprep.subr.bf16.mxu0 %v5622_v19  ;;  %v5684_v19 = vcombine.high %v922_v15, %v926_v22  ;;  %v958_v61 = vld [vmem:[#allocation8 + $0xe28] sm:$0xff]  ;;  %v943_v3 = vld [vmem:[#allocation8 + $0xdb0] sm:$0xff] }
 0x266   :  { %3851 = vmatpush1.bf16.msra.mxu1 %v5635_v26  ;;  %v919_v26 = vld [vmem:[#allocation8 + $0xcf0] sm:$0xff] }
 0x267   :  { %4011 = vmatpush1.bf16.msra.mxu0 %v5621_v27  ;;  %3852 = vmatprep.subr.bf16.mxu1 %v5644_v28  ;;  %v5683_v27 = vcombine.low %v922_v15, %v926_v22  ;;  %v5669_v28 = vcombine.low %v907_v16, %v911_v13  ;;  %v5678_v31 = vcombine.high %v915_v7, %v919_v26  ;;  %v962_v13 = vld [vmem:[#allocation8 + $0xe48] sm:$0xff] }
 0x268   :  { %4012 = vmatprep.subr.bf16.mxu0 %v5630_v29  ;;  %v5692_v29 = vcombine.high %v930_v23, %v934_v25  ;;  %v5702_v16 = vcombine.high %v939_v62, %v943_v3 }
 0x26a   :  { %3853 = vmatpush1.bf16.msra.mxu1 %v5643_v59  ;;  %v927_v59 = vld [vmem:[#allocation8 + $0xd30] sm:$0xff] }
 0x26b   :  { %4013 = vmatpush1.bf16.msra.mxu0 %v5629_v0  ;;  %3863 = vmatprep.subr.bf16.mxu1 %v5652_v2  ;;  %v5691_v0 = vcombine.low %v930_v23, %v934_v25  ;;  %v5677_v2 = vcombine.low %v915_v7, %v919_v26  ;;  %v5686_v42 = vcombine.high %v923_v36, %v927_v59  ;;  %v951_v23 = vld [vmem:[#allocation8 + $0xdf0] sm:$0xff] }
 0x26c   :  { %4014 = vmatprep.subr.bf16.mxu0 %v5638_v37  ;;  %v5700_v37 = vcombine.high %v938_v34, %v942_v35  ;;  %v5715_v7 = vcombine.low %v954_v60, %v958_v61  ;;  %v970_v34 = vld [vmem:[#allocation8 + $0xe88] sm:$0xff] }
 0x26d   :  { %3855 = vmatmul.mubr.bf16.vlgmr.msra.gmra.mrb[12].mxu1 %v6587_v9  ;;  %v974_v35 = vld [vmem:[#allocation8 + $0xea8] sm:$0xff] }
 0x26e   :  { %3864 = vmatpush1.bf16.msra.mxu1 %v5651_v44  ;;  %5772 = vmatprep.mubr.msk.bf16.mxu1 %vm3547_vm3, %v6596_v33  ;;  %v950_v44 = vld [vmem:[#allocation8 + $0xde8] sm:$0xff] }
 0x26f   :  { %4015 = vmatpush1.bf16.msra.mxu0 %v5637_v45  ;;  %3865 = vmatprep.subr.bf16.mxu1 %v5660_v47  ;;  %v931_v47 = vld [vmem:[#allocation8 + $0xd50] sm:$0xff] }
 0x270   :  { %4016 = vmatprep.subr.bf16.mxu0 %v5646_v48  ;;  %v935_v48 = vld [vmem:[#allocation8 + $0xd70] sm:$0xff] }
 0x272   :  { %3866 = vmatpush1.bf16.msra.mxu1 %v5659_v55  ;;  %v5685_v55 = vcombine.low %v923_v36, %v927_v59  ;;  %v955_v36 = vld [vmem:[#allocation8 + $0xe10] sm:$0xff] }
 0x273   :  { %4017 = vmatpush1.bf16.msra.mxu0 %v5645_v56  ;;  %3867 = vmatprep.subr.bf16.mxu1 %v5668_v57  ;;  %v5708_v56 = vcombine.high %v946_v43, %v950_v44  ;;  %v1014_v57 = vrot.slane %v1005_v39, %v6552_v8  ;;  %v959_v59 = vld [vmem:[#allocation8 + $0xe30] sm:$0xff] }
 0x274   :  { %4027 = vmatprep.subr.bf16.mxu0 %v5654_v58  ;;  %v5694_v58 = vcombine.high %v931_v47, %v935_v48  ;;  %v5718_v39 = vcombine.high %v955_v36, %v959_v59 }
 0x276   :  { %4019 = vmatmul.mubr.bf16.vlgmr.msra.gmra.mrb[12].mxu0 %v6587_v9  ;;  %3868 = vmatpush1.bf16.msra.mxu1 %v5667_v4  ;;  %v5707_v4 = vcombine.low %v946_v43, %v950_v44  ;;  %v963_v43 = vld [vmem:[#allocation8 + $0xe50] sm:$0xff] }
 0x277   :  { %4028 = vmatpush1.bf16.msra.mxu0 %v5653_v1  ;;  %5774 = vmatprep.mubr.msk.bf16.mxu0 %vm3547_vm3, %v6596_v33  ;;  %v967_v44 = vld [vmem:[#allocation8 + $0xe70] sm:$0xff] }
 0x278   :  { %3869 = vmatprep.subr.bf16.mxu1 %v5676_v11  ;;  %4029 = vmatprep.subr.bf16.mxu0 %v5662_v14  ;;  %v5693_v11 = vcombine.low %v931_v47, %v935_v48  ;;  %v5716_v14 = vcombine.high %v954_v60, %v958_v61  ;;  %v5717_v47 = vcombine.low %v955_v36, %v959_v59  ;;  %v994_v61 = vld [vmem:[#allocation8 + $0xf48] sm:$0xff]  ;;  %v516_v59 = vld [vmem:[#allocation8 + $0x58] sm:$0xff] }
 0x27a   :  { %3870 = vmatpush1.bf16.msra.mxu1 %v5675_v17  ;;  %v966_v17 = vld [vmem:[#allocation8 + $0xe68] sm:$0xff] }
 0x27b   :  { %4030 = vmatpush1.bf16.msra.mxu0 %v5661_v18  ;;  %3871 = vmatprep.subr.bf16.mxu1 %v5684_v19 }
 0x27c   :  { %4031 = vmatprep.subr.bf16.mxu0 %v5670_v20  ;;  %v947_v20 = vld [vmem:[#allocation8 + $0xdd0] sm:$0xff] }
 0x27e   :  { %3872 = vmatpush1.bf16.msra.mxu1 %v5683_v27  ;;  %v5701_v27 = vcombine.low %v939_v62, %v943_v3  ;;  %v998_v62 = vld [vmem:[#allocation8 + $0xf68] sm:$0xff]  ;;  %v979_v3 = vld [vmem:[#allocation8 + $0xed0] sm:$0xff] }
 0x27f   :  { %4032 = vmatpush1.bf16.msra.mxu0 %v5669_v28  ;;  %3873 = vmatprep.subr.bf16.mxu1 %v5692_v29  ;;  %v5724_v28 = vcombine.high %v962_v13, %v966_v17 }
 0x280   :  { %v3651_v41 = vpop.f32.mrb[8].mxu1  ;;  %4033 = vmatprep.subr.bf16.mxu0 %v5678_v31  ;;  %v5710_v31 = vcombine.high %v947_v20, %v951_v23 }
 0x281   :  { %v3653_v45 = vpop.f32.mrb[9].mxu1  ;;  %v5906_v1 = vadd.f32 %v3651_v41, %v1010_v53  ;;  %v978_v41 = vld [vmem:[#allocation8 + $0xec8] sm:$0xff] }
 0x282   :  { %v3655_v49 = vpop.f32.mrb[10].mxu1  ;;  %3874 = vmatpush1.bf16.msra.mxu1 %v5691_v0  ;;  %v5908_v15 = vadd.f32 %v3653_v45, %v1014_v57  ;;  %v5723_v0 = vcombine.low %v962_v13, %v966_v17  ;;  %v5731_v45 = vcombine.low %v970_v34, %v974_v35  ;;  %v990_v53 = vld [vmem:[#allocation8 + $0xf28] sm:$0xff]  ;;  %v5725_v57 = vcombine.low %v963_v43, %v967_v44  ;;  %v991_v13 = vld [vmem:[#allocation8 + $0xf30] sm:$0xff] }
 0x283   :  { %4034 = vmatpush1.bf16.msra.mxu0 %v5677_v2  ;;  %v3656_v52 = vpop.f32.mrb[11].mxu1  ;;  %3875 = vmatprep.subr.bf16.mxu1 %v5700_v37  ;;  %v5709_v2 = vcombine.low %v947_v20, %v951_v23  ;;  %v5732_v37 = vcombine.high %v970_v34, %v974_v35  ;;  %v5726_v49 = vcombine.high %v963_v43, %v967_v44  ;;  %v524_v44 = vld [vmem:[#allocation8 + $0x98] sm:$0xff] }
 0x284   :  { %4035 = vmatprep.subr.bf16.mxu0 %v5686_v42  ;;  %v982_v42 = vld [vmem:[#allocation8 + $0xee8] sm:$0xff]  ;;  %v971_v52 = vld [vmem:[#allocation8 + $0xe90] sm:$0xff]  ;;  %v5755_v17 = vcombine.low %v994_v61, %v998_v62 }
 0x285   :  { %v5740_v48 = vcombine.high %v978_v41, %v982_v42 }
 0x286   :  { %3876 = vmatpush1.bf16.msra.mxu1 %v5699_v50  ;;  %v986_v50 = vld [vmem:[#allocation8 + $0xf08] sm:$0xff] }
 0x287   :  { %4036 = vmatpush1.bf16.msra.mxu0 %v5685_v55  ;;  %3877 = vmatprep.subr.bf16.mxu1 %v5708_v56  ;;  %v975_v55 = vld [vmem:[#allocation8 + $0xeb0] sm:$0xff]  ;;  %v5739_v56 = vcombine.low %v978_v41, %v982_v42 }
 0x288   :  { %v3733_v22 = vpop.f32.mrb[8].mxu0  ;;  %4037 = vmatprep.subr.bf16.mxu0 %v5694_v58  ;;  %v5748_v58 = vcombine.high %v986_v50, %v990_v53  ;;  %v5734_v60 = vcombine.high %v971_v52, %v975_v55 }
 0x289   :  { %v6636_v18 = vadd.f32 %v5906_v1, %v3733_v22  ;;  %v3735_v19 = vpop.f32.mrb[9].mxu0  ;;  %v5747_v1 = vcombine.low %v986_v50, %v990_v53  ;;  %v1002_v22 = vld [vmem:[#allocation8 + $0xf88] sm:$0xff]  ;;  %v6001_v53 = vld [vmem:[%s7074_s5 + $0x4] ss:$8 sps:$4 sm:$0xff]  }
 0x28a   :  { %v6638_v25 = vadd.f32 %v5908_v15, %v3735_v19  ;;  %3878 = vmatpush1.bf16.msra.mxu1 %v5707_v4  ;;  %v3737_v26 = vpop.f32.mrb[10].mxu0  ;;  %v983_v4 = vld [vmem:[#allocation8 + $0xef0] sm:$0xff]  ;;  %v5764_v20 = vcombine.high %v1002_v22, %v1002_v22  ;;  %v5763_v23 = vcombine.low %v1002_v22, %v1002_v22 }
 0x28b   :  { %4038 = vmatpush1.bf16.msra.mxu0 %v5693_v11  ;;  %3879 = vmatprep.subr.bf16.mxu1 %v5716_v14  ;;  %v3738_v29 = vpop.f32.mrb[11].mxu0  ;;  %v5733_v11 = vcombine.low %v971_v52, %v975_v55  ;;  %v5756_v14 = vcombine.high %v994_v61, %v998_v62  ;;  %v5742_v15 = vcombine.high %v979_v3, %v983_v4  ;;  %v508_v26 = vld [vmem:[#allocation8 + $0x18] sm:$0xff] }
 0x28c   :  { %4039 = vmatprep.subr.bf16.mxu0 %v5702_v16  ;;  %v987_v16 = vld [vmem:[#allocation8 + $0xf10] sm:$0xff]  ;;  %v5741_v19 = vcombine.low %v979_v3, %v983_v4  ;;  %v3559_v34 = vsel %vm3551_vm4, %v5763_v23, 0  ;;  %v532_v55 = vld [vmem:[#allocation8 + $0xd8] sm:$0xff] }
 0x28d   :  { %v999_v29 = vld [vmem:[#allocation8 + $0xf70] sm:$0xff]  ;;  %v544_v61 = vld [vmem:[#allocation8 + $0x138] sm:$0xff] }
 0x28e   :  { %3880 = vmatpush1.bf16.msra.mxu1 %v5715_v7  ;;  %v5750_v7 = vcombine.high %v987_v16, %v991_v13  ;;  %v6002_v4 = vld [vmem:[%s7074_s5 + $0x10] ss:$8 sps:$4 sm:$0xff]  }
 0x28f   :  { %4040 = vmatpush1.bf16.msra.mxu0 %v5701_v27  ;;  %3881 = vmatprep.subr.bf16.mxu1 %v5724_v28  ;;  %v512_v27 = vld [vmem:[#allocation8 + $0x38] sm:$0xff]  ;;  %v995_v28 = vld [vmem:[#allocation8 + $0xf50] sm:$0xff] }
 0x290   :  { %4041 = vmatprep.subr.bf16.mxu0 %v5710_v31  ;;  %v5749_v31 = vcombine.low %v987_v16, %v991_v13  ;;  %v5272_v35 = vcombine.high %v508_v26, %v512_v27  ;;  %v5758_v36 = vcombine.high %v995_v28, %v999_v29  ;;  %v6005_v16 = vld [vmem:[%s7074_s5 + $0x20] ss:$8 sps:$4 sm:$0xff]  }
 0x292   :  { %3882 = vmatpush1.bf16.msra.mxu1 %v5723_v0  ;;  %v520_v0 = vld [vmem:[#allocation8 + $0x78] sm:$0xff] }
 0x293   :  { %4042 = vmatpush1.bf16.msra.mxu0 %v5709_v2  ;;  %3883 = vmatprep.subr.bf16.mxu1 %v5732_v37  ;;  %v1003_v2 = vld [vmem:[#allocation8 + $0xf90] sm:$0xff]  ;;  %v5271_v37 = vcombine.low %v508_v26, %v512_v27  ;;  %v5280_v41 = vcombine.high %v516_v59, %v520_v0 }
 0x294   :  { %4043 = vmatprep.subr.bf16.mxu0 %v5718_v39  ;;  %v5757_v39 = vcombine.low %v995_v28, %v999_v29  ;;  %v5766_v42 = vcombine.high %v1003_v2, %v1003_v2  ;;  %v5765_v43 = vcombine.low %v1003_v2, %v1003_v2  ;;  %v6013_v27 = vld [vmem:[%s7074_s5 + $0x44] ss:$8 sps:$4 sm:$0xff]  }
 0x295   :  { %v564_v28 = vld [vmem:[#allocation8 + $0x1d8] sm:$0xff] }
 0x296   :  { %3884 = vmatpush1.bf16.msra.mxu1 %v5731_v45  ;;  %v528_v45 = vld [vmem:[#allocation8 + $0xb8] sm:$0xff]  ;;  %v3565_v50 = vsel %vm3551_vm4, %v5765_v43, 0 }
 0x297   :  { %4044 = vmatpush1.bf16.msra.mxu0 %v5717_v47  ;;  %3885 = vmatprep.subr.bf16.mxu1 %v5740_v48  ;;  %v4233_v47 = vpack.c.bf16 %v6638_v25, %v6638_v25  ;;  %v5279_v48 = vcombine.low %v516_v59, %v520_v0  ;;  %v536_v25 = vld [vmem:[#allocation8 + $0xf8] sm:$0xff] }
 0x298   :  { %4045 = vmatprep.subr.bf16.mxu0 %v5726_v49  ;;  %v5288_v49 = vcombine.high %v524_v44, %v528_v45  ;;  %v5295_v3 = vcombine.low %v532_v55, %v536_v25  ;;  %v568_v29 = vld [vmem:[#allocation8 + $0x1f8] sm:$0xff] }
 0x299   :  { %v4241_v52 = vmul.bf16 1009007652, %v4233_v47  ;;  %v572_v59 = vld [vmem:[#allocation8 + $0x218] sm:$0xff]  ;;  %v5327_v2 = vcombine.low %v564_v28, %v568_v29 }
 0x29a   :  { %3886 = vmatpush1.bf16.msra.mxu1 %v5739_v56  ;;  %v5287_v56 = vcombine.low %v524_v44, %v528_v45  ;;  %v576_v0 = vld [vmem:[#allocation8 + $0x238] sm:$0xff] }
 0x29b   :  { %4046 = vmatpush1.bf16.msra.mxu0 %v5725_v57  ;;  %3887 = vmatprep.subr.bf16.mxu1 %v5748_v58  ;;  %v5296_v57 = vcombine.high %v532_v55, %v536_v25  ;;  %v6004_v58 = vld [vmem:[%s7074_s5 + $0x14] ss:$8 sps:$4 sm:$0xff]   ;;  %v4249_v62 = vmax.bf16 %v4241_v52, %v4233_v47  ;;  %v584_v43 = vld [vmem:[#allocation8 + $0x278] sm:$0xff]  ;;  %v5335_v44 = vcombine.low %v572_v59, %v576_v0 }
 0x29c   :  { %4047 = vmatprep.subr.bf16.mxu0 %v5734_v60  ;;  %v540_v60 = vld [vmem:[#allocation8 + $0x118] sm:$0xff] }
 0x29d   :  { %v5303_v22 = vcombine.low %v540_v60, %v544_v61  ;;  %v6017_v45 = vld [vmem:[%s7074_s5 + $0x60] ss:$8 sps:$4 sm:$0xff]   ;;  %v6020_v52 = vld [vmem:[%s7074_s5 + $0x70] ss:$8 sps:$4 sm:$0xff]   ;;  %v6025_v25 = vld [vmem:[%s7074_s5 + $0x84] ss:$8 sps:$4 sm:$0xff]  }
 0x29e   :  { %3888 = vmatpush1.bf16.msra.mxu1 %v5747_v1  ;;  %v5304_v1 = vcombine.high %v540_v60, %v544_v61  ;;  %v6028_v61 = vld [vmem:[%s7074_s5 + $0x94] ss:$8 sps:$4 sm:$0xff]  }
 0x29f   :  { %4048 = vmatpush1.bf16.msra.mxu0 %v5733_v11  ;;  %3889 = vmatprep.subr.bf16.mxu1 %v5756_v14  ;;  %v6007_v11 = vld [vmem:[%s7074_s5 + $0x24] ss:$8 sps:$4 sm:$0xff]  }
 0x2a0   :  { %4049 = vmatprep.subr.bf16.mxu0 %v5742_v15  ;;  %v548_v14 = vld [vmem:[#allocation8 + $0x158] sm:$0xff] }
 0x2a1   :  { %v552_v15 = vld [vmem:[#allocation8 + $0x178] sm:$0xff] }
 0x2a2   :  { %3890 = vmatpush1.bf16.msra.mxu1 %v5755_v17  ;;  %v5312_v13 = vcombine.high %v548_v14, %v552_v15  ;;  %v6010_v17 = vld [vmem:[%s7074_s5 + $0x34] ss:$8 sps:$4 sm:$0xff]   ;;  %v5311_v23 = vcombine.low %v548_v14, %v552_v15  ;;  %v6031_v14 = vld [vmem:[%s7074_s5 + $0xa4] ss:$8 sps:$4 sm:$0xff]  }
 0x2a3   :  { %4050 = vmatpush1.bf16.msra.mxu0 %v5741_v19  ;;  %5771 = vmatprep.subr.msk.bf16.mxu1 %vm3551_vm4, %v5764_v20  ;;  %v556_v19 = vld [vmem:[#allocation8 + $0x198] sm:$0xff] }
 0x2a4   :  { %4051 = vmatprep.subr.bf16.mxu0 %v5750_v7  ;;  %v560_v20 = vld [vmem:[#allocation8 + $0x1b8] sm:$0xff] }
 0x2a5   :  { %v6008_v7 = vld [vmem:[%s7074_s5 + $0x30] ss:$8 sps:$4 sm:$0xff]   ;;  %v5320_v26 = vcombine.high %v556_v19, %v560_v20 }
 0x2a6   :  { %3892 = vmatpush1.bf16.msra.mxu1 %v3559_v34  ;;  %v6011_v34 = vld [vmem:[%s7074_s5 + $0x40] ss:$8 sps:$4 sm:$0xff]  }
 0x2a7   :  { %4052 = vmatpush1.bf16.msra.mxu0 %v5749_v31  ;;  %4068 = vmatprep.subr.bf16.mxu1 %v5272_v35  ;;  %v5319_v31 = vcombine.low %v556_v19, %v560_v20  ;;  %v5328_v35 = vcombine.high %v564_v28, %v568_v29  ;;  %v612_v15 = vld [vmem:[#allocation8 + $0x358] sm:$0xff]  ;;  %v6034_v19 = vld [vmem:[%s7074_s5 + $0xb4] ss:$8 sps:$4 sm:$0xff]  }
 0x2a8   :  { %4053 = vmatprep.subr.bf16.mxu0 %v5758_v36  ;;  %v6016_v36 = vld [vmem:[%s7074_s5 + $0x54] ss:$8 sps:$4 sm:$0xff]   ;;  %v620_v20 = vld [vmem:[#allocation8 + $0x398] sm:$0xff] }
 0x2a9   :  { %3896 = vmatmul.mubr.bf16.vlgmr.msra.gmra.mrb[12].mxu1 %v6616_v51  ;;  %v6037_v28 = vld [vmem:[%s7074_s5 + $0xc4] ss:$8 sps:$4 sm:$0xff]  }
 0x2aa   :  { %4069 = vmatpush1.bf16.msra.mxu1 %v5271_v37  ;;  %4100 = vmatprep.mubr.bf16.mxu1 %v6566_v30  ;;  %v5999_v30 = vld [vmem:[%s7074_s5] ss:$8 sps:$4 sm:$0xff]   ;;  %v6014_v37 = vld [vmem:[%s7074_s5 + $0x50] ss:$8 sps:$4 sm:$0xff]  }
 0x2ab   :  { %4054 = vmatpush1.bf16.msra.mxu0 %v5757_v39  ;;  %4070 = vmatprep.subr.bf16.mxu1 %v5280_v41  ;;  %v5336_v39 = vcombine.high %v572_v59, %v576_v0  ;;  %v6019_v41 = vld [vmem:[%s7074_s5 + $0x64] ss:$8 sps:$4 sm:$0xff]   ;;  %v6040_v59 = vld [vmem:[%s7074_s5 + $0xd4] ss:$8 sps:$4 sm:$0xff]  }
 0x2ac   :  { %5773 = vmatprep.subr.msk.bf16.mxu0 %vm3551_vm4, %v5766_v42  ;;  %v580_v42 = vld [vmem:[#allocation8 + $0x258] sm:$0xff] }
 0x2ad   :  { %v5344_v47 = vcombine.high %v580_v42, %v584_v43  ;;  %v628_v29 = vld [vmem:[#allocation8 + $0x3d8] sm:$0xff] }
 0x2ae   :  { %4071 = vmatpush1.bf16.msra.mxu1 %v5279_v48  ;;  %v6022_v48 = vld [vmem:[%s7074_s5 + $0x74] ss:$8 sps:$4 sm:$0xff]   ;;  %v636_v0 = vld [vmem:[#allocation8 + $0x418] sm:$0xff] }
 0x2af   :  { %4056 = vmatpush1.bf16.msra.mxu0 %v3565_v50  ;;  %4072 = vmatprep.subr.bf16.mxu1 %v5288_v49  ;;  %v588_v49 = vld [vmem:[#allocation8 + $0x298] sm:$0xff] }
 0x2b0   :  { %5027 = vmatprep.subr.bf16.mxu0 %v6001_v53  ;;  %v592_v50 = vld [vmem:[#allocation8 + $0x2b8] sm:$0xff]  ;;  %v5343_v53 = vcombine.low %v580_v42, %v584_v43 }
 0x2b1   :  { %v5352_v55 = vcombine.high %v588_v49, %v592_v50  ;;  %v6043_v42 = vld [vmem:[%s7074_s5 + $0xe4] ss:$8 sps:$4 sm:$0xff]  }
 0x2b2   :  { %4060 = vmatmul.mubr.bf16.vlgmr.msra.gmra.mrb[12].mxu0 %v6616_v51  ;;  %4073 = vmatpush1.bf16.msra.mxu1 %v5287_v56  ;;  %v596_v56 = vld [vmem:[#allocation8 + $0x2d8] sm:$0xff] }
 0x2b3   :  { %5028 = vmatpush1.bf16.msra.mxu0 %v5999_v30  ;;  %5059 = vmatprep.mubr.bf16.mxu0 %v4249_v62  ;;  %v600_v30 = vld [vmem:[#allocation8 + $0x2f8] sm:$0xff] }
 0x2b4   :  { %4074 = vmatprep.subr.bf16.mxu1 %v5296_v57  ;;  %5029 = vmatprep.subr.bf16.mxu0 %v6004_v58  ;;  %v5351_v57 = vcombine.low %v588_v49, %v592_v50  ;;  %v6023_v58 = vld [vmem:[%s7074_s5 + $0x80] ss:$8 sps:$4 sm:$0xff]   ;;  %v5360_v60 = vcombine.high %v596_v56, %v600_v30  ;;  %v4232_v49 = vpack.c.bf16 %v6636_v18, %v6636_v18  ;;  %v6046_v50 = vld [vmem:[%s7074_s5 + $0xf4] ss:$8 sps:$4 sm:$0xff]  }
 0x2b5   :  { %v604_v62 = vld [vmem:[#allocation8 + $0x318] sm:$0xff] }
 0x2b6   :  { %4075 = vmatpush1.bf16.msra.mxu1 %v5295_v3  ;;  %v608_v3 = vld [vmem:[#allocation8 + $0x338] sm:$0xff] }
 0x2b7   :  { %5030 = vmatpush1.bf16.msra.mxu0 %v6002_v4  ;;  %4076 = vmatprep.subr.bf16.mxu1 %v5304_v1  ;;  %v5359_v4 = vcombine.low %v596_v56, %v600_v30  ;;  %v6026_v1 = vld [vmem:[%s7074_s5 + $0x90] ss:$8 sps:$4 sm:$0xff]   ;;  %v4240_v56 = vmul.bf16 1009007652, %v4232_v49 }
 0x2b8   :  { %5031 = vmatprep.subr.bf16.mxu0 %v6007_v11  ;;  %v5368_v11 = vcombine.high %v604_v62, %v608_v3  ;;  %v644_v43 = vld [vmem:[#allocation8 + $0x458] sm:$0xff] }
 0x2b9   :  { %v660_v30 = vld [vmem:[#allocation8 + $0x4d8] sm:$0xff] }
 0x2ba   :  { %4077 = vmatpush1.bf16.msra.mxu1 %v5303_v22  ;;  %v616_v22 = vld [vmem:[#allocation8 + $0x378] sm:$0xff] }
 0x2bb   :  { %5032 = vmatpush1.bf16.msra.mxu0 %v6005_v16  ;;  %4078 = vmatprep.subr.bf16.mxu1 %v5312_v13  ;;  %v5367_v16 = vcombine.low %v604_v62, %v608_v3  ;;  %v6029_v13 = vld [vmem:[%s7074_s5 + $0xa0] ss:$8 sps:$4 sm:$0xff]  }
 0x2bc   :  { %5033 = vmatprep.subr.bf16.mxu0 %v6010_v17  ;;  %v5376_v17 = vcombine.high %v612_v15, %v616_v22  ;;  %v668_v62 = vld [vmem:[#allocation8 + $0x518] sm:$0xff] }
 0x2bd   :  { %v672_v3 = vld [vmem:[#allocation8 + $0x538] sm:$0xff] }
 0x2be   :  { %4079 = vmatpush1.bf16.msra.mxu1 %v5311_v23  ;;  %v624_v23 = vld [vmem:[#allocation8 + $0x3b8] sm:$0xff] }
 0x2bf   :  { %5034 = vmatpush1.bf16.msra.mxu0 %v6008_v7  ;;  %4080 = vmatprep.subr.bf16.mxu1 %v5320_v26  ;;  %v5375_v7 = vcombine.low %v612_v15, %v616_v22  ;;  %v6032_v26 = vld [vmem:[%s7074_s5 + $0xb0] ss:$8 sps:$4 sm:$0xff]  }
 0x2c0   :  { %5035 = vmatprep.subr.bf16.mxu0 %v6013_v27  ;;  %v5384_v27 = vcombine.high %v620_v20, %v624_v23  ;;  %v676_v15 = vld [vmem:[#allocation8 + $0x558] sm:$0xff] }
 0x2c1   :  { %v680_v22 = vld [vmem:[#allocation8 + $0x578] sm:$0xff] }
 0x2c2   :  { %4081 = vmatpush1.bf16.msra.mxu1 %v5319_v31  ;;  %v632_v31 = vld [vmem:[#allocation8 + $0x3f8] sm:$0xff] }
 0x2c3   :  { %5036 = vmatpush1.bf16.msra.mxu0 %v6011_v34  ;;  %4082 = vmatprep.subr.bf16.mxu1 %v5328_v35  ;;  %v5383_v34 = vcombine.low %v620_v20, %v624_v23  ;;  %v6035_v35 = vld [vmem:[%s7074_s5 + $0xc0] ss:$8 sps:$4 sm:$0xff]  }
 0x2c4   :  { %5037 = vmatprep.subr.bf16.mxu0 %v6016_v36  ;;  %v5392_v36 = vcombine.high %v628_v29, %v632_v31  ;;  %v684_v20 = vld [vmem:[#allocation8 + $0x598] sm:$0xff] }
 0x2c5   :  { %v688_v23 = vld [vmem:[#allocation8 + $0x5b8] sm:$0xff] }
 0x2c6   :  { %4083 = vmatpush1.bf16.msra.mxu1 %v5327_v2  ;;  %v640_v2 = vld [vmem:[#allocation8 + $0x438] sm:$0xff] }
 0x2c7   :  { %5038 = vmatpush1.bf16.msra.mxu0 %v6014_v37  ;;  %4084 = vmatprep.subr.bf16.mxu1 %v5336_v39  ;;  %v5391_v37 = vcombine.low %v628_v29, %v632_v31  ;;  %v6038_v39 = vld [vmem:[%s7074_s5 + $0xd0] ss:$8 sps:$4 sm:$0xff]  }
 0x2c8   :  { %5039 = vmatprep.subr.bf16.mxu0 %v6019_v41  ;;  %v5400_v41 = vcombine.high %v636_v0, %v640_v2  ;;  %v692_v29 = vld [vmem:[#allocation8 + $0x5d8] sm:$0xff] }
 0x2c9   :  { %v696_v31 = vld [vmem:[#allocation8 + $0x5f8] sm:$0xff] }
 0x2ca   :  { %4085 = vmatpush1.bf16.msra.mxu1 %v5335_v44  ;;  %v648_v44 = vld [vmem:[#allocation8 + $0x478] sm:$0xff] }
 0x2cb   :  { %5040 = vmatpush1.bf16.msra.mxu0 %v6017_v45  ;;  %4086 = vmatprep.subr.bf16.mxu1 %v5344_v47  ;;  %v5399_v45 = vcombine.low %v636_v0, %v640_v2  ;;  %v6041_v47 = vld [vmem:[%s7074_s5 + $0xe0] ss:$8 sps:$4 sm:$0xff]  }
 0x2cc   :  { %5041 = vmatprep.subr.bf16.mxu0 %v6022_v48  ;;  %v5408_v48 = vcombine.high %v644_v43, %v648_v44  ;;  %v700_v0 = vld [vmem:[#allocation8 + $0x618] sm:$0xff] }
 0x2cd   :  { %v704_v2 = vld [vmem:[#allocation8 + $0x638] sm:$0xff] }
 0x2ce   :  { %4087 = vmatpush1.bf16.msra.mxu1 %v5343_v53  ;;  %v652_v53 = vld [vmem:[#allocation8 + $0x498] sm:$0xff] }
 0x2cf   :  { %5042 = vmatpush1.bf16.msra.mxu0 %v6020_v52  ;;  %4088 = vmatprep.subr.bf16.mxu1 %v5352_v55  ;;  %v656_v52 = vld [vmem:[#allocation8 + $0x4b8] sm:$0xff]  ;;  %v5407_v55 = vcombine.low %v644_v43, %v648_v44 }
 0x2d0   :  { %5043 = vmatprep.subr.bf16.mxu0 %v6025_v25  ;;  %v6044_v25 = vld [vmem:[%s7074_s5 + $0xf0] ss:$8 sps:$4 sm:$0xff]   ;;  %v5416_v18 = vcombine.high %v652_v53, %v656_v52 }
 0x2d1   :  { %v708_v43 = vld [vmem:[#allocation8 + $0x658] sm:$0xff] }
 0x2d2   :  { %4089 = vmatpush1.bf16.msra.mxu1 %v5351_v57  ;;  %v664_v57 = vld [vmem:[#allocation8 + $0x4f8] sm:$0xff] }
 0x2d3   :  { %5044 = vmatpush1.bf16.msra.mxu0 %v6023_v58  ;;  %4090 = vmatprep.subr.bf16.mxu1 %v5360_v60  ;;  %v6049_v58 = vld [vmem:[%s7074_s5 + $0x104] ss:$8 sps:$4 sm:$0xff]   ;;  %v6047_v60 = vld [vmem:[%s7074_s5 + $0x100] ss:$8 sps:$4 sm:$0xff]  }
 0x2d4   :  { %5045 = vmatprep.subr.bf16.mxu0 %v6028_v61  ;;  %v4248_v61 = vmax.bf16 %v4240_v56, %v4232_v49  ;;  %v712_v44 = vld [vmem:[#allocation8 + $0x678] sm:$0xff] }
 0x2d5   :  { %v6065_v49 = vld [vmem:[%s7074_s5 + $0x160] ss:$8 sps:$4 sm:$0xff]  }
 0x2d6   :  { %4091 = vmatpush1.bf16.msra.mxu1 %v5359_v4  ;;  %v6052_v4 = vld [vmem:[%s7074_s5 + $0x114] ss:$8 sps:$4 sm:$0xff]   ;;  %v724_v56 = vld [vmem:[#allocation8 + $0x6d8] sm:$0xff] }
 0x2d7   :  { %5046 = vmatpush1.bf16.msra.mxu0 %v6026_v1  ;;  %4092 = vmatprep.subr.bf16.mxu1 %v5368_v11  ;;  %v5423_v1 = vcombine.low %v660_v30, %v664_v57  ;;  %v5432_v11 = vcombine.high %v668_v62, %v672_v3 }
 0x2d8   :  { %5047 = vmatprep.subr.bf16.mxu0 %v6031_v14  ;;  %v6050_v14 = vld [vmem:[%s7074_s5 + $0x110] ss:$8 sps:$4 sm:$0xff]  }
 0x2da   :  { %4093 = vmatpush1.bf16.msra.mxu1 %v5367_v16  ;;  %v6055_v16 = vld [vmem:[%s7074_s5 + $0x124] ss:$8 sps:$4 sm:$0xff]  }
 0x2db   :  { %5048 = vmatpush1.bf16.msra.mxu0 %v6029_v13  ;;  %4094 = vmatprep.subr.bf16.mxu1 %v5376_v17  ;;  %v5431_v13 = vcombine.low %v668_v62, %v672_v3  ;;  %v5440_v17 = vcombine.high %v676_v15, %v680_v22  ;;  %v6076_v62 = vld [vmem:[%s7074_s5 + $0x194] ss:$8 sps:$4 sm:$0xff]  }
 0x2dc   :  { %5049 = vmatprep.subr.bf16.mxu0 %v6034_v19  ;;  %v6053_v19 = vld [vmem:[%s7074_s5 + $0x120] ss:$8 sps:$4 sm:$0xff]  }
 0x2de   :  { %4095 = vmatpush1.bf16.msra.mxu1 %v5375_v7  ;;  %v6058_v7 = vld [vmem:[%s7074_s5 + $0x134] ss:$8 sps:$4 sm:$0xff]  }
 0x2df   :  { %5050 = vmatpush1.bf16.msra.mxu0 %v6032_v26  ;;  %4096 = vmatprep.subr.bf16.mxu1 %v5384_v27  ;;  %v5439_v26 = vcombine.low %v676_v15, %v680_v22  ;;  %v5448_v27 = vcombine.high %v684_v20, %v688_v23  ;;  %v6079_v15 = vld [vmem:[%s7074_s5 + $0x1a4] ss:$8 sps:$4 sm:$0xff]  }
 0x2e0   :  { %5051 = vmatprep.subr.bf16.mxu0 %v6037_v28  ;;  %v6056_v28 = vld [vmem:[%s7074_s5 + $0x130] ss:$8 sps:$4 sm:$0xff]  }
 0x2e2   :  { %4097 = vmatpush1.bf16.msra.mxu1 %v5383_v34  ;;  %v6061_v34 = vld [vmem:[%s7074_s5 + $0x144] ss:$8 sps:$4 sm:$0xff]  }
 0x2e3   :  { %5052 = vmatpush1.bf16.msra.mxu0 %v6035_v35  ;;  %4098 = vmatprep.subr.bf16.mxu1 %v5392_v36  ;;  %v5447_v35 = vcombine.low %v684_v20, %v688_v23  ;;  %v5456_v36 = vcombine.high %v692_v29, %v696_v31  ;;  %v6082_v20 = vld [vmem:[%s7074_s5 + $0x1b4] ss:$8 sps:$4 sm:$0xff]  }
 0x2e4   :  { %5053 = vmatprep.subr.bf16.mxu0 %v6040_v59  ;;  %v6059_v59 = vld [vmem:[%s7074_s5 + $0x140] ss:$8 sps:$4 sm:$0xff]  }
 0x2e6   :  { %4099 = vmatpush1.bf16.msra.mxu1 %v5391_v37  ;;  %v6064_v37 = vld [vmem:[%s7074_s5 + $0x154] ss:$8 sps:$4 sm:$0xff]  }
 0x2e7   :  { %5054 = vmatpush1.bf16.msra.mxu0 %v6038_v39  ;;  %4109 = vmatprep.subr.bf16.mxu1 %v5400_v41  ;;  %v5455_v39 = vcombine.low %v692_v29, %v696_v31  ;;  %v5464_v41 = vcombine.high %v700_v0, %v704_v2  ;;  %v6085_v29 = vld [vmem:[%s7074_s5 + $0x1c4] ss:$8 sps:$4 sm:$0xff]  }
 0x2e8   :  { %5055 = vmatprep.subr.bf16.mxu0 %v6043_v42  ;;  %v6062_v42 = vld [vmem:[%s7074_s5 + $0x150] ss:$8 sps:$4 sm:$0xff]  }
 0x2e9   :  { %4101 = vmatmul.mubr.bf16.vlgmr.msra.gmra.mrb[16].mxu1 %v6568_v32  ;;  %v5415_v32 = vcombine.low %v652_v53, %v656_v52  ;;  %v720_v53 = vld [vmem:[#allocation8 + $0x6b8] sm:$0xff]  ;;  %v6070_v52 = vld [vmem:[%s7074_s5 + $0x174] ss:$8 sps:$4 sm:$0xff]  }
 0x2ea   :  { %4110 = vmatpush1.bf16.msra.mxu1 %v5399_v45  ;;  %4141 = vmatprep.mubr.bf16.mxu1 %v6579_v46  ;;  %v5424_v46 = vcombine.high %v660_v30, %v664_v57  ;;  %v6067_v45 = vld [vmem:[%s7074_s5 + $0x164] ss:$8 sps:$4 sm:$0xff]  }
 0x2eb   :  { %5056 = vmatpush1.bf16.msra.mxu0 %v6041_v47  ;;  %4111 = vmatprep.subr.bf16.mxu1 %v5408_v48  ;;  %v5463_v47 = vcombine.low %v700_v0, %v704_v2  ;;  %v5472_v48 = vcombine.high %v708_v43, %v712_v44  ;;  %v728_v30 = vld [vmem:[#allocation8 + $0x6f8] sm:$0xff]  ;;  %v6088_v0 = vld [vmem:[%s7074_s5 + $0x1d4] ss:$8 sps:$4 sm:$0xff]  }
 0x2ec   :  { %5057 = vmatprep.subr.bf16.mxu0 %v6046_v50  ;;  %v716_v50 = vld [vmem:[#allocation8 + $0x698] sm:$0xff]  ;;  %v5487_v3 = vcombine.low %v724_v56, %v728_v30 }
 0x2ed   :  { %v6073_v57 = vld [vmem:[%s7074_s5 + $0x184] ss:$8 sps:$4 sm:$0xff]  }
 0x2ee   :  { %4112 = vmatpush1.bf16.msra.mxu1 %v5407_v55  ;;  %v5471_v55 = vcombine.low %v708_v43, %v712_v44  ;;  %v6091_v43 = vld [vmem:[%s7074_s5 + $0x1e4] ss:$8 sps:$4 sm:$0xff]  }
 0x2ef   :  { %5058 = vmatpush1.bf16.msra.mxu0 %v6044_v25  ;;  %4113 = vmatprep.subr.bf16.mxu1 %v5416_v18  ;;  %v5480_v25 = vcombine.high %v716_v50, %v720_v53  ;;  %v6068_v18 = vld [vmem:[%s7074_s5 + $0x170] ss:$8 sps:$4 sm:$0xff]  }
 0x2f0   :  { %5068 = vmatprep.subr.bf16.mxu0 %v6049_v58  ;;  %v5479_v58 = vcombine.low %v716_v50, %v720_v53  ;;  %v6094_v50 = vld [vmem:[%s7074_s5 + $0x1f4] ss:$8 sps:$4 sm:$0xff]  }
 0x2f2   :  { %5060 = vmatmul.mubr.bf16.vlgmr.msra.gmra.mrb[16].mxu0 %v4248_v61  ;;  %4114 = vmatpush1.bf16.msra.mxu1 %v5415_v32  ;;  %v5488_v32 = vcombine.high %v724_v56, %v728_v30  ;;  %v736_v61 = vld [vmem:[#allocation8 + $0x738] sm:$0xff] }
 0x2f3   :  { %4115 = vmatprep.subr.bf16.mxu1 %v5424_v46  ;;  %5069 = vmatpush1.bf16.msra.mxu0 %v6047_v60  ;;  %v6071_v46 = vld [vmem:[%s7074_s5 + $0x180] ss:$8 sps:$4 sm:$0xff]   ;;  %v6097_v56 = vld [vmem:[%s7074_s5 + $0x204] ss:$8 sps:$4 sm:$0xff]  }
 0x2f4   :  { %5070 = vmatprep.subr.bf16.mxu0 %v6052_v4  ;;  %v732_v60 = vld [vmem:[#allocation8 + $0x718] sm:$0xff] }
 0x2f5   :  { %v5496_v4 = vcombine.high %v732_v60, %v736_v61  ;;  %v5495_v22 = vcombine.low %v732_v60, %v736_v61  ;;  %v808_v60 = vld [vmem:[#allocation8 + $0x978] sm:$0xff] }
 0x2f6   :  { %4116 = vmatpush1.bf16.msra.mxu1 %v5423_v1  ;;  %v6074_v1 = vld [vmem:[%s7074_s5 + $0x190] ss:$8 sps:$4 sm:$0xff]  }
 0x2f7   :  { %4117 = vmatprep.subr.bf16.mxu1 %v5432_v11  ;;  %5071 = vmatpush1.bf16.msra.mxu0 %v6050_v14  ;;  %v740_v11 = vld [vmem:[#allocation8 + $0x758] sm:$0xff] }
 0x2f8   :  { %5072 = vmatprep.subr.bf16.mxu0 %v6055_v16  ;;  %v744_v14 = vld [vmem:[#allocation8 + $0x778] sm:$0xff] }
 0x2f9   :  { %v5504_v16 = vcombine.high %v740_v11, %v744_v14  ;;  %v5503_v23 = vcombine.low %v740_v11, %v744_v14  ;;  %v820_v14 = vld [vmem:[#allocation8 + $0x9d8] sm:$0xff] }
 0x2fa   :  { %4118 = vmatpush1.bf16.msra.mxu1 %v5431_v13  ;;  %v6077_v13 = vld [vmem:[%s7074_s5 + $0x1a0] ss:$8 sps:$4 sm:$0xff]  }
 0x2fb   :  { %4119 = vmatprep.subr.bf16.mxu1 %v5440_v17  ;;  %5073 = vmatpush1.bf16.msra.mxu0 %v6053_v19  ;;  %v748_v17 = vld [vmem:[#allocation8 + $0x798] sm:$0xff] }
 0x2fc   :  { %5074 = vmatprep.subr.bf16.mxu0 %v6058_v7  ;;  %v752_v19 = vld [vmem:[#allocation8 + $0x7b8] sm:$0xff] }
 0x2fd   :  { %v5512_v7 = vcombine.high %v748_v17, %v752_v19  ;;  %v5511_v31 = vcombine.low %v748_v17, %v752_v19  ;;  %v832_v17 = vld [vmem:[#allocation8 + $0xa38] sm:$0xff] }
 0x2fe   :  { %4120 = vmatpush1.bf16.msra.mxu1 %v5439_v26  ;;  %v6080_v26 = vld [vmem:[%s7074_s5 + $0x1b0] ss:$8 sps:$4 sm:$0xff]  }
 0x2ff   :  { %4121 = vmatprep.subr.bf16.mxu1 %v5448_v27  ;;  %5075 = vmatpush1.bf16.msra.mxu0 %v6056_v28  ;;  %v756_v27 = vld [vmem:[#allocation8 + $0x7d8] sm:$0xff] }
 0x300   :  { %5076 = vmatprep.subr.bf16.mxu0 %v6061_v34  ;;  %v760_v28 = vld [vmem:[#allocation8 + $0x7f8] sm:$0xff] }
 0x301   :  { %v5520_v34 = vcombine.high %v756_v27, %v760_v28  ;;  %v5519_v2 = vcombine.low %v756_v27, %v760_v28  ;;  %v844_v28 = vld [vmem:[#allocation8 + $0xa98] sm:$0xff] }
 0x302   :  { %4122 = vmatpush1.bf16.msra.mxu1 %v5447_v35  ;;  %v6083_v35 = vld [vmem:[%s7074_s5 + $0x1c0] ss:$8 sps:$4 sm:$0xff]  }
 0x303   :  { %4123 = vmatprep.subr.bf16.mxu1 %v5456_v36  ;;  %5077 = vmatpush1.bf16.msra.mxu0 %v6059_v59  ;;  %v764_v36 = vld [vmem:[#allocation8 + $0x818] sm:$0xff] }
 0x304   :  { %5078 = vmatprep.subr.bf16.mxu0 %v6064_v37  ;;  %v768_v59 = vld [vmem:[#allocation8 + $0x838] sm:$0xff] }
 0x305   :  { %v5528_v37 = vcombine.high %v764_v36, %v768_v59  ;;  %v5527_v44 = vcombine.low %v764_v36, %v768_v59  ;;  %v856_v36 = vld [vmem:[#allocation8 + $0xaf8] sm:$0xff] }
 0x306   :  { %4124 = vmatpush1.bf16.msra.mxu1 %v5455_v39  ;;  %v6086_v39 = vld [vmem:[%s7074_s5 + $0x1d0] ss:$8 sps:$4 sm:$0xff]  }
 0x307   :  { %4125 = vmatprep.subr.bf16.mxu1 %v5464_v41  ;;  %5079 = vmatpush1.bf16.msra.mxu0 %v6062_v42  ;;  %v772_v41 = vld [vmem:[#allocation8 + $0x858] sm:$0xff] }
 0x308   :  { %5080 = vmatprep.subr.bf16.mxu0 %v6067_v45  ;;  %v776_v42 = vld [vmem:[#allocation8 + $0x878] sm:$0xff] }
 0x309   :  { %v5536_v45 = vcombine.high %v772_v41, %v776_v42  ;;  %v5535_v53 = vcombine.low %v772_v41, %v776_v42  ;;  %v868_v42 = vld [vmem:[#allocation8 + $0xb58] sm:$0xff] }
 0x30a   :  { %4126 = vmatpush1.bf16.msra.mxu1 %v5463_v47  ;;  %v6089_v47 = vld [vmem:[%s7074_s5 + $0x1e0] ss:$8 sps:$4 sm:$0xff]  }
 0x30b   :  { %4127 = vmatprep.subr.bf16.mxu1 %v5472_v48  ;;  %5081 = vmatpush1.bf16.msra.mxu0 %v6065_v49  ;;  %v780_v48 = vld [vmem:[#allocation8 + $0x898] sm:$0xff] }
 0x30c   :  { %5082 = vmatprep.subr.bf16.mxu0 %v6070_v52  ;;  %v784_v49 = vld [vmem:[#allocation8 + $0x8b8] sm:$0xff] }
 0x30d   :  { %v5544_v52 = vcombine.high %v780_v48, %v784_v49 }
 0x30e   :  { %4128 = vmatpush1.bf16.msra.mxu1 %v5471_v55  ;;  %v6092_v55 = vld [vmem:[%s7074_s5 + $0x1f0] ss:$8 sps:$4 sm:$0xff]  }
 0x30f   :  { %4129 = vmatprep.subr.bf16.mxu1 %v5480_v25  ;;  %5083 = vmatpush1.bf16.msra.mxu0 %v6068_v18  ;;  %v788_v25 = vld [vmem:[#allocation8 + $0x8d8] sm:$0xff] }
 0x310   :  { %5084 = vmatprep.subr.bf16.mxu0 %v6073_v57  ;;  %v792_v18 = vld [vmem:[#allocation8 + $0x8f8] sm:$0xff] }
 0x311   :  { %v5552_v30 = vcombine.high %v788_v25, %v792_v18  ;;  %v800_v57 = vld [vmem:[#allocation8 + $0x938] sm:$0xff] }
 0x312   :  { %4130 = vmatpush1.bf16.msra.mxu1 %v5479_v58  ;;  %v5551_v58 = vcombine.low %v788_v25, %v792_v18  ;;  %v892_v18 = vld [vmem:[#allocation8 + $0xc18] sm:$0xff] }
 0x313   :  { %4131 = vmatprep.subr.bf16.mxu1 %v5488_v32  ;;  %5085 = vmatpush1.bf16.msra.mxu0 %v6071_v46  ;;  %v804_v46 = vld [vmem:[#allocation8 + $0x958] sm:$0xff] }
 0x314   :  { %5086 = vmatprep.subr.bf16.mxu0 %v6076_v62  ;;  %v5568_v62 = vcombine.high %v804_v46, %v808_v60 }
 0x316   :  { %4132 = vmatpush1.bf16.msra.mxu1 %v5487_v3  ;;  %v812_v3 = vld [vmem:[#allocation8 + $0x998] sm:$0xff] }
 0x317   :  { %4133 = vmatprep.subr.bf16.mxu1 %v5496_v4  ;;  %5087 = vmatpush1.bf16.msra.mxu0 %v6074_v1  ;;  %v816_v4 = vld [vmem:[#allocation8 + $0x9b8] sm:$0xff]  ;;  %v5567_v1 = vcombine.low %v804_v46, %v808_v60 }
 0x318   :  { %5088 = vmatprep.subr.bf16.mxu0 %v6079_v15  ;;  %v5576_v11 = vcombine.high %v812_v3, %v816_v4  ;;  %v824_v15 = vld [vmem:[#allocation8 + $0x9f8] sm:$0xff] }
 0x319   :  { %v5583_v19 = vcombine.low %v820_v14, %v824_v15  ;;  %v908_v46 = vld [vmem:[#allocation8 + $0xc98] sm:$0xff] }
 0x31a   :  { %4134 = vmatpush1.bf16.msra.mxu1 %v5495_v22  ;;  %v5575_v22 = vcombine.low %v812_v3, %v816_v4  ;;  %v912_v60 = vld [vmem:[#allocation8 + $0xcb8] sm:$0xff] }
 0x31b   :  { %4135 = vmatprep.subr.bf16.mxu1 %v5504_v16  ;;  %5089 = vmatpush1.bf16.msra.mxu0 %v6077_v13  ;;  %v5584_v16 = vcombine.high %v820_v14, %v824_v15  ;;  %v828_v13 = vld [vmem:[#allocation8 + $0xa18] sm:$0xff] }
 0x31c   :  { %5090 = vmatprep.subr.bf16.mxu0 %v6082_v20  ;;  %v5592_v20 = vcombine.high %v828_v13, %v832_v17  ;;  %v916_v3 = vld [vmem:[#allocation8 + $0xcd8] sm:$0xff] }
 0x31d   :  { %v920_v4 = vld [vmem:[#allocation8 + $0xcf8] sm:$0xff] }
 0x31e   :  { %4136 = vmatpush1.bf16.msra.mxu1 %v5503_v23  ;;  %v836_v23 = vld [vmem:[#allocation8 + $0xa58] sm:$0xff] }
 0x31f   :  { %4137 = vmatprep.subr.bf16.mxu1 %v5512_v7  ;;  %5091 = vmatpush1.bf16.msra.mxu0 %v6080_v26  ;;  %v840_v7 = vld [vmem:[#allocation8 + $0xa78] sm:$0xff]  ;;  %v5591_v26 = vcombine.low %v828_v13, %v832_v17 }
 0x320   :  { %5092 = vmatprep.subr.bf16.mxu0 %v6085_v29  ;;  %v5600_v27 = vcombine.high %v836_v23, %v840_v7  ;;  %v848_v29 = vld [vmem:[#allocation8 + $0xab8] sm:$0xff] }
 0x321   :  { %v5607_v59 = vcombine.low %v844_v28, %v848_v29  ;;  %v924_v14 = vld [vmem:[#allocation8 + $0xd18] sm:$0xff] }
 0x322   :  { %4138 = vmatpush1.bf16.msra.mxu1 %v5511_v31  ;;  %v5599_v31 = vcombine.low %v836_v23, %v840_v7  ;;  %v928_v15 = vld [vmem:[#allocation8 + $0xd38] sm:$0xff]  ;;  %v6853_v23 = vld [vmem:[#allocation10] sm:$0xff] }
 0x323   :  { %4139 = vmatprep.subr.bf16.mxu1 %v5520_v34  ;;  %5093 = vmatpush1.bf16.msra.mxu0 %v6083_v35  ;;  %v5608_v34 = vcombine.high %v844_v28, %v848_v29  ;;  %v852_v35 = vld [vmem:[#allocation8 + $0xad8] sm:$0xff]  ;;  %v5687_v17 = vcombine.low %v924_v14, %v928_v15  ;;  %v1018_v7 = vrot.slane %v6853_v23, %v155_v38 }
 0x324   :  { %5094 = vmatprep.subr.bf16.mxu0 %v6088_v0  ;;  %v5616_v0 = vcombine.high %v852_v35, %v856_v36  ;;  %v936_v13 = vld [vmem:[#allocation8 + $0xd78] sm:$0xff] }
 0x326   :  { %4140 = vmatpush1.bf16.msra.mxu1 %v5519_v2  ;;  %v860_v2 = vld [vmem:[#allocation8 + $0xb18] sm:$0xff] }
 0x327   :  { %4150 = vmatprep.subr.bf16.mxu1 %v5528_v37  ;;  %5095 = vmatpush1.bf16.msra.mxu0 %v6086_v39  ;;  %v864_v37 = vld [vmem:[#allocation8 + $0xb38] sm:$0xff]  ;;  %v5615_v39 = vcombine.low %v852_v35, %v856_v36 }
 0x328   :  { %5096 = vmatprep.subr.bf16.mxu0 %v6091_v43  ;;  %v5624_v41 = vcombine.high %v860_v2, %v864_v37  ;;  %v872_v43 = vld [vmem:[#allocation8 + $0xb78] sm:$0xff] }
 0x329   :  { %4142 = vmatmul.mubr.bf16.vlgmr.msra.gmra.mrb[16].mxu1 %v6610_v63  ;;  %v5543_v63 = vcombine.low %v780_v48, %v784_v49  ;;  %v880_v48 = vld [vmem:[#allocation8 + $0xbb8] sm:$0xff]  ;;  %v5631_v49 = vcombine.low %v868_v42, %v872_v43 }
 0x32a   :  { %4151 = vmatpush1.bf16.msra.mxu1 %v5527_v44  ;;  %4182 = vmatprep.mubr.bf16.mxu1 %v6589_v12  ;;  %v796_v12 = vld [vmem:[#allocation8 + $0x918] sm:$0xff]  ;;  %v5623_v44 = vcombine.low %v860_v2, %v864_v37 }
 0x32b   :  { %4152 = vmatprep.subr.bf16.mxu1 %v5536_v45  ;;  %5097 = vmatpush1.bf16.msra.mxu0 %v6089_v47  ;;  %v5560_v32 = vcombine.high %v796_v12, %v800_v57  ;;  %v5559_v61 = vcombine.low %v796_v12, %v800_v57  ;;  %v5632_v45 = vcombine.high %v868_v42, %v872_v43  ;;  %v876_v47 = vld [vmem:[#allocation8 + $0xb98] sm:$0xff] }
 0x32c   :  { %5098 = vmatprep.subr.bf16.mxu0 %v6094_v50  ;;  %v5640_v50 = vcombine.high %v876_v47, %v880_v48  ;;  %v900_v12 = vld [vmem:[#allocation8 + $0xc58] sm:$0xff] }
 0x32d   :  { %v904_v57 = vld [vmem:[#allocation8 + $0xc78] sm:$0xff] }
 0x32e   :  { %4153 = vmatpush1.bf16.msra.mxu1 %v5535_v53  ;;  %v884_v53 = vld [vmem:[#allocation8 + $0xbd8] sm:$0xff] }
 0x32f   :  { %4154 = vmatprep.subr.bf16.mxu1 %v5544_v52  ;;  %5099 = vmatpush1.bf16.msra.mxu0 %v6092_v55  ;;  %v888_v52 = vld [vmem:[#allocation8 + $0xbf8] sm:$0xff]  ;;  %v5639_v55 = vcombine.low %v876_v47, %v880_v48  ;;  %v1030_v47 = vrot.slane %v6853_v23, %v167_v24 }
 0x330   :  { %5109 = vmatprep.subr.bf16.mxu0 %v6097_v56  ;;  %v5648_v25 = vcombine.high %v884_v53, %v888_v52  ;;  %v896_v56 = vld [vmem:[#allocation8 + $0xc38] sm:$0xff] }
 0x331   :  { %v956_v42 = vld [vmem:[#allocation8 + $0xe18] sm:$0xff] }
 0x332   :  { %4155 = vmatpush1.bf16.msra.mxu1 %v5543_v63  ;;  %v5647_v63 = vcombine.low %v884_v53, %v888_v52  ;;  %v960_v43 = vld [vmem:[#allocation8 + $0xe38] sm:$0xff] }
 0x333   :  { %4156 = vmatprep.subr.bf16.mxu1 %v5552_v30  ;;  %v5656_v30 = vcombine.high %v892_v18, %v896_v56  ;;  %v5720_v48 = vcombine.high %v956_v42, %v960_v43  ;;  %v964_v53 = vld [vmem:[#allocation8 + $0xe58] sm:$0xff]  ;;  %v5719_v24 = vcombine.low %v956_v42, %v960_v43 }
 0x334   :  { %v968_v52 = vld [vmem:[#allocation8 + $0xe78] sm:$0xff] }
 0x335   :  { %v6118_v42 = vld [vmem:[%s7074_s5 + $0x270] ss:$8 sps:$4 sm:$0xff]   ;;  %v6123_v43 = vld [vmem:[%s7074_s5 + $0x284] ss:$8 sps:$4 sm:$0xff]  }
 0x336   :  { %4157 = vmatpush1.bf16.msra.mxu1 %v5551_v58  ;;  %v5655_v58 = vcombine.low %v892_v18, %v896_v56  ;;  %v6100_v18 = vld [vmem:[%s7074_s5 + $0x214] ss:$8 sps:$4 sm:$0xff]  }
 0x337   :  { %4158 = vmatprep.subr.bf16.mxu1 %v5560_v32  ;;  %v5664_v32 = vcombine.high %v900_v12, %v904_v57 }
 0x33a   :  { %4159 = vmatpush1.bf16.msra.mxu1 %v5559_v61  ;;  %v5663_v61 = vcombine.low %v900_v12, %v904_v57  ;;  %v5728_v12 = vcombine.high %v964_v53, %v968_v52 }
 0x33b   :  { %4160 = vmatprep.subr.bf16.mxu1 %v5568_v62  ;;  %v5672_v62 = vcombine.high %v908_v46, %v912_v60 }
 0x33e   :  { %4161 = vmatpush1.bf16.msra.mxu1 %v5567_v1  ;;  %v5671_v1 = vcombine.low %v908_v46, %v912_v60  ;;  %v976_v46 = vld [vmem:[#allocation8 + $0xeb8] sm:$0xff] }
 0x33f   :  { %4162 = vmatprep.subr.bf16.mxu1 %v5576_v11  ;;  %v5680_v11 = vcombine.high %v916_v3, %v920_v4 }
 0x342   :  { %4163 = vmatpush1.bf16.msra.mxu1 %v5575_v22  ;;  %v5679_v22 = vcombine.low %v916_v3, %v920_v4 }
 0x343   :  { %4164 = vmatprep.subr.bf16.mxu1 %v5584_v16  ;;  %v5688_v16 = vcombine.high %v924_v14, %v928_v15  ;;  %v984_v14 = vld [vmem:[#allocation8 + $0xef8] sm:$0xff] }
 0x346   :  { %4165 = vmatpush1.bf16.msra.mxu1 %v5583_v19  ;;  %v940_v19 = vld [vmem:[#allocation8 + $0xd98] sm:$0xff] }
 0x347   :  { %4166 = vmatprep.subr.bf16.mxu1 %v5592_v20  ;;  %v944_v20 = vld [vmem:[#allocation8 + $0xdb8] sm:$0xff] }
 0x348   :  { %v5704_v28 = vcombine.high %v940_v19, %v944_v20  ;;  %v5703_v2 = vcombine.low %v940_v19, %v944_v20  ;;  %v6109_v19 = vld [vmem:[%s7074_s5 + $0x244] ss:$8 sps:$4 sm:$0xff]  }
 0x34a   :  { %4167 = vmatpush1.bf16.msra.mxu1 %v5591_v26  ;;  %v1022_v26 = vrot.slane %v6853_v23, %v159_v10 }
 0x34b   :  { %4168 = vmatprep.subr.bf16.mxu1 %v5600_v27 }
 0x34e   :  { %4169 = vmatpush1.bf16.msra.mxu1 %v5599_v31  ;;  %v948_v31 = vld [vmem:[#allocation8 + $0xdd8] sm:$0xff] }
 0x34f   :  { %4170 = vmatprep.subr.bf16.mxu1 %v5608_v34  ;;  %v952_v34 = vld [vmem:[#allocation8 + $0xdf8] sm:$0xff] }
 0x350   :  { %v5712_v38 = vcombine.high %v948_v31, %v952_v34 }
 0x352   :  { %4171 = vmatpush1.bf16.msra.mxu1 %v5607_v59 }
 0x353   :  { %4172 = vmatprep.subr.bf16.mxu1 %v5616_v0 }
 0x356   :  { %4173 = vmatpush1.bf16.msra.mxu1 %v5615_v39 }
 0x357   :  { %4174 = vmatprep.subr.bf16.mxu1 %v5624_v41 }
 0x35a   :  { %4175 = vmatpush1.bf16.msra.mxu1 %v5623_v44 }
 0x35b   :  { %4176 = vmatprep.subr.bf16.mxu1 %v5632_v45  ;;  %v5711_v45 = vcombine.low %v948_v31, %v952_v34 }
 0x35e   :  { %4177 = vmatpush1.bf16.msra.mxu1 %v5631_v49 }
 0x35f   :  { %4178 = vmatprep.subr.bf16.mxu1 %v5640_v50  ;;  %v6095_v50 = vld [vmem:[%s7074_s5 + $0x200] ss:$8 sps:$4 sm:$0xff]  }
 0x362   :  { %4179 = vmatpush1.bf16.msra.mxu1 %v5639_v55 }
 0x363   :  { %4180 = vmatprep.subr.bf16.mxu1 %v5648_v25 }
 0x366   :  { %4181 = vmatpush1.bf16.msra.mxu1 %v5647_v63 }
 0x367   :  { %4191 = vmatprep.subr.bf16.mxu1 %v5656_v30 }
 0x369   :  { %4183 = vmatmul.mubr.bf16.vlgmr.msra.gmra.mrb[16].mxu1 %v6587_v9  ;;  %v932_v9 = vld [vmem:[#allocation8 + $0xd58] sm:$0xff] }
 0x36a   :  { %4192 = vmatpush1.bf16.msra.mxu1 %v5655_v58  ;;  %5776 = vmatprep.mubr.msk.bf16.mxu1 %vm3547_vm3, %v6596_v33  ;;  %v5696_v33 = vcombine.high %v932_v9, %v936_v13  ;;  %v5695_v27 = vcombine.low %v932_v9, %v936_v13  ;;  %v6098_v58 = vld [vmem:[%s7074_s5 + $0x210] ss:$8 sps:$4 sm:$0xff]  }
 0x36b   :  { %4193 = vmatprep.subr.bf16.mxu1 %v5664_v32  ;;  %v972_v32 = vld [vmem:[#allocation8 + $0xe98] sm:$0xff] }
 0x36c   :  { %v5736_v4 = vcombine.high %v972_v32, %v976_v46  ;;  %v6104_v13 = vld [vmem:[%s7074_s5 + $0x230] ss:$8 sps:$4 sm:$0xff]  }
 0x36e   :  { %4194 = vmatpush1.bf16.msra.mxu1 %v5663_v61  ;;  %v6103_v61 = vld [vmem:[%s7074_s5 + $0x224] ss:$8 sps:$4 sm:$0xff]  }
 0x36f   :  { %4195 = vmatprep.subr.bf16.mxu1 %v5672_v62  ;;  %v5727_v62 = vcombine.low %v964_v53, %v968_v52  ;;  %v6133_v53 = vld [vmem:[%s7074_s5 + $0x2c0] ss:$8 sps:$4 sm:$0xff]   ;;  %v1026_v52 = vrot.slane %v6853_v23, %v163_v21 }
 0x370   :  { %v6139_v21 = vld [vmem:[%s7074_s5 + $0x2e0] ss:$8 sps:$4 sm:$0xff]  }
 0x372   :  { %4196 = vmatpush1.bf16.msra.mxu1 %v5671_v1  ;;  %v6101_v1 = vld [vmem:[%s7074_s5 + $0x220] ss:$8 sps:$4 sm:$0xff]  }
 0x373   :  { %4197 = vmatprep.subr.bf16.mxu1 %v5680_v11  ;;  %v980_v11 = vld [vmem:[#allocation8 + $0xed8] sm:$0xff] }
 0x374   :  { %v5744_v9 = vcombine.high %v980_v11, %v984_v14  ;;  %v5743_v20 = vcombine.low %v980_v11, %v984_v14  ;;  %v6157_v11 = vld [vmem:[%s7074_s5 + $0x340] ss:$8 sps:$4 sm:$0xff]   ;;  %v6162_v14 = vld [vmem:[%s7074_s5 + $0x354] ss:$8 sps:$4 sm:$0xff]  }
 0x376   :  { %4198 = vmatpush1.bf16.msra.mxu1 %v5679_v22  ;;  %v6106_v22 = vld [vmem:[%s7074_s5 + $0x234] ss:$8 sps:$4 sm:$0xff]  }
 0x377   :  { %4199 = vmatprep.subr.bf16.mxu1 %v5688_v16  ;;  %v5735_v16 = vcombine.low %v972_v32, %v976_v46  ;;  %v6150_v46 = vld [vmem:[%s7074_s5 + $0x314] ss:$8 sps:$4 sm:$0xff]  }
 0x37a   :  { %4200 = vmatpush1.bf16.msra.mxu1 %v5687_v17  ;;  %v988_v17 = vld [vmem:[#allocation8 + $0xf18] sm:$0xff] }
 0x37b   :  { %4201 = vmatprep.subr.bf16.mxu1 %v5696_v33  ;;  %v992_v33 = vld [vmem:[#allocation8 + $0xf38] sm:$0xff] }
 0x37c   :  { %v3897_v29 = vpop.f32.mrb[12].mxu1  ;;  %v5751_v31 = vcombine.low %v988_v17, %v992_v33 }
 0x37d   :  { %v5910_v35 = vadd.f32 %v3897_v29, %v1018_v7  ;;  %v3899_v36 = vpop.f32.mrb[13].mxu1  ;;  %v5752_v7 = vcombine.high %v988_v17, %v992_v33  ;;  %v6112_v29 = vld [vmem:[%s7074_s5 + $0x254] ss:$8 sps:$4 sm:$0xff]   ;;  %v6171_v17 = vld [vmem:[%s7074_s5 + $0x384] ss:$8 sps:$4 sm:$0xff]  }
 0x37e   :  { %v5911_v59 = vadd.f32 %v3899_v36, %v1022_v26  ;;  %v3901_v0 = vpop.f32.mrb[14].mxu1  ;;  %4202 = vmatpush1.bf16.msra.mxu1 %v5695_v27  ;;  %v6107_v26 = vld [vmem:[%s7074_s5 + $0x240] ss:$8 sps:$4 sm:$0xff]  }
 0x37f   :  { %v4234_v37 = vpack.c.bf16 %v5910_v35, %v5910_v35  ;;  %v3902_v39 = vpop.f32.mrb[15].mxu1  ;;  %4203 = vmatprep.subr.bf16.mxu1 %v5704_v28  ;;  %v996_v27 = vld [vmem:[#allocation8 + $0xf58] sm:$0xff] }
 0x380   :  { %v4235_v41 = vpack.c.bf16 %v5911_v59, %v5911_v59  ;;  %v1000_v28 = vld [vmem:[#allocation8 + $0xf78] sm:$0xff] }
 0x381   :  { %v4242_v10 = vmul.bf16 1009007652, %v4234_v37  ;;  %v5760_v34 = vcombine.high %v996_v27, %v1000_v28  ;;  %v6110_v35 = vld [vmem:[%s7074_s5 + $0x250] ss:$8 sps:$4 sm:$0xff]   ;;  %v6115_v59 = vld [vmem:[%s7074_s5 + $0x264] ss:$8 sps:$4 sm:$0xff]   ;;  %v5759_v0 = vcombine.low %v996_v27, %v1000_v28 }
 0x382   :  { %v4243_v44 = vmul.bf16 1009007652, %v4235_v41  ;;  %4204 = vmatpush1.bf16.msra.mxu1 %v5703_v2  ;;  %v1004_v36 = vld [vmem:[#allocation8 + $0xf98] sm:$0xff]  ;;  %v6180_v27 = vld [vmem:[%s7074_s5 + $0x3b4] ss:$8 sps:$4 sm:$0xff]  }
 0x383   :  { %4205 = vmatprep.subr.bf16.mxu1 %v5712_v38  ;;  %v4250_v55 = vmax.bf16 %v4242_v10, %v4234_v37  ;;  %v5768_v2 = vcombine.high %v1004_v36, %v1004_v36  ;;  %v5767_v37 = vcombine.low %v1004_v36, %v1004_v36  ;;  %v6113_v39 = vld [vmem:[%s7074_s5 + $0x260] ss:$8 sps:$4 sm:$0xff]   ;;  %v6120_v38 = vld [vmem:[%s7074_s5 + $0x274] ss:$8 sps:$4 sm:$0xff]   ;;  %v6178_v28 = vld [vmem:[%s7074_s5 + $0x3b0] ss:$8 sps:$4 sm:$0xff]  }
 0x384   :  { %v4251_v49 = vmax.bf16 %v4243_v44, %v4235_v41  ;;  %v6121_v10 = vld [vmem:[%s7074_s5 + $0x280] ss:$8 sps:$4 sm:$0xff]   ;;  %v6126_v44 = vld [vmem:[%s7074_s5 + $0x294] ss:$8 sps:$4 sm:$0xff]  }
 0x385   :  { %v6867_v25 = vpop.f32.mrb[12].mxu0  ;;  %v3571_v41 = vsel %vm3551_vm4, %v5767_v37, 0  ;;  %v6169_v33 = vld [vmem:[%s7074_s5 + $0x380] ss:$8 sps:$4 sm:$0xff]   ;;  %v1034_v37 = vrot.slane %v6853_v23, %v171_v54  ;;  %v4381_v54 = vld [vmem:[#allocation11] sm:$0x3] }
 0x386   :  { %v4063_v56 = vpop.f32.mrb[13].mxu0  ;;  %4206 = vmatpush1.bf16.msra.mxu1 %v5711_v45  ;;  %5100 = vmatprep.mubr.bf16.mxu0 %v4251_v49  ;;  %v6124_v45 = vld [vmem:[%s7074_s5 + $0x290] ss:$8 sps:$4 sm:$0xff]   ;;  %v4380_v36 = vld [vmem:[%s7074_s5 + $0x3e0] sm:$0xff]  ;;  %v4386_v5 = vrot.slane %v4381_v54, %v6547_v6 }
 0x387   :  { %v5913_v63 = vadd.f32 %v4063_v56, %v1030_v47  ;;  %v4065_v30 = vpop.f32.mrb[14].mxu0  ;;  %5101 = vmatmul.mubr.bf16.vlgmr.msra.gmra.mrb[16].mxu0 %v4250_v55  ;;  %4207 = vmatprep.subr.bf16.mxu1 %v5720_v48  ;;  %v6129_v47 = vld [vmem:[%s7074_s5 + $0x2a4] ss:$8 sps:$4 sm:$0xff]   ;;  %v6132_v48 = vld [vmem:[%s7074_s5 + $0x2b4] ss:$8 sps:$4 sm:$0xff]   ;;  %v5912_v56 = vadd.f32 %v6867_v25, %v1026_v52 }
 0x388   :  { %v4066_v57 = vpop.f32.mrb[15].mxu0  ;;  %5110 = vmatpush1.bf16.msra.mxu0 %v6095_v50  ;;  %v6130_v49 = vld [vmem:[%s7074_s5 + $0x2b0] ss:$8 sps:$4 sm:$0xff]   ;;  %v6135_v50 = vld [vmem:[%s7074_s5 + $0x2c4] ss:$8 sps:$4 sm:$0xff]  }
 0x389   :  { %v4237_v60 = vpack.c.bf16 %v5913_v63, %v5913_v63  ;;  %5111 = vmatprep.subr.bf16.mxu0 %v6100_v18  ;;  %v6138_v55 = vld [vmem:[%s7074_s5 + $0x2d4] ss:$8 sps:$4 sm:$0xff]   ;;  %v6136_v18 = vld [vmem:[%s7074_s5 + $0x2d0] ss:$8 sps:$4 sm:$0xff]   ;;  %v4236_v63 = vpack.c.bf16 %v5912_v56, %v5912_v56  ;;  %v6147_v57 = vld [vmem:[%s7074_s5 + $0x304] ss:$8 sps:$4 sm:$0xff]  }
 0x38a   :  { %4208 = vmatpush1.bf16.msra.mxu1 %v5719_v24  ;;  %v6141_v24 = vld [vmem:[%s7074_s5 + $0x2e4] ss:$8 sps:$4 sm:$0xff]   ;;  %v6144_v30 = vld [vmem:[%s7074_s5 + $0x2f4] ss:$8 sps:$4 sm:$0xff]   ;;  %v6142_v25 = vld [vmem:[%s7074_s5 + $0x2f0] ss:$8 sps:$4 sm:$0xff]  }
 0x38b   :  { %v4245_v3 = vmul.bf16 1009007652, %v4237_v60  ;;  %4209 = vmatprep.subr.bf16.mxu1 %v5728_v12  ;;  %v4244_v12 = vmul.bf16 1009007652, %v4236_v63 }
 0x38c   :  { %5112 = vmatpush1.bf16.msra.mxu0 %v6098_v58  ;;  %v6145_v58 = vld [vmem:[%s7074_s5 + $0x300] ss:$8 sps:$4 sm:$0xff]  }
 0x38d   :  { %v4253_v15 = vmax.bf16 %v4245_v3, %v4237_v60  ;;  %5113 = vmatprep.subr.bf16.mxu0 %v6103_v61  ;;  %v4252_v32 = vmax.bf16 %v4244_v12, %v4236_v63  ;;  %v6148_v60 = vld [vmem:[%s7074_s5 + $0x310] ss:$8 sps:$4 sm:$0xff]   ;;  %v6153_v61 = vld [vmem:[%s7074_s5 + $0x324] ss:$8 sps:$4 sm:$0xff]   ;;  %v6156_v3 = vld [vmem:[%s7074_s5 + $0x334] ss:$8 sps:$4 sm:$0xff]  }
 0x38e   :  { %4210 = vmatpush1.bf16.msra.mxu1 %v5727_v62  ;;  %v6151_v62 = vld [vmem:[%s7074_s5 + $0x320] ss:$8 sps:$4 sm:$0xff]  }
 0x38f   :  { %5141 = vmatprep.mubr.bf16.mxu0 %v4253_v15  ;;  %4211 = vmatprep.subr.bf16.mxu1 %v5736_v4  ;;  %v6154_v4 = vld [vmem:[%s7074_s5 + $0x330] ss:$8 sps:$4 sm:$0xff]  }
 0x390   :  { %5114 = vmatpush1.bf16.msra.mxu0 %v6101_v1  ;;  %v6159_v1 = vld [vmem:[%s7074_s5 + $0x344] ss:$8 sps:$4 sm:$0xff]   ;;  %v6160_v15 = vld [vmem:[%s7074_s5 + $0x350] ss:$8 sps:$4 sm:$0xff]  }
 0x391   :  { %5115 = vmatprep.subr.bf16.mxu0 %v6106_v22  ;;  %v6165_v22 = vld [vmem:[%s7074_s5 + $0x364] ss:$8 sps:$4 sm:$0xff]  }
 0x392   :  { %4212 = vmatpush1.bf16.msra.mxu1 %v5735_v16  ;;  %v6163_v16 = vld [vmem:[%s7074_s5 + $0x360] ss:$8 sps:$4 sm:$0xff]  }
 0x393   :  { %4213 = vmatprep.subr.bf16.mxu1 %v5744_v9  ;;  %v6168_v9 = vld [vmem:[%s7074_s5 + $0x374] ss:$8 sps:$4 sm:$0xff]  }
 0x394   :  { %5116 = vmatpush1.bf16.msra.mxu0 %v6104_v13  ;;  %v6166_v13 = vld [vmem:[%s7074_s5 + $0x370] ss:$8 sps:$4 sm:$0xff]  }
 0x395   :  { %5117 = vmatprep.subr.bf16.mxu0 %v6109_v19  ;;  %v6174_v19 = vld [vmem:[%s7074_s5 + $0x394] ss:$8 sps:$4 sm:$0xff]  }
 0x396   :  { %4214 = vmatpush1.bf16.msra.mxu1 %v5743_v20  ;;  %v6172_v20 = vld [vmem:[%s7074_s5 + $0x390] ss:$8 sps:$4 sm:$0xff]  }
 0x397   :  { %4215 = vmatprep.subr.bf16.mxu1 %v5752_v7  ;;  %v6177_v7 = vld [vmem:[%s7074_s5 + $0x3a4] ss:$8 sps:$4 sm:$0xff]  }
 0x398   :  { %5118 = vmatpush1.bf16.msra.mxu0 %v6107_v26  ;;  %v6175_v26 = vld [vmem:[%s7074_s5 + $0x3a0] ss:$8 sps:$4 sm:$0xff]  }
 0x399   :  { %5119 = vmatprep.subr.bf16.mxu0 %v6112_v29  ;;  %v6183_v29 = vld [vmem:[%s7074_s5 + $0x3c4] ss:$8 sps:$4 sm:$0xff]  }
 0x39a   :  { %4216 = vmatpush1.bf16.msra.mxu1 %v5751_v31  ;;  %v6181_v31 = vld [vmem:[%s7074_s5 + $0x3c0] ss:$8 sps:$4 sm:$0xff]  }
 0x39b   :  { %4217 = vmatprep.subr.bf16.mxu1 %v5760_v34  ;;  %v6186_v34 = vld [vmem:[%s7074_s5 + $0x3d4] ss:$8 sps:$4 sm:$0xff]  }
 0x39c   :  { %5120 = vmatpush1.bf16.msra.mxu0 %v6110_v35  ;;  %v6184_v35 = vld [vmem:[%s7074_s5 + $0x3d0] ss:$8 sps:$4 sm:$0xff]  }
 0x39d   :  { %5121 = vmatprep.subr.bf16.mxu0 %v6115_v59  ;;  %v5902_v59 = vcombine.high %v4380_v36, %v4380_v36 }
 0x39e   :  { %4218 = vmatpush1.bf16.msra.mxu1 %v5759_v0  ;;  %v5901_v0 = vcombine.low %v4380_v36, %v4380_v36 }
 0x39f   :  { %5775 = vmatprep.subr.msk.bf16.mxu1 %vm3551_vm4, %v5768_v2 }
 0x3a0   :  { %5122 = vmatpush1.bf16.msra.mxu0 %v6113_v39  ;;  %v5022_v2 = vsel %vm3551_vm4, %v5901_v0, 0  ;;  %v1038_v39 = vrot.slane %v6853_v23, %v175_v40  ;;  %v4390_v40 = vrot.slane %v4381_v54, %v6552_v8 }
 0x3a1   :  { %5123 = vmatprep.subr.bf16.mxu0 %v6120_v38 }
 0x3a2   :  { %4220 = vmatpush1.bf16.msra.mxu1 %v3571_v41 }
 0x3a4   :  { %5124 = vmatpush1.bf16.msra.mxu0 %v6118_v42 }
 0x3a5   :  { %4224 = vmatmul.mubr.bf16.vlgmr.msra.gmra.mrb[16].mxu1 %v6616_v51  ;;  %5125 = vmatprep.subr.bf16.mxu0 %v6123_v43  ;;  %v6127_v51 = vld [vmem:[%s7074_s5 + $0x2a0] ss:$8 sps:$4 sm:$0xff]  }
 0x3a8   :  { %5126 = vmatpush1.bf16.msra.mxu0 %v6121_v10 }
 0x3a9   :  { %5127 = vmatprep.subr.bf16.mxu0 %v6126_v44 }
 0x3ac   :  { %5128 = vmatpush1.bf16.msra.mxu0 %v6124_v45 }
 0x3ad   :  { %5129 = vmatprep.subr.bf16.mxu0 %v6129_v47 }
 0x3b0   :  { %5130 = vmatpush1.bf16.msra.mxu0 %v6127_v51 }
 0x3b1   :  { %5131 = vmatprep.subr.bf16.mxu0 %v6132_v48 }
 0x3b4   :  { %5132 = vmatpush1.bf16.msra.mxu0 %v6130_v49 }
 0x3b5   :  { %5133 = vmatprep.subr.bf16.mxu0 %v6135_v50 }
 0x3b8   :  { %5134 = vmatpush1.bf16.msra.mxu0 %v6133_v53 }
 0x3b9   :  { %5135 = vmatprep.subr.bf16.mxu0 %v6138_v55  ;;  %v5195_v55 = vld [vmem:[#allocation13] sm:$0x3] }
 0x3ba   :  { %v5200_v12 = vrot.slane %v5195_v55, %v6547_v6 }
 0x3bc   :  { %5136 = vmatpush1.bf16.msra.mxu0 %v6136_v18 }
 0x3bd   :  { %5137 = vmatprep.subr.bf16.mxu0 %v6141_v24 }
 0x3c0   :  { %5138 = vmatpush1.bf16.msra.mxu0 %v6139_v21 }
 0x3c1   :  { %5139 = vmatprep.subr.bf16.mxu0 %v6144_v30  ;;  %v5204_v30 = vrot.slane %v5195_v55, %v6552_v8 }
 0x3c4   :  { %5140 = vmatpush1.bf16.msra.mxu0 %v6142_v25 }
 0x3c5   :  { %5150 = vmatprep.subr.bf16.mxu0 %v6147_v57 }
 0x3c7   :  { %5142 = vmatmul.mubr.bf16.vlgmr.msra.gmra.mrb[16].mxu0 %v4252_v32 }
 0x3c8   :  { %5151 = vmatpush1.bf16.msra.mxu0 %v6145_v58 }
 0x3c9   :  { %5152 = vmatprep.subr.bf16.mxu0 %v6150_v46 }
 0x3cc   :  { %5153 = vmatpush1.bf16.msra.mxu0 %v6148_v60 }
 0x3cd   :  { %5154 = vmatprep.subr.bf16.mxu0 %v6153_v61  ;;  %v5905_v61 = vld [vmem:[#allocation2] ss:$0 sm:$0xff] }
 0x3d0   :  { %5155 = vmatpush1.bf16.msra.mxu0 %v6151_v62 }
 0x3d1   :  { %5156 = vmatprep.subr.bf16.mxu0 %v6156_v3 }
 0x3d4   :  { %5157 = vmatpush1.bf16.msra.mxu0 %v6154_v4 }
 0x3d5   :  { %5158 = vmatprep.subr.bf16.mxu0 %v6159_v1 }
 0x3d8   :  { %5159 = vmatpush1.bf16.msra.mxu0 %v6157_v11 }
 0x3d9   :  { %5160 = vmatprep.subr.bf16.mxu0 %v6162_v14 }
 0x3dc   :  { %5161 = vmatpush1.bf16.msra.mxu0 %v6160_v15 }
 0x3dd   :  { %5162 = vmatprep.subr.bf16.mxu0 %v6165_v22 }
 0x3e0   :  { %5163 = vmatpush1.bf16.msra.mxu0 %v6163_v16 }
 0x3e1   :  { %5164 = vmatprep.subr.bf16.mxu0 %v6168_v9 }
 0x3e4   :  { %5165 = vmatpush1.bf16.msra.mxu0 %v6166_v13 }
 0x3e5   :  { %5166 = vmatprep.subr.bf16.mxu0 %v6171_v17 }
 0x3e8   :  { %5167 = vmatpush1.bf16.msra.mxu0 %v6169_v33 }
 0x3e9   :  { %5168 = vmatprep.subr.bf16.mxu0 %v6174_v19 }
 0x3ec   :  { %5169 = vmatpush1.bf16.msra.mxu0 %v6172_v20 }
 0x3ed   :  { %5170 = vmatprep.subr.bf16.mxu0 %v6177_v7 }
 0x3f0   :  { %5171 = vmatpush1.bf16.msra.mxu0 %v6175_v26 }
 0x3f1   :  { %5172 = vmatprep.subr.bf16.mxu0 %v6180_v27 }
 0x3f4   :  { %5173 = vmatpush1.bf16.msra.mxu0 %v6178_v28 }
 0x3f5   :  { %5174 = vmatprep.subr.bf16.mxu0 %v6183_v29 }
 0x3f8   :  { %5175 = vmatpush1.bf16.msra.mxu0 %v6181_v31 }
 0x3f9   :  { %5176 = vmatprep.subr.bf16.mxu0 %v6186_v34 }
 0x3fc   :  { %5177 = vmatpush1.bf16.msra.mxu0 %v6184_v35 }
 0x3fd   :  { %5903 = vmatprep.subr.msk.bf16.mxu0 %vm3551_vm4, %v5902_v59 }
 0x400   :  { %5179 = vmatpush1.bf16.msra.mxu0 %v5022_v2 }
 0x478   :  { %v4225_v38 = vpop.f32.mrb[16].mxu1 }
 0x479   :  { %v5914_v41 = vadd.f32 %v4225_v38, %v1034_v37  ;;  %v4227_v42 = vpop.f32.mrb[17].mxu1 }
 0x47a   :  { %v5915_v43 = vadd.f32 %v4227_v42, %v1038_v39  ;;  %v4229_v10 = vpop.f32.mrb[18].mxu1 }
 0x47b   :  { %v4238_v44 = vpack.c.bf16 %v5914_v41, %v5914_v41  ;;  %v4230_v45 = vpop.f32.mrb[19].mxu1 }
 0x47c   :  { %v4239_v47 = vpack.c.bf16 %v5915_v43, %v5915_v43 }
 0x47d   :  { %v4246_v51 = vmul.bf16 1009007652, %v4238_v44 }
 0x47e   :  { %v4247_v48 = vmul.bf16 1009007652, %v4239_v47 }
 0x47f   :  { %v4254_v50 = vmax.bf16 %v4246_v51, %v4238_v44 }
 0x480   :  { %v4255_v49 = vmax.bf16 %v4247_v48, %v4239_v47 }
 0x482   :  { %5904 = vmatprep.mubr.msk.bf16.mxu0 %vm3547_vm3, %v4255_v49 }
 0x483   :  { %5183 = vmatmul.mubr.bf16.vlgmr.msra.gmra.mrb[16].mxu0 %v4254_v50 }
 0x556   :  { %v5184_v23 = vpop.f32.mrb[16].mxu0 }
 0x557   :  { %v5916_v53 = vadd.f32 %v5184_v23, %v4386_v5  ;;  %v5186_v52 = vpop.f32.mrb[17].mxu0 }
 0x558   :  { %v5917_v18 = vadd.f32 %v5186_v52, %v4390_v40  ;;  %v5188_v56 = vpop.f32.mrb[18].mxu0 }
 0x559   :  { %v5191_v24 = vmul.f32 0.01, %v5916_v53  ;;  %v5189_v21 = vpop.f32.mrb[19].mxu0 }
 0x55a   :  { %v5192_v63 = vmul.f32 0.01, %v5917_v18 }
 0x55b   :  { %v5193_v25 = vmax.f32 %v5916_v53, %v5191_v24 }
 0x55c   :  { %v5194_v57 = vmax.f32 %v5917_v18, %v5192_v63 }
 0x55d   :  { %v5207_v32 = vmul.f32 %v5200_v12, %v5193_v25 }
 0x55e   :  { %v5208_v58 = vmul.f32 %v5204_v30, %v5194_v57 }
 0x560   :  { %v5210_v46 = vsel %vm5209_vm5, %v5208_v58, 0.0 }
 0x561   :  { %v5211_v60 = vadd.f32 %v5210_v46, %v5207_v32 }
 0x563   :  { %5212 = vadd.xlane.f32.xlu0 %v5211_v60 }
 0x5f0   :  { %v5213_v62 = vpop.xlane.xlu0 %5212 }
 0x5f1   :  { %v5221_v3 = vadd.f32 %v5905_v61, %v5213_v62 }
 0x5f3   :  { %v5222_v4 = vsub.f32 0.0, %v5221_v3 }
 0x5f5   :  { %v5223_v1 = vmul.f32 1.442695, %v5222_v4 }
 0x5f7   :  { %6189 = vpow2.f32 %v5223_v1 }
 0x601   :  { %v6190_v11 = vpop.eup %6189 }
 0x602   :  { %v5225_v14 = vadd.f32 1.0, %v6190_v11 }
 0x604   :  { %6191 = vrcp.f32 %v5225_v14 }
 0x60e   :  { %v6192_v8 = vpop.eup %6191 }
 0x60f   :  { %5228 = vst.msk [vmem:[%s7078_s9] sm:$0xff] %vm5227_vm6, %v6192_v8 }
 0x610   :  { %5233 = vsyncpa [#allocation4], 1 }
 0x611   :  { %5234 = vsyncpa [#allocation6], 1 }
 0x612   :  { %5235 = vsyncpa [#allocation9], 1 }
 0x613   :  { %5236 = vsyncpa [#allocation12], 1 }

</bundles_post_ra>
